<compile_context>
chip_gen: v5e
topology: v5e:2x2
jax: 0.10.0
libtpu: 0.0.40
codegen_flags: <defaults>
</compile_context>

<pallas_src>
import jax
import jax.numpy as jnp
import numpy as np
from jax.experimental import pallas as pl
from jax.experimental.pallas import tpu as pltpu

# ----------------------------- problem sizes --------------------------------
# (scaled-down but structurally identical to the PyTorch module)
B = 2              # BATCH_SIZE
S = 4              # SEQ_L (context frames per sample)
C_IN = 64          # res4 channels           (1024 in the original)
D = 128            # conv out / embed dim    (2048 in the original)
HEADS = 4          # MultiheadAttention heads
DH = D // HEADS    # head dim
KH = KW = 5        # conv kernel
SH = SW = 4        # conv stride
H_RES, W_RES = 45, 21             # res4 spatial -> conv out = (11,5) = pool window
OH = (H_RES - KH) // SH + 1       # 11
OW = (W_RES - KW) // SW + 1       # 5
P = OH * OW                       # 55 conv output positions (pooled to 1x1)
P_PAD = 64                        # positions padded (replicated rows) to sublane mult.
HW = H_RES * W_RES                # 945 flattened spatial (lane-dense fusion)
K = C_IN * KH * KW                # 1600 im2col features
K_PAD = ((K + 127) // 128) * 128  # 1664 = 13*128 zero-padded contraction
N_TOTAL = B * (1 + S)             # 10 images + context frames


def _pick_conv_grid():
    # v7x has 2 TensorCores per chip -> 2 parallel grid steps; single-TC
    # v5e/v6e prefer one big step (halves per-step overhead, doubles MXU M-fill).
    try:
        kind = jax.devices()[0].device_kind.lower()
    except Exception:
        kind = ""
    return 2 if ("v7" in kind or "7x" in kind) else 1


G = _pick_conv_grid()             # conv grid steps
GROUP = N_TOTAL // G              # images per conv grid step
assert N_TOTAL % G == 0


# ------------------------- kernel 1: conv + maxpool --------------------------
def conv_pool_kernel(p_ref, w_ref, b_ref, o_ref):
    # p_ref: (1, GROUP*P_PAD, K_PAD) bf16   w_ref: (K_PAD, D) bf16
    # b_ref: (1, D) f32                     o_ref: (1, GROUP, D) f32
    acc = jnp.dot(p_ref[0], w_ref[...],
                  preferred_element_type=jnp.float32)        # (GROUP*P_PAD, D) f32
    acc = acc + b_ref[...]                                   # + bias (f32)
    # MaxPool2d((11,5)) == max over the P positions of each image.  Rows
    # P..P_PAD-1 are replicas of real patch rows, so the max is unchanged and
    # the reduce is a clean aligned (GROUP, 64, D) sublane reduce.
    o_ref[0] = jnp.max(acc.reshape(GROUP, P_PAD, D), axis=1)  # (GROUP, D)


def conv_pool(patches_g, w_flat, bias2d):
    out = pl.pallas_call(
        conv_pool_kernel,
        out_shape=jax.ShapeDtypeStruct((G, GROUP, D), jnp.float32),
        grid=(G,),
        in_specs=[
            pl.BlockSpec((1, GROUP * P_PAD, K_PAD), lambda g: (g, 0, 0)),
            pl.BlockSpec((K_PAD, D), lambda g: (0, 0)),
            pl.BlockSpec((1, D), lambda g: (0, 0)),
        ],
        out_specs=pl.BlockSpec((1, GROUP, D), lambda g: (g, 0, 0)),
        compiler_params=pltpu.CompilerParams(dimension_semantics=("parallel",)),
    )(patches_g, w_flat, bias2d)
    return out.reshape(N_TOTAL, D)   # == torch.squeeze(squeeze(pool(conv(x))))


# --------- kernel 2: fused attention-weights + res4 feature fusion -----------
def fuse_mha_kernel(qk_ref, wqk_ref, bqk_ref, img_ref, ctx_ref, o_ref, aw_ref):
    # qk_ref : (1, 1+S, D) f32  row 0 = image feature, rows 1..S = context feats
    # wqk_ref: (D, 2D) = [WqT | WkT] f32      bqk_ref: (1, 2D) = [bq | bk] f32
    # img_ref: (1, C_IN, HW) bf16             ctx_ref: (1, S, C_IN, HW) bf16
    # o_ref  : (1, C_IN, HW) f32              aw_ref : (1, S, 1) f32
    proj = jnp.dot(qk_ref[0], wqk_ref[...],
                   preferred_element_type=jnp.float32) + bqk_ref[...]   # (1+S, 2D)
    qp = proj[0:1, :D]          # Q projection of the image     (1, D)
    kp = proj[1:1 + S, D:]      # K projection of the contexts  (S, D)
    prod = qp * kp              # (S, D)

    # per-head scores via static lane slices + lane reduce (no 4x4 MXU push)
    cols = []
    for h in range(HEADS):
        ph = prod[:, h * DH:(h + 1) * DH]                      # (S, DH)
        cols.append(jnp.sum(ph, axis=1, keepdims=True))        # (S, 1)
    scores = jnp.concatenate(cols, axis=1) * (DH ** -0.5)      # (S, HEADS)

    # softmax over the key axis, per head
    m = jnp.max(scores, axis=0, keepdims=True)
    e = jnp.exp(scores - m)
    w = e * pl.reciprocal(jnp.sum(e, axis=0, keepdims=True), approx=False)
    # torch default average_attn_weights=True -> mean over heads
    wavg = jnp.sum(w, axis=1, keepdims=True) * (1.0 / HEADS)   # (S, 1)
    aw_ref[0] = wavg

    # res4 fusion: 0.5*img + 0.5*sum_s wavg[s]*ctx[s]   (bf16 reads, f32 math)
    acc = 0.5 * img_ref[0].astype(jnp.float32)                 # (C_IN, HW)
    for s in range(S):                                         # small static loop
        ws = wavg[s:s + 1, 0:1]                                # (1, 1)
        acc = acc + (0.5 * ws) * ctx_ref[0, s].astype(jnp.float32)
    o_ref[0] = acc


def fuse_with_attention(qk_feats, wqk, bqk, img_flat, ctx_flat):
    fused, aw = pl.pallas_call(
        fuse_mha_kernel,
        out_shape=(jax.ShapeDtypeStruct((B, C_IN, HW), jnp.float32),
                   jax.ShapeDtypeStruct((B, S, 1), jnp.float32)),
        grid=(B,),
        in_specs=[
            pl.BlockSpec((1, 1 + S, D), lambda b: (b, 0, 0)),
            pl.BlockSpec((D, 2 * D), lambda b: (0, 0)),
            pl.BlockSpec((1, 2 * D), lambda b: (0, 0)),
            pl.BlockSpec((1, C_IN, HW), lambda b: (b, 0, 0)),
            pl.BlockSpec((1, S, C_IN, HW), lambda b: (b, 0, 0, 0)),
        ],
        out_specs=(pl.BlockSpec((1, C_IN, HW), lambda b: (b, 0, 0)),
                   pl.BlockSpec((1, S, 1), lambda b: (b, 0, 0))),
        compiler_params=pltpu.CompilerParams(dimension_semantics=("parallel",)),
    )(qk_feats, wqk, bqk, img_flat, ctx_flat)
    return fused, aw[:, :, 0]   # (B, C_IN, HW), (B, S)


# ------------------------------- glue ----------------------------------------
def im2col_bf16(x_bf16):
    # x: (N, C, H, W) bf16 -> patches (N, P_PAD, K_PAD) bf16 with
    # p = oh*OW + ow, feature index = (kh*KW + kw)*C + c.  Built from an NHWC
    # view; rows P..P_PAD-1 replicate real patch rows; K zero-padded to K_PAD.
    xh = x_bf16.transpose(0, 2, 3, 1)                            # (N, H, W, C)
    cols = []
    for kh in range(KH):
        for kw in range(KW):
            cols.append(xh[:, kh:kh + SH * (OH - 1) + 1:SH,
                              kw:kw + SW * (OW - 1) + 1:SW, :])   # (N, OH, OW, C)
    stacked = jnp.stack(cols, axis=3)                             # (N, OH, OW, 25, C)
    patches = stacked.reshape(x_bf16.shape[0], P, K)              # (N, P, K)
    patches = jnp.concatenate([patches, patches[:, :P_PAD - P]], axis=1)  # replicate
    patches = jnp.pad(patches, ((0, 0), (0, 0), (0, K_PAD - K)))  # K -> K_PAD
    return patches                                                # (N, P_PAD, K_PAD)


def prepare_params(params):
    """One-time packing of the module parameters (hoisted out of the forward)."""
    conv_w, conv_b, in_proj_w, in_proj_b, out_w, out_b = params
    w_flat = conv_w.transpose(2, 3, 1, 0).reshape(K, D)            # (kh,kw,c) order
    w_flat = jnp.pad(w_flat, ((0, K_PAD - K), (0, 0))).astype(jnp.bfloat16)
    bias2d = conv_b.reshape(1, D)
    wqk = jnp.concatenate([in_proj_w[:D].T, in_proj_w[D:2 * D].T], axis=1)  # (D, 2D)
    bqk = jnp.concatenate([in_proj_b[:D], in_proj_b[D:2 * D]]).reshape(1, 2 * D)
    # value == ones => Vp = ones @ Wv.T + bv is identical for every (b, s); each
    # head's softmax weights sum to 1, so attn == Vp and out-projection is a
    # batch-independent constant (valid for dropout=0, no masks,
    # average_attn_weights default).
    vp = jnp.sum(in_proj_w[2 * D:], axis=1) + in_proj_b[2 * D:]    # (D,)
    attn_out_const = vp @ out_w.T + out_b                          # (D,)
    return w_flat, bias2d, wqk, bqk, attn_out_const


@jax.jit
def attention_rcnn_feature_path(res4, prepped):
    """Everything AttentionRCNN adds on top of the stock GeneralizedRCNN."""
    w_flat, bias2d, wqk, bqk, attn_out_const = prepped

    # --- conv + pool + squeeze -> features_tensor (N_TOTAL, D) ---
    res4_bf = res4.astype(jnp.bfloat16)                           # cast BEFORE im2col
    patches = im2col_bf16(res4_bf).reshape(G, GROUP * P_PAD, K_PAD)
    feats = conv_pool(patches, w_flat, bias2d)                    # (N_TOTAL, D) f32

    # --- per-batch [image ; contexts] feature rows for the fused MHA+fusion ---
    qk_feats = jnp.concatenate([feats[:B, None, :],
                                feats[B:].reshape(B, S, D)], axis=1)   # (B, 1+S, D)

    # --- fused attention-weights + res4 fusion kernel (bf16 slab reads) ---
    img_flat = res4_bf[:B].reshape(B, C_IN, HW)
    ctx_flat = res4_bf[B:].reshape(B, S, C_IN, HW)
    fused_flat, attn_weights = fuse_with_attention(qk_feats, wqk, bqk,
                                                   img_flat, ctx_flat)
    fused_res4 = fused_flat.reshape(B, C_IN, H_RES, W_RES)

    # batch-independent attn_output (value == ones identity)
    attn_output = jnp.broadcast_to(attn_out_const[None, None, :], (B, 1, D))

    # TODO(synk): proposal_generator / roi_heads / loss dict are not translatable here.
    return feats, attn_output, attn_weights, fused_res4


# --------------------------- pure-JAX reference -------------------------------
def reference(res4, params):
    conv_w, conv_b, in_proj_w, in_proj_b, out_w, out_b = params
    # conv in bf16 with f32 accumulation to match the kernel's MXU precision
    conv_out = jax.lax.conv_general_dilated(
        res4.astype(jnp.bfloat16), conv_w.astype(jnp.bfloat16), (SH, SW), "VALID",
        dimension_numbers=("NCHW", "OIHW", "NCHW"),
        preferred_element_type=jnp.float32) + conv_b[None, :, None, None]
    feats = jnp.max(conv_out, axis=(2, 3))            # MaxPool over full (11,5) window
    img_f, ctx_f = feats[:B], feats[B:].reshape(B, S, D)
    q = img_f[:, None, :]
    Wq, Wk, Wv = in_proj_w[:D], in_proj_w[D:2 * D], in_proj_w[2 * D:]
    bq, bk, bv = in_proj_b[:D], in_proj_b[D:2 * D], in_proj_b[2 * D:]
    Q = q @ Wq.T + bq
    Kp = ctx_f @ Wk.T + bk
    Vp = jnp.ones((B, S, D)) @ Wv.T + bv
    Qh = Q.reshape(B, 1, HEADS, DH).transpose(0, 2, 1, 3)
    Kh = Kp.reshape(B, S, HEADS, DH).transpose(0, 2, 1, 3)
    Vh = Vp.reshape(B, S, HEADS, DH).transpose(0, 2, 1, 3)
    scores = jnp.einsum("bhqd,bhkd->bhqk", Qh, Kh) / np.sqrt(DH)
    w = jax.nn.softmax(scores, axis=-1)
    attn = jnp.einsum("bhqk,bhkd->bhqd", w, Vh).transpose(0, 2, 1, 3).reshape(B, 1, D)
    attn_out = attn @ out_w.T + out_b
    w_avg = w.mean(axis=1)[:, 0, :]
    fused = 0.5 * res4[:B] + 0.5 * jnp.einsum(
        "bs,bschw->bchw", w_avg, res4[B:].reshape(B, S, C_IN, H_RES, W_RES))
    return feats, attn_out, w_avg, fused


# --------------------------------- main ---------------------------------------
if __name__ == "__main__":
    key = jax.random.PRNGKey(0)
    k_x, k_cw, k_cb, k_iw, k_ib, k_ow, k_ob = jax.random.split(key, 7)

    res4 = jax.random.normal(k_x, (N_TOTAL, C_IN, H_RES, W_RES), jnp.float32)

    params = (
        0.05 * jax.random.normal(k_cw, (D, C_IN, KH, KW), jnp.float32),  # conv weight
        0.05 * jax.random.normal(k_cb, (D,), jnp.float32),               # conv bias
        0.05 * jax.random.normal(k_iw, (3 * D, D), jnp.float32),         # MHA in_proj_weight
        0.05 * jax.random.normal(k_ib, (3 * D,), jnp.float32),           # MHA in_proj_bias
        0.05 * jax.random.normal(k_ow, (D, D), jnp.float32),             # MHA out_proj weight
        0.05 * jax.random.normal(k_ob, (D,), jnp.float32),               # MHA out_proj bias
    )

    prepped = prepare_params(params)
    feats, attn_out, attn_w, fused = attention_rcnn_feature_path(res4, prepped)
    jax.block_until_ready((feats, attn_out, attn_w, fused))

    feats_r, attn_out_r, attn_w_r, fused_r = reference(res4, params)
    np.testing.assert_allclose(np.asarray(feats), np.asarray(feats_r),
                               atol=1e-2, rtol=1e-2)
    np.testing.assert_allclose(np.asarray(attn_out), np.asarray(attn_out_r),
                               atol=1e-2, rtol=1e-2)
    np.testing.assert_allclose(np.asarray(attn_w), np.asarray(attn_w_r),
                               atol=1e-3, rtol=1e-3)
    # fusion kernel reads bf16 res4 slabs (review recommendation); reference stays f32
    np.testing.assert_allclose(np.asarray(fused), np.asarray(fused_r),
                               atol=2e-2, rtol=1e-2)

    print("KERNEL_OK")
</pallas_src>

<mosaic_0001>
module attributes {stable_mosaic.version = 11 : i64} {
  func.func @conv_pool_kernel(%arg0: i32, %arg1: memref<1x640x1664xbf16, #tpu.memory_space<vmem>>, %arg2: memref<1664x128xbf16, #tpu.memory_space<vmem>>, %arg3: memref<1x128xf32, #tpu.memory_space<vmem>>, %arg4: memref<1x10x128xf32, #tpu.memory_space<vmem>>) attributes {dimension_semantics = [#tpu.dimension_semantics<parallel>], iteration_bounds = array<i64: 1>, scalar_prefetch = 0 : i64, scratch_operands = 0 : i64, tpu.core_type = #tpu.core_type<tc>, window_params = [{transform_indices = @transform_0, window_bounds = array<i64: 1, 640, 1664>}, {pipeline_mode = #tpu.pipeline_mode<synchronous>, transform_indices = @transform_1, window_bounds = array<i64: 1664, 128>}, {pipeline_mode = #tpu.pipeline_mode<synchronous>, transform_indices = @transform_2, window_bounds = array<i64: 1, 128>}, {transform_indices = @transform_3, window_bounds = array<i64: 1, 10, 128>}]} {
    %c0 = arith.constant 0 : index
    %c0_0 = arith.constant 0 : index
    %c0_1 = arith.constant 0 : index
    %0 = vector.load %arg1[%c0, %c0_0, %c0_1] : memref<1x640x1664xbf16, #tpu.memory_space<vmem>>, vector<1x640x1664xbf16>
    %1 = vector.shape_cast %0 : vector<1x640x1664xbf16> to vector<640x1664xbf16>
    %c0_2 = arith.constant 0 : index
    %c0_3 = arith.constant 0 : index
    %2 = vector.load %arg2[%c0_2, %c0_3] : memref<1664x128xbf16, #tpu.memory_space<vmem>>, vector<1664x128xbf16>
    %cst = arith.constant dense<0.000000e+00> : vector<640x128xf32>
    %3 = tpu.matmul %1, %2, %cst {dimension_numbers = #tpu.dot_dimension_numbers<[1], [0], [0], [1], [0, 0, 1, 1], [], []>} : vector<640x1664xbf16>, vector<1664x128xbf16>, vector<640x128xf32> -> vector<640x128xf32>
    %c0_4 = arith.constant 0 : index
    %c0_5 = arith.constant 0 : index
    %4 = vector.load %arg3[%c0_4, %c0_5] : memref<1x128xf32, #tpu.memory_space<vmem>>, vector<1x128xf32>
    %5 = vector.broadcast %4 : vector<1x128xf32> to vector<640x128xf32>
    %6 = arith.addf %3, %5 : vector<640x128xf32>
    %7 = vector.shape_cast %6 : vector<640x128xf32> to vector<10x64x128xf32>
    %cst_6 = arith.constant dense<0xFF800000> : vector<10x128xf32>
    %8 = vector.multi_reduction <maximumf>, %7, %cst_6 [1] : vector<10x64x128xf32> to vector<10x128xf32>
    %c0_7 = arith.constant 0 : index
    %c0_8 = arith.constant 0 : index
    %c0_9 = arith.constant 0 : index
    %9 = vector.load %arg4[%c0_7, %c0_8, %c0_9] : memref<1x10x128xf32, #tpu.memory_space<vmem>>, vector<1x10x128xf32>
    %10 = vector.shape_cast %9 : vector<1x10x128xf32> to vector<10x128xf32>
    %11 = vector.shape_cast %8 : vector<10x128xf32> to vector<1x10x128xf32>
    tpu.vector_store %arg4[%c0_7, %c0_8, %c0_9], %11 {strides = array<i32>} : memref<1x10x128xf32, #tpu.memory_space<vmem>>, vector<1x10x128xf32>,
    return
  }
  func.func @transform_0(%arg0: i32) -> (i32, i32, i32) {
    %c0_i32 = arith.constant 0 : i32
    %c0_i32_0 = arith.constant 0 : i32
    %c0_i32_1 = arith.constant 0 : i32
    return %arg0, %c0_i32, %c0_i32_0 : i32, i32, i32
  }
  func.func @transform_1(%arg0: i32) -> (i32, i32) {
    %c0_i32 = arith.constant 0 : i32
    %c0_i32_0 = arith.constant 0 : i32
    %c0_i32_1 = arith.constant 0 : i32
    return %c0_i32, %c0_i32_0 : i32, i32
  }
  func.func @transform_2(%arg0: i32) -> (i32, i32) {
    %c0_i32 = arith.constant 0 : i32
    %c0_i32_0 = arith.constant 0 : i32
    %c0_i32_1 = arith.constant 0 : i32
    return %c0_i32, %c0_i32_0 : i32, i32
  }
  func.func @transform_3(%arg0: i32) -> (i32, i32, i32) {
    %c0_i32 = arith.constant 0 : i32
    %c0_i32_0 = arith.constant 0 : i32
    %c0_i32_1 = arith.constant 0 : i32
    return %arg0, %c0_i32, %c0_i32_0 : i32, i32, i32
  }
}

module attributes {stable_mosaic.version = 11 : i64} {
  func.func @fuse_mha_kernel(%arg0: i32, %arg1: memref<1x5x128xf32, #tpu.memory_space<vmem>>, %arg2: memref<128x256xf32, #tpu.memory_space<vmem>>, %arg3: memref<1x256xf32, #tpu.memory_space<vmem>>, %arg4: memref<1x64x945xbf16, #tpu.memory_space<vmem>>, %arg5: memref<1x4x64x945xbf16, #tpu.memory_space<vmem>>, %arg6: memref<1x64x945xf32, #tpu.memory_space<vmem>>, %arg7: memref<1x4x1xf32, #tpu.memory_space<vmem>>) attributes {dimension_semantics = [#tpu.dimension_semantics<parallel>], iteration_bounds = array<i64: 2>, scalar_prefetch = 0 : i64, scratch_operands = 0 : i64, tpu.core_type = #tpu.core_type<tc>, window_params = [{transform_indices = @transform_0, window_bounds = array<i64: 1, 5, 128>}, {pipeline_mode = #tpu.pipeline_mode<synchronous>, transform_indices = @transform_1, window_bounds = array<i64: 128, 256>}, {pipeline_mode = #tpu.pipeline_mode<synchronous>, transform_indices = @transform_2, window_bounds = array<i64: 1, 256>}, {transform_indices = @transform_3, window_bounds = array<i64: 1, 64, 945>}, {transform_indices = @transform_4, window_bounds = array<i64: 1, 4, 64, 945>}, {transform_indices = @transform_5, window_bounds = array<i64: 1, 64, 945>}, {transform_indices = @transform_6, window_bounds = array<i64: 1, 4, 1>}]} {
    %c0 = arith.constant 0 : index
    %c0_0 = arith.constant 0 : index
    %c0_1 = arith.constant 0 : index
    %0 = vector.load %arg1[%c0, %c0_0, %c0_1] : memref<1x5x128xf32, #tpu.memory_space<vmem>>, vector<1x5x128xf32>
    %1 = vector.shape_cast %0 : vector<1x5x128xf32> to vector<5x128xf32>
    %c0_2 = arith.constant 0 : index
    %c0_3 = arith.constant 0 : index
    %2 = vector.load %arg2[%c0_2, %c0_3] : memref<128x256xf32, #tpu.memory_space<vmem>>, vector<128x256xf32>
    %cst = arith.constant dense<0.000000e+00> : vector<5x256xf32>
    %3 = tpu.matmul %1, %2, %cst {dimension_numbers = #tpu.dot_dimension_numbers<[1], [0], [0], [1], [0, 0, 1, 1], [], []>} : vector<5x128xf32>, vector<128x256xf32>, vector<5x256xf32> -> vector<5x256xf32>
    %c0_4 = arith.constant 0 : index
    %c0_5 = arith.constant 0 : index
    %4 = vector.load %arg3[%c0_4, %c0_5] : memref<1x256xf32, #tpu.memory_space<vmem>>, vector<1x256xf32>
    %5 = vector.broadcast %4 : vector<1x256xf32> to vector<5x256xf32>
    %6 = arith.addf %3, %5 : vector<5x256xf32>
    %7 = vector.extract_strided_slice %6 {offsets = [0, 0], sizes = [1, 128], strides = [1, 1]} : vector<5x256xf32> to vector<1x128xf32>
    %8 = vector.extract_strided_slice %6 {offsets = [1, 128], sizes = [4, 128], strides = [1, 1]} : vector<5x256xf32> to vector<4x128xf32>
    %9 = vector.broadcast %7 : vector<1x128xf32> to vector<4x128xf32>
    %10 = arith.mulf %9, %8 : vector<4x128xf32>
    %11 = vector.extract_strided_slice %10 {offsets = [0, 0], sizes = [4, 32], strides = [1, 1]} : vector<4x128xf32> to vector<4x32xf32>
    %cst_6 = arith.constant dense<0.000000e+00> : vector<4xf32>
    %12 = vector.multi_reduction <add>, %11, %cst_6 [1] : vector<4x32xf32> to vector<4xf32>
    %13 = vector.shape_cast %12 : vector<4xf32> to vector<4x1xf32>
    %14 = vector.extract_strided_slice %10 {offsets = [0, 32], sizes = [4, 32], strides = [1, 1]} : vector<4x128xf32> to vector<4x32xf32>
    %cst_7 = arith.constant dense<0.000000e+00> : vector<4xf32>
    %15 = vector.multi_reduction <add>, %14, %cst_7 [1] : vector<4x32xf32> to vector<4xf32>
    %16 = vector.shape_cast %15 : vector<4xf32> to vector<4x1xf32>
    %17 = vector.extract_strided_slice %10 {offsets = [0, 64], sizes = [4, 32], strides = [1, 1]} : vector<4x128xf32> to vector<4x32xf32>
    %cst_8 = arith.constant dense<0.000000e+00> : vector<4xf32>
    %18 = vector.multi_reduction <add>, %17, %cst_8 [1] : vector<4x32xf32> to vector<4xf32>
    %19 = vector.shape_cast %18 : vector<4xf32> to vector<4x1xf32>
    %20 = vector.extract_strided_slice %10 {offsets = [0, 96], sizes = [4, 32], strides = [1, 1]} : vector<4x128xf32> to vector<4x32xf32>
    %cst_9 = arith.constant dense<0.000000e+00> : vector<4xf32>
    %21 = vector.multi_reduction <add>, %20, %cst_9 [1] : vector<4x32xf32> to vector<4xf32>
    %22 = vector.shape_cast %21 : vector<4xf32> to vector<4x1xf32>
    %23 = tpu.concatenate %13, %16, %19, %22 in 1 : vector<4x1xf32>, vector<4x1xf32>, vector<4x1xf32>, vector<4x1xf32> -> vector<4x4xf32>
    %cst_10 = arith.constant 0.176776692 : f32
    %24 = vector.broadcast %cst_10 : f32 to vector<4x4xf32>
    %25 = arith.mulf %23, %24 : vector<4x4xf32>
    %cst_11 = arith.constant dense<0xFF800000> : vector<4xf32>
    %26 = vector.multi_reduction <maximumf>, %25, %cst_11 [0] : vector<4x4xf32> to vector<4xf32>
    %27 = vector.shape_cast %26 : vector<4xf32> to vector<1x4xf32>
    %28 = vector.broadcast %27 : vector<1x4xf32> to vector<4x4xf32>
    %29 = arith.subf %25, %28 : vector<4x4xf32>
    %30 = math.exp %29 : vector<4x4xf32>
    %cst_12 = arith.constant dense<0.000000e+00> : vector<4xf32>
    %31 = vector.multi_reduction <add>, %30, %cst_12 [0] : vector<4x4xf32> to vector<4xf32>
    %32 = vector.shape_cast %31 : vector<4xf32> to vector<1x4xf32>
    %33 = tpu.reciprocal %32 : vector<1x4xf32> -> vector<1x4xf32>
    %34 = vector.broadcast %33 : vector<1x4xf32> to vector<4x4xf32>
    %35 = arith.mulf %30, %34 : vector<4x4xf32>
    %cst_13 = arith.constant dense<0.000000e+00> : vector<4xf32>
    %36 = vector.multi_reduction <add>, %35, %cst_13 [1] : vector<4x4xf32> to vector<4xf32>
    %37 = vector.shape_cast %36 : vector<4xf32> to vector<4x1xf32>
    %cst_14 = arith.constant 2.500000e-01 : f32
    %38 = vector.broadcast %cst_14 : f32 to vector<4x1xf32>
    %39 = arith.mulf %37, %38 : vector<4x1xf32>
    %c0_15 = arith.constant 0 : index
    %c0_16 = arith.constant 0 : index
    %c0_17 = arith.constant 0 : index
    %40 = vector.load %arg7[%c0_15, %c0_16, %c0_17] : memref<1x4x1xf32, #tpu.memory_space<vmem>>, vector<1x4x1xf32>
    %41 = vector.shape_cast %40 : vector<1x4x1xf32> to vector<4x1xf32>
    %42 = vector.shape_cast %39 : vector<4x1xf32> to vector<1x4x1xf32>
    tpu.vector_store %arg7[%c0_15, %c0_16, %c0_17], %42 {strides = array<i32>} : memref<1x4x1xf32, #tpu.memory_space<vmem>>, vector<1x4x1xf32>,
    %c0_18 = arith.constant 0 : index
    %c0_19 = arith.constant 0 : index
    %c0_20 = arith.constant 0 : index
    %43 = vector.load %arg4[%c0_18, %c0_19, %c0_20] : memref<1x64x945xbf16, #tpu.memory_space<vmem>>, vector<1x64x945xbf16>
    %44 = vector.shape_cast %43 : vector<1x64x945xbf16> to vector<64x945xbf16>
    %45 = arith.extf %44 : vector<64x945xbf16> to vector<64x945xf32>
    %cst_21 = arith.constant 5.000000e-01 : f32
    %46 = vector.broadcast %cst_21 : f32 to vector<64x945xf32>
    %47 = arith.mulf %46, %45 : vector<64x945xf32>
    %48 = vector.extract_strided_slice %39 {offsets = [0, 0], sizes = [1, 1], strides = [1, 1]} : vector<4x1xf32> to vector<1x1xf32>
    %cst_22 = arith.constant 5.000000e-01 : f32
    %49 = vector.broadcast %cst_22 : f32 to vector<1x1xf32>
    %50 = arith.mulf %49, %48 : vector<1x1xf32>
    %c0_23 = arith.constant 0 : index
    %c0_24 = arith.constant 0 : index
    %c0_25 = arith.constant 0 : index
    %c0_26 = arith.constant 0 : index
    %51 = vector.load %arg5[%c0_23, %c0_24, %c0_25, %c0_26] : memref<1x4x64x945xbf16, #tpu.memory_space<vmem>>, vector<1x1x64x945xbf16>
    %52 = vector.shape_cast %51 : vector<1x1x64x945xbf16> to vector<64x945xbf16>
    %53 = arith.extf %52 : vector<64x945xbf16> to vector<64x945xf32>
    %54 = vector.broadcast %50 : vector<1x1xf32> to vector<64x945xf32>
    %55 = arith.mulf %54, %53 : vector<64x945xf32>
    %56 = arith.addf %47, %55 : vector<64x945xf32>
    %57 = vector.extract_strided_slice %39 {offsets = [1, 0], sizes = [1, 1], strides = [1, 1]} : vector<4x1xf32> to vector<1x1xf32>
    %cst_27 = arith.constant 5.000000e-01 : f32
    %58 = vector.broadcast %cst_27 : f32 to vector<1x1xf32>
    %59 = arith.mulf %58, %57 : vector<1x1xf32>
    %c0_28 = arith.constant 0 : index
    %c1 = arith.constant 1 : index
    %c0_29 = arith.constant 0 : index
    %c0_30 = arith.constant 0 : index
    %60 = vector.load %arg5[%c0_28, %c1, %c0_29, %c0_30] : memref<1x4x64x945xbf16, #tpu.memory_space<vmem>>, vector<1x1x64x945xbf16>
    %61 = vector.shape_cast %60 : vector<1x1x64x945xbf16> to vector<64x945xbf16>
    %62 = arith.extf %61 : vector<64x945xbf16> to vector<64x945xf32>
    %63 = vector.broadcast %59 : vector<1x1xf32> to vector<64x945xf32>
    %64 = arith.mulf %63, %62 : vector<64x945xf32>
    %65 = arith.addf %56, %64 : vector<64x945xf32>
    %66 = vector.extract_strided_slice %39 {offsets = [2, 0], sizes = [1, 1], strides = [1, 1]} : vector<4x1xf32> to vector<1x1xf32>
    %cst_31 = arith.constant 5.000000e-01 : f32
    %67 = vector.broadcast %cst_31 : f32 to vector<1x1xf32>
    %68 = arith.mulf %67, %66 : vector<1x1xf32>
    %c0_32 = arith.constant 0 : index
    %c2 = arith.constant 2 : index
    %c0_33 = arith.constant 0 : index
    %c0_34 = arith.constant 0 : index
    %69 = vector.load %arg5[%c0_32, %c2, %c0_33, %c0_34] : memref<1x4x64x945xbf16, #tpu.memory_space<vmem>>, vector<1x1x64x945xbf16>
    %70 = vector.shape_cast %69 : vector<1x1x64x945xbf16> to vector<64x945xbf16>
    %71 = arith.extf %70 : vector<64x945xbf16> to vector<64x945xf32>
    %72 = vector.broadcast %68 : vector<1x1xf32> to vector<64x945xf32>
    %73 = arith.mulf %72, %71 : vector<64x945xf32>
    %74 = arith.addf %65, %73 : vector<64x945xf32>
    %75 = vector.extract_strided_slice %39 {offsets = [3, 0], sizes = [1, 1], strides = [1, 1]} : vector<4x1xf32> to vector<1x1xf32>
    %cst_35 = arith.constant 5.000000e-01 : f32
    %76 = vector.broadcast %cst_35 : f32 to vector<1x1xf32>
    %77 = arith.mulf %76, %75 : vector<1x1xf32>
    %c0_36 = arith.constant 0 : index
    %c3 = arith.constant 3 : index
    %c0_37 = arith.constant 0 : index
    %c0_38 = arith.constant 0 : index
    %78 = vector.load %arg5[%c0_36, %c3, %c0_37, %c0_38] : memref<1x4x64x945xbf16, #tpu.memory_space<vmem>>, vector<1x1x64x945xbf16>
    %79 = vector.shape_cast %78 : vector<1x1x64x945xbf16> to vector<64x945xbf16>
    %80 = arith.extf %79 : vector<64x945xbf16> to vector<64x945xf32>
    %81 = vector.broadcast %77 : vector<1x1xf32> to vector<64x945xf32>
    %82 = arith.mulf %81, %80 : vector<64x945xf32>
    %83 = arith.addf %74, %82 : vector<64x945xf32>
    %c0_39 = arith.constant 0 : index
    %c0_40 = arith.constant 0 : index
    %c0_41 = arith.constant 0 : index
    %84 = vector.load %arg6[%c0_39, %c0_40, %c0_41] : memref<1x64x945xf32, #tpu.memory_space<vmem>>, vector<1x64x945xf32>
    %85 = vector.shape_cast %84 : vector<1x64x945xf32> to vector<64x945xf32>
    %86 = vector.shape_cast %83 : vector<64x945xf32> to vector<1x64x945xf32>
    tpu.vector_store %arg6[%c0_39, %c0_40, %c0_41], %86 {strides = array<i32>} : memref<1x64x945xf32, #tpu.memory_space<vmem>>, vector<1x64x945xf32>,
    return
  }
  func.func @transform_0(%arg0: i32) -> (i32, i32, i32) {
    %c0_i32 = arith.constant 0 : i32
    %c0_i32_0 = arith.constant 0 : i32
    %c0_i32_1 = arith.constant 0 : i32
    return %arg0, %c0_i32, %c0_i32_0 : i32, i32, i32
  }
  func.func @transform_1(%arg0: i32) -> (i32, i32) {
    %c0_i32 = arith.constant 0 : i32
    %c0_i32_0 = arith.constant 0 : i32
    %c0_i32_1 = arith.constant 0 : i32
    return %c0_i32, %c0_i32_0 : i32, i32
  }
  func.func @transform_2(%arg0: i32) -> (i32, i32) {
    %c0_i32 = arith.constant 0 : i32
    %c0_i32_0 = arith.constant 0 : i32
    %c0_i32_1 = arith.constant 0 : i32
    return %c0_i32, %c0_i32_0 : i32, i32
  }
  func.func @transform_3(%arg0: i32) -> (i32, i32, i32) {
    %c0_i32 = arith.constant 0 : i32
    %c0_i32_0 = arith.constant 0 : i32
    %c0_i32_1 = arith.constant 0 : i32
    return %arg0, %c0_i32, %c0_i32_0 : i32, i32, i32
  }
  func.func @transform_4(%arg0: i32) -> (i32, i32, i32, i32) {
    %c0_i32 = arith.constant 0 : i32
    %c0_i32_0 = arith.constant 0 : i32
    %c0_i32_1 = arith.constant 0 : i32
    %c0_i32_2 = arith.constant 0 : i32
    return %arg0, %c0_i32, %c0_i32_0, %c0_i32_1 : i32, i32, i32, i32
  }
  func.func @transform_5(%arg0: i32) -> (i32, i32, i32) {
    %c0_i32 = arith.constant 0 : i32
    %c0_i32_0 = arith.constant 0 : i32
    %c0_i32_1 = arith.constant 0 : i32
    return %arg0, %c0_i32, %c0_i32_0 : i32, i32, i32
  }
  func.func @transform_6(%arg0: i32) -> (i32, i32, i32) {
    %c0_i32 = arith.constant 0 : i32
    %c0_i32_0 = arith.constant 0 : i32
    %c0_i32_1 = arith.constant 0 : i32
    return %arg0, %c0_i32, %c0_i32_0 : i32, i32, i32
  }
}

</mosaic_0001>

<bundles_post_ra>
// kernel: attention_rcnn_feature_path.2
= control target key start
LH: loop header
LB: loop body
LE: loop exit
PB: predicated region body
PF: predicated region fallthrough
CT: control target
= control target key end

     0   :  { %vm6907_vm0 = vcmask 1041409   ;;  %vm6909_vm1 = vcmask 1042434   ;;  %vm6911_vm2 = vcmask 1043459   ;;  %vm6913_vm3 = vcmask 1044484   ;;  %s14378_s1 = inlined_call_operand.vmem [shape: bf16[1664,128], index: 1, kind: input, shape index: {}]   ;;  %s14379_s2 = inlined_call_operand.vmem [shape: f32[1,128], index: 2, kind: input, shape index: {}]   ;;  %s14380_s0 = inlined_call_operand.vmem [shape: bf16[1,640,1664], index: 0, kind: input, shape index: {}]   ;;  %s14381_s3 = inlined_call_operand.vmem [shape: f32[1,10,128], index: 3, kind: output, shape index: {}]  }
   0x1   :  { %v9953_v0 = vld [vmem:[%s14378_s1 + $0x38] sm:$0xff]  ;;  %v9952_v1 = vld [vmem:[%s14378_s1 + $0x30] sm:$0xff]  ;;  %v9951_v2 = vld [vmem:[%s14378_s1 + $0x28] sm:$0xff]  ;;  %vm6915_vm4 = vcmask 1045509   ;;  %vm6917_vm5 = vcmask 1046534   ;;  %vm6919_vm6 = vcmask 1047559  }
   0x2   :  { %10050 = vmatpush.bf16.msra.mxu1 %v9953_v0  ;;  %10051 = vmatpush.bf16.msra.mxu2 %v9953_v0  ;;  %v9950_v3 = vld [vmem:[%s14378_s1 + $0x20] sm:$0xff]  ;;  %v9949_v4 = vld [vmem:[%s14378_s1 + $0x18] sm:$0xff]  ;;  %v9948_v5 = vld [vmem:[%s14378_s1 + $0x10] sm:$0xff] }
   0x3   :  { %10052 = vmatpush.bf16.msra.mxu3 %v9953_v0  ;;  %4050 = vmatpush.bf16.msra.mxu0 %v9953_v0  ;;  %v9947_v6 = vld [vmem:[%s14378_s1 + $0x8] sm:$0xff]  ;;  %v9946_v7 = vld [vmem:[%s14378_s1] sm:$0xff]  ;;  %v7452_v8 = vld [vmem:[%s14380_s0 + $0x410] sm:$0xf] }
   0x4   :  { %v9562_v9 = vld [vmem:[%s14380_s0 + $0x440] sm:$0xf0]  ;;  %v7972_v10 = vld [vmem:[%s14380_s0 + $0x820] sm:$0xf]  ;;  %v9692_v11 = vld [vmem:[%s14380_s0 + $0x850] sm:$0xf0] }
   0x5   :  { %v8492_v12 = vld [vmem:[%s14380_s0 + $0xc30] sm:$0xf]  ;;  %v9822_v13 = vld [vmem:[%s14380_s0 + $0xc60] sm:$0xf0]  ;;  %v6932_v14 = vld [vmem:[%s14380_s0] sm:$0xf]  ;;  %v7453_v18 = vor.u32 %v9562_v9, %v7452_v8  ;;  %v7973_v19 = vor.u32 %v9692_v11, %v7972_v10 }
   0x6   :  { %10053 = vmatpush.bf16.msra.mxu1 %v9952_v1  ;;  %10054 = vmatpush.bf16.msra.mxu2 %v9952_v1  ;;  %v9432_v15 = vld [vmem:[%s14380_s0 + $0x30] sm:$0xf0]  ;;  %v9969_v16 = vld [vmem:[%s14378_s1 + $0xb8] sm:$0xff]  ;;  %v8493_v20 = vor.u32 %v9822_v13, %v8492_v12  ;;  %v9967_v28 = vld [vmem:[%s14378_s1 + $0xa8] sm:$0xff] }
   0x7   :  { %10055 = vmatpush.bf16.msra.mxu3 %v9952_v1  ;;  %4051 = vmatpush.bf16.msra.mxu0 %v9952_v1  ;;  %v9977_v17 = vld [vmem:[%s14378_s1 + $0xf8] sm:$0xff]  ;;  %v6933_v21 = vor.u32 %v9432_v15, %v6932_v14  ;;  %v9968_v24 = vld [vmem:[%s14378_s1 + $0xb0] sm:$0xff]  ;;  %v9975_v29 = vld [vmem:[%s14378_s1 + $0xe8] sm:$0xff] }
   0x8   :  { %v9961_v22 = vld [vmem:[%s14378_s1 + $0x78] sm:$0xff]  ;;  %v9976_v25 = vld [vmem:[%s14378_s1 + $0xf0] sm:$0xff]  ;;  %v9959_v30 = vld [vmem:[%s14378_s1 + $0x68] sm:$0xff] }
   0x9   :  { %v9985_v23 = vld [vmem:[%s14378_s1 + $0x138] sm:$0xff]  ;;  %v9960_v26 = vld [vmem:[%s14378_s1 + $0x70] sm:$0xff]  ;;  %v9575_v32 = vld [vmem:[%s14380_s0 + $0x4a8] sm:$0xf0] }
   0xa   :  { %10056 = vmatpush.bf16.msra.mxu1 %v9951_v2  ;;  %10057 = vmatpush.bf16.msra.mxu2 %v9951_v2  ;;  %v9984_v27 = vld [vmem:[%s14378_s1 + $0x130] sm:$0xff]  ;;  %v7504_v31 = vld [vmem:[%s14380_s0 + $0x478] sm:$0xf]  ;;  %v8024_v33 = vld [vmem:[%s14380_s0 + $0x888] sm:$0xf] }
   0xb   :  { %10058 = vmatpush.bf16.msra.mxu3 %v9951_v2  ;;  %4052 = vmatpush.bf16.msra.mxu0 %v9951_v2  ;;  %v9705_v34 = vld [vmem:[%s14380_s0 + $0x8b8] sm:$0xf0]  ;;  %v8544_v35 = vld [vmem:[%s14380_s0 + $0xc98] sm:$0xf]  ;;  %v9835_v36 = vld [vmem:[%s14380_s0 + $0xcc8] sm:$0xf0]  ;;  %v7505_v39 = vor.u32 %v9575_v32, %v7504_v31 }
   0xc   :  { %v6984_v37 = vld [vmem:[%s14380_s0 + $0x68] sm:$0xf]  ;;  %v9445_v38 = vld [vmem:[%s14380_s0 + $0x98] sm:$0xf0]  ;;  %v8025_v40 = vor.u32 %v9705_v34, %v8024_v33  ;;  %v8545_v41 = vor.u32 %v9835_v36, %v8544_v35  ;;  %v9966_v44 = vld [vmem:[%s14378_s1 + $0xa0] sm:$0xff] }
   0xd   :  { %v6985_v42 = vor.u32 %v9445_v38, %v6984_v37  ;;  %v9983_v43 = vld [vmem:[%s14378_s1 + $0x128] sm:$0xff]  ;;  %v9974_v45 = vld [vmem:[%s14378_s1 + $0xe0] sm:$0xff]  ;;  %v9588_v47 = vld [vmem:[%s14380_s0 + $0x510] sm:$0xf0] }
   0xe   :  { %10059 = vmatpush.bf16.msra.mxu1 %v9950_v3  ;;  %10060 = vmatpush.bf16.msra.mxu2 %v9950_v3  ;;  %v7556_v46 = vld [vmem:[%s14380_s0 + $0x4e0] sm:$0xf]  ;;  %v8076_v48 = vld [vmem:[%s14380_s0 + $0x8f0] sm:$0xf]  ;;  %v9718_v49 = vld [vmem:[%s14380_s0 + $0x920] sm:$0xf0] }
   0xf   :  { %10061 = vmatpush.bf16.msra.mxu3 %v9950_v3  ;;  %4053 = vmatpush.bf16.msra.mxu0 %v9950_v3  ;;  %v8596_v50 = vld [vmem:[%s14380_s0 + $0xd00] sm:$0xf]  ;;  %v9848_v51 = vld [vmem:[%s14380_s0 + $0xd30] sm:$0xf0]  ;;  %v7036_v52 = vld [vmem:[%s14380_s0 + $0xd0] sm:$0xf]  ;;  %v7557_v54 = vor.u32 %v9588_v47, %v7556_v46  ;;  %v8077_v55 = vor.u32 %v9718_v49, %v8076_v48 }
  0x10   :  { %v9458_v53 = vld [vmem:[%s14380_s0 + $0x100] sm:$0xf0]  ;;  %v8597_v56 = vor.u32 %v9848_v51, %v8596_v50  ;;  %v7608_v60 = vld [vmem:[%s14380_s0 + $0x548] sm:$0xf]  ;;  %v9601_v61 = vld [vmem:[%s14380_s0 + $0x578] sm:$0xf0] }
  0x11   :  { %v7037_v57 = vor.u32 %v9458_v53, %v7036_v52  ;;  %v9958_v58 = vld [vmem:[%s14378_s1 + $0x60] sm:$0xff]  ;;  %v8128_v62 = vld [vmem:[%s14380_s0 + $0x958] sm:$0xf]  ;;  %v9731_v63 = vld [vmem:[%s14380_s0 + $0x988] sm:$0xf0] }
  0x12   :  { %10062 = vmatpush.bf16.msra.mxu1 %v9949_v4  ;;  %10063 = vmatpush.bf16.msra.mxu2 %v9949_v4  ;;  %v9982_v59 = vld [vmem:[%s14378_s1 + $0x120] sm:$0xff]  ;;  %v8648_v0 = vld [vmem:[%s14380_s0 + $0xd68] sm:$0xf]  ;;  %v9861_v1 = vld [vmem:[%s14380_s0 + $0xd98] sm:$0xf0] }
  0x13   :  { %10064 = vmatpush.bf16.msra.mxu3 %v9949_v4  ;;  %4054 = vmatpush.bf16.msra.mxu0 %v9949_v4  ;;  %v7088_v2 = vld [vmem:[%s14380_s0 + $0x138] sm:$0xf]  ;;  %v9471_v3 = vld [vmem:[%s14380_s0 + $0x168] sm:$0xf0]  ;;  %v7609_v4 = vor.u32 %v9601_v61, %v7608_v60  ;;  %v7660_v12 = vld [vmem:[%s14380_s0 + $0x5b0] sm:$0xf] }
  0x14   :  { %v9965_v8 = vld [vmem:[%s14378_s1 + $0x98] sm:$0xff]  ;;  %v9614_v13 = vld [vmem:[%s14380_s0 + $0x5e0] sm:$0xf0]  ;;  %v8180_v14 = vld [vmem:[%s14380_s0 + $0x9c0] sm:$0xf] }
  0x15   :  { %v9973_v9 = vld [vmem:[%s14378_s1 + $0xd8] sm:$0xff]  ;;  %v9744_v15 = vld [vmem:[%s14380_s0 + $0x9f0] sm:$0xf0]  ;;  %v9887_v33 = vld [vmem:[%s14380_s0 + $0xe68] sm:$0xf0] }
  0x16   :  { %10065 = vmatpush.bf16.msra.mxu1 %v9948_v5  ;;  %10066 = vmatpush.bf16.msra.mxu2 %v9948_v5  ;;  %v9957_v10 = vld [vmem:[%s14378_s1 + $0x58] sm:$0xff]  ;;  %v7192_v34 = vld [vmem:[%s14380_s0 + $0x208] sm:$0xf]  ;;  %v9770_v46 = vld [vmem:[%s14380_s0 + $0xac0] sm:$0xf0] }
  0x17   :  { %10067 = vmatpush.bf16.msra.mxu3 %v9948_v5  ;;  %4055 = vmatpush.bf16.msra.mxu0 %v9948_v5  ;;  %v8129_v5 = vor.u32 %v9731_v63, %v8128_v62  ;;  %v9981_v11 = vld [vmem:[%s14378_s1 + $0x118] sm:$0xff]  ;;  %v8804_v47 = vld [vmem:[%s14380_s0 + $0xea0] sm:$0xf]  ;;  %v9900_v48 = vld [vmem:[%s14380_s0 + $0xed0] sm:$0xf0] }
  0x18   :  { %v9757_v31 = vld [vmem:[%s14380_s0 + $0xa58] sm:$0xf0]  ;;  %v8752_v32 = vld [vmem:[%s14380_s0 + $0xe38] sm:$0xf]  ;;  %v7244_v49 = vld [vmem:[%s14380_s0 + $0x270] sm:$0xf]  ;;  %v8805_v53 = vor.u32 %v9900_v48, %v8804_v47 }
  0x19   :  { %v9497_v35 = vld [vmem:[%s14380_s0 + $0x238] sm:$0xf0]  ;;  %v8753_v38 = vor.u32 %v9887_v33, %v8752_v32  ;;  %v9510_v50 = vld [vmem:[%s14380_s0 + $0x2a0] sm:$0xf0]  ;;  %v8856_v60 = vld [vmem:[%s14380_s0 + $0xf08] sm:$0xf] }
  0x1a   :  { %10068 = vmatpush.bf16.msra.mxu1 %v9947_v6  ;;  %10069 = vmatpush.bf16.msra.mxu2 %v9947_v6  ;;  %v9913_v61 = vld [vmem:[%s14380_s0 + $0xf38] sm:$0xf0]  ;;  %v7296_v62 = vld [vmem:[%s14380_s0 + $0x2d8] sm:$0xf]  ;;  %v9523_v63 = vld [vmem:[%s14380_s0 + $0x308] sm:$0xf0] }
  0x1b   :  { %10070 = vmatpush.bf16.msra.mxu3 %v9947_v6  ;;  %4056 = vmatpush.bf16.msra.mxu0 %v9947_v6  ;;  %v8649_v6 = vor.u32 %v9861_v1, %v8648_v0  ;;  %v8440_v32 = vld [vmem:[%s14380_s0 + $0xbc8] sm:$0xf]  ;;  %v9809_v33 = vld [vmem:[%s14380_s0 + $0xbf8] sm:$0xf0] }
  0x1e   :  { %10071 = vmatpush.bf16.msra.mxu1 %v9946_v7  ;;  %10072 = vmatpush.bf16.msra.mxu2 %v9946_v7 }
  0x1f   :  { %10073 = vmatpush.bf16.msra.mxu3 %v9946_v7  ;;  %4057 = vmatpush.bf16.msra.mxu0 %v9946_v7  ;;  %v7089_v7 = vor.u32 %v9471_v3, %v7088_v2  ;;  %v8857_v2 = vor.u32 %v9913_v61, %v8856_v60  ;;  %v7297_v3 = vor.u32 %v9523_v63, %v7296_v62 }
  0x21   :  { %4108 = vmatmul.bf16.vlgmr.msra.gmra.mxu1 %v7453_v18  ;;  %4158 = vmatmul.bf16.vlgmr.msra.gmra.mxu2 %v7973_v19  ;;  %v7140_v18 = vld [vmem:[%s14380_s0 + $0x1a0] sm:$0xf]  ;;  %v9484_v19 = vld [vmem:[%s14380_s0 + $0x1d0] sm:$0xf0] }
  0x22   :  { %4468 = vmatpush.bf16.msrb.mxu2 %v9969_v16  ;;  %4208 = vmatmul.bf16.vlgmr.msra.gmra.mxu3 %v8493_v20  ;;  %v8700_v16 = vld [vmem:[%s14380_s0 + $0xdd0] sm:$0xf]  ;;  %v7661_v20 = vor.u32 %v9614_v13, %v7660_v12  ;;  %v9926_v13 = vld [vmem:[%s14380_s0 + $0xfa0] sm:$0xf0] }
  0x23   :  { %4677 = vmatpush.bf16.msrb.mxu3 %v9977_v17  ;;  %4058 = vmatmul.bf16.vlgmr.msra.gmra.mxu0 %v6933_v21  ;;  %v9874_v17 = vld [vmem:[%s14380_s0 + $0xe00] sm:$0xf0]  ;;  %v8181_v21 = vor.u32 %v9744_v15, %v8180_v14  ;;  %v8908_v12 = vld [vmem:[%s14380_s0 + $0xf70] sm:$0xf]  ;;  %v7348_v14 = vld [vmem:[%s14380_s0 + $0x340] sm:$0xf] }
  0x24   :  { %4259 = vmatpush.bf16.msrb.mxu1 %v9961_v22  ;;  %4886 = vmatpush.bf16.msrb.mxu0 %v9985_v23  ;;  %v8701_v22 = vor.u32 %v9874_v17, %v8700_v16  ;;  %v7141_v23 = vor.u32 %v9484_v19, %v7140_v18  ;;  %v9536_v15 = vld [vmem:[%s14380_s0 + $0x370] sm:$0xf0]  ;;  %v8909_v19 = vor.u32 %v9926_v13, %v8908_v12  ;;  %v7000_v12 = vld [vmem:[%s14380_s0 + $0x78] sm:$0xf]  ;;  %v9447_v13 = vld [vmem:[%s14380_s0 + $0xa8] sm:$0xf0] }
  0x26   :  { %4469 = vmatpush.bf16.msrb.mxu2 %v9968_v24  ;;  %v9964_v24 = vld [vmem:[%s14378_s1 + $0x90] sm:$0xff] }
  0x27   :  { %4678 = vmatpush.bf16.msrb.mxu3 %v9976_v25  ;;  %v9972_v25 = vld [vmem:[%s14378_s1 + $0xd0] sm:$0xff] }
  0x28   :  { %4260 = vmatpush.bf16.msrb.mxu1 %v9960_v26  ;;  %4887 = vmatpush.bf16.msrb.mxu0 %v9984_v27  ;;  %v9956_v26 = vld [vmem:[%s14378_s1 + $0x50] sm:$0xff] }
  0x29   :  { %v9980_v27 = vld [vmem:[%s14378_s1 + $0x110] sm:$0xff] }
  0x2a   :  { %4470 = vmatpush.bf16.msrb.mxu2 %v9967_v28  ;;  %v7712_v28 = vld [vmem:[%s14380_s0 + $0x618] sm:$0xf] }
  0x2b   :  { %4679 = vmatpush.bf16.msrb.mxu3 %v9975_v29  ;;  %v9627_v29 = vld [vmem:[%s14380_s0 + $0x648] sm:$0xf0] }
  0x2c   :  { %4261 = vmatpush.bf16.msrb.mxu1 %v9959_v30  ;;  %4888 = vmatpush.bf16.msrb.mxu0 %v9983_v43  ;;  %v8232_v30 = vld [vmem:[%s14380_s0 + $0xa28] sm:$0xf]  ;;  %v7713_v36 = vor.u32 %v9627_v29, %v7712_v28  ;;  %v7764_v43 = vld [vmem:[%s14380_s0 + $0x680] sm:$0xf]  ;;  %v10017_v29 = vld [vmem:[%s14378_s1 + $0x238] sm:$0xff] }
  0x2d   :  { %v8233_v37 = vor.u32 %v9757_v31, %v8232_v30  ;;  %v7920_v30 = vld [vmem:[%s14380_s0 + $0x7b8] sm:$0xf]  ;;  %v9679_v31 = vld [vmem:[%s14380_s0 + $0x7e8] sm:$0xf0] }
  0x2e   :  { %4471 = vmatpush.bf16.msrb.mxu2 %v9966_v44  ;;  %v9640_v44 = vld [vmem:[%s14380_s0 + $0x6b0] sm:$0xf0] }
  0x2f   :  { %4680 = vmatpush.bf16.msrb.mxu3 %v9974_v45  ;;  %v8284_v45 = vld [vmem:[%s14380_s0 + $0xa90] sm:$0xf]  ;;  %v7765_v51 = vor.u32 %v9640_v44, %v7764_v43 }
  0x30   :  { %4262 = vmatpush.bf16.msrb.mxu1 %v9958_v58  ;;  %4889 = vmatpush.bf16.msrb.mxu0 %v9982_v59  ;;  %v8285_v52 = vor.u32 %v9770_v46, %v8284_v45  ;;  %v8336_v58 = vld [vmem:[%s14380_s0 + $0xaf8] sm:$0xf]  ;;  %v9783_v59 = vld [vmem:[%s14380_s0 + $0xb28] sm:$0xf0] }
  0x31   :  { %4113 = vmatmul.bf16.gmra.mxu1 %v7505_v39  ;;  %4163 = vmatmul.bf16.gmra.mxu2 %v8025_v40  ;;  %v7193_v39 = vor.u32 %v9497_v35, %v7192_v34  ;;  %v9963_v40 = vld [vmem:[%s14378_s1 + $0x88] sm:$0xff]  ;;  %v8337_v1 = vor.u32 %v9783_v59, %v8336_v58  ;;  %v8960_v34 = vld [vmem:[%s14380_s0 + $0xfd8] sm:$0xf] }
  0x32   :  { %4213 = vmatmul.bf16.gmra.mxu3 %v8545_v41  ;;  %4472 = vmatpush.bf16.msrb.mxu2 %v9965_v8  ;;  %v9971_v41 = vld [vmem:[%s14378_s1 + $0xc8] sm:$0xff]  ;;  %v7868_v8 = vld [vmem:[%s14380_s0 + $0x750] sm:$0xf] }
  0x33   :  { %4063 = vmatmul.bf16.gmra.mxu0 %v6985_v42  ;;  %4681 = vmatpush.bf16.msrb.mxu3 %v9973_v9  ;;  %v9955_v42 = vld [vmem:[%s14378_s1 + $0x48] sm:$0xff]  ;;  %v9666_v9 = vld [vmem:[%s14380_s0 + $0x780] sm:$0xf0] }
  0x34   :  { %4263 = vmatpush.bf16.msrb.mxu1 %v9957_v10  ;;  %4890 = vmatpush.bf16.msrb.mxu0 %v9981_v11  ;;  %v8388_v10 = vld [vmem:[%s14380_s0 + $0xb60] sm:$0xf]  ;;  %v9796_v11 = vld [vmem:[%s14380_s0 + $0xb90] sm:$0xf0]  ;;  %v7869_v16 = vor.u32 %v9666_v9, %v7868_v8  ;;  %v9939_v35 = vld [vmem:[%s14380_s0 + $0x1008] sm:$0xf0] }
  0x35   :  { %v8389_v17 = vor.u32 %v9796_v11, %v8388_v10  ;;  %v8961_v43 = vor.u32 %v9939_v35, %v8960_v34  ;;  %v6992_v8 = vld [vmem:[%s14380_s0 + $0x70] sm:$0xf]  ;;  %v9446_v9 = vld [vmem:[%s14380_s0 + $0xa0] sm:$0xf0]  ;;  %v9440_v10 = vld [vmem:[%s14380_s0 + $0x74] sm:$0xf] }
  0x36   :  { %4473 = vmatpush.bf16.msrb.mxu2 %v9964_v24  ;;  %v6994_v11 = vld [vmem:[%s14380_s0 + $0xa4] sm:$0xf0]  ;;  %v7044_v34 = vld [vmem:[%s14380_s0 + $0xd8] sm:$0xf]  ;;  %v9459_v35 = vld [vmem:[%s14380_s0 + $0x108] sm:$0xf0] }
  0x37   :  { %4682 = vmatpush.bf16.msrb.mxu3 %v9972_v25 }
  0x38   :  { %4264 = vmatpush.bf16.msrb.mxu1 %v9956_v26  ;;  %4891 = vmatpush.bf16.msrb.mxu0 %v9980_v27  ;;  %v9993_v27 = vld [vmem:[%s14378_s1 + $0x178] sm:$0xff] }
  0x3a   :  { %4474 = vmatpush.bf16.msrb.mxu2 %v9963_v40  ;;  %v7921_v40 = vor.u32 %v9679_v31, %v7920_v30 }
  0x3b   :  { %4683 = vmatpush.bf16.msrb.mxu3 %v9971_v41  ;;  %v8441_v41 = vor.u32 %v9809_v33, %v8440_v32  ;;  %v9452_v32 = vld [vmem:[%s14380_s0 + $0xd4] sm:$0xf]  ;;  %v7038_v33 = vld [vmem:[%s14380_s0 + $0x104] sm:$0xf0] }
  0x3c   :  { %4265 = vmatpush.bf16.msrb.mxu1 %v9955_v42 }
  0x41   :  { %4118 = vmatmul.bf16.gmra.mxu1 %v7557_v54  ;;  %4168 = vmatmul.bf16.gmra.mxu2 %v8077_v55  ;;  %v7245_v54 = vor.u32 %v9510_v50, %v7244_v49  ;;  %v9979_v55 = vld [vmem:[%s14378_s1 + $0x108] sm:$0xff]  ;;  %v9426_v50 = vld [vmem:[%s14380_s0 + $0x4] sm:$0xf] }
  0x42   :  { %4218 = vmatmul.bf16.gmra.mxu3 %v8597_v56  ;;  %4892 = vmatpush.bf16.msrb.mxu0 %v9979_v55  ;;  %v7816_v56 = vld [vmem:[%s14380_s0 + $0x6e8] sm:$0xf]  ;;  %v6942_v55 = vld [vmem:[%s14380_s0 + $0x3c] sm:$0xf0] }
  0x43   :  { %4068 = vmatmul.bf16.gmra.mxu0 %v7037_v57  ;;  %v9653_v57 = vld [vmem:[%s14380_s0 + $0x718] sm:$0xf0] }
  0x44   :  { %v7817_v0 = vor.u32 %v9653_v57, %v7816_v56  ;;  %v6948_v56 = vld [vmem:[%s14380_s0 + $0x10] sm:$0xf]  ;;  %v9434_v57 = vld [vmem:[%s14380_s0 + $0x40] sm:$0xf0] }
  0x51   :  { %4123 = vmatmul.bf16.gmra.mxu1 %v7609_v4  ;;  %4173 = vmatmul.bf16.gmra.mxu2 %v8129_v5  ;;  %v9962_v4 = vld [vmem:[%s14378_s1 + $0x80] sm:$0xff] }
  0x52   :  { %4223 = vmatmul.bf16.gmra.mxu3 %v8649_v6  ;;  %v9970_v5 = vld [vmem:[%s14378_s1 + $0xc0] sm:$0xff]  ;;  %4475 = vmatpush.bf16.msrb.mxu2 %v9962_v4 }
  0x53   :  { %4073 = vmatmul.bf16.gmra.mxu0 %v7089_v7  ;;  %v9954_v6 = vld [vmem:[%s14378_s1 + $0x40] sm:$0xff]  ;;  %4684 = vmatpush.bf16.msrb.mxu3 %v9970_v5 }
  0x54   :  { %4266 = vmatpush.bf16.msrb.mxu1 %v9954_v6  ;;  %v9978_v7 = vld [vmem:[%s14378_s1 + $0x100] sm:$0xff]  ;;  %v9439_v6 = vld [vmem:[%s14380_s0 + $0x6c] sm:$0xf] }
  0x55   :  { %4893 = vmatpush.bf16.msrb.mxu0 %v9978_v7  ;;  %v6986_v7 = vld [vmem:[%s14380_s0 + $0x9c] sm:$0xf0] }
  0x58   :  { %5095 = vmatpush.bf16.msra.mxu1 %v9993_v27 }
  0x59   :  { %5722 = vmatpush.bf16.msra.mxu0 %v10017_v29 }
  0x61   :  { %4128 = vmatmul.bf16.gmra.mxu1 %v7661_v20  ;;  %4178 = vmatmul.bf16.gmra.mxu2 %v8181_v21  ;;  %v7349_v20 = vor.u32 %v9536_v15, %v7348_v14 }
  0x62   :  { %4228 = vmatmul.bf16.gmra.mxu3 %v8701_v22  ;;  %v10001_v22 = vld [vmem:[%s14378_s1 + $0x1b8] sm:$0xff] }
  0x63   :  { %4078 = vmatmul.bf16.gmra.mxu0 %v7141_v23  ;;  %v10009_v23 = vld [vmem:[%s14378_s1 + $0x1f8] sm:$0xff]  ;;  %5304 = vmatpush.bf16.msra.mxu2 %v10001_v22  ;;  %v7001_v22 = vor.u32 %v9447_v13, %v7000_v12 }
  0x64   :  { %5513 = vmatpush.bf16.msra.mxu3 %v10009_v23 }
  0x71   :  { %4133 = vmatmul.bf16.gmra.mxu1 %v7713_v36  ;;  %4183 = vmatmul.bf16.gmra.mxu2 %v8233_v37  ;;  %v7400_v36 = vld [vmem:[%s14380_s0 + $0x3a8] sm:$0xf]  ;;  %v9549_v37 = vld [vmem:[%s14380_s0 + $0x3d8] sm:$0xf0] }
  0x72   :  { %4233 = vmatmul.bf16.gmra.mxu3 %v8753_v38  ;;  %v7401_v44 = vor.u32 %v9549_v37, %v7400_v36  ;;  %v9453_v36 = vld [vmem:[%s14380_s0 + $0xdc] sm:$0xf]  ;;  %v7046_v37 = vld [vmem:[%s14380_s0 + $0x10c] sm:$0xf0] }
  0x73   :  { %4083 = vmatmul.bf16.gmra.mxu0 %v7193_v39 }
  0x81   :  { %4138 = vmatmul.bf16.gmra.mxu1 %v7765_v51  ;;  %4188 = vmatmul.bf16.gmra.mxu2 %v8285_v52  ;;  %v6934_v51 = vld [vmem:[%s14380_s0 + $0x34] sm:$0xf0]  ;;  %v6940_v52 = vld [vmem:[%s14380_s0 + $0x8] sm:$0xf] }
  0x82   :  { %4238 = vmatmul.bf16.gmra.mxu3 %v8805_v53  ;;  %v9433_v53 = vld [vmem:[%s14380_s0 + $0x38] sm:$0xf0]  ;;  %v6937_v60 = vor.u32 %v9426_v50, %v6934_v51  ;;  %v7041_v50 = vor.u32 %v9452_v32, %v7038_v33  ;;  %v7045_v51 = vor.u32 %v9459_v35, %v7044_v34  ;;  %v10000_v34 = vld [vmem:[%s14378_s1 + $0x1b0] sm:$0xff] }
  0x83   :  { %4088 = vmatmul.bf16.gmra.mxu0 %v7245_v54  ;;  %v9427_v54 = vld [vmem:[%s14380_s0 + $0xc] sm:$0xf]  ;;  %v6941_v61 = vor.u32 %v9433_v53, %v6940_v52  ;;  %v7049_v53 = vor.u32 %v9453_v36, %v7046_v37  ;;  %v10008_v35 = vld [vmem:[%s14378_s1 + $0x1f0] sm:$0xff]  ;;  %5305 = vmatpush.bf16.msra.mxu2 %v10000_v34 }
  0x84   :  { %v6945_v63 = vor.u32 %v9427_v54, %v6942_v55  ;;  %5514 = vmatpush.bf16.msra.mxu3 %v10008_v35 }
  0x91   :  { %4143 = vmatmul.bf16.gmra.mxu1 %v7817_v0  ;;  %4193 = vmatmul.bf16.gmra.mxu2 %v8337_v1  ;;  %v6949_v0 = vor.u32 %v9434_v57, %v6948_v56 }
  0x92   :  { %4243 = vmatmul.bf16.gmra.mxu3 %v8857_v2 }
  0x93   :  { %4093 = vmatmul.bf16.gmra.mxu0 %v7297_v3 }
  0x9e   :  { %v10433_v18 = vpop.f32.mrf.mxu1 }
  0xa0   :  { %v10435_v21 = vpop.f32.mrf.mxu0 }
  0xa1   :  { %4148 = vmatmul.bf16.gmra.mxu1 %v7869_v16  ;;  %4198 = vmatmul.bf16.gmra.mxu2 %v8389_v17  ;;  %v6989_v16 = vor.u32 %v9439_v6, %v6986_v7  ;;  %v6993_v17 = vor.u32 %v9446_v9, %v6992_v8  ;;  %v7096_v6 = vld [vmem:[%s14380_s0 + $0x140] sm:$0xf]  ;;  %v9472_v7 = vld [vmem:[%s14380_s0 + $0x170] sm:$0xf0]  ;;  %v9466_v8 = vld [vmem:[%s14380_s0 + $0x144] sm:$0xf] }
  0xa2   :  { %4248 = vmatmul.bf16.gmra.mxu3 %v8909_v19  ;;  %v7098_v9 = vld [vmem:[%s14380_s0 + $0x174] sm:$0xf0] }
  0xa3   :  { %4098 = vmatmul.bf16.gmra.mxu0 %v7349_v20  ;;  %v6997_v20 = vor.u32 %v9440_v10, %v6994_v11  ;;  %v7104_v10 = vld [vmem:[%s14380_s0 + $0x148] sm:$0xf]  ;;  %v9473_v11 = vld [vmem:[%s14380_s0 + $0x178] sm:$0xf0] }
  0xa4   :  { %v10443_v24 = vpop.f32.mrf.mxu2  ;;  %v7105_v32 = vor.u32 %v9473_v11, %v7104_v10 }
  0xa5   :  { %v10445_v25 = vpop.f32.mrf.mxu3 }
  0xa6   :  { %14382 = vst [vmem:[#allocation2_spill] sm:$0xff] %v10445_v25  ;;  %v10447_v26 = vpop.f32.mrf.mxu1 }
  0xa8   :  { %v10452_v28 = vpop.f32.mrf.mxu0 }
  0xac   :  { %v10481_v38 = vpop.f32.mrf.mxu2 }
  0xad   :  { %14383 = vst [vmem:[#allocation3_spill] sm:$0xff] %v10481_v38  ;;  %v10483_v39 = vpop.f32.mrf.mxu3 }
  0xae   :  { %14384 = vst [vmem:[#allocation4_spill] sm:$0xff] %v10483_v39  ;;  %v10485_v42 = vpop.f32.mrf.mxu1 }
  0xb0   :  { %v10487_v45 = vpop.f32.mrf.mxu0 }
  0xb1   :  { %4153 = vmatmul.bf16.gmra.mxu1 %v7921_v40  ;;  %4203 = vmatmul.bf16.gmra.mxu2 %v8441_v41  ;;  %v7052_v40 = vld [vmem:[%s14380_s0 + $0xe0] sm:$0xf]  ;;  %v9460_v41 = vld [vmem:[%s14380_s0 + $0x110] sm:$0xf0] }
  0xb2   :  { %4253 = vmatmul.bf16.gmra.mxu3 %v8961_v43  ;;  %v7053_v54 = vor.u32 %v9460_v41, %v7052_v40  ;;  %v9992_v41 = vld [vmem:[%s14378_s1 + $0x170] sm:$0xff] }
  0xb3   :  { %4103 = vmatmul.bf16.gmra.mxu0 %v7401_v44  ;;  %5096 = vmatpush.bf16.msra.mxu1 %v9992_v41 }
  0xb4   :  { %v10489_v46 = vpop.f32.mrf.mxu2 }
  0xb5   :  { %14385 = vst [vmem:[#allocation5_spill] sm:$0xff] %v10489_v46  ;;  %v10491_v47 = vpop.f32.mrf.mxu3 }
  0xb6   :  { %14386 = vst [vmem:[#allocation6_spill] sm:$0xff] %v10491_v47  ;;  %v10493_v48 = vpop.f32.mrf.mxu1 }
  0xb8   :  { %v10495_v49 = vpop.f32.mrf.mxu0 }
  0xbc   :  { %v10521_v58 = vpop.f32.mrf.mxu2 }
  0xbd   :  { %14387 = vst [vmem:[#allocation7_spill] sm:$0xff] %v10521_v58  ;;  %v10523_v59 = vpop.f32.mrf.mxu3 }
  0xbe   :  { %14388 = vst [vmem:[#allocation8_spill] sm:$0xff] %v10523_v59  ;;  %v10525_v62 = vpop.f32.mrf.mxu1 }
  0xc0   :  { %v10527_v1 = vpop.f32.mrf.mxu0 }
  0xc1   :  { %4267 = vmatmul.bf16.vlgmr.msrb.gmra.mxu1 %v6937_v60  ;;  %4476 = vmatmul.bf16.vlgmr.msrb.gmra.mxu2 %v6941_v61 }
  0xc2   :  { %4685 = vmatmul.bf16.vlgmr.msrb.gmra.mxu3 %v6945_v63  ;;  %v9465_v63 = vld [vmem:[%s14380_s0 + $0x13c] sm:$0xf] }
  0xc3   :  { %4894 = vmatmul.bf16.vlgmr.msrb.gmra.mxu0 %v6949_v0  ;;  %v7090_v0 = vld [vmem:[%s14380_s0 + $0x16c] sm:$0xf0] }
  0xc4   :  { %v10529_v2 = vpop.f32.mrf.mxu2 }
  0xc5   :  { %14389 = vst [vmem:[#allocation9_spill] sm:$0xff] %v10529_v2  ;;  %v10531_v3 = vpop.f32.mrf.mxu3 }
  0xc6   :  { %14390 = vst [vmem:[#allocation10_spill] sm:$0xff] %v10531_v3  ;;  %v10533_v4 = vpop.f32.mrf.mxu1 }
  0xc8   :  { %v10535_v5 = vpop.f32.mrf.mxu0 }
  0xcc   :  { %v10561_v14 = vpop.f32.mrf.mxu2 }
  0xcd   :  { %14391 = vst [vmem:[#allocation11_spill] sm:$0xff] %v10561_v14  ;;  %v10563_v15 = vpop.f32.mrf.mxu3 }
  0xce   :  { %14392 = vst [vmem:[#allocation12_spill] sm:$0xff] %v10563_v15  ;;  %v10565_v19 = vpop.f32.mrf.mxu1 }
  0xd0   :  { %v10567_v23 = vpop.f32.mrf.mxu0 }
  0xd1   :  { %4272 = vmatmul.bf16.gmra.mxu1 %v6989_v16  ;;  %4481 = vmatmul.bf16.gmra.mxu2 %v6993_v17  ;;  %v7093_v16 = vor.u32 %v9465_v63, %v7090_v0  ;;  %v7097_v17 = vor.u32 %v9472_v7, %v7096_v6  ;;  %v7148_v63 = vld [vmem:[%s14380_s0 + $0x1a8] sm:$0xf]  ;;  %v9485_v0 = vld [vmem:[%s14380_s0 + $0x1d8] sm:$0xf0]  ;;  %v9479_v6 = vld [vmem:[%s14380_s0 + $0x1ac] sm:$0xf] }
  0xd2   :  { %4690 = vmatmul.bf16.gmra.mxu3 %v6997_v20  ;;  %v7150_v7 = vld [vmem:[%s14380_s0 + $0x1dc] sm:$0xf0] }
  0xd3   :  { %4899 = vmatmul.bf16.gmra.mxu0 %v7001_v22  ;;  %v7101_v22 = vor.u32 %v9466_v8, %v7098_v9  ;;  %v7156_v8 = vld [vmem:[%s14380_s0 + $0x1b0] sm:$0xf]  ;;  %v9486_v9 = vld [vmem:[%s14380_s0 + $0x1e0] sm:$0xf0] }
  0xd4   :  { %v10569_v27 = vpop.f32.mrf.mxu2  ;;  %v7157_v34 = vor.u32 %v9486_v9, %v7156_v8  ;;  %v7208_v8 = vld [vmem:[%s14380_s0 + $0x218] sm:$0xf]  ;;  %v9499_v9 = vld [vmem:[%s14380_s0 + $0x248] sm:$0xf0] }
  0xd5   :  { %14393 = vst [vmem:[#allocation13_spill] sm:$0xff] %v10569_v27  ;;  %v10571_v29 = vpop.f32.mrf.mxu3 }
  0xd6   :  { %14394 = vst [vmem:[#allocation14_spill] sm:$0xff] %v10571_v29  ;;  %v10573_v30 = vpop.f32.mrf.mxu1 }
  0xd8   :  { %v10575_v31 = vpop.f32.mrf.mxu0 }
  0xdc   :  { %v10601_v43 = vpop.f32.mrf.mxu2 }
  0xdd   :  { %14395 = vst [vmem:[#allocation15_spill] sm:$0xff] %v10601_v43  ;;  %v10603_v44 = vpop.f32.mrf.mxu3 }
  0xde   :  { %14396 = vst [vmem:[#allocation16_spill] sm:$0xff] %v10603_v44  ;;  %v10605_v52 = vpop.f32.mrf.mxu1 }
  0xe0   :  { %v10607_v55 = vpop.f32.mrf.mxu0 }
  0xe1   :  { %4277 = vmatmul.bf16.gmra.mxu1 %v7041_v50  ;;  %4486 = vmatmul.bf16.gmra.mxu2 %v7045_v51  ;;  %v10016_v51 = vld [vmem:[%s14378_s1 + $0x230] sm:$0xff] }
  0xe2   :  { %4695 = vmatmul.bf16.gmra.mxu3 %v7049_v53  ;;  %v9478_v53 = vld [vmem:[%s14380_s0 + $0x1a4] sm:$0xf]  ;;  %5723 = vmatpush.bf16.msra.mxu0 %v10016_v51 }
  0xe3   :  { %4904 = vmatmul.bf16.gmra.mxu0 %v7053_v54  ;;  %v7142_v54 = vld [vmem:[%s14380_s0 + $0x1d4] sm:$0xf0] }
  0xe4   :  { %v10609_v56 = vpop.f32.mrf.mxu2 }
  0xe5   :  { %14397 = vst [vmem:[#allocation17_spill] sm:$0xff] %v10609_v56  ;;  %v10611_v57 = vpop.f32.mrf.mxu3 }
  0xe6   :  { %14398 = vst [vmem:[#allocation18_spill] sm:$0xff] %v10611_v57  ;;  %v10613_v60 = vpop.f32.mrf.mxu1  ;;  %v7209_v57 = vor.u32 %v9499_v9, %v7208_v8 }
  0xe8   :  { %v10615_v61 = vpop.f32.mrf.mxu0 }
  0xec   :  { %v10641_v12 = vpop.f32.mrf.mxu2 }
  0xed   :  { %14399 = vst [vmem:[#allocation19_spill] sm:$0xff] %v10641_v12  ;;  %v10643_v13 = vpop.f32.mrf.mxu3 }
  0xee   :  { %14400 = vst [vmem:[#allocation20_spill] sm:$0xff] %v10643_v13  ;;  %v10645_v20 = vpop.f32.mrf.mxu1 }
  0xf0   :  { %v10647_v33 = vpop.f32.mrf.mxu0 }
  0xf1   :  { %4282 = vmatmul.bf16.gmra.mxu1 %v7093_v16  ;;  %4491 = vmatmul.bf16.gmra.mxu2 %v7097_v17  ;;  %v7145_v16 = vor.u32 %v9478_v53, %v7142_v54  ;;  %v7149_v17 = vor.u32 %v9485_v0, %v7148_v63  ;;  %v9491_v53 = vld [vmem:[%s14380_s0 + $0x20c] sm:$0xf]  ;;  %v7194_v54 = vld [vmem:[%s14380_s0 + $0x23c] sm:$0xf0]  ;;  %v7200_v63 = vld [vmem:[%s14380_s0 + $0x210] sm:$0xf] }
  0xf2   :  { %4700 = vmatmul.bf16.gmra.mxu3 %v7101_v22  ;;  %v9498_v0 = vld [vmem:[%s14380_s0 + $0x240] sm:$0xf0] }
  0xf3   :  { %4909 = vmatmul.bf16.gmra.mxu0 %v7105_v32  ;;  %v7153_v32 = vor.u32 %v9479_v6, %v7150_v7  ;;  %v9492_v6 = vld [vmem:[%s14380_s0 + $0x214] sm:$0xf]  ;;  %v7202_v7 = vld [vmem:[%s14380_s0 + $0x244] sm:$0xf0] }
  0xf4   :  { %v10655_v36 = vpop.f32.mrf.mxu2 }
  0xf5   :  { %14401 = vst [vmem:[#allocation21_spill] sm:$0xff] %v10655_v36  ;;  %v10657_v37 = vpop.f32.mrf.mxu3 }
  0xf6   :  { %14402 = vst [vmem:[#allocation22_spill] sm:$0xff] %v10657_v37  ;;  %v10659_v40 = vpop.f32.mrf.mxu1 }
  0xf8   :  { %v10664_v50 = vpop.f32.mrf.mxu0 }
  0xfc   :  { %v10693_v10 = vpop.f32.mrf.mxu2 }
  0xfd   :  { %14403 = vst [vmem:[#allocation23_spill] sm:$0xff] %v10693_v10  ;;  %v10695_v11 = vpop.f32.mrf.mxu3 }
  0xfe   :  { %14404 = vst [vmem:[#allocation24_spill] sm:$0xff] %v10695_v11  ;;  %v10697_v22 = vpop.f32.mrf.mxu1  ;;  %v7205_v11 = vor.u32 %v9492_v6, %v7202_v7  ;;  %v7260_v6 = vld [vmem:[%s14380_s0 + $0x280] sm:$0xf]  ;;  %v9512_v7 = vld [vmem:[%s14380_s0 + $0x2b0] sm:$0xf0] }
  0xff   :  { %v7261_v47 = vor.u32 %v9512_v7, %v7260_v6 }
 0x100   :  { %v10699_v35 = vpop.f32.mrf.mxu0 }
 0x101   :  { %4287 = vmatmul.bf16.gmra.mxu1 %v7145_v16  ;;  %4496 = vmatmul.bf16.gmra.mxu2 %v7149_v17 }
 0x102   :  { %4705 = vmatmul.bf16.gmra.mxu3 %v7153_v32  ;;  %v7197_v32 = vor.u32 %v9491_v53, %v7194_v54  ;;  %v9504_v53 = vld [vmem:[%s14380_s0 + $0x274] sm:$0xf]  ;;  %v7246_v54 = vld [vmem:[%s14380_s0 + $0x2a4] sm:$0xf0] }
 0x103   :  { %4914 = vmatmul.bf16.gmra.mxu0 %v7157_v34  ;;  %v7201_v34 = vor.u32 %v9498_v0, %v7200_v63  ;;  %v9505_v63 = vld [vmem:[%s14380_s0 + $0x27c] sm:$0xf]  ;;  %v7254_v0 = vld [vmem:[%s14380_s0 + $0x2ac] sm:$0xf0] }
 0x104   :  { %v10701_v41 = vpop.f32.mrf.mxu2 }
 0x105   :  { %14405 = vst [vmem:[#allocation25_spill] sm:$0xff] %v10701_v41  ;;  %v10703_v51 = vpop.f32.mrf.mxu3 }
 0x106   :  { %14406 = vst [vmem:[#allocation26_spill] sm:$0xff] %v10703_v51  ;;  %v10705_v37 = vpop.f32.mrf.mxu1 }
 0x108   :  { %v10707_v13 = vpop.f32.mrf.mxu0 }
 0x10c   :  { %v10733_v16 = vpop.f32.mrf.mxu2 }
 0x10d   :  { %14407 = vst [vmem:[#allocation27_spill] sm:$0xff] %v10733_v16  ;;  %v10735_v17 = vpop.f32.mrf.mxu3 }
 0x10e   :  { %14408 = vst [vmem:[#allocation28_spill] sm:$0xff] %v10735_v17  ;;  %v10737_v51 = vpop.f32.mrf.mxu1  ;;  %v7257_v17 = vor.u32 %v9505_v63, %v7254_v0  ;;  %v7312_v63 = vld [vmem:[%s14380_s0 + $0x2e8] sm:$0xf]  ;;  %v9525_v0 = vld [vmem:[%s14380_s0 + $0x318] sm:$0xf0] }
 0x110   :  { %v10739_v44 = vpop.f32.mrf.mxu0 }
 0x111   :  { %4292 = vmatmul.bf16.gmra.mxu1 %v7197_v32  ;;  %4501 = vmatmul.bf16.gmra.mxu2 %v7201_v34  ;;  %v7249_v32 = vor.u32 %v9504_v53, %v7246_v54  ;;  %v9517_v53 = vld [vmem:[%s14380_s0 + $0x2dc] sm:$0xf]  ;;  %v7298_v54 = vld [vmem:[%s14380_s0 + $0x30c] sm:$0xf0] }
 0x112   :  { %4710 = vmatmul.bf16.gmra.mxu3 %v7205_v11  ;;  %v9511_v11 = vld [vmem:[%s14380_s0 + $0x2a8] sm:$0xf0] }
 0x113   :  { %4919 = vmatmul.bf16.gmra.mxu0 %v7209_v57  ;;  %v7252_v57 = vld [vmem:[%s14380_s0 + $0x278] sm:$0xf] }
 0x114   :  { %v10741_v29 = vpop.f32.mrf.mxu2  ;;  %v7253_v34 = vor.u32 %v9511_v11, %v7252_v57  ;;  %v9518_v57 = vld [vmem:[%s14380_s0 + $0x2e4] sm:$0xf]  ;;  %v7306_v11 = vld [vmem:[%s14380_s0 + $0x314] sm:$0xf0] }
 0x115   :  { %14409 = vst [vmem:[#allocation29_spill] sm:$0xff] %v10741_v29  ;;  %v10743_v15 = vpop.f32.mrf.mxu3 }
 0x116   :  { %14410 = vst [vmem:[#allocation30_spill] sm:$0xff] %v10743_v15  ;;  %v10745_v3 = vpop.f32.mrf.mxu1 }
 0x118   :  { %v10747_v59 = vpop.f32.mrf.mxu0 }
 0x11c   :  { %v10773_v8 = vpop.f32.mrf.mxu2 }
 0x11d   :  { %14411 = vst [vmem:[#allocation31_spill] sm:$0xff] %v10773_v8  ;;  %v10775_v9 = vpop.f32.mrf.mxu3 }
 0x11e   :  { %14412 = vst [vmem:[#allocation32_spill] sm:$0xff] %v10775_v9  ;;  %v10777_v15 = vpop.f32.mrf.mxu1  ;;  %v7309_v9 = vor.u32 %v9518_v57, %v7306_v11  ;;  %v7358_v57 = vld [vmem:[%s14380_s0 + $0x37c] sm:$0xf0]  ;;  %v7364_v11 = vld [vmem:[%s14380_s0 + $0x350] sm:$0xf] }
 0x120   :  { %v10779_v39 = vpop.f32.mrf.mxu0 }
 0x121   :  { %4297 = vmatmul.bf16.gmra.mxu1 %v7249_v32  ;;  %4506 = vmatmul.bf16.gmra.mxu2 %v7253_v34  ;;  %v7301_v32 = vor.u32 %v9517_v53, %v7298_v54  ;;  %v10832_v53 = vld [vmem:[%s14379_s2] ss:$0 sm:$0xff]  ;;  %v9530_v54 = vld [vmem:[%s14380_s0 + $0x344] sm:$0xf] }
 0x122   :  { %4715 = vmatmul.bf16.gmra.mxu3 %v7257_v17  ;;  %v9524_v17 = vld [vmem:[%s14380_s0 + $0x310] sm:$0xf0] }
 0x123   :  { %4924 = vmatmul.bf16.gmra.mxu0 %v7261_v47  ;;  %v7304_v47 = vld [vmem:[%s14380_s0 + $0x2e0] sm:$0xf] }
 0x124   :  { %v10781_v25 = vpop.f32.mrf.mxu2  ;;  %v7305_v34 = vor.u32 %v9524_v17, %v7304_v47  ;;  %v9537_v47 = vld [vmem:[%s14380_s0 + $0x378] sm:$0xf0]  ;;  %v9531_v17 = vld [vmem:[%s14380_s0 + $0x34c] sm:$0xf] }
 0x125   :  { %14413 = vst [vmem:[#allocation33_spill] sm:$0xff] %v10781_v25  ;;  %v10783_v29 = vpop.f32.mrf.mxu3  ;;  %v7313_v25 = vor.u32 %v9525_v0, %v7312_v63  ;;  %v9538_v63 = vld [vmem:[%s14380_s0 + $0x380] sm:$0xf0]  ;;  %v7361_v56 = vor.u32 %v9531_v17, %v7358_v57  ;;  %v9543_v17 = vld [vmem:[%s14380_s0 + $0x3ac] sm:$0xf] }
 0x126   :  { %14414 = vst [vmem:[#allocation34_spill] sm:$0xff] %v10783_v29  ;;  %v10785_v16 = vpop.f32.mrf.mxu1  ;;  %v7365_v43 = vor.u32 %v9538_v63, %v7364_v11  ;;  %v7408_v57 = vld [vmem:[%s14380_s0 + $0x3b0] sm:$0xf]  ;;  %v9550_v11 = vld [vmem:[%s14380_s0 + $0x3e0] sm:$0xf0] }
 0x127   :  { %v9544_v63 = vld [vmem:[%s14380_s0 + $0x3b4] sm:$0xf] }
 0x128   :  { %v10787_v8 = vpop.f32.mrf.mxu0 }
 0x12c   :  { %v10813_v6 = vpop.f32.mrf.mxu2 }
 0x12d   :  { %14415 = vst [vmem:[#allocation35_spill] sm:$0xff] %v10813_v6  ;;  %v10815_v7 = vpop.f32.mrf.mxu3 }
 0x12e   :  { %14416 = vst [vmem:[#allocation36_spill] sm:$0xff] %v10815_v7  ;;  %v10817_v29 = vpop.f32.mrf.mxu1 }
 0x130   :  { %v10819_v41 = vpop.f32.mrf.mxu0 }
 0x131   :  { %4302 = vmatmul.bf16.gmra.mxu1 %v7301_v32  ;;  %4511 = vmatmul.bf16.gmra.mxu2 %v7305_v34  ;;  %v4060_v32 = vadd.f32 %v10832_v53, %v10435_v21  ;;  %v10007_v21 = vld [vmem:[%s14378_s1 + $0x1e8] sm:$0xff] }
 0x132   :  { %4720 = vmatmul.bf16.gmra.mxu3 %v7309_v9  ;;  %v7356_v9 = vld [vmem:[%s14380_s0 + $0x348] sm:$0xf] }
 0x133   :  { %4929 = vmatmul.bf16.gmra.mxu0 %v7313_v25  ;;  %v7350_v25 = vld [vmem:[%s14380_s0 + $0x374] sm:$0xf0]  ;;  %v7357_v7 = vor.u32 %v9537_v47, %v7356_v9  ;;  %5515 = vmatpush.bf16.msra.mxu3 %v10007_v21  ;;  %v9991_v9 = vld [vmem:[%s14378_s1 + $0x168] sm:$0xff]  ;;  %v4065_v21 = vadd.f32 %v10832_v53, %v10487_v45  ;;  %v4067_v45 = vadd.f32 %v10832_v53, %v10495_v49 }
 0x134   :  { %v10821_v10 = vpop.f32.mrf.mxu2  ;;  %v10015_v47 = vld [vmem:[%s14378_s1 + $0x228] sm:$0xff]  ;;  %5097 = vmatpush.bf16.msra.mxu1 %v9991_v9  ;;  %v7460_v49 = vld [vmem:[%s14380_s0 + $0x418] sm:$0xf] }
 0x135   :  { %14417 = vst [vmem:[#allocation37_spill] sm:$0xff] %v10821_v10  ;;  %v10823_v36 = vpop.f32.mrf.mxu3  ;;  %5724 = vmatpush.bf16.msra.mxu0 %v10015_v47 }
 0x136   :  { %14418 = vst [vmem:[#allocation38_spill] sm:$0xff] %v10823_v36  ;;  %v10825_v12 = vpop.f32.mrf.mxu1  ;;  %v7353_v36 = vor.u32 %v9530_v54, %v7350_v25  ;;  %v4062_v54 = vadd.f32 %v10832_v53, %v10452_v28  ;;  %v7402_v28 = vld [vmem:[%s14380_s0 + $0x3dc] sm:$0xf0] }
 0x138   :  { %v10827_v6 = vpop.f32.mrf.mxu0 }
 0x13c   :  { %v10858_v0 = vpop.f32.mrf.mxu2 }
 0x13d   :  { %14419 = vst [vmem:[#allocation39_spill] sm:$0xff] %v10858_v0  ;;  %v10862_v34 = vpop.f32.mrf.mxu3  ;;  %v9999_v0 = vld [vmem:[%s14378_s1 + $0x1a8] sm:$0xff] }
 0x13e   :  { %14420 = vst [vmem:[#allocation40_spill] sm:$0xff] %v10862_v34  ;;  %v4268_v10 = vpop.f32.mrf.mxu1  ;;  %5306 = vmatpush.bf16.msra.mxu2 %v9999_v0  ;;  %v7410_v0 = vld [vmem:[%s14380_s0 + $0x3e4] sm:$0xf0] }
 0x13f   :  { %v4269_v27 = vadd.f32 %v4268_v10, %v4060_v32  ;;  %v9551_v32 = vld [vmem:[%s14380_s0 + $0x3e8] sm:$0xf0]  ;;  %v7413_v9 = vor.u32 %v9544_v63, %v7410_v0  ;;  %v9556_v63 = vld [vmem:[%s14380_s0 + $0x414] sm:$0xf]  ;;  %v7462_v0 = vld [vmem:[%s14380_s0 + $0x44c] sm:$0xf0] }
 0x140   :  { %v4895_v14 = vpop.f32.mrf.mxu0 }
 0x141   :  { %4307 = vmatmul.bf16.gmra.mxu1 %v7353_v36  ;;  %4516 = vmatmul.bf16.gmra.mxu2 %v7357_v7 }
 0x142   :  { %4725 = vmatmul.bf16.gmra.mxu3 %v7361_v56 }
 0x143   :  { %4934 = vmatmul.bf16.gmra.mxu0 %v7365_v43 }
 0x144   :  { %v4477_v34 = vpop.f32.mrf.mxu2 }
 0x145   :  { %v4478_v10 = vadd.f32 %v4477_v34, %v4269_v27  ;;  %v4686_v25 = vpop.f32.mrf.mxu3 }
 0x146   :  { %v4270_v36 = vpop.f32.mrf.mxu1 }
 0x147   :  { %v4687_v7 = vadd.f32 %v4686_v25, %v4478_v10  ;;  %v4271_v56 = vadd.f32 %v4270_v36, %v4062_v54  ;;  %v7405_v25 = vor.u32 %v9543_v17, %v7402_v28  ;;  %v7409_v36 = vor.u32 %v9550_v11, %v7408_v57 }
 0x148   :  { %v4897_v43 = vpop.f32.mrf.mxu0 }
 0x149   :  { %v10884_v27 = vadd.f32 %v4895_v14, %v4687_v7  ;;  %v7416_v14 = vld [vmem:[%s14380_s0 + $0x3b8] sm:$0xf] }
 0x14a   :  { %v7417_v47 = vor.u32 %v9551_v32, %v7416_v14  ;;  %v9564_v14 = vld [vmem:[%s14380_s0 + $0x450] sm:$0xf0] }
 0x14b   :  { %14421 = vst [vmem:[#allocation41_spill] sm:$0xff] %v10884_v27 }
 0x14c   :  { %v4479_v34 = vpop.f32.mrf.mxu2 }
 0x14d   :  { %v4480_v54 = vadd.f32 %v4479_v34, %v4271_v56  ;;  %v4688_v10 = vpop.f32.mrf.mxu3 }
 0x14e   :  { %v4273_v7 = vpop.f32.mrf.mxu1 }
 0x14f   :  { %v4689_v27 = vadd.f32 %v4688_v10, %v4480_v54  ;;  %v4274_v2 = vadd.f32 %v4273_v7, %v4065_v21  ;;  %v4070_v21 = vadd.f32 %v10832_v53, %v10527_v1  ;;  %v4072_v1 = vadd.f32 %v10832_v53, %v10535_v5  ;;  %v7512_v5 = vld [vmem:[%s14380_s0 + $0x480] sm:$0xf] }
 0x150   :  { %v4900_v58 = vpop.f32.mrf.mxu0 }
 0x151   :  { %4312 = vmatmul.bf16.gmra.mxu1 %v7405_v25  ;;  %4521 = vmatmul.bf16.gmra.mxu2 %v7409_v36  ;;  %v10906_v46 = vadd.f32 %v4897_v43, %v4689_v27  ;;  %v7454_v43 = vld [vmem:[%s14380_s0 + $0x444] sm:$0xf0] }
 0x152   :  { %4730 = vmatmul.bf16.gmra.mxu3 %v7413_v9  ;;  %v7457_v25 = vor.u32 %v9556_v63, %v7454_v43 }
 0x153   :  { %4939 = vmatmul.bf16.gmra.mxu0 %v7417_v47 }
 0x154   :  { %v4482_v38 = vpop.f32.mrf.mxu2 }
 0x155   :  { %v4483_v56 = vadd.f32 %v4482_v38, %v4274_v2  ;;  %v4691_v34 = vpop.f32.mrf.mxu3  ;;  %v9563_v38 = vld [vmem:[%s14380_s0 + $0x448] sm:$0xf0]  ;;  %v9557_v2 = vld [vmem:[%s14380_s0 + $0x41c] sm:$0xf] }
 0x156   :  { %v4275_v17 = vpop.f32.mrf.mxu1  ;;  %v7461_v36 = vor.u32 %v9563_v38, %v7460_v49  ;;  %v7465_v9 = vor.u32 %v9557_v2, %v7462_v0  ;;  %v9569_v2 = vld [vmem:[%s14380_s0 + $0x47c] sm:$0xf] }
 0x157   :  { %v4692_v28 = vadd.f32 %v4691_v34, %v4483_v56  ;;  %v4276_v57 = vadd.f32 %v4275_v17, %v4067_v45 }
 0x158   :  { %v4902_v11 = vpop.f32.mrf.mxu0 }
 0x159   :  { %v10916_v27 = vadd.f32 %v4900_v58, %v4692_v28  ;;  %v7468_v58 = vld [vmem:[%s14380_s0 + $0x420] sm:$0xf] }
 0x15a   :  { %v7469_v47 = vor.u32 %v9564_v14, %v7468_v58  ;;  %v9576_v58 = vld [vmem:[%s14380_s0 + $0x4b0] sm:$0xf0]  ;;  %v9570_v14 = vld [vmem:[%s14380_s0 + $0x484] sm:$0xf] }
 0x15c   :  { %v4484_v32 = vpop.f32.mrf.mxu2 }
 0x15d   :  { %v4485_v54 = vadd.f32 %v4484_v32, %v4276_v57  ;;  %v4693_v10 = vpop.f32.mrf.mxu3 }
 0x15e   :  { %v4278_v7 = vpop.f32.mrf.mxu1 }
 0x15f   :  { %v4694_v45 = vadd.f32 %v4693_v10, %v4485_v54  ;;  %v4279_v56 = vadd.f32 %v4278_v7, %v4070_v21  ;;  %v7514_v21 = vld [vmem:[%s14380_s0 + $0x4b4] sm:$0xf0]  ;;  %v7520_v54 = vld [vmem:[%s14380_s0 + $0x488] sm:$0xf]  ;;  %v9577_v10 = vld [vmem:[%s14380_s0 + $0x4b8] sm:$0xf0] }
 0x160   :  { %v4905_v34 = vpop.f32.mrf.mxu0 }
 0x161   :  { %4317 = vmatmul.bf16.gmra.mxu1 %v7457_v25  ;;  %4526 = vmatmul.bf16.gmra.mxu2 %v7461_v36  ;;  %v10938_v17 = vadd.f32 %v4902_v11, %v4694_v45  ;;  %v7506_v11 = vld [vmem:[%s14380_s0 + $0x4ac] sm:$0xf0]  ;;  %v4075_v36 = vadd.f32 %v10832_v53, %v10567_v23  ;;  %v7513_v45 = vor.u32 %v9576_v58, %v7512_v5 }
 0x162   :  { %4735 = vmatmul.bf16.gmra.mxu3 %v7465_v9  ;;  %v4077_v23 = vadd.f32 %v10832_v53, %v10575_v31  ;;  %v7564_v31 = vld [vmem:[%s14380_s0 + $0x4e8] sm:$0xf] }
 0x163   :  { %4944 = vmatmul.bf16.gmra.mxu0 %v7469_v47  ;;  %v7509_v47 = vor.u32 %v9569_v2, %v7506_v11 }
 0x164   :  { %v4487_v28 = vpop.f32.mrf.mxu2 }
 0x165   :  { %v4488_v57 = vadd.f32 %v4487_v28, %v4279_v56  ;;  %v4696_v32 = vpop.f32.mrf.mxu3  ;;  %v7521_v28 = vor.u32 %v9577_v10, %v7520_v54  ;;  %v9589_v54 = vld [vmem:[%s14380_s0 + $0x518] sm:$0xf0]  ;;  %v9583_v10 = vld [vmem:[%s14380_s0 + $0x4ec] sm:$0xf] }
 0x166   :  { %v4280_v63 = vpop.f32.mrf.mxu1 }
 0x167   :  { %v4697_v43 = vadd.f32 %v4696_v32, %v4488_v57  ;;  %v4281_v49 = vadd.f32 %v4280_v63, %v4072_v1 }
 0x168   :  { %v4907_v38 = vpop.f32.mrf.mxu0 }
 0x169   :  { %v10948_v0 = vadd.f32 %v4905_v34, %v4697_v43  ;;  %v7517_v34 = vor.u32 %v9570_v14, %v7514_v21  ;;  %v9582_v14 = vld [vmem:[%s14380_s0 + $0x4e4] sm:$0xf] }
 0x16c   :  { %v4489_v25 = vpop.f32.mrf.mxu2 }
 0x16d   :  { %v4490_v7 = vadd.f32 %v4489_v25, %v4281_v49  ;;  %v4698_v9 = vpop.f32.mrf.mxu3 }
 0x16e   :  { %v4283_v56 = vpop.f32.mrf.mxu1 }
 0x16f   :  { %v4699_v1 = vadd.f32 %v4698_v9, %v4490_v7  ;;  %v4284_v57 = vadd.f32 %v4283_v56, %v4075_v36  ;;  %v7566_v36 = vld [vmem:[%s14380_s0 + $0x51c] sm:$0xf0]  ;;  %v7572_v7 = vld [vmem:[%s14380_s0 + $0x4f0] sm:$0xf]  ;;  %v9590_v9 = vld [vmem:[%s14380_s0 + $0x520] sm:$0xf0] }
 0x170   :  { %v4910_v32 = vpop.f32.mrf.mxu0 }
 0x171   :  { %4322 = vmatmul.bf16.gmra.mxu1 %v7509_v47  ;;  %4531 = vmatmul.bf16.gmra.mxu2 %v7513_v45  ;;  %v10970_v63 = vadd.f32 %v4907_v38, %v4699_v1  ;;  %v7558_v38 = vld [vmem:[%s14380_s0 + $0x514] sm:$0xf0]  ;;  %v4080_v45 = vadd.f32 %v10832_v53, %v10607_v55  ;;  %v7565_v1 = vor.u32 %v9589_v54, %v7564_v31 }
 0x172   :  { %4740 = vmatmul.bf16.gmra.mxu3 %v7517_v34  ;;  %v4082_v55 = vadd.f32 %v10832_v53, %v10615_v61  ;;  %v7616_v61 = vld [vmem:[%s14380_s0 + $0x550] sm:$0xf] }
 0x173   :  { %4949 = vmatmul.bf16.gmra.mxu0 %v7521_v28  ;;  %v7561_v28 = vor.u32 %v9582_v14, %v7558_v38 }
 0x174   :  { %v4492_v43 = vpop.f32.mrf.mxu2 }
 0x175   :  { %v4493_v49 = vadd.f32 %v4492_v43, %v4284_v57  ;;  %v4701_v25 = vpop.f32.mrf.mxu3  ;;  %v7573_v43 = vor.u32 %v9590_v9, %v7572_v7  ;;  %v9602_v7 = vld [vmem:[%s14380_s0 + $0x580] sm:$0xf0]  ;;  %v9596_v9 = vld [vmem:[%s14380_s0 + $0x554] sm:$0xf] }
 0x176   :  { %v4285_v2 = vpop.f32.mrf.mxu1 }
 0x177   :  { %v4702_v11 = vadd.f32 %v4701_v25, %v4493_v49  ;;  %v4286_v5 = vadd.f32 %v4285_v2, %v4077_v23 }
 0x178   :  { %v4912_v58 = vpop.f32.mrf.mxu0 }
 0x179   :  { %v10980_v21 = vadd.f32 %v4910_v32, %v4702_v11  ;;  %v7569_v32 = vor.u32 %v9583_v10, %v7566_v36  ;;  %v9595_v10 = vld [vmem:[%s14380_s0 + $0x54c] sm:$0xf] }
 0x17c   :  { %v4494_v47 = vpop.f32.mrf.mxu2 }
 0x17d   :  { %v4495_v56 = vadd.f32 %v4494_v47, %v4286_v5  ;;  %v4703_v34 = vpop.f32.mrf.mxu3 }
 0x17e   :  { %v4288_v57 = vpop.f32.mrf.mxu1 }
 0x17f   :  { %v4704_v23 = vadd.f32 %v4703_v34, %v4495_v56  ;;  %v4289_v49 = vadd.f32 %v4288_v57, %v4080_v45  ;;  %v7618_v45 = vld [vmem:[%s14380_s0 + $0x584] sm:$0xf0]  ;;  %v7624_v56 = vld [vmem:[%s14380_s0 + $0x558] sm:$0xf]  ;;  %v9603_v34 = vld [vmem:[%s14380_s0 + $0x588] sm:$0xf0] }
 0x180   :  { %v4915_v25 = vpop.f32.mrf.mxu0 }
 0x181   :  { %4327 = vmatmul.bf16.gmra.mxu1 %v7561_v28  ;;  %4536 = vmatmul.bf16.gmra.mxu2 %v7565_v1  ;;  %v11002_v2 = vadd.f32 %v4912_v58, %v4704_v23  ;;  %v7610_v58 = vld [vmem:[%s14380_s0 + $0x57c] sm:$0xf0]  ;;  %v4085_v1 = vadd.f32 %v10832_v53, %v10647_v33  ;;  %v7617_v23 = vor.u32 %v9602_v7, %v7616_v61 }
 0x182   :  { %4745 = vmatmul.bf16.gmra.mxu3 %v7569_v32  ;;  %v9998_v33 = vld [vmem:[%s14378_s1 + $0x1a0] sm:$0xff] }
 0x183   :  { %4954 = vmatmul.bf16.gmra.mxu0 %v7573_v43  ;;  %v7613_v43 = vor.u32 %v9595_v10, %v7610_v58  ;;  %5307 = vmatpush.bf16.msra.mxu2 %v9998_v33  ;;  %v4087_v10 = vadd.f32 %v10832_v53, %v10664_v50  ;;  %v7662_v50 = vld [vmem:[%s14380_s0 + $0x5e4] sm:$0xf0] }
 0x184   :  { %v4497_v11 = vpop.f32.mrf.mxu2 }
 0x185   :  { %v4498_v5 = vadd.f32 %v4497_v11, %v4289_v49  ;;  %v4706_v47 = vpop.f32.mrf.mxu3  ;;  %v7625_v11 = vor.u32 %v9603_v34, %v7624_v56  ;;  %v9990_v56 = vld [vmem:[%s14378_s1 + $0x160] sm:$0xff] }
 0x186   :  { %v4290_v14 = vpop.f32.mrf.mxu1  ;;  %v10014_v34 = vld [vmem:[%s14378_s1 + $0x220] sm:$0xff]  ;;  %5098 = vmatpush.bf16.msra.mxu1 %v9990_v56 }
 0x187   :  { %v4707_v38 = vadd.f32 %v4706_v47, %v4498_v5  ;;  %v4291_v31 = vadd.f32 %v4290_v14, %v4082_v55  ;;  %5725 = vmatpush.bf16.msra.mxu0 %v10014_v34 }
 0x188   :  { %v4917_v54 = vpop.f32.mrf.mxu0 }
 0x189   :  { %v11012_v36 = vadd.f32 %v4915_v25, %v4707_v38  ;;  %v7621_v25 = vor.u32 %v9596_v9, %v7618_v45  ;;  %v10006_v38 = vld [vmem:[%s14378_s1 + $0x1e0] sm:$0xff] }
 0x18a   :  { %5516 = vmatpush.bf16.msra.mxu3 %v10006_v38 }
 0x18c   :  { %v4499_v28 = vpop.f32.mrf.mxu2 }
 0x18d   :  { %v4500_v57 = vadd.f32 %v4499_v28, %v4291_v31  ;;  %v4708_v32 = vpop.f32.mrf.mxu3  ;;  %v9608_v28 = vld [vmem:[%s14380_s0 + $0x5b4] sm:$0xf] }
 0x18e   :  { %v4293_v49 = vpop.f32.mrf.mxu1  ;;  %v7665_v33 = vor.u32 %v9608_v28, %v7662_v50 }
 0x18f   :  { %v4709_v55 = vadd.f32 %v4708_v32, %v4500_v57  ;;  %v4294_v5 = vadd.f32 %v4293_v49, %v4085_v1  ;;  %v7668_v57 = vld [vmem:[%s14380_s0 + $0x5b8] sm:$0xf]  ;;  %v9615_v32 = vld [vmem:[%s14380_s0 + $0x5e8] sm:$0xf0]  ;;  %v7676_v49 = vld [vmem:[%s14380_s0 + $0x5c0] sm:$0xf] }
 0x190   :  { %v4920_v47 = vpop.f32.mrf.mxu0  ;;  %v7669_v38 = vor.u32 %v9615_v32, %v7668_v57 }
 0x191   :  { %4332 = vmatmul.bf16.gmra.mxu1 %v7613_v43  ;;  %4541 = vmatmul.bf16.gmra.mxu2 %v7617_v23  ;;  %v11034_v14 = vadd.f32 %v4917_v54, %v4709_v55  ;;  %v9609_v43 = vld [vmem:[%s14380_s0 + $0x5bc] sm:$0xf]  ;;  %v7670_v23 = vld [vmem:[%s14380_s0 + $0x5ec] sm:$0xf0]  ;;  %v4090_v55 = vadd.f32 %v10832_v53, %v10699_v35  ;;  %v4092_v35 = vadd.f32 %v10832_v53, %v10707_v13  ;;  %v7720_v13 = vld [vmem:[%s14380_s0 + $0x620] sm:$0xf] }
 0x192   :  { %4750 = vmatmul.bf16.gmra.mxu3 %v7621_v25  ;;  %v9616_v25 = vld [vmem:[%s14380_s0 + $0x5f0] sm:$0xf0] }
 0x193   :  { %4959 = vmatmul.bf16.gmra.mxu0 %v7625_v11 }
 0x194   :  { %v4502_v31 = vpop.f32.mrf.mxu2 }
 0x195   :  { %v4503_v58 = vadd.f32 %v4502_v31, %v4294_v5  ;;  %v4711_v61 = vpop.f32.mrf.mxu3 }
 0x196   :  { %v4295_v54 = vpop.f32.mrf.mxu1 }
 0x197   :  { %v4712_v7 = vadd.f32 %v4711_v61, %v4503_v58  ;;  %v4296_v9 = vadd.f32 %v4295_v54, %v4087_v10  ;;  %v7673_v10 = vor.u32 %v9609_v43, %v7670_v23  ;;  %v7677_v58 = vor.u32 %v9616_v25, %v7676_v49  ;;  %v9621_v43 = vld [vmem:[%s14380_s0 + $0x61c] sm:$0xf]  ;;  %v9628_v49 = vld [vmem:[%s14380_s0 + $0x650] sm:$0xf0]  ;;  %v9622_v25 = vld [vmem:[%s14380_s0 + $0x624] sm:$0xf] }
 0x198   :  { %v4922_v45 = vpop.f32.mrf.mxu0 }
 0x199   :  { %v11056_v1 = vadd.f32 %v4920_v47, %v4712_v7 }
 0x19c   :  { %v4504_v11 = vpop.f32.mrf.mxu2 }
 0x19d   :  { %v4505_v5 = vadd.f32 %v4504_v11, %v4296_v9  ;;  %v4713_v47 = vpop.f32.mrf.mxu3 }
 0x19e   :  { %v4298_v31 = vpop.f32.mrf.mxu1 }
 0x19f   :  { %v4714_v61 = vadd.f32 %v4713_v47, %v4505_v5  ;;  %v4299_v54 = vadd.f32 %v4298_v31, %v4090_v55  ;;  %v7722_v55 = vld [vmem:[%s14380_s0 + $0x654] sm:$0xf0]  ;;  %v7728_v5 = vld [vmem:[%s14380_s0 + $0x628] sm:$0xf]  ;;  %v9629_v47 = vld [vmem:[%s14380_s0 + $0x658] sm:$0xf0] }
 0x1a0   :  { %v4925_v7 = vpop.f32.mrf.mxu0 }
 0x1a1   :  { %4337 = vmatmul.bf16.gmra.mxu1 %v7665_v33  ;;  %4546 = vmatmul.bf16.gmra.mxu2 %v7669_v38  ;;  %v11078_v56 = vadd.f32 %v4922_v45, %v4714_v61  ;;  %v7714_v45 = vld [vmem:[%s14380_s0 + $0x64c] sm:$0xf0]  ;;  %v4095_v38 = vadd.f32 %v10832_v53, %v10739_v44  ;;  %v7721_v61 = vor.u32 %v9628_v49, %v7720_v13 }
 0x1a2   :  { %4755 = vmatmul.bf16.gmra.mxu3 %v7673_v10  ;;  %v4097_v44 = vadd.f32 %v10832_v53, %v10747_v59  ;;  %v7772_v59 = vld [vmem:[%s14380_s0 + $0x688] sm:$0xf] }
 0x1a3   :  { %4964 = vmatmul.bf16.gmra.mxu0 %v7677_v58  ;;  %v7717_v58 = vor.u32 %v9621_v43, %v7714_v45 }
 0x1a4   :  { %v4507_v34 = vpop.f32.mrf.mxu2 }
 0x1a5   :  { %v4508_v9 = vadd.f32 %v4507_v34, %v4299_v54  ;;  %v4716_v11 = vpop.f32.mrf.mxu3  ;;  %v7729_v34 = vor.u32 %v9629_v47, %v7728_v5  ;;  %v9641_v5 = vld [vmem:[%s14380_s0 + $0x6b8] sm:$0xf0]  ;;  %v9635_v47 = vld [vmem:[%s14380_s0 + $0x68c] sm:$0xf] }
 0x1a6   :  { %v4300_v28 = vpop.f32.mrf.mxu1 }
 0x1a7   :  { %v4717_v50 = vadd.f32 %v4716_v11, %v4508_v9  ;;  %v4301_v57 = vadd.f32 %v4300_v28, %v4092_v35 }
 0x1a8   :  { %v4927_v32 = vpop.f32.mrf.mxu0 }
 0x1a9   :  { %v11088_v23 = vadd.f32 %v4925_v7, %v4717_v50  ;;  %v7725_v7 = vor.u32 %v9622_v25, %v7722_v55  ;;  %v9634_v25 = vld [vmem:[%s14380_s0 + $0x684] sm:$0xf] }
 0x1ac   :  { %v4509_v33 = vpop.f32.mrf.mxu2 }
 0x1ad   :  { %v4510_v31 = vadd.f32 %v4509_v33, %v4301_v57  ;;  %v4718_v10 = vpop.f32.mrf.mxu3 }
 0x1ae   :  { %v4303_v54 = vpop.f32.mrf.mxu1 }
 0x1af   :  { %v4719_v35 = vadd.f32 %v4718_v10, %v4510_v31  ;;  %v4304_v9 = vadd.f32 %v4303_v54, %v4095_v38  ;;  %v7774_v38 = vld [vmem:[%s14380_s0 + $0x6bc] sm:$0xf0]  ;;  %v7780_v31 = vld [vmem:[%s14380_s0 + $0x690] sm:$0xf]  ;;  %v9642_v10 = vld [vmem:[%s14380_s0 + $0x6c0] sm:$0xf0] }
 0x1b0   :  { %v4930_v11 = vpop.f32.mrf.mxu0 }
 0x1b1   :  { %4342 = vmatmul.bf16.gmra.mxu1 %v7717_v58  ;;  %4551 = vmatmul.bf16.gmra.mxu2 %v7721_v61  ;;  %v11110_v28 = vadd.f32 %v4927_v32, %v4719_v35  ;;  %v7766_v32 = vld [vmem:[%s14380_s0 + $0x6b4] sm:$0xf0]  ;;  %v4100_v61 = vadd.f32 %v10832_v53, %v10779_v39  ;;  %v7773_v35 = vor.u32 %v9641_v5, %v7772_v59 }
 0x1b2   :  { %4760 = vmatmul.bf16.gmra.mxu3 %v7725_v7  ;;  %v4102_v39 = vadd.f32 %v10832_v53, %v10787_v8  ;;  %v7824_v8 = vld [vmem:[%s14380_s0 + $0x6f0] sm:$0xf] }
 0x1b3   :  { %4969 = vmatmul.bf16.gmra.mxu0 %v7729_v34  ;;  %v7769_v34 = vor.u32 %v9634_v25, %v7766_v32 }
 0x1b4   :  { %v4512_v50 = vpop.f32.mrf.mxu2 }
 0x1b5   :  { %v4513_v57 = vadd.f32 %v4512_v50, %v4304_v9  ;;  %v4721_v33 = vpop.f32.mrf.mxu3  ;;  %v7781_v50 = vor.u32 %v9642_v10, %v7780_v31  ;;  %v9654_v31 = vld [vmem:[%s14380_s0 + $0x720] sm:$0xf0]  ;;  %v9648_v10 = vld [vmem:[%s14380_s0 + $0x6f4] sm:$0xf] }
 0x1b6   :  { %v4305_v43 = vpop.f32.mrf.mxu1 }
 0x1b7   :  { %v4722_v45 = vadd.f32 %v4721_v33, %v4513_v57  ;;  %v4306_v13 = vadd.f32 %v4305_v43, %v4097_v44 }
 0x1b8   :  { %v4932_v49 = vpop.f32.mrf.mxu0 }
 0x1b9   :  { %v11120_v55 = vadd.f32 %v4930_v11, %v4722_v45  ;;  %v7777_v11 = vor.u32 %v9635_v47, %v7774_v38  ;;  %v9647_v47 = vld [vmem:[%s14380_s0 + $0x6ec] sm:$0xf] }
 0x1bc   :  { %v4514_v58 = vpop.f32.mrf.mxu2 }
 0x1bd   :  { %v4515_v54 = vadd.f32 %v4514_v58, %v4306_v13  ;;  %v4723_v7 = vpop.f32.mrf.mxu3 }
 0x1be   :  { %v4308_v9 = vpop.f32.mrf.mxu1 }
 0x1bf   :  { %v4724_v44 = vadd.f32 %v4723_v7, %v4515_v54  ;;  %v4309_v57 = vadd.f32 %v4308_v9, %v4100_v61  ;;  %v7826_v61 = vld [vmem:[%s14380_s0 + $0x724] sm:$0xf0]  ;;  %v7832_v54 = vld [vmem:[%s14380_s0 + $0x6f8] sm:$0xf]  ;;  %v9655_v7 = vld [vmem:[%s14380_s0 + $0x728] sm:$0xf0] }
 0x1c0   :  { %v4935_v33 = vpop.f32.mrf.mxu0 }
 0x1c1   :  { %4347 = vmatmul.bf16.gmra.mxu1 %v7769_v34  ;;  %4556 = vmatmul.bf16.gmra.mxu2 %v7773_v35  ;;  %v11142_v43 = vadd.f32 %v4932_v49, %v4724_v44  ;;  %v7818_v49 = vld [vmem:[%s14380_s0 + $0x71c] sm:$0xf0]  ;;  %v4105_v35 = vadd.f32 %v10832_v53, %v10819_v41  ;;  %v7825_v44 = vor.u32 %v9654_v31, %v7824_v8 }
 0x1c2   :  { %4765 = vmatmul.bf16.gmra.mxu3 %v7777_v11  ;;  %v4107_v41 = vadd.f32 %v10832_v53, %v10827_v6  ;;  %v7876_v6 = vld [vmem:[%s14380_s0 + $0x758] sm:$0xf] }
 0x1c3   :  { %4974 = vmatmul.bf16.gmra.mxu0 %v7781_v50  ;;  %v7821_v50 = vor.u32 %v9647_v47, %v7818_v49 }
 0x1c4   :  { %v4517_v45 = vpop.f32.mrf.mxu2 }
 0x1c5   :  { %v4518_v13 = vadd.f32 %v4517_v45, %v4309_v57  ;;  %v4726_v58 = vpop.f32.mrf.mxu3  ;;  %v7833_v45 = vor.u32 %v9655_v7, %v7832_v54  ;;  %v9667_v54 = vld [vmem:[%s14380_s0 + $0x788] sm:$0xf0]  ;;  %v9661_v7 = vld [vmem:[%s14380_s0 + $0x75c] sm:$0xf] }
 0x1c6   :  { %v4310_v25 = vpop.f32.mrf.mxu1 }
 0x1c7   :  { %v4727_v32 = vadd.f32 %v4726_v58, %v4518_v13  ;;  %v4311_v59 = vadd.f32 %v4310_v25, %v4102_v39 }
 0x1c8   :  { %v4937_v5 = vpop.f32.mrf.mxu0 }
 0x1c9   :  { %v11152_v38 = vadd.f32 %v4935_v33, %v4727_v32  ;;  %v7829_v33 = vor.u32 %v9648_v10, %v7826_v61  ;;  %v9660_v10 = vld [vmem:[%s14380_s0 + $0x754] sm:$0xf] }
 0x1cc   :  { %v4519_v34 = vpop.f32.mrf.mxu2 }
 0x1cd   :  { %v4520_v9 = vadd.f32 %v4519_v34, %v4311_v59  ;;  %v4728_v11 = vpop.f32.mrf.mxu3 }
 0x1ce   :  { %v4313_v57 = vpop.f32.mrf.mxu1 }
 0x1cf   :  { %v4729_v39 = vadd.f32 %v4728_v11, %v4520_v9  ;;  %v4314_v13 = vadd.f32 %v4313_v57, %v4105_v35  ;;  %v7878_v35 = vld [vmem:[%s14380_s0 + $0x78c] sm:$0xf0]  ;;  %v7884_v9 = vld [vmem:[%s14380_s0 + $0x760] sm:$0xf]  ;;  %v9668_v11 = vld [vmem:[%s14380_s0 + $0x790] sm:$0xf0] }
 0x1d0   :  { %v4940_v58 = vpop.f32.mrf.mxu0 }
 0x1d1   :  { %4352 = vmatmul.bf16.gmra.mxu1 %v7821_v50  ;;  %4561 = vmatmul.bf16.gmra.mxu2 %v7825_v44  ;;  %v11174_v25 = vadd.f32 %v4937_v5, %v4729_v39  ;;  %v7870_v5 = vld [vmem:[%s14380_s0 + $0x784] sm:$0xf0]  ;;  %v4110_v44 = vadd.f32 %v10832_v53, %v10433_v18  ;;  %v7877_v39 = vor.u32 %v9667_v54, %v7876_v6  ;;  %v9997_v18 = vld [vmem:[%s14378_s1 + $0x198] sm:$0xff] }
 0x1d2   :  { %4770 = vmatmul.bf16.gmra.mxu3 %v7829_v33  ;;  %5308 = vmatpush.bf16.msra.mxu2 %v9997_v18 }
 0x1d3   :  { %4979 = vmatmul.bf16.gmra.mxu0 %v7833_v45  ;;  %v7873_v45 = vor.u32 %v9660_v10, %v7870_v5  ;;  %v4112_v10 = vadd.f32 %v10832_v53, %v10447_v26  ;;  %v7922_v26 = vld [vmem:[%s14380_s0 + $0x7ec] sm:$0xf0] }
 0x1d4   :  { %v4522_v32 = vpop.f32.mrf.mxu2 }
 0x1d5   :  { %v4523_v59 = vadd.f32 %v4522_v32, %v4314_v13  ;;  %v4731_v34 = vpop.f32.mrf.mxu3  ;;  %v7885_v32 = vor.u32 %v9668_v11, %v7884_v9  ;;  %v9989_v9 = vld [vmem:[%s14378_s1 + $0x158] sm:$0xff] }
 0x1d6   :  { %v4315_v47 = vpop.f32.mrf.mxu1  ;;  %v10013_v11 = vld [vmem:[%s14378_s1 + $0x218] sm:$0xff]  ;;  %5099 = vmatpush.bf16.msra.mxu1 %v9989_v9 }
 0x1d7   :  { %v4732_v49 = vadd.f32 %v4731_v34, %v4523_v59  ;;  %v4316_v8 = vadd.f32 %v4315_v47, %v4107_v41  ;;  %5726 = vmatpush.bf16.msra.mxu0 %v10013_v11 }
 0x1d8   :  { %v4942_v31 = vpop.f32.mrf.mxu0 }
 0x1d9   :  { %v11184_v61 = vadd.f32 %v4940_v58, %v4732_v49  ;;  %v7881_v58 = vor.u32 %v9661_v7, %v7878_v35  ;;  %v10005_v49 = vld [vmem:[%s14378_s1 + $0x1d8] sm:$0xff] }
 0x1da   :  { %5517 = vmatpush.bf16.msra.mxu3 %v10005_v49 }
 0x1dc   :  { %v4524_v50 = vpop.f32.mrf.mxu2 }
 0x1dd   :  { %v4525_v57 = vadd.f32 %v4524_v50, %v4316_v8  ;;  %v4733_v33 = vpop.f32.mrf.mxu3  ;;  %v9673_v50 = vld [vmem:[%s14380_s0 + $0x7bc] sm:$0xf] }
 0x1de   :  { %v4318_v13 = vpop.f32.mrf.mxu1  ;;  %v7925_v18 = vor.u32 %v9673_v50, %v7922_v26 }
 0x1df   :  { %v4734_v41 = vadd.f32 %v4733_v33, %v4525_v57  ;;  %v4319_v59 = vadd.f32 %v4318_v13, %v4110_v44  ;;  %v7928_v57 = vld [vmem:[%s14380_s0 + $0x7c0] sm:$0xf]  ;;  %v9680_v33 = vld [vmem:[%s14380_s0 + $0x7f0] sm:$0xf0]  ;;  %v7936_v13 = vld [vmem:[%s14380_s0 + $0x7c8] sm:$0xf] }
 0x1e0   :  { %v4945_v34 = vpop.f32.mrf.mxu0  ;;  %v7929_v49 = vor.u32 %v9680_v33, %v7928_v57 }
 0x1e1   :  { %4357 = vmatmul.bf16.gmra.mxu1 %v7873_v45  ;;  %4566 = vmatmul.bf16.gmra.mxu2 %v7877_v39  ;;  %v11206_v47 = vadd.f32 %v4942_v31, %v4734_v41  ;;  %v9674_v45 = vld [vmem:[%s14380_s0 + $0x7c4] sm:$0xf]  ;;  %v7930_v39 = vld [vmem:[%s14380_s0 + $0x7f4] sm:$0xf0]  ;;  %v4115_v41 = vadd.f32 %v10832_v53, %v10485_v42  ;;  %v4117_v42 = vadd.f32 %v10832_v53, %v10493_v48  ;;  %v7980_v48 = vld [vmem:[%s14380_s0 + $0x828] sm:$0xf] }
 0x1e2   :  { %4775 = vmatmul.bf16.gmra.mxu3 %v7881_v58  ;;  %v9681_v58 = vld [vmem:[%s14380_s0 + $0x7f8] sm:$0xf0] }
 0x1e3   :  { %4984 = vmatmul.bf16.gmra.mxu0 %v7885_v32 }
 0x1e4   :  { %v4527_v8 = vpop.f32.mrf.mxu2 }
 0x1e5   :  { %v4528_v5 = vadd.f32 %v4527_v8, %v4319_v59  ;;  %v4736_v6 = vpop.f32.mrf.mxu3 }
 0x1e6   :  { %v4320_v31 = vpop.f32.mrf.mxu1 }
 0x1e7   :  { %v4737_v54 = vadd.f32 %v4736_v6, %v4528_v5  ;;  %v4321_v7 = vadd.f32 %v4320_v31, %v4112_v10  ;;  %v7933_v10 = vor.u32 %v9674_v45, %v7930_v39  ;;  %v7937_v5 = vor.u32 %v9681_v58, %v7936_v13  ;;  %v9686_v45 = vld [vmem:[%s14380_s0 + $0x824] sm:$0xf]  ;;  %v9693_v13 = vld [vmem:[%s14380_s0 + $0x858] sm:$0xf0]  ;;  %v9687_v58 = vld [vmem:[%s14380_s0 + $0x82c] sm:$0xf] }
 0x1e8   :  { %v4947_v35 = vpop.f32.mrf.mxu0 }
 0x1e9   :  { %v11228_v44 = vadd.f32 %v4945_v34, %v4737_v54 }
 0x1ec   :  { %v4529_v32 = vpop.f32.mrf.mxu2 }
 0x1ed   :  { %v4530_v59 = vadd.f32 %v4529_v32, %v4321_v7  ;;  %v4738_v34 = vpop.f32.mrf.mxu3 }
 0x1ee   :  { %v4323_v8 = vpop.f32.mrf.mxu1 }
 0x1ef   :  { %v4739_v6 = vadd.f32 %v4738_v34, %v4530_v59  ;;  %v4324_v31 = vadd.f32 %v4323_v8, %v4115_v41  ;;  %v7982_v41 = vld [vmem:[%s14380_s0 + $0x85c] sm:$0xf0]  ;;  %v7988_v59 = vld [vmem:[%s14380_s0 + $0x830] sm:$0xf]  ;;  %v9694_v34 = vld [vmem:[%s14380_s0 + $0x860] sm:$0xf0] }
 0x1f0   :  { %v4950_v54 = vpop.f32.mrf.mxu0 }
 0x1f1   :  { %4362 = vmatmul.bf16.gmra.mxu1 %v7925_v18  ;;  %4571 = vmatmul.bf16.gmra.mxu2 %v7929_v49  ;;  %v11250_v9 = vadd.f32 %v4947_v35, %v4739_v6  ;;  %v7974_v35 = vld [vmem:[%s14380_s0 + $0x854] sm:$0xf0]  ;;  %v4120_v49 = vadd.f32 %v10832_v53, %v10525_v62  ;;  %v7981_v6 = vor.u32 %v9693_v13, %v7980_v48 }
 0x1f2   :  { %4780 = vmatmul.bf16.gmra.mxu3 %v7933_v10  ;;  %v4122_v62 = vadd.f32 %v10832_v53, %v10533_v4  ;;  %v8032_v4 = vld [vmem:[%s14380_s0 + $0x890] sm:$0xf] }
 0x1f3   :  { %4989 = vmatmul.bf16.gmra.mxu0 %v7937_v5  ;;  %v7977_v5 = vor.u32 %v9686_v45, %v7974_v35 }
 0x1f4   :  { %v4532_v11 = vpop.f32.mrf.mxu2 }
 0x1f5   :  { %v4533_v7 = vadd.f32 %v4532_v11, %v4324_v31  ;;  %v4741_v32 = vpop.f32.mrf.mxu3  ;;  %v7989_v11 = vor.u32 %v9694_v34, %v7988_v59  ;;  %v9706_v59 = vld [vmem:[%s14380_s0 + $0x8c0] sm:$0xf0]  ;;  %v9700_v34 = vld [vmem:[%s14380_s0 + $0x894] sm:$0xf] }
 0x1f6   :  { %v4325_v50 = vpop.f32.mrf.mxu1 }
 0x1f7   :  { %v4742_v26 = vadd.f32 %v4741_v32, %v4533_v7  ;;  %v4326_v57 = vadd.f32 %v4325_v50, %v4117_v42 }
 0x1f8   :  { %v4952_v33 = vpop.f32.mrf.mxu0 }
 0x1f9   :  { %v11260_v39 = vadd.f32 %v4950_v54, %v4742_v26  ;;  %v7985_v54 = vor.u32 %v9687_v58, %v7982_v41  ;;  %v9699_v58 = vld [vmem:[%s14380_s0 + $0x88c] sm:$0xf] }
 0x1fc   :  { %v4534_v18 = vpop.f32.mrf.mxu2 }
 0x1fd   :  { %v4535_v8 = vadd.f32 %v4534_v18, %v4326_v57  ;;  %v4743_v10 = vpop.f32.mrf.mxu3 }
 0x1fe   :  { %v4328_v31 = vpop.f32.mrf.mxu1 }
 0x1ff   :  { %v4744_v42 = vadd.f32 %v4743_v10, %v4535_v8  ;;  %v4329_v7 = vadd.f32 %v4328_v31, %v4120_v49  ;;  %v8034_v49 = vld [vmem:[%s14380_s0 + $0x8c4] sm:$0xf0]  ;;  %v8040_v8 = vld [vmem:[%s14380_s0 + $0x898] sm:$0xf]  ;;  %v9707_v10 = vld [vmem:[%s14380_s0 + $0x8c8] sm:$0xf0] }
 0x200   :  { %v4955_v32 = vpop.f32.mrf.mxu0 }
 0x201   :  { %4367 = vmatmul.bf16.gmra.mxu1 %v7977_v5  ;;  %4576 = vmatmul.bf16.gmra.mxu2 %v7981_v6  ;;  %v11282_v50 = vadd.f32 %v4952_v33, %v4744_v42  ;;  %v8026_v33 = vld [vmem:[%s14380_s0 + $0x8bc] sm:$0xf0]  ;;  %v4125_v6 = vadd.f32 %v10832_v53, %v10565_v19  ;;  %v8033_v42 = vor.u32 %v9706_v59, %v8032_v4 }
 0x202   :  { %4785 = vmatmul.bf16.gmra.mxu3 %v7985_v54  ;;  %v4127_v19 = vadd.f32 %v10832_v53, %v10573_v30  ;;  %v8084_v30 = vld [vmem:[%s14380_s0 + $0x8f8] sm:$0xf] }
 0x203   :  { %4994 = vmatmul.bf16.gmra.mxu0 %v7989_v11  ;;  %v8029_v11 = vor.u32 %v9699_v58, %v8026_v33 }
 0x204   :  { %v4537_v26 = vpop.f32.mrf.mxu2 }
 0x205   :  { %v4538_v57 = vadd.f32 %v4537_v26, %v4329_v7  ;;  %v4746_v18 = vpop.f32.mrf.mxu3  ;;  %v8041_v26 = vor.u32 %v9707_v10, %v8040_v8  ;;  %v9719_v8 = vld [vmem:[%s14380_s0 + $0x928] sm:$0xf0]  ;;  %v9713_v10 = vld [vmem:[%s14380_s0 + $0x8fc] sm:$0xf] }
 0x206   :  { %v4330_v45 = vpop.f32.mrf.mxu1 }
 0x207   :  { %v4747_v35 = vadd.f32 %v4746_v18, %v4538_v57  ;;  %v4331_v48 = vadd.f32 %v4330_v45, %v4122_v62 }
 0x208   :  { %v4957_v13 = vpop.f32.mrf.mxu0 }
 0x209   :  { %v11292_v41 = vadd.f32 %v4955_v32, %v4747_v35  ;;  %v8037_v32 = vor.u32 %v9700_v34, %v8034_v49  ;;  %v9712_v34 = vld [vmem:[%s14380_s0 + $0x8f4] sm:$0xf] }
 0x20c   :  { %v4539_v5 = vpop.f32.mrf.mxu2 }
 0x20d   :  { %v4540_v31 = vadd.f32 %v4539_v5, %v4331_v48  ;;  %v4748_v54 = vpop.f32.mrf.mxu3 }
 0x20e   :  { %v4333_v7 = vpop.f32.mrf.mxu1 }
 0x20f   :  { %v4749_v62 = vadd.f32 %v4748_v54, %v4540_v31  ;;  %v4334_v57 = vadd.f32 %v4333_v7, %v4125_v6  ;;  %v8086_v6 = vld [vmem:[%s14380_s0 + $0x92c] sm:$0xf0]  ;;  %v8092_v31 = vld [vmem:[%s14380_s0 + $0x900] sm:$0xf]  ;;  %v9720_v54 = vld [vmem:[%s14380_s0 + $0x930] sm:$0xf0] }
 0x210   :  { %v4960_v18 = vpop.f32.mrf.mxu0 }
 0x211   :  { %4372 = vmatmul.bf16.gmra.mxu1 %v8029_v11  ;;  %4581 = vmatmul.bf16.gmra.mxu2 %v8033_v42  ;;  %v11314_v45 = vadd.f32 %v4957_v13, %v4749_v62  ;;  %v8078_v13 = vld [vmem:[%s14380_s0 + $0x924] sm:$0xf0]  ;;  %v4130_v42 = vadd.f32 %v10832_v53, %v10605_v52  ;;  %v8085_v62 = vor.u32 %v9719_v8, %v8084_v30  ;;  %v11351_v52 = vld [vmem:[%s14379_s2] ss:$0 sm:$0xff] }
 0x212   :  { %4790 = vmatmul.bf16.gmra.mxu3 %v8037_v32  ;;  %v4132_v53 = vadd.f32 %v11351_v52, %v10613_v60  ;;  %v8136_v60 = vld [vmem:[%s14380_s0 + $0x960] sm:$0xf] }
 0x213   :  { %4999 = vmatmul.bf16.gmra.mxu0 %v8041_v26  ;;  %v8081_v26 = vor.u32 %v9712_v34, %v8078_v13 }
 0x214   :  { %v4542_v35 = vpop.f32.mrf.mxu2 }
 0x215   :  { %v4543_v48 = vadd.f32 %v4542_v35, %v4334_v57  ;;  %v4751_v5 = vpop.f32.mrf.mxu3  ;;  %v8093_v35 = vor.u32 %v9720_v54, %v8092_v31  ;;  %v9732_v54 = vld [vmem:[%s14380_s0 + $0x990] sm:$0xf0] }
 0x216   :  { %v4335_v58 = vpop.f32.mrf.mxu1 }
 0x217   :  { %v4752_v33 = vadd.f32 %v4751_v5, %v4543_v48  ;;  %v4336_v4 = vadd.f32 %v4335_v58, %v4127_v19 }
 0x218   :  { %v4962_v59 = vpop.f32.mrf.mxu0 }
 0x219   :  { %v11324_v49 = vadd.f32 %v4960_v18, %v4752_v33  ;;  %v8089_v18 = vor.u32 %v9713_v10, %v8086_v6  ;;  %v8130_v6 = vld [vmem:[%s14380_s0 + $0x98c] sm:$0xf0] }
 0x21c   :  { %v4544_v11 = vpop.f32.mrf.mxu2 }
 0x21d   :  { %v4545_v7 = vadd.f32 %v4544_v11, %v4336_v4  ;;  %v4753_v32 = vpop.f32.mrf.mxu3  ;;  %v9726_v11 = vld [vmem:[%s14380_s0 + $0x964] sm:$0xf] }
 0x21e   :  { %v4338_v57 = vpop.f32.mrf.mxu1 }
 0x21f   :  { %v4754_v19 = vadd.f32 %v4753_v32, %v4545_v7  ;;  %v4339_v48 = vadd.f32 %v4338_v57, %v4130_v42  ;;  %v8138_v42 = vld [vmem:[%s14380_s0 + $0x994] sm:$0xf0]  ;;  %v8144_v7 = vld [vmem:[%s14380_s0 + $0x968] sm:$0xf]  ;;  %v9733_v32 = vld [vmem:[%s14380_s0 + $0x998] sm:$0xf0] }
 0x220   :  { %v4965_v5 = vpop.f32.mrf.mxu0 }
 0x221   :  { %4377 = vmatmul.bf16.gmra.mxu1 %v8081_v26  ;;  %4586 = vmatmul.bf16.gmra.mxu2 %v8085_v62  ;;  %v11346_v58 = vadd.f32 %v4962_v59, %v4754_v19  ;;  %v9725_v59 = vld [vmem:[%s14380_s0 + $0x95c] sm:$0xf]  ;;  %v4135_v62 = vadd.f32 %v11351_v52, %v10645_v20  ;;  %v8137_v19 = vor.u32 %v9732_v54, %v8136_v60  ;;  %v9996_v20 = vld [vmem:[%s14378_s1 + $0x190] sm:$0xff] }
 0x222   :  { %4795 = vmatmul.bf16.gmra.mxu3 %v8089_v18  ;;  %5309 = vmatpush.bf16.msra.mxu2 %v9996_v20 }
 0x223   :  { %5004 = vmatmul.bf16.gmra.mxu0 %v8093_v35  ;;  %v8133_v35 = vor.u32 %v9725_v59, %v8130_v6  ;;  %v4137_v59 = vadd.f32 %v11351_v52, %v10659_v40  ;;  %v8182_v40 = vld [vmem:[%s14380_s0 + $0x9f4] sm:$0xf0] }
 0x224   :  { %v4547_v33 = vpop.f32.mrf.mxu2 }
 0x225   :  { %v4548_v4 = vadd.f32 %v4547_v33, %v4339_v48  ;;  %v4756_v34 = vpop.f32.mrf.mxu3  ;;  %v8145_v33 = vor.u32 %v9733_v32, %v8144_v7  ;;  %v9988_v7 = vld [vmem:[%s14378_s1 + $0x150] sm:$0xff] }
 0x226   :  { %v4340_v13 = vpop.f32.mrf.mxu1  ;;  %v10012_v32 = vld [vmem:[%s14378_s1 + $0x210] sm:$0xff]  ;;  %5100 = vmatpush.bf16.msra.mxu1 %v9988_v7 }
 0x227   :  { %v4757_v30 = vadd.f32 %v4756_v34, %v4548_v4  ;;  %v4341_v8 = vadd.f32 %v4340_v13, %v4132_v53  ;;  %5727 = vmatpush.bf16.msra.mxu0 %v10012_v32 }
 0x228   :  { %v4967_v10 = vpop.f32.mrf.mxu0 }
 0x229   :  { %v11361_v31 = vadd.f32 %v4965_v5, %v4757_v30  ;;  %v8141_v5 = vor.u32 %v9726_v11, %v8138_v42  ;;  %v10004_v30 = vld [vmem:[%s14378_s1 + $0x1d0] sm:$0xff] }
 0x22a   :  { %5518 = vmatpush.bf16.msra.mxu3 %v10004_v30 }
 0x22c   :  { %v4549_v26 = vpop.f32.mrf.mxu2 }
 0x22d   :  { %v4550_v57 = vadd.f32 %v4549_v26, %v4341_v8  ;;  %v4758_v18 = vpop.f32.mrf.mxu3  ;;  %v9738_v26 = vld [vmem:[%s14380_s0 + $0x9c4] sm:$0xf] }
 0x22e   :  { %v4343_v48 = vpop.f32.mrf.mxu1  ;;  %v8185_v20 = vor.u32 %v9738_v26, %v8182_v40 }
 0x22f   :  { %v4759_v53 = vadd.f32 %v4758_v18, %v4550_v57  ;;  %v4344_v4 = vadd.f32 %v4343_v48, %v4135_v62  ;;  %v8188_v57 = vld [vmem:[%s14380_s0 + $0x9c8] sm:$0xf]  ;;  %v9745_v18 = vld [vmem:[%s14380_s0 + $0x9f8] sm:$0xf0]  ;;  %v8196_v48 = vld [vmem:[%s14380_s0 + $0x9d0] sm:$0xf] }
 0x230   :  { %v4970_v34 = vpop.f32.mrf.mxu0  ;;  %v8189_v30 = vor.u32 %v9745_v18, %v8188_v57 }
 0x231   :  { %4382 = vmatmul.bf16.gmra.mxu1 %v8133_v35  ;;  %4591 = vmatmul.bf16.gmra.mxu2 %v8137_v19  ;;  %v11383_v13 = vadd.f32 %v4967_v10, %v4759_v53  ;;  %v9739_v35 = vld [vmem:[%s14380_s0 + $0x9cc] sm:$0xf]  ;;  %v8190_v19 = vld [vmem:[%s14380_s0 + $0x9fc] sm:$0xf0]  ;;  %v4140_v53 = vadd.f32 %v11351_v52, %v10697_v22  ;;  %v4142_v22 = vadd.f32 %v11351_v52, %v10705_v37  ;;  %v8240_v37 = vld [vmem:[%s14380_s0 + $0xa30] sm:$0xf] }
 0x232   :  { %4800 = vmatmul.bf16.gmra.mxu3 %v8141_v5  ;;  %v9746_v5 = vld [vmem:[%s14380_s0 + $0xa00] sm:$0xf0] }
 0x233   :  { %5009 = vmatmul.bf16.gmra.mxu0 %v8145_v33 }
 0x234   :  { %v4552_v8 = vpop.f32.mrf.mxu2 }
 0x235   :  { %v4553_v6 = vadd.f32 %v4552_v8, %v4344_v4  ;;  %v4761_v60 = vpop.f32.mrf.mxu3 }
 0x236   :  { %v4345_v10 = vpop.f32.mrf.mxu1 }
 0x237   :  { %v4762_v54 = vadd.f32 %v4761_v60, %v4553_v6  ;;  %v4346_v11 = vadd.f32 %v4345_v10, %v4137_v59  ;;  %v8193_v59 = vor.u32 %v9739_v35, %v8190_v19  ;;  %v8197_v6 = vor.u32 %v9746_v5, %v8196_v48  ;;  %v9751_v35 = vld [vmem:[%s14380_s0 + $0xa2c] sm:$0xf]  ;;  %v9758_v48 = vld [vmem:[%s14380_s0 + $0xa60] sm:$0xf0]  ;;  %v9752_v5 = vld [vmem:[%s14380_s0 + $0xa34] sm:$0xf] }
 0x238   :  { %v4972_v42 = vpop.f32.mrf.mxu0 }
 0x239   :  { %v11405_v62 = vadd.f32 %v4970_v34, %v4762_v54 }
 0x23c   :  { %v4554_v33 = vpop.f32.mrf.mxu2 }
 0x23d   :  { %v4555_v4 = vadd.f32 %v4554_v33, %v4346_v11  ;;  %v4763_v34 = vpop.f32.mrf.mxu3 }
 0x23e   :  { %v4348_v8 = vpop.f32.mrf.mxu1 }
 0x23f   :  { %v4764_v60 = vadd.f32 %v4763_v34, %v4555_v4  ;;  %v4349_v10 = vadd.f32 %v4348_v8, %v4140_v53  ;;  %v8242_v53 = vld [vmem:[%s14380_s0 + $0xa64] sm:$0xf0]  ;;  %v8248_v4 = vld [vmem:[%s14380_s0 + $0xa38] sm:$0xf]  ;;  %v9759_v34 = vld [vmem:[%s14380_s0 + $0xa68] sm:$0xf0] }
 0x240   :  { %v4975_v54 = vpop.f32.mrf.mxu0 }
 0x241   :  { %4387 = vmatmul.bf16.gmra.mxu1 %v8185_v20  ;;  %4596 = vmatmul.bf16.gmra.mxu2 %v8189_v30  ;;  %v11427_v7 = vadd.f32 %v4972_v42, %v4764_v60  ;;  %v8234_v42 = vld [vmem:[%s14380_s0 + $0xa5c] sm:$0xf0]  ;;  %v4145_v30 = vadd.f32 %v11351_v52, %v10737_v51  ;;  %v8241_v60 = vor.u32 %v9758_v48, %v8240_v37 }
 0x242   :  { %4805 = vmatmul.bf16.gmra.mxu3 %v8193_v59  ;;  %v4147_v51 = vadd.f32 %v11351_v52, %v10745_v3  ;;  %v8292_v3 = vld [vmem:[%s14380_s0 + $0xa98] sm:$0xf] }
 0x243   :  { %5014 = vmatmul.bf16.gmra.mxu0 %v8197_v6  ;;  %v8237_v6 = vor.u32 %v9751_v35, %v8234_v42 }
 0x244   :  { %v4557_v32 = vpop.f32.mrf.mxu2 }
 0x245   :  { %v4558_v11 = vadd.f32 %v4557_v32, %v4349_v10  ;;  %v4766_v33 = vpop.f32.mrf.mxu3  ;;  %v8249_v32 = vor.u32 %v9759_v34, %v8248_v4  ;;  %v9771_v4 = vld [vmem:[%s14380_s0 + $0xac8] sm:$0xf0]  ;;  %v9765_v34 = vld [vmem:[%s14380_s0 + $0xa9c] sm:$0xf] }
 0x246   :  { %v4350_v26 = vpop.f32.mrf.mxu1 }
 0x247   :  { %v4767_v40 = vadd.f32 %v4766_v33, %v4558_v11  ;;  %v4351_v57 = vadd.f32 %v4350_v26, %v4142_v22 }
 0x248   :  { %v4977_v18 = vpop.f32.mrf.mxu0 }
 0x249   :  { %v11437_v19 = vadd.f32 %v4975_v54, %v4767_v40  ;;  %v8245_v54 = vor.u32 %v9752_v5, %v8242_v53  ;;  %v9764_v5 = vld [vmem:[%s14380_s0 + $0xa94] sm:$0xf] }
 0x24c   :  { %v4559_v20 = vpop.f32.mrf.mxu2 }
 0x24d   :  { %v4560_v8 = vadd.f32 %v4559_v20, %v4351_v57  ;;  %v4768_v59 = vpop.f32.mrf.mxu3 }
 0x24e   :  { %v4353_v10 = vpop.f32.mrf.mxu1 }
 0x24f   :  { %v4769_v22 = vadd.f32 %v4768_v59, %v4560_v8  ;;  %v4354_v11 = vadd.f32 %v4353_v10, %v4145_v30  ;;  %v8294_v30 = vld [vmem:[%s14380_s0 + $0xacc] sm:$0xf0]  ;;  %v8300_v8 = vld [vmem:[%s14380_s0 + $0xaa0] sm:$0xf]  ;;  %v9772_v59 = vld [vmem:[%s14380_s0 + $0xad0] sm:$0xf0] }
 0x250   :  { %v4980_v33 = vpop.f32.mrf.mxu0 }
 0x251   :  { %4392 = vmatmul.bf16.gmra.mxu1 %v8237_v6  ;;  %4601 = vmatmul.bf16.gmra.mxu2 %v8241_v60  ;;  %v11459_v26 = vadd.f32 %v4977_v18, %v4769_v22  ;;  %v8286_v18 = vld [vmem:[%s14380_s0 + $0xac4] sm:$0xf0]  ;;  %v4150_v60 = vadd.f32 %v11351_v52, %v10777_v15  ;;  %v8293_v22 = vor.u32 %v9771_v4, %v8292_v3 }
 0x252   :  { %4810 = vmatmul.bf16.gmra.mxu3 %v8245_v54  ;;  %v4152_v15 = vadd.f32 %v11351_v52, %v10785_v16  ;;  %v8344_v16 = vld [vmem:[%s14380_s0 + $0xb00] sm:$0xf] }
 0x253   :  { %5019 = vmatmul.bf16.gmra.mxu0 %v8249_v32  ;;  %v8289_v32 = vor.u32 %v9764_v5, %v8286_v18 }
 0x254   :  { %v4562_v40 = vpop.f32.mrf.mxu2 }
 0x255   :  { %v4563_v57 = vadd.f32 %v4562_v40, %v4354_v11  ;;  %v4771_v20 = vpop.f32.mrf.mxu3  ;;  %v8301_v40 = vor.u32 %v9772_v59, %v8300_v8  ;;  %v9784_v8 = vld [vmem:[%s14380_s0 + $0xb30] sm:$0xf0]  ;;  %v9778_v59 = vld [vmem:[%s14380_s0 + $0xb04] sm:$0xf] }
 0x256   :  { %v4355_v35 = vpop.f32.mrf.mxu1 }
 0x257   :  { %v4772_v42 = vadd.f32 %v4771_v20, %v4563_v57  ;;  %v4356_v37 = vadd.f32 %v4355_v35, %v4147_v51 }
 0x258   :  { %v4982_v48 = vpop.f32.mrf.mxu0 }
 0x259   :  { %v11469_v53 = vadd.f32 %v4980_v33, %v4772_v42  ;;  %v8297_v33 = vor.u32 %v9765_v34, %v8294_v30  ;;  %v9777_v34 = vld [vmem:[%s14380_s0 + $0xafc] sm:$0xf] }
 0x25c   :  { %v4564_v6 = vpop.f32.mrf.mxu2 }
 0x25d   :  { %v4565_v10 = vadd.f32 %v4564_v6, %v4356_v37  ;;  %v4773_v54 = vpop.f32.mrf.mxu3 }
 0x25e   :  { %v4358_v11 = vpop.f32.mrf.mxu1 }
 0x25f   :  { %v4774_v51 = vadd.f32 %v4773_v54, %v4565_v10  ;;  %v4359_v57 = vadd.f32 %v4358_v11, %v4150_v60  ;;  %v8346_v60 = vld [vmem:[%s14380_s0 + $0xb34] sm:$0xf0]  ;;  %v8352_v10 = vld [vmem:[%s14380_s0 + $0xb08] sm:$0xf]  ;;  %v9785_v54 = vld [vmem:[%s14380_s0 + $0xb38] sm:$0xf0] }
 0x260   :  { %v4985_v20 = vpop.f32.mrf.mxu0 }
 0x261   :  { %4397 = vmatmul.bf16.gmra.mxu1 %v8289_v32  ;;  %4606 = vmatmul.bf16.gmra.mxu2 %v8293_v22  ;;  %v11491_v35 = vadd.f32 %v4982_v48, %v4774_v51  ;;  %v8338_v48 = vld [vmem:[%s14380_s0 + $0xb2c] sm:$0xf0]  ;;  %v4155_v22 = vadd.f32 %v11351_v52, %v10817_v29  ;;  %v8345_v51 = vor.u32 %v9784_v8, %v8344_v16 }
 0x262   :  { %4815 = vmatmul.bf16.gmra.mxu3 %v8297_v33  ;;  %v4157_v29 = vadd.f32 %v11351_v52, %v10825_v12  ;;  %v8396_v12 = vld [vmem:[%s14380_s0 + $0xb68] sm:$0xf] }
 0x263   :  { %5024 = vmatmul.bf16.gmra.mxu0 %v8301_v40  ;;  %v8341_v40 = vor.u32 %v9777_v34, %v8338_v48 }
 0x264   :  { %v4567_v42 = vpop.f32.mrf.mxu2 }
 0x265   :  { %v4568_v37 = vadd.f32 %v4567_v42, %v4359_v57  ;;  %v4776_v6 = vpop.f32.mrf.mxu3  ;;  %v8353_v42 = vor.u32 %v9785_v54, %v8352_v10  ;;  %v9797_v10 = vld [vmem:[%s14380_s0 + $0xb98] sm:$0xf0]  ;;  %v9791_v54 = vld [vmem:[%s14380_s0 + $0xb6c] sm:$0xf] }
 0x266   :  { %v4360_v5 = vpop.f32.mrf.mxu1 }
 0x267   :  { %v4777_v18 = vadd.f32 %v4776_v6, %v4568_v37  ;;  %v4361_v3 = vadd.f32 %v4360_v5, %v4152_v15 }
 0x268   :  { %v4987_v4 = vpop.f32.mrf.mxu0 }
 0x269   :  { %v11501_v30 = vadd.f32 %v4985_v20, %v4777_v18  ;;  %v8349_v20 = vor.u32 %v9778_v59, %v8346_v60  ;;  %v9790_v59 = vld [vmem:[%s14380_s0 + $0xb64] sm:$0xf] }
 0x26c   :  { %v4569_v32 = vpop.f32.mrf.mxu2 }
 0x26d   :  { %v4570_v11 = vadd.f32 %v4569_v32, %v4361_v3  ;;  %v4778_v33 = vpop.f32.mrf.mxu3 }
 0x26e   :  { %v4363_v57 = vpop.f32.mrf.mxu1 }
 0x26f   :  { %v4779_v15 = vadd.f32 %v4778_v33, %v4570_v11  ;;  %v4364_v37 = vadd.f32 %v4363_v57, %v4155_v22  ;;  %v8398_v22 = vld [vmem:[%s14380_s0 + $0xb9c] sm:$0xf0]  ;;  %v8404_v11 = vld [vmem:[%s14380_s0 + $0xb70] sm:$0xf]  ;;  %v9798_v33 = vld [vmem:[%s14380_s0 + $0xba0] sm:$0xf0] }
 0x270   :  { %v4990_v6 = vpop.f32.mrf.mxu0 }
 0x271   :  { %4402 = vmatmul.bf16.gmra.mxu1 %v8341_v40  ;;  %4611 = vmatmul.bf16.gmra.mxu2 %v8345_v51  ;;  %v11523_v5 = vadd.f32 %v4987_v4, %v4779_v15  ;;  %v8390_v4 = vld [vmem:[%s14380_s0 + $0xb94] sm:$0xf0]  ;;  %v4160_v51 = vadd.f32 %v11351_v52, %v10443_v24  ;;  %v8397_v15 = vor.u32 %v9797_v10, %v8396_v12  ;;  %v9995_v24 = vld [vmem:[%s14378_s1 + $0x188] sm:$0xff] }
 0x272   :  { %4820 = vmatmul.bf16.gmra.mxu3 %v8349_v20  ;;  %5310 = vmatpush.bf16.msra.mxu2 %v9995_v24 }
 0x273   :  { %5029 = vmatmul.bf16.gmra.mxu0 %v8353_v42  ;;  %v8393_v42 = vor.u32 %v9790_v59, %v8390_v4  ;;  %v14424_v59 = vld [vmem:[#allocation3_spill] sm:$0xff] }
 0x274   :  { %v4572_v18 = vpop.f32.mrf.mxu2  ;;  %v4162_v4 = vadd.f32 %v11351_v52, %v14424_v59 }
 0x275   :  { %v4573_v3 = vadd.f32 %v4572_v18, %v4364_v37  ;;  %v4781_v32 = vpop.f32.mrf.mxu3  ;;  %v8405_v18 = vor.u32 %v9798_v33, %v8404_v11  ;;  %v9987_v33 = vld [vmem:[%s14378_s1 + $0x148] sm:$0xff] }
 0x276   :  { %v4365_v34 = vpop.f32.mrf.mxu1  ;;  %5101 = vmatpush.bf16.msra.mxu1 %v9987_v33 }
 0x277   :  { %v4782_v48 = vadd.f32 %v4781_v32, %v4573_v3  ;;  %v4366_v16 = vadd.f32 %v4365_v34, %v4157_v29 }
 0x278   :  { %v4992_v8 = vpop.f32.mrf.mxu0 }
 0x279   :  { %v11533_v60 = vadd.f32 %v4990_v6, %v4782_v48  ;;  %v8401_v6 = vor.u32 %v9791_v54, %v8398_v22  ;;  %v10003_v48 = vld [vmem:[%s14378_s1 + $0x1c8] sm:$0xff] }
 0x27a   :  { %5519 = vmatpush.bf16.msra.mxu3 %v10003_v48 }
 0x27b   :  { %14422 = vst [vmem:[#allocation42_spill] sm:$0xff] %v11533_v60  ;;  %v14428_v60 = vld [vmem:[#allocation7_spill] sm:$0xff] }
 0x27c   :  { %v4574_v40 = vpop.f32.mrf.mxu2 }
 0x27d   :  { %v4575_v57 = vadd.f32 %v4574_v40, %v4366_v16  ;;  %v4783_v20 = vpop.f32.mrf.mxu3  ;;  %v10011_v40 = vld [vmem:[%s14378_s1 + $0x208] sm:$0xff] }
 0x27e   :  { %v4368_v37 = vpop.f32.mrf.mxu1  ;;  %5728 = vmatpush.bf16.msra.mxu0 %v10011_v40 }
 0x27f   :  { %v4784_v29 = vadd.f32 %v4783_v20, %v4575_v57  ;;  %v4369_v3 = vadd.f32 %v4368_v37, %v4160_v51  ;;  %v9803_v51 = vld [vmem:[%s14380_s0 + $0xbcc] sm:$0xf]  ;;  %v8442_v57 = vld [vmem:[%s14380_s0 + $0xbfc] sm:$0xf0]  ;;  %v9804_v37 = vld [vmem:[%s14380_s0 + $0xbd4] sm:$0xf] }
 0x280   :  { %v4995_v32 = vpop.f32.mrf.mxu0  ;;  %v8445_v59 = vor.u32 %v9803_v51, %v8442_v57 }
 0x281   :  { %4407 = vmatmul.bf16.gmra.mxu1 %v8393_v42  ;;  %4616 = vmatmul.bf16.gmra.mxu2 %v8397_v15  ;;  %v11555_v34 = vadd.f32 %v4992_v8, %v4784_v29  ;;  %v8448_v42 = vld [vmem:[%s14380_s0 + $0xbd0] sm:$0xf]  ;;  %v9810_v15 = vld [vmem:[%s14380_s0 + $0xc00] sm:$0xf0]  ;;  %v9811_v29 = vld [vmem:[%s14380_s0 + $0xc08] sm:$0xf0] }
 0x282   :  { %4825 = vmatmul.bf16.gmra.mxu3 %v8401_v6  ;;  %v8450_v6 = vld [vmem:[%s14380_s0 + $0xc04] sm:$0xf0] }
 0x283   :  { %14423 = vst [vmem:[#allocation43_spill] sm:$0xff] %v11555_v34  ;;  %5034 = vmatmul.bf16.gmra.mxu0 %v8405_v18  ;;  %v8456_v18 = vld [vmem:[%s14380_s0 + $0xbd8] sm:$0xf] }
 0x284   :  { %v4577_v16 = vpop.f32.mrf.mxu2 }
 0x285   :  { %v4578_v12 = vadd.f32 %v4577_v16, %v4369_v3  ;;  %v4786_v10 = vpop.f32.mrf.mxu3 }
 0x286   :  { %v4370_v8 = vpop.f32.mrf.mxu1 }
 0x287   :  { %v4787_v54 = vadd.f32 %v4786_v10, %v4578_v12  ;;  %v4371_v22 = vadd.f32 %v4370_v8, %v4162_v4  ;;  %v8449_v4 = vor.u32 %v9810_v15, %v8448_v42  ;;  %v8453_v10 = vor.u32 %v9804_v37, %v8450_v6  ;;  %v9816_v37 = vld [vmem:[%s14380_s0 + $0xc34] sm:$0xf] }
 0x288   :  { %v4997_v11 = vpop.f32.mrf.mxu0  ;;  %v8457_v8 = vor.u32 %v9811_v29, %v8456_v18  ;;  %v9817_v18 = vld [vmem:[%s14380_s0 + $0xc3c] sm:$0xf]  ;;  %v8502_v29 = vld [vmem:[%s14380_s0 + $0xc6c] sm:$0xf0] }
 0x289   :  { %v11577_v20 = vadd.f32 %v4995_v32, %v4787_v54  ;;  %v14426_v32 = vld [vmem:[#allocation5_spill] sm:$0xff] }
 0x28a   :  { %v4165_v24 = vadd.f32 %v11351_v52, %v14426_v32  ;;  %v4167_v32 = vadd.f32 %v11351_v52, %v14428_v60  ;;  %v8500_v60 = vld [vmem:[%s14380_s0 + $0xc38] sm:$0xf] }
 0x28b   :  { %14425 = vst [vmem:[#allocation3_spill] sm:$0xff] %v11577_v20 }
 0x28c   :  { %v4579_v3 = vpop.f32.mrf.mxu2 }
 0x28d   :  { %v4580_v48 = vadd.f32 %v4579_v3, %v4371_v22  ;;  %v4788_v16 = vpop.f32.mrf.mxu3 }
 0x28e   :  { %v4373_v12 = vpop.f32.mrf.mxu1 }
 0x28f   :  { %v4789_v54 = vadd.f32 %v4788_v16, %v4580_v48  ;;  %v4374_v33 = vadd.f32 %v4373_v12, %v4165_v24  ;;  %v8508_v24 = vld [vmem:[%s14380_s0 + $0xc40] sm:$0xf]  ;;  %v9824_v48 = vld [vmem:[%s14380_s0 + $0xc70] sm:$0xf0] }
 0x290   :  { %v5000_v40 = vpop.f32.mrf.mxu0 }
 0x291   :  { %4412 = vmatmul.bf16.gmra.mxu1 %v8445_v59  ;;  %4621 = vmatmul.bf16.gmra.mxu2 %v8449_v4  ;;  %v11599_v20 = vadd.f32 %v4997_v11, %v4789_v54  ;;  %v8494_v11 = vld [vmem:[%s14380_s0 + $0xc64] sm:$0xf0]  ;;  %v14430_v59 = vld [vmem:[#allocation9_spill] sm:$0xff] }
 0x292   :  { %4830 = vmatmul.bf16.gmra.mxu3 %v8453_v10  ;;  %v4170_v4 = vadd.f32 %v11351_v52, %v14430_v59 }
 0x293   :  { %14427 = vst [vmem:[#allocation5_spill] sm:$0xff] %v11599_v20  ;;  %5039 = vmatmul.bf16.gmra.mxu0 %v8457_v8  ;;  %v8497_v8 = vor.u32 %v9816_v37, %v8494_v11  ;;  %v14432_v20 = vld [vmem:[#allocation11_spill] sm:$0xff] }
 0x294   :  { %v4582_v34 = vpop.f32.mrf.mxu2  ;;  %v4172_v59 = vadd.f32 %v11351_v52, %v14432_v20  ;;  %v8552_v20 = vld [vmem:[%s14380_s0 + $0xca0] sm:$0xf] }
 0x295   :  { %v4583_v22 = vadd.f32 %v4582_v34, %v4374_v33  ;;  %v4791_v3 = vpop.f32.mrf.mxu3  ;;  %v9823_v34 = vld [vmem:[%s14380_s0 + $0xc68] sm:$0xf0] }
 0x296   :  { %v4375_v51 = vpop.f32.mrf.mxu1  ;;  %v8501_v54 = vor.u32 %v9823_v34, %v8500_v60 }
 0x297   :  { %v4792_v57 = vadd.f32 %v4791_v3, %v4583_v22  ;;  %v4376_v42 = vadd.f32 %v4375_v51, %v4167_v32  ;;  %v8509_v32 = vor.u32 %v9824_v48, %v8508_v24  ;;  %v9830_v24 = vld [vmem:[%s14380_s0 + $0xca4] sm:$0xf]  ;;  %v8554_v48 = vld [vmem:[%s14380_s0 + $0xcd4] sm:$0xf0] }
 0x298   :  { %v5002_v15 = vpop.f32.mrf.mxu0 }
 0x299   :  { %v11609_v6 = vadd.f32 %v5000_v40, %v4792_v57  ;;  %v8505_v40 = vor.u32 %v9817_v18, %v8502_v29  ;;  %v9829_v18 = vld [vmem:[%s14380_s0 + $0xc9c] sm:$0xf] }
 0x29b   :  { %14429 = vst [vmem:[#allocation7_spill] sm:$0xff] %v11609_v6 }
 0x29c   :  { %v4584_v16 = vpop.f32.mrf.mxu2 }
 0x29d   :  { %v4585_v12 = vadd.f32 %v4584_v16, %v4376_v42  ;;  %v4793_v10 = vpop.f32.mrf.mxu3 }
 0x29e   :  { %v4378_v33 = vpop.f32.mrf.mxu1 }
 0x29f   :  { %v4794_v22 = vadd.f32 %v4793_v10, %v4585_v12  ;;  %v4379_v3 = vadd.f32 %v4378_v33, %v4170_v4  ;;  %v8560_v4 = vld [vmem:[%s14380_s0 + $0xca8] sm:$0xf]  ;;  %v9837_v12 = vld [vmem:[%s14380_s0 + $0xcd8] sm:$0xf0] }
 0x2a0   :  { %v5005_v51 = vpop.f32.mrf.mxu0 }
 0x2a1   :  { %4417 = vmatmul.bf16.gmra.mxu1 %v8497_v8  ;;  %4626 = vmatmul.bf16.gmra.mxu2 %v8501_v54  ;;  %v11631_v57 = vadd.f32 %v5002_v15, %v4794_v22  ;;  %v8546_v15 = vld [vmem:[%s14380_s0 + $0xccc] sm:$0xf0]  ;;  %v14434_v8 = vld [vmem:[#allocation13_spill] sm:$0xff] }
 0x2a2   :  { %4835 = vmatmul.bf16.gmra.mxu3 %v8505_v40  ;;  %v4175_v54 = vadd.f32 %v11351_v52, %v14434_v8 }
 0x2a3   :  { %14431 = vst [vmem:[#allocation9_spill] sm:$0xff] %v11631_v57  ;;  %5044 = vmatmul.bf16.gmra.mxu0 %v8509_v32  ;;  %v8549_v32 = vor.u32 %v9829_v18, %v8546_v15  ;;  %v14436_v57 = vld [vmem:[#allocation15_spill] sm:$0xff] }
 0x2a4   :  { %v4587_v6 = vpop.f32.mrf.mxu2  ;;  %v4177_v8 = vadd.f32 %v11351_v52, %v14436_v57  ;;  %v8604_v57 = vld [vmem:[%s14380_s0 + $0xd08] sm:$0xf] }
 0x2a5   :  { %v4588_v42 = vadd.f32 %v4587_v6, %v4379_v3  ;;  %v4796_v16 = vpop.f32.mrf.mxu3  ;;  %v9836_v6 = vld [vmem:[%s14380_s0 + $0xcd0] sm:$0xf0] }
 0x2a6   :  { %v4380_v37 = vpop.f32.mrf.mxu1  ;;  %v8553_v22 = vor.u32 %v9836_v6, %v8552_v20 }
 0x2a7   :  { %v4797_v11 = vadd.f32 %v4796_v16, %v4588_v42  ;;  %v4381_v60 = vadd.f32 %v4380_v37, %v4172_v59  ;;  %v8561_v59 = vor.u32 %v9837_v12, %v8560_v4  ;;  %v9843_v4 = vld [vmem:[%s14380_s0 + $0xd0c] sm:$0xf]  ;;  %v8606_v12 = vld [vmem:[%s14380_s0 + $0xd3c] sm:$0xf0] }
 0x2a8   :  { %v5007_v34 = vpop.f32.mrf.mxu0 }
 0x2a9   :  { %v11641_v29 = vadd.f32 %v5005_v51, %v4797_v11  ;;  %v8557_v51 = vor.u32 %v9830_v24, %v8554_v48  ;;  %v9842_v24 = vld [vmem:[%s14380_s0 + $0xd04] sm:$0xf] }
 0x2ab   :  { %14433 = vst [vmem:[#allocation11_spill] sm:$0xff] %v11641_v29 }
 0x2ac   :  { %v4589_v10 = vpop.f32.mrf.mxu2 }
 0x2ad   :  { %v4590_v33 = vadd.f32 %v4589_v10, %v4381_v60  ;;  %v4798_v40 = vpop.f32.mrf.mxu3 }
 0x2ae   :  { %v4383_v3 = vpop.f32.mrf.mxu1 }
 0x2af   :  { %v4799_v42 = vadd.f32 %v4798_v40, %v4590_v33  ;;  %v4384_v16 = vadd.f32 %v4383_v3, %v4175_v54  ;;  %v8612_v54 = vld [vmem:[%s14380_s0 + $0xd10] sm:$0xf]  ;;  %v9850_v33 = vld [vmem:[%s14380_s0 + $0xd40] sm:$0xf0] }
 0x2b0   :  { %v5010_v37 = vpop.f32.mrf.mxu0 }
 0x2b1   :  { %4422 = vmatmul.bf16.gmra.mxu1 %v8549_v32  ;;  %4631 = vmatmul.bf16.gmra.mxu2 %v8553_v22  ;;  %v11663_v11 = vadd.f32 %v5007_v34, %v4799_v42  ;;  %v8598_v34 = vld [vmem:[%s14380_s0 + $0xd34] sm:$0xf0] }
 0x2b2   :  { %4840 = vmatmul.bf16.gmra.mxu3 %v8557_v51  ;;  %v14438_v32 = vld [vmem:[#allocation17_spill] sm:$0xff] }
 0x2b3   :  { %14435 = vst [vmem:[#allocation13_spill] sm:$0xff] %v11663_v11  ;;  %5049 = vmatmul.bf16.gmra.mxu0 %v8561_v59  ;;  %v4180_v22 = vadd.f32 %v11351_v52, %v14438_v32  ;;  %v8601_v59 = vor.u32 %v9842_v24, %v8598_v34  ;;  %v14440_v11 = vld [vmem:[#allocation19_spill] sm:$0xff] }
 0x2b4   :  { %v4592_v29 = vpop.f32.mrf.mxu2  ;;  %v4182_v32 = vadd.f32 %v11351_v52, %v14440_v11  ;;  %v8656_v11 = vld [vmem:[%s14380_s0 + $0xd70] sm:$0xf] }
 0x2b5   :  { %v4593_v60 = vadd.f32 %v4592_v29, %v4384_v16  ;;  %v4801_v10 = vpop.f32.mrf.mxu3  ;;  %v9849_v29 = vld [vmem:[%s14380_s0 + $0xd38] sm:$0xf0] }
 0x2b6   :  { %v4385_v18 = vpop.f32.mrf.mxu1  ;;  %v8605_v42 = vor.u32 %v9849_v29, %v8604_v57 }
 0x2b7   :  { %v4802_v15 = vadd.f32 %v4801_v10, %v4593_v60  ;;  %v4386_v20 = vadd.f32 %v4385_v18, %v4177_v8  ;;  %v8613_v8 = vor.u32 %v9850_v33, %v8612_v54  ;;  %v9856_v54 = vld [vmem:[%s14380_s0 + $0xd74] sm:$0xf]  ;;  %v8658_v33 = vld [vmem:[%s14380_s0 + $0xda4] sm:$0xf0] }
 0x2b8   :  { %v5012_v6 = vpop.f32.mrf.mxu0 }
 0x2b9   :  { %v11673_v48 = vadd.f32 %v5010_v37, %v4802_v15  ;;  %v8609_v37 = vor.u32 %v9843_v4, %v8606_v12  ;;  %v9855_v4 = vld [vmem:[%s14380_s0 + $0xd6c] sm:$0xf] }
 0x2bb   :  { %14437 = vst [vmem:[#allocation15_spill] sm:$0xff] %v11673_v48 }
 0x2bc   :  { %v4594_v40 = vpop.f32.mrf.mxu2 }
 0x2bd   :  { %v4595_v3 = vadd.f32 %v4594_v40, %v4386_v20  ;;  %v4803_v51 = vpop.f32.mrf.mxu3 }
 0x2be   :  { %v4388_v16 = vpop.f32.mrf.mxu1 }
 0x2bf   :  { %v4804_v60 = vadd.f32 %v4803_v51, %v4595_v3  ;;  %v4389_v10 = vadd.f32 %v4388_v16, %v4180_v22  ;;  %v8664_v22 = vld [vmem:[%s14380_s0 + $0xd78] sm:$0xf]  ;;  %v9863_v3 = vld [vmem:[%s14380_s0 + $0xda8] sm:$0xf0] }
 0x2c0   :  { %v5015_v18 = vpop.f32.mrf.mxu0 }
 0x2c1   :  { %4427 = vmatmul.bf16.gmra.mxu1 %v8601_v59  ;;  %4636 = vmatmul.bf16.gmra.mxu2 %v8605_v42  ;;  %v11695_v15 = vadd.f32 %v5012_v6, %v4804_v60  ;;  %v8650_v6 = vld [vmem:[%s14380_s0 + $0xd9c] sm:$0xf0]  ;;  %v14442_v59 = vld [vmem:[#allocation21_spill] sm:$0xff] }
 0x2c2   :  { %4845 = vmatmul.bf16.gmra.mxu3 %v8609_v37  ;;  %v4185_v42 = vadd.f32 %v11351_v52, %v14442_v59  ;;  %v9994_v59 = vld [vmem:[%s14378_s1 + $0x180] sm:$0xff] }
 0x2c3   :  { %14439 = vst [vmem:[#allocation17_spill] sm:$0xff] %v11695_v15  ;;  %5054 = vmatmul.bf16.gmra.mxu0 %v8613_v8  ;;  %v8653_v8 = vor.u32 %v9855_v4, %v8650_v6  ;;  %5311 = vmatpush.bf16.msra.mxu2 %v9994_v59  ;;  %v14444_v6 = vld [vmem:[#allocation23_spill] sm:$0xff]  ;;  %v14446_v59 = vld [vmem:[#allocation25_spill] sm:$0xff] }
 0x2c4   :  { %v4597_v48 = vpop.f32.mrf.mxu2  ;;  %v14448_v15 = vld [vmem:[#allocation27_spill] sm:$0xff] }
 0x2c5   :  { %v4598_v20 = vadd.f32 %v4597_v48, %v4389_v10  ;;  %v4806_v40 = vpop.f32.mrf.mxu3  ;;  %v9862_v48 = vld [vmem:[%s14380_s0 + $0xda0] sm:$0xf0] }
 0x2c6   :  { %v4390_v24 = vpop.f32.mrf.mxu1  ;;  %v8657_v60 = vor.u32 %v9862_v48, %v8656_v11  ;;  %v4187_v11 = vadd.f32 %v11351_v52, %v14444_v6 }
 0x2c7   :  { %v4807_v34 = vadd.f32 %v4806_v40, %v4598_v20  ;;  %v4391_v57 = vadd.f32 %v4390_v24, %v4182_v32  ;;  %v8665_v32 = vor.u32 %v9863_v3, %v8664_v22 }
 0x2c8   :  { %v5017_v29 = vpop.f32.mrf.mxu0 }
 0x2c9   :  { %v11705_v12 = vadd.f32 %v5015_v18, %v4807_v34  ;;  %v8661_v18 = vor.u32 %v9856_v54, %v8658_v33 }
 0x2cb   :  { %14441 = vst [vmem:[#allocation19_spill] sm:$0xff] %v11705_v12 }
 0x2cc   :  { %v4599_v51 = vpop.f32.mrf.mxu2 }
 0x2cd   :  { %v4600_v16 = vadd.f32 %v4599_v51, %v4391_v57  ;;  %v4808_v37 = vpop.f32.mrf.mxu3  ;;  %v10002_v57 = vld [vmem:[%s14378_s1 + $0x1c0] sm:$0xff] }
 0x2ce   :  { %v4393_v10 = vpop.f32.mrf.mxu1  ;;  %5520 = vmatpush.bf16.msra.mxu3 %v10002_v57  ;;  %v9986_v51 = vld [vmem:[%s14378_s1 + $0x140] sm:$0xff]  ;;  %v4190_v57 = vadd.f32 %v11351_v52, %v14446_v59  ;;  %v4192_v59 = vadd.f32 %v11351_v52, %v14448_v15 }
 0x2cf   :  { %v4809_v20 = vadd.f32 %v4808_v37, %v4600_v16  ;;  %v4394_v40 = vadd.f32 %v4393_v10, %v4185_v42  ;;  %v10010_v42 = vld [vmem:[%s14378_s1 + $0x200] sm:$0xff]  ;;  %v9868_v16 = vld [vmem:[%s14380_s0 + $0xdd4] sm:$0xf]  ;;  %v8702_v37 = vld [vmem:[%s14380_s0 + $0xe04] sm:$0xf0]  ;;  %5102 = vmatpush.bf16.msra.mxu1 %v9986_v51 }
 0x2d0   :  { %v5020_v24 = vpop.f32.mrf.mxu0  ;;  %5729 = vmatpush.bf16.msra.mxu0 %v10010_v42  ;;  %v9875_v10 = vld [vmem:[%s14380_s0 + $0xe08] sm:$0xf0]  ;;  %v8760_v15 = vld [vmem:[%s14380_s0 + $0xe40] sm:$0xf] }
 0x2d1   :  { %4432 = vmatmul.bf16.gmra.mxu1 %v8653_v8  ;;  %4641 = vmatmul.bf16.gmra.mxu2 %v8657_v60  ;;  %v11727_v34 = vadd.f32 %v5017_v29, %v4809_v20  ;;  %v8708_v60 = vld [vmem:[%s14380_s0 + $0xdd8] sm:$0xf]  ;;  %v8716_v20 = vld [vmem:[%s14380_s0 + $0xde0] sm:$0xf] }
 0x2d2   :  { %4850 = vmatmul.bf16.gmra.mxu3 %v8661_v18  ;;  %v9869_v18 = vld [vmem:[%s14380_s0 + $0xddc] sm:$0xf] }
 0x2d3   :  { %14443 = vst [vmem:[#allocation21_spill] sm:$0xff] %v11727_v34  ;;  %5059 = vmatmul.bf16.gmra.mxu0 %v8665_v32  ;;  %v8710_v32 = vld [vmem:[%s14380_s0 + $0xe0c] sm:$0xf0] }
 0x2d4   :  { %v4602_v4 = vpop.f32.mrf.mxu2 }
 0x2d5   :  { %v4603_v48 = vadd.f32 %v4602_v4, %v4394_v40  ;;  %v4811_v54 = vpop.f32.mrf.mxu3  ;;  %v9876_v40 = vld [vmem:[%s14380_s0 + $0xe10] sm:$0xf0] }
 0x2d6   :  { %v4395_v29 = vpop.f32.mrf.mxu1 }
 0x2d7   :  { %v4812_v33 = vadd.f32 %v4811_v54, %v4603_v48  ;;  %v4396_v22 = vadd.f32 %v4395_v29, %v4187_v11  ;;  %v8705_v11 = vor.u32 %v9868_v16, %v8702_v37  ;;  %v8709_v48 = vor.u32 %v9875_v10, %v8708_v60 }
 0x2d8   :  { %v5022_v3 = vpop.f32.mrf.mxu0  ;;  %v8713_v29 = vor.u32 %v9869_v18, %v8710_v32  ;;  %v9881_v18 = vld [vmem:[%s14380_s0 + $0xe3c] sm:$0xf] }
 0x2d9   :  { %v11749_v8 = vadd.f32 %v5020_v24, %v4812_v33  ;;  %v8717_v33 = vor.u32 %v9876_v40, %v8716_v20  ;;  %v9882_v20 = vld [vmem:[%s14380_s0 + $0xe44] sm:$0xf]  ;;  %v8762_v40 = vld [vmem:[%s14380_s0 + $0xe74] sm:$0xf0] }
 0x2db   :  { %14445 = vst [vmem:[#allocation23_spill] sm:$0xff] %v11749_v8 }
 0x2dc   :  { %v4604_v24 = vpop.f32.mrf.mxu2 }
 0x2dd   :  { %v4605_v4 = vadd.f32 %v4604_v24, %v4396_v22  ;;  %v4813_v6 = vpop.f32.mrf.mxu3 }
 0x2de   :  { %v4398_v54 = vpop.f32.mrf.mxu1 }
 0x2df   :  { %v4814_v51 = vadd.f32 %v4813_v6, %v4605_v4  ;;  %v4399_v42 = vadd.f32 %v4398_v54, %v4190_v57  ;;  %v9889_v57 = vld [vmem:[%s14380_s0 + $0xe78] sm:$0xf0] }
 0x2e0   :  { %v5025_v8 = vpop.f32.mrf.mxu0  ;;  %v14450_v6 = vld [vmem:[#allocation29_spill] sm:$0xff] }
 0x2e1   :  { %4437 = vmatmul.bf16.gmra.mxu1 %v8705_v11  ;;  %4646 = vmatmul.bf16.gmra.mxu2 %v8709_v48  ;;  %v11771_v34 = vadd.f32 %v5022_v3, %v4814_v51  ;;  %v8754_v3 = vld [vmem:[%s14380_s0 + $0xe6c] sm:$0xf0]  ;;  %v4195_v11 = vadd.f32 %v11351_v52, %v14450_v6 }
 0x2e2   :  { %4855 = vmatmul.bf16.gmra.mxu3 %v8713_v29  ;;  %v8757_v29 = vor.u32 %v9881_v18, %v8754_v3 }
 0x2e3   :  { %14447 = vst [vmem:[#allocation25_spill] sm:$0xff] %v11771_v34  ;;  %5064 = vmatmul.bf16.gmra.mxu0 %v8717_v33  ;;  %v14452_v34 = vld [vmem:[#allocation31_spill] sm:$0xff] }
 0x2e4   :  { %v4607_v12 = vpop.f32.mrf.mxu2  ;;  %v4197_v6 = vadd.f32 %v11351_v52, %v14452_v34  ;;  %v8812_v34 = vld [vmem:[%s14380_s0 + $0xea8] sm:$0xf] }
 0x2e5   :  { %v4608_v22 = vadd.f32 %v4607_v12, %v4399_v42  ;;  %v4816_v24 = vpop.f32.mrf.mxu3  ;;  %v9888_v12 = vld [vmem:[%s14380_s0 + $0xe70] sm:$0xf0]  ;;  %v8765_v42 = vor.u32 %v9882_v20, %v8762_v40  ;;  %v9894_v20 = vld [vmem:[%s14380_s0 + $0xea4] sm:$0xf] }
 0x2e6   :  { %v4400_v16 = vpop.f32.mrf.mxu1  ;;  %v8761_v33 = vor.u32 %v9888_v12, %v8760_v15 }
 0x2e7   :  { %v4817_v37 = vadd.f32 %v4816_v24, %v4608_v22  ;;  %v4401_v60 = vadd.f32 %v4400_v16, %v4192_v59 }
 0x2e8   :  { %v5027_v10 = vpop.f32.mrf.mxu0 }
 0x2e9   :  { %v11781_v32 = vadd.f32 %v5025_v8, %v4817_v37  ;;  %v8768_v8 = vld [vmem:[%s14380_s0 + $0xe48] sm:$0xf] }
 0x2ea   :  { %v8769_v59 = vor.u32 %v9889_v57, %v8768_v8  ;;  %v9895_v8 = vld [vmem:[%s14380_s0 + $0xeac] sm:$0xf]  ;;  %v8814_v57 = vld [vmem:[%s14380_s0 + $0xedc] sm:$0xf0] }
 0x2eb   :  { %14449 = vst [vmem:[#allocation27_spill] sm:$0xff] %v11781_v32 }
 0x2ec   :  { %v4609_v4 = vpop.f32.mrf.mxu2 }
 0x2ed   :  { %v4610_v48 = vadd.f32 %v4609_v4, %v4401_v60  ;;  %v4818_v54 = vpop.f32.mrf.mxu3 }
 0x2ee   :  { %v4403_v51 = vpop.f32.mrf.mxu1 }
 0x2ef   :  { %v4819_v22 = vadd.f32 %v4818_v54, %v4610_v48  ;;  %v4404_v24 = vadd.f32 %v4403_v51, %v4195_v11  ;;  %v8820_v11 = vld [vmem:[%s14380_s0 + $0xeb0] sm:$0xf]  ;;  %v9902_v48 = vld [vmem:[%s14380_s0 + $0xee0] sm:$0xf0] }
 0x2f0   :  { %v5030_v16 = vpop.f32.mrf.mxu0 }
 0x2f1   :  { %4442 = vmatmul.bf16.gmra.mxu1 %v8757_v29  ;;  %4651 = vmatmul.bf16.gmra.mxu2 %v8761_v33  ;;  %v11803_v37 = vadd.f32 %v5027_v10, %v4819_v22  ;;  %v8806_v10 = vld [vmem:[%s14380_s0 + $0xed4] sm:$0xf0] }
 0x2f2   :  { %4860 = vmatmul.bf16.gmra.mxu3 %v8765_v42  ;;  %v14454_v29 = vld [vmem:[#allocation33_spill] sm:$0xff] }
 0x2f3   :  { %14451 = vst [vmem:[#allocation29_spill] sm:$0xff] %v11803_v37  ;;  %5069 = vmatmul.bf16.gmra.mxu0 %v8769_v59  ;;  %v4200_v33 = vadd.f32 %v11351_v52, %v14454_v29  ;;  %v8809_v59 = vor.u32 %v9894_v20, %v8806_v10  ;;  %v14456_v37 = vld [vmem:[#allocation35_spill] sm:$0xff] }
 0x2f4   :  { %v4612_v32 = vpop.f32.mrf.mxu2  ;;  %v4202_v29 = vadd.f32 %v11351_v52, %v14456_v37  ;;  %v8864_v52 = vld [vmem:[%s14380_s0 + $0xf10] sm:$0xf]  ;;  %v9914_v37 = vld [vmem:[%s14380_s0 + $0xf40] sm:$0xf0] }
 0x2f5   :  { %v4613_v60 = vadd.f32 %v4612_v32, %v4404_v24  ;;  %v4821_v4 = vpop.f32.mrf.mxu3  ;;  %v9901_v32 = vld [vmem:[%s14380_s0 + $0xed8] sm:$0xf0] }
 0x2f6   :  { %v4405_v18 = vpop.f32.mrf.mxu1  ;;  %v8813_v22 = vor.u32 %v9901_v32, %v8812_v34 }
 0x2f7   :  { %v4822_v3 = vadd.f32 %v4821_v4, %v4613_v60  ;;  %v4406_v15 = vadd.f32 %v4405_v18, %v4197_v6  ;;  %v8821_v6 = vor.u32 %v9902_v48, %v8820_v11  ;;  %v8866_v11 = vld [vmem:[%s14380_s0 + $0xf44] sm:$0xf0]  ;;  %v8872_v48 = vld [vmem:[%s14380_s0 + $0xf18] sm:$0xf] }
 0x2f8   :  { %v5032_v12 = vpop.f32.mrf.mxu0 }
 0x2f9   :  { %v11813_v40 = vadd.f32 %v5030_v16, %v4822_v3  ;;  %v8817_v16 = vor.u32 %v9895_v8, %v8814_v57  ;;  %v9907_v8 = vld [vmem:[%s14380_s0 + $0xf0c] sm:$0xf] }
 0x2fb   :  { %14453 = vst [vmem:[#allocation31_spill] sm:$0xff] %v11813_v40 }
 0x2fc   :  { %v4614_v54 = vpop.f32.mrf.mxu2 }
 0x2fd   :  { %v4615_v51 = vadd.f32 %v4614_v54, %v4406_v15  ;;  %v4823_v42 = vpop.f32.mrf.mxu3 }
 0x2fe   :  { %v4408_v24 = vpop.f32.mrf.mxu1 }
 0x2ff   :  { %v4824_v60 = vadd.f32 %v4823_v42, %v4615_v51  ;;  %v4409_v4 = vadd.f32 %v4408_v24, %v4200_v33  ;;  %v9915_v33 = vld [vmem:[%s14380_s0 + $0xf48] sm:$0xf0]  ;;  %v11868_v42 = vld [vmem:[%s14379_s2] ss:$0 sm:$0xff] }
 0x300   :  { %v5035_v18 = vpop.f32.mrf.mxu0 }
 0x301   :  { %4447 = vmatmul.bf16.gmra.mxu1 %v8809_v59  ;;  %4656 = vmatmul.bf16.gmra.mxu2 %v8813_v22  ;;  %v11835_v3 = vadd.f32 %v5032_v12, %v4824_v60  ;;  %v8858_v12 = vld [vmem:[%s14380_s0 + $0xf3c] sm:$0xf0]  ;;  %v14458_v59 = vld [vmem:[#allocation37_spill] sm:$0xff]  ;;  %v8865_v60 = vor.u32 %v9914_v37, %v8864_v52 }
 0x302   :  { %4865 = vmatmul.bf16.gmra.mxu3 %v8817_v16  ;;  %v4205_v22 = vadd.f32 %v11868_v42, %v14458_v59 }
 0x303   :  { %14455 = vst [vmem:[#allocation33_spill] sm:$0xff] %v11835_v3  ;;  %5074 = vmatmul.bf16.gmra.mxu0 %v8821_v6  ;;  %v8861_v6 = vor.u32 %v9907_v8, %v8858_v12  ;;  %v14460_v3 = vld [vmem:[#allocation39_spill] sm:$0xff] }
 0x304   :  { %v4617_v40 = vpop.f32.mrf.mxu2  ;;  %v4207_v59 = vadd.f32 %v11868_v42, %v14460_v3  ;;  %v8916_v3 = vld [vmem:[%s14380_s0 + $0xf78] sm:$0xf] }
 0x305   :  { %v4618_v15 = vadd.f32 %v4617_v40, %v4409_v4  ;;  %v4826_v54 = vpop.f32.mrf.mxu3  ;;  %v9908_v40 = vld [vmem:[%s14380_s0 + $0xf14] sm:$0xf] }
 0x306   :  { %v4410_v20 = vpop.f32.mrf.mxu1 }
 0x307   :  { %v4827_v10 = vadd.f32 %v4826_v54, %v4618_v15  ;;  %v4411_v34 = vadd.f32 %v4410_v20, %v4202_v29  ;;  %v8873_v29 = vor.u32 %v9915_v33, %v8872_v48  ;;  %v9921_v48 = vld [vmem:[%s14380_s0 + $0xf7c] sm:$0xf]  ;;  %v8918_v33 = vld [vmem:[%s14380_s0 + $0xfac] sm:$0xf0] }
 0x308   :  { %v5037_v32 = vpop.f32.mrf.mxu0 }
 0x309   :  { %v11845_v57 = vadd.f32 %v5035_v18, %v4827_v10  ;;  %v8869_v18 = vor.u32 %v9908_v40, %v8866_v11  ;;  %v9920_v40 = vld [vmem:[%s14380_s0 + $0xf74] sm:$0xf] }
 0x30b   :  { %14457 = vst [vmem:[#allocation35_spill] sm:$0xff] %v11845_v57 }
 0x30c   :  { %v4619_v51 = vpop.f32.mrf.mxu2 }
 0x30d   :  { %v4620_v24 = vadd.f32 %v4619_v51, %v4411_v34  ;;  %v4828_v16 = vpop.f32.mrf.mxu3 }
 0x30e   :  { %v4413_v4 = vpop.f32.mrf.mxu1 }
 0x30f   :  { %v4829_v15 = vadd.f32 %v4828_v16, %v4620_v24  ;;  %v4414_v54 = vadd.f32 %v4413_v4, %v4205_v22  ;;  %v8924_v22 = vld [vmem:[%s14380_s0 + $0xf80] sm:$0xf]  ;;  %v9928_v24 = vld [vmem:[%s14380_s0 + $0xfb0] sm:$0xf0] }
 0x310   :  { %v5040_v20 = vpop.f32.mrf.mxu0 }
 0x311   :  { %4452 = vmatmul.bf16.gmra.mxu1 %v8861_v6  ;;  %4661 = vmatmul.bf16.gmra.mxu2 %v8865_v60  ;;  %v11872_v10 = vadd.f32 %v5037_v32, %v4829_v15  ;;  %v8910_v32 = vld [vmem:[%s14380_s0 + $0xfa4] sm:$0xf0]  ;;  %v14462_v6 = vld [vmem:[#allocation2_spill] sm:$0xff] }
 0x312   :  { %4870 = vmatmul.bf16.gmra.mxu3 %v8869_v18  ;;  %v4210_v60 = vadd.f32 %v11868_v42, %v14462_v6  ;;  %v10033_v6 = vld [vmem:[%s14378_s1 + $0x2b8] sm:$0xff] }
 0x313   :  { %14459 = vst [vmem:[#allocation37_spill] sm:$0xff] %v11872_v10  ;;  %5079 = vmatmul.bf16.gmra.mxu0 %v8873_v29  ;;  %v8913_v29 = vor.u32 %v9920_v40, %v8910_v32  ;;  %6140 = vmatpush.bf16.msrb.mxu2 %v10033_v6  ;;  %v14464_v32 = vld [vmem:[#allocation4_spill] sm:$0xff]  ;;  %v14466_v6 = vld [vmem:[#allocation6_spill] sm:$0xff] }
 0x314   :  { %v4622_v57 = vpop.f32.mrf.mxu2  ;;  %v14468_v10 = vld [vmem:[#allocation8_spill] sm:$0xff] }
 0x315   :  { %v4623_v34 = vadd.f32 %v4622_v57, %v4414_v54  ;;  %v4831_v51 = vpop.f32.mrf.mxu3  ;;  %v9927_v57 = vld [vmem:[%s14380_s0 + $0xfa8] sm:$0xf0] }
 0x316   :  { %v4415_v8 = vpop.f32.mrf.mxu1  ;;  %v8917_v15 = vor.u32 %v9927_v57, %v8916_v3  ;;  %v4212_v3 = vadd.f32 %v11868_v42, %v14464_v32 }
 0x317   :  { %v4832_v12 = vadd.f32 %v4831_v51, %v4623_v34  ;;  %v4416_v52 = vadd.f32 %v4415_v8, %v4207_v59  ;;  %v8925_v59 = vor.u32 %v9928_v24, %v8924_v22 }
 0x318   :  { %v5042_v37 = vpop.f32.mrf.mxu0 }
 0x319   :  { %v11882_v11 = vadd.f32 %v5040_v20, %v4832_v12  ;;  %v8921_v20 = vor.u32 %v9921_v48, %v8918_v33 }
 0x31b   :  { %14461 = vst [vmem:[#allocation39_spill] sm:$0xff] %v11882_v11 }
 0x31c   :  { %v4624_v16 = vpop.f32.mrf.mxu2 }
 0x31d   :  { %v4625_v4 = vadd.f32 %v4624_v16, %v4416_v52  ;;  %v4833_v18 = vpop.f32.mrf.mxu3  ;;  %v10041_v52 = vld [vmem:[%s14378_s1 + $0x2f8] sm:$0xff] }
 0x31e   :  { %v4418_v54 = vpop.f32.mrf.mxu1  ;;  %6349 = vmatpush.bf16.msrb.mxu3 %v10041_v52  ;;  %v10025_v16 = vld [vmem:[%s14378_s1 + $0x278] sm:$0xff]  ;;  %v4215_v52 = vadd.f32 %v11868_v42, %v14466_v6  ;;  %v4217_v6 = vadd.f32 %v11868_v42, %v14468_v10 }
 0x31f   :  { %v4834_v34 = vadd.f32 %v4833_v18, %v4625_v4  ;;  %v4419_v51 = vadd.f32 %v4418_v54, %v4210_v60  ;;  %v10049_v60 = vld [vmem:[%s14378_s1 + $0x338] sm:$0xff]  ;;  %v8962_v18 = vld [vmem:[%s14380_s0 + $0x100c] sm:$0xf0]  ;;  %5931 = vmatpush.bf16.msrb.mxu1 %v10025_v16  ;;  %v9940_v54 = vld [vmem:[%s14380_s0 + $0x1010] sm:$0xf0] }
 0x320   :  { %v5045_v8 = vpop.f32.mrf.mxu0  ;;  %v9933_v4 = vld [vmem:[%s14380_s0 + $0xfdc] sm:$0xf]  ;;  %6558 = vmatpush.bf16.msrb.mxu0 %v10049_v60  ;;  %v6956_v10 = vld [vmem:[%s14380_s0 + $0x18] sm:$0xf] }
 0x321   :  { %4457 = vmatmul.bf16.gmra.mxu1 %v8913_v29  ;;  %4666 = vmatmul.bf16.gmra.mxu2 %v8917_v15  ;;  %v11904_v12 = vadd.f32 %v5042_v37, %v4834_v34  ;;  %v8968_v15 = vld [vmem:[%s14380_s0 + $0xfe0] sm:$0xf]  ;;  %v8976_v34 = vld [vmem:[%s14380_s0 + $0xfe8] sm:$0xf] }
 0x322   :  { %4875 = vmatmul.bf16.gmra.mxu3 %v8921_v20  ;;  %v9934_v20 = vld [vmem:[%s14380_s0 + $0xfe4] sm:$0xf] }
 0x323   :  { %14463 = vst [vmem:[#allocation2_spill] sm:$0xff] %v11904_v12  ;;  %5084 = vmatmul.bf16.gmra.mxu0 %v8925_v59  ;;  %v8970_v59 = vld [vmem:[%s14380_s0 + $0x1014] sm:$0xf0] }
 0x324   :  { %v4627_v40 = vpop.f32.mrf.mxu2 }
 0x325   :  { %v4628_v57 = vadd.f32 %v4627_v40, %v4419_v51  ;;  %v4836_v48 = vpop.f32.mrf.mxu3  ;;  %v9941_v51 = vld [vmem:[%s14380_s0 + $0x1018] sm:$0xf0] }
 0x326   :  { %v4420_v37 = vpop.f32.mrf.mxu1 }
 0x327   :  { %v4837_v33 = vadd.f32 %v4836_v48, %v4628_v57  ;;  %v4421_v22 = vadd.f32 %v4420_v37, %v4212_v3  ;;  %v8965_v3 = vor.u32 %v9933_v4, %v8962_v18  ;;  %v8969_v57 = vor.u32 %v9940_v54, %v8968_v15 }
 0x328   :  { %v5047_v24 = vpop.f32.mrf.mxu0  ;;  %v8973_v37 = vor.u32 %v9934_v20, %v8970_v59  ;;  %v9428_v20 = vld [vmem:[%s14380_s0 + $0x14] sm:$0xf] }
 0x329   :  { %v11926_v29 = vadd.f32 %v5045_v8, %v4837_v33  ;;  %v8977_v33 = vor.u32 %v9941_v51, %v8976_v34  ;;  %v9429_v34 = vld [vmem:[%s14380_s0 + $0x1c] sm:$0xf]  ;;  %v6958_v51 = vld [vmem:[%s14380_s0 + $0x4c] sm:$0xf0] }
 0x32b   :  { %14465 = vst [vmem:[#allocation4_spill] sm:$0xff] %v11926_v29 }
 0x32c   :  { %v4629_v8 = vpop.f32.mrf.mxu2 }
 0x32d   :  { %v4630_v40 = vadd.f32 %v4629_v8, %v4421_v22  ;;  %v4838_v32 = vpop.f32.mrf.mxu3 }
 0x32e   :  { %v4423_v48 = vpop.f32.mrf.mxu1 }
 0x32f   :  { %v4839_v16 = vadd.f32 %v4838_v32, %v4630_v40  ;;  %v4424_v60 = vadd.f32 %v4423_v48, %v4215_v52  ;;  %v9436_v52 = vld [vmem:[%s14380_s0 + $0x50] sm:$0xf0]  ;;  %v14470_v32 = vld [vmem:[#allocation10_spill] sm:$0xff] }
 0x330   :  { %v5050_v29 = vpop.f32.mrf.mxu0 }
 0x331   :  { %4462 = vmatmul.bf16.gmra.mxu1 %v8965_v3  ;;  %4671 = vmatmul.bf16.gmra.mxu2 %v8969_v57  ;;  %v11948_v12 = vadd.f32 %v5047_v24, %v4839_v16  ;;  %v6950_v24 = vld [vmem:[%s14380_s0 + $0x44] sm:$0xf0]  ;;  %v4220_v3 = vadd.f32 %v11868_v42, %v14470_v32 }
 0x332   :  { %4880 = vmatmul.bf16.gmra.mxu3 %v8973_v37  ;;  %v6953_v37 = vor.u32 %v9428_v20, %v6950_v24 }
 0x333   :  { %14467 = vst [vmem:[#allocation6_spill] sm:$0xff] %v11948_v12  ;;  %5089 = vmatmul.bf16.gmra.mxu0 %v8977_v33  ;;  %v14472_v12 = vld [vmem:[#allocation12_spill] sm:$0xff] }
 0x334   :  { %v4632_v11 = vpop.f32.mrf.mxu2  ;;  %v4222_v32 = vadd.f32 %v11868_v42, %v14472_v12  ;;  %v7008_v12 = vld [vmem:[%s14380_s0 + $0x80] sm:$0xf] }
 0x335   :  { %v4633_v22 = vadd.f32 %v4632_v11, %v4424_v60  ;;  %v4841_v8 = vpop.f32.mrf.mxu3  ;;  %v9435_v11 = vld [vmem:[%s14380_s0 + $0x48] sm:$0xf0]  ;;  %v6961_v60 = vor.u32 %v9429_v34, %v6958_v51  ;;  %v9441_v34 = vld [vmem:[%s14380_s0 + $0x7c] sm:$0xf] }
 0x336   :  { %v4425_v4 = vpop.f32.mrf.mxu1  ;;  %v6957_v33 = vor.u32 %v9435_v11, %v6956_v10 }
 0x337   :  { %v4842_v18 = vadd.f32 %v4841_v8, %v4633_v22  ;;  %v4426_v15 = vadd.f32 %v4425_v4, %v4217_v6 }
 0x338   :  { %v5052_v54 = vpop.f32.mrf.mxu0 }
 0x339   :  { %v11958_v59 = vadd.f32 %v5050_v29, %v4842_v18  ;;  %v6964_v29 = vld [vmem:[%s14380_s0 + $0x20] sm:$0xf] }
 0x33a   :  { %v6965_v6 = vor.u32 %v9436_v52, %v6964_v29  ;;  %v9442_v29 = vld [vmem:[%s14380_s0 + $0x84] sm:$0xf]  ;;  %v7010_v52 = vld [vmem:[%s14380_s0 + $0xb4] sm:$0xf0] }
 0x33b   :  { %14469 = vst [vmem:[#allocation8_spill] sm:$0xff] %v11958_v59 }
 0x33c   :  { %v4634_v40 = vpop.f32.mrf.mxu2 }
 0x33d   :  { %v4635_v57 = vadd.f32 %v4634_v40, %v4426_v15  ;;  %v4843_v48 = vpop.f32.mrf.mxu3 }
 0x33e   :  { %v4428_v16 = vpop.f32.mrf.mxu1 }
 0x33f   :  { %v4844_v22 = vadd.f32 %v4843_v48, %v4635_v57  ;;  %v4429_v8 = vadd.f32 %v4428_v16, %v4220_v3  ;;  %v7016_v3 = vld [vmem:[%s14380_s0 + $0x88] sm:$0xf]  ;;  %v9449_v57 = vld [vmem:[%s14380_s0 + $0xb8] sm:$0xf0] }
 0x340   :  { %v5055_v4 = vpop.f32.mrf.mxu0 }
 0x341   :  { %5103 = vmatmul.bf16.vlgmr.msra.gmra.mxu1 %v6953_v37  ;;  %5312 = vmatmul.bf16.vlgmr.msra.gmra.mxu2 %v6957_v33  ;;  %v11980_v18 = vadd.f32 %v5052_v54, %v4844_v22  ;;  %v7002_v54 = vld [vmem:[%s14380_s0 + $0xac] sm:$0xf0]  ;;  %v14474_v37 = vld [vmem:[#allocation14_spill] sm:$0xff] }
 0x342   :  { %5521 = vmatmul.bf16.vlgmr.msra.gmra.mxu3 %v6961_v60  ;;  %v4225_v33 = vadd.f32 %v11868_v42, %v14474_v37 }
 0x343   :  { %14471 = vst [vmem:[#allocation10_spill] sm:$0xff] %v11980_v18  ;;  %5730 = vmatmul.bf16.vlgmr.msra.gmra.mxu0 %v6965_v6  ;;  %v7005_v6 = vor.u32 %v9441_v34, %v7002_v54  ;;  %v14476_v18 = vld [vmem:[#allocation16_spill] sm:$0xff] }
 0x344   :  { %v4637_v59 = vpop.f32.mrf.mxu2  ;;  %v4227_v37 = vadd.f32 %v11868_v42, %v14476_v18  ;;  %v7060_v18 = vld [vmem:[%s14380_s0 + $0xe8] sm:$0xf] }
 0x345   :  { %v4638_v15 = vadd.f32 %v4637_v59, %v4429_v8  ;;  %v4846_v40 = vpop.f32.mrf.mxu3  ;;  %v9448_v59 = vld [vmem:[%s14380_s0 + $0xb0] sm:$0xf0] }
 0x346   :  { %v4430_v20 = vpop.f32.mrf.mxu1  ;;  %v7009_v22 = vor.u32 %v9448_v59, %v7008_v12 }
 0x347   :  { %v4847_v24 = vadd.f32 %v4846_v40, %v4638_v15  ;;  %v4431_v10 = vadd.f32 %v4430_v20, %v4222_v32  ;;  %v7017_v32 = vor.u32 %v9449_v57, %v7016_v3  ;;  %v9455_v3 = vld [vmem:[%s14380_s0 + $0xec] sm:$0xf]  ;;  %v7062_v57 = vld [vmem:[%s14380_s0 + $0x11c] sm:$0xf0] }
 0x348   :  { %v5057_v11 = vpop.f32.mrf.mxu0 }
 0x349   :  { %v11990_v51 = vadd.f32 %v5055_v4, %v4847_v24  ;;  %v7013_v4 = vor.u32 %v9442_v29, %v7010_v52  ;;  %v9454_v29 = vld [vmem:[%s14380_s0 + $0xe4] sm:$0xf] }
 0x34b   :  { %14473 = vst [vmem:[#allocation12_spill] sm:$0xff] %v11990_v51 }
 0x34c   :  { %v4639_v48 = vpop.f32.mrf.mxu2 }
 0x34d   :  { %v4640_v16 = vadd.f32 %v4639_v48, %v4431_v10  ;;  %v4848_v60 = vpop.f32.mrf.mxu3 }
 0x34e   :  { %v4433_v8 = vpop.f32.mrf.mxu1 }
 0x34f   :  { %v4849_v15 = vadd.f32 %v4848_v60, %v4640_v16  ;;  %v4434_v40 = vadd.f32 %v4433_v8, %v4225_v33  ;;  %v7068_v33 = vld [vmem:[%s14380_s0 + $0xf0] sm:$0xf]  ;;  %v9462_v16 = vld [vmem:[%s14380_s0 + $0x120] sm:$0xf0] }
 0x350   :  { %v5060_v20 = vpop.f32.mrf.mxu0 }
 0x351   :  { %5108 = vmatmul.bf16.gmra.mxu1 %v7005_v6  ;;  %5317 = vmatmul.bf16.gmra.mxu2 %v7009_v22  ;;  %v12012_v24 = vadd.f32 %v5057_v11, %v4849_v15  ;;  %v7054_v11 = vld [vmem:[%s14380_s0 + $0x114] sm:$0xf0]  ;;  %v14478_v6 = vld [vmem:[#allocation18_spill] sm:$0xff] }
 0x352   :  { %5526 = vmatmul.bf16.gmra.mxu3 %v7013_v4  ;;  %v4230_v22 = vadd.f32 %v11868_v42, %v14478_v6 }
 0x353   :  { %14475 = vst [vmem:[#allocation14_spill] sm:$0xff] %v12012_v24  ;;  %5735 = vmatmul.bf16.gmra.mxu0 %v7017_v32  ;;  %v7057_v32 = vor.u32 %v9454_v29, %v7054_v11  ;;  %v14480_v24 = vld [vmem:[#allocation20_spill] sm:$0xff] }
 0x354   :  { %v4642_v51 = vpop.f32.mrf.mxu2  ;;  %v4232_v6 = vadd.f32 %v11868_v42, %v14480_v24  ;;  %v7112_v24 = vld [vmem:[%s14380_s0 + $0x150] sm:$0xf] }
 0x355   :  { %v4643_v10 = vadd.f32 %v4642_v51, %v4434_v40  ;;  %v4851_v48 = vpop.f32.mrf.mxu3  ;;  %v9461_v51 = vld [vmem:[%s14380_s0 + $0x118] sm:$0xf0] }
 0x356   :  { %v4435_v34 = vpop.f32.mrf.mxu1  ;;  %v7061_v15 = vor.u32 %v9461_v51, %v7060_v18 }
 0x357   :  { %v4852_v54 = vadd.f32 %v4851_v48, %v4643_v10  ;;  %v4436_v12 = vadd.f32 %v4435_v34, %v4227_v37  ;;  %v7069_v37 = vor.u32 %v9462_v16, %v7068_v33  ;;  %v9468_v33 = vld [vmem:[%s14380_s0 + $0x154] sm:$0xf]  ;;  %v7114_v16 = vld [vmem:[%s14380_s0 + $0x184] sm:$0xf0] }
 0x358   :  { %v5062_v59 = vpop.f32.mrf.mxu0 }
 0x359   :  { %v12022_v52 = vadd.f32 %v5060_v20, %v4852_v54  ;;  %v7065_v20 = vor.u32 %v9455_v3, %v7062_v57  ;;  %v9467_v3 = vld [vmem:[%s14380_s0 + $0x14c] sm:$0xf] }
 0x35b   :  { %14477 = vst [vmem:[#allocation16_spill] sm:$0xff] %v12022_v52 }
 0x35c   :  { %v4644_v60 = vpop.f32.mrf.mxu2 }
 0x35d   :  { %v4645_v8 = vadd.f32 %v4644_v60, %v4436_v12  ;;  %v4853_v4 = vpop.f32.mrf.mxu3 }
 0x35e   :  { %v4438_v40 = vpop.f32.mrf.mxu1 }
 0x35f   :  { %v4854_v10 = vadd.f32 %v4853_v4, %v4645_v8  ;;  %v4439_v48 = vadd.f32 %v4438_v40, %v4230_v22  ;;  %v7120_v22 = vld [vmem:[%s14380_s0 + $0x158] sm:$0xf]  ;;  %v9475_v8 = vld [vmem:[%s14380_s0 + $0x188] sm:$0xf0] }
 0x360   :  { %v5065_v34 = vpop.f32.mrf.mxu0 }
 0x361   :  { %5113 = vmatmul.bf16.gmra.mxu1 %v7057_v32  ;;  %5322 = vmatmul.bf16.gmra.mxu2 %v7061_v15  ;;  %v12044_v54 = vadd.f32 %v5062_v59, %v4854_v10  ;;  %v7106_v59 = vld [vmem:[%s14380_s0 + $0x17c] sm:$0xf0] }
 0x362   :  { %5531 = vmatmul.bf16.gmra.mxu3 %v7065_v20  ;;  %v14482_v32 = vld [vmem:[#allocation22_spill] sm:$0xff] }
 0x363   :  { %14479 = vst [vmem:[#allocation18_spill] sm:$0xff] %v12044_v54  ;;  %5740 = vmatmul.bf16.gmra.mxu0 %v7069_v37  ;;  %v4235_v15 = vadd.f32 %v11868_v42, %v14482_v32  ;;  %v7109_v37 = vor.u32 %v9467_v3, %v7106_v59  ;;  %v10032_v32 = vld [vmem:[%s14378_s1 + $0x2b0] sm:$0xff] }
 0x364   :  { %v4647_v52 = vpop.f32.mrf.mxu2  ;;  %6141 = vmatpush.bf16.msrb.mxu2 %v10032_v32  ;;  %v14484_v59 = vld [vmem:[#allocation24_spill] sm:$0xff]  ;;  %v14486_v32 = vld [vmem:[#allocation26_spill] sm:$0xff] }
 0x365   :  { %v4648_v12 = vadd.f32 %v4647_v52, %v4439_v48  ;;  %v4856_v60 = vpop.f32.mrf.mxu3  ;;  %v9474_v52 = vld [vmem:[%s14380_s0 + $0x180] sm:$0xf0]  ;;  %v14488_v54 = vld [vmem:[#allocation28_spill] sm:$0xff] }
 0x366   :  { %v4440_v29 = vpop.f32.mrf.mxu1  ;;  %v7113_v10 = vor.u32 %v9474_v52, %v7112_v24  ;;  %v4237_v24 = vadd.f32 %v11868_v42, %v14484_v59 }
 0x367   :  { %v4857_v11 = vadd.f32 %v4856_v60, %v4648_v12  ;;  %v4441_v18 = vadd.f32 %v4440_v29, %v4232_v6  ;;  %v7121_v6 = vor.u32 %v9475_v8, %v7120_v22 }
 0x368   :  { %v5067_v51 = vpop.f32.mrf.mxu0 }
 0x369   :  { %v12054_v57 = vadd.f32 %v5065_v34, %v4857_v11  ;;  %v7117_v34 = vor.u32 %v9468_v33, %v7114_v16 }
 0x36b   :  { %14481 = vst [vmem:[#allocation20_spill] sm:$0xff] %v12054_v57 }
 0x36c   :  { %v4649_v4 = vpop.f32.mrf.mxu2 }
 0x36d   :  { %v4650_v40 = vadd.f32 %v4649_v4, %v4441_v18  ;;  %v4858_v20 = vpop.f32.mrf.mxu3  ;;  %v10040_v18 = vld [vmem:[%s14378_s1 + $0x2f0] sm:$0xff] }
 0x36e   :  { %v4443_v48 = vpop.f32.mrf.mxu1  ;;  %6350 = vmatpush.bf16.msrb.mxu3 %v10040_v18  ;;  %v10024_v4 = vld [vmem:[%s14378_s1 + $0x270] sm:$0xff]  ;;  %v4240_v18 = vadd.f32 %v11868_v42, %v14486_v32  ;;  %v4242_v32 = vadd.f32 %v11868_v42, %v14488_v54  ;;  %v7216_v54 = vld [vmem:[%s14380_s0 + $0x220] sm:$0xf] }
 0x36f   :  { %v4859_v12 = vadd.f32 %v4858_v20, %v4650_v40  ;;  %v4444_v60 = vadd.f32 %v4443_v48, %v4235_v15  ;;  %v10048_v15 = vld [vmem:[%s14378_s1 + $0x330] sm:$0xff]  ;;  %v7158_v20 = vld [vmem:[%s14380_s0 + $0x1e4] sm:$0xf0]  ;;  %5932 = vmatpush.bf16.msrb.mxu1 %v10024_v4  ;;  %v9487_v48 = vld [vmem:[%s14380_s0 + $0x1e8] sm:$0xf0] }
 0x370   :  { %v5070_v29 = vpop.f32.mrf.mxu0  ;;  %v9480_v40 = vld [vmem:[%s14380_s0 + $0x1b4] sm:$0xf]  ;;  %6559 = vmatpush.bf16.msrb.mxu0 %v10048_v15 }
 0x371   :  { %5118 = vmatmul.bf16.gmra.mxu1 %v7109_v37  ;;  %5327 = vmatmul.bf16.gmra.mxu2 %v7113_v10  ;;  %v12076_v11 = vadd.f32 %v5067_v51, %v4859_v12  ;;  %v7164_v10 = vld [vmem:[%s14380_s0 + $0x1b8] sm:$0xf]  ;;  %v7172_v12 = vld [vmem:[%s14380_s0 + $0x1c0] sm:$0xf] }
 0x372   :  { %5536 = vmatmul.bf16.gmra.mxu3 %v7117_v34  ;;  %v9481_v34 = vld [vmem:[%s14380_s0 + $0x1bc] sm:$0xf] }
 0x373   :  { %14483 = vst [vmem:[#allocation22_spill] sm:$0xff] %v12076_v11  ;;  %5745 = vmatmul.bf16.gmra.mxu0 %v7121_v6  ;;  %v7166_v6 = vld [vmem:[%s14380_s0 + $0x1ec] sm:$0xf0] }
 0x374   :  { %v4652_v3 = vpop.f32.mrf.mxu2 }
 0x375   :  { %v4653_v52 = vadd.f32 %v4652_v3, %v4444_v60  ;;  %v4861_v33 = vpop.f32.mrf.mxu3  ;;  %v9488_v60 = vld [vmem:[%s14380_s0 + $0x1f0] sm:$0xf0] }
 0x376   :  { %v4445_v51 = vpop.f32.mrf.mxu1 }
 0x377   :  { %v4862_v16 = vadd.f32 %v4861_v33, %v4653_v52  ;;  %v4446_v22 = vadd.f32 %v4445_v51, %v4237_v24  ;;  %v7161_v24 = vor.u32 %v9480_v40, %v7158_v20  ;;  %v7165_v52 = vor.u32 %v9487_v48, %v7164_v10 }
 0x378   :  { %v5072_v8 = vpop.f32.mrf.mxu0  ;;  %v7169_v51 = vor.u32 %v9481_v34, %v7166_v6  ;;  %v9493_v34 = vld [vmem:[%s14380_s0 + $0x21c] sm:$0xf] }
 0x379   :  { %v12098_v37 = vadd.f32 %v5070_v29, %v4862_v16  ;;  %v7173_v16 = vor.u32 %v9488_v60, %v7172_v12  ;;  %v9494_v12 = vld [vmem:[%s14380_s0 + $0x224] sm:$0xf]  ;;  %v7218_v60 = vld [vmem:[%s14380_s0 + $0x254] sm:$0xf0] }
 0x37b   :  { %14485 = vst [vmem:[#allocation24_spill] sm:$0xff] %v12098_v37 }
 0x37c   :  { %v4654_v29 = vpop.f32.mrf.mxu2 }
 0x37d   :  { %v4655_v3 = vadd.f32 %v4654_v29, %v4446_v22  ;;  %v4863_v59 = vpop.f32.mrf.mxu3 }
 0x37e   :  { %v4448_v33 = vpop.f32.mrf.mxu1 }
 0x37f   :  { %v4864_v4 = vadd.f32 %v4863_v59, %v4655_v3  ;;  %v4449_v15 = vadd.f32 %v4448_v33, %v4240_v18  ;;  %v9501_v18 = vld [vmem:[%s14380_s0 + $0x258] sm:$0xf0]  ;;  %v14490_v59 = vld [vmem:[#allocation30_spill] sm:$0xff] }
 0x380   :  { %v5075_v37 = vpop.f32.mrf.mxu0 }
 0x381   :  { %5123 = vmatmul.bf16.gmra.mxu1 %v7161_v24  ;;  %5332 = vmatmul.bf16.gmra.mxu2 %v7165_v52  ;;  %v12120_v11 = vadd.f32 %v5072_v8, %v4864_v4  ;;  %v7210_v8 = vld [vmem:[%s14380_s0 + $0x24c] sm:$0xf0]  ;;  %v4245_v24 = vadd.f32 %v11868_v42, %v14490_v59 }
 0x382   :  { %5541 = vmatmul.bf16.gmra.mxu3 %v7169_v51  ;;  %v7213_v51 = vor.u32 %v9493_v34, %v7210_v8 }
 0x383   :  { %14487 = vst [vmem:[#allocation26_spill] sm:$0xff] %v12120_v11  ;;  %5750 = vmatmul.bf16.gmra.mxu0 %v7173_v16  ;;  %v14492_v11 = vld [vmem:[#allocation32_spill] sm:$0xff] }
 0x384   :  { %v4657_v57 = vpop.f32.mrf.mxu2  ;;  %v4247_v59 = vadd.f32 %v11868_v42, %v14492_v11  ;;  %v7268_v11 = vld [vmem:[%s14380_s0 + $0x288] sm:$0xf] }
 0x385   :  { %v4658_v22 = vadd.f32 %v4657_v57, %v4449_v15  ;;  %v4866_v29 = vpop.f32.mrf.mxu3  ;;  %v9500_v57 = vld [vmem:[%s14380_s0 + $0x250] sm:$0xf0]  ;;  %v7221_v15 = vor.u32 %v9494_v12, %v7218_v60  ;;  %v9506_v12 = vld [vmem:[%s14380_s0 + $0x284] sm:$0xf] }
 0x386   :  { %v4450_v40 = vpop.f32.mrf.mxu1  ;;  %v7217_v16 = vor.u32 %v9500_v57, %v7216_v54 }
 0x387   :  { %v4867_v20 = vadd.f32 %v4866_v29, %v4658_v22  ;;  %v4451_v10 = vadd.f32 %v4450_v40, %v4242_v32 }
 0x388   :  { %v5077_v48 = vpop.f32.mrf.mxu0 }
 0x389   :  { %v12130_v6 = vadd.f32 %v5075_v37, %v4867_v20  ;;  %v7224_v37 = vld [vmem:[%s14380_s0 + $0x228] sm:$0xf] }
 0x38a   :  { %v7225_v32 = vor.u32 %v9501_v18, %v7224_v37  ;;  %v9507_v37 = vld [vmem:[%s14380_s0 + $0x28c] sm:$0xf]  ;;  %v7270_v18 = vld [vmem:[%s14380_s0 + $0x2bc] sm:$0xf0] }
 0x38b   :  { %14489 = vst [vmem:[#allocation28_spill] sm:$0xff] %v12130_v6 }
 0x38c   :  { %v4659_v3 = vpop.f32.mrf.mxu2 }
 0x38d   :  { %v4660_v52 = vadd.f32 %v4659_v3, %v4451_v10  ;;  %v4868_v33 = vpop.f32.mrf.mxu3 }
 0x38e   :  { %v4453_v4 = vpop.f32.mrf.mxu1 }
 0x38f   :  { %v4869_v22 = vadd.f32 %v4868_v33, %v4660_v52  ;;  %v4454_v29 = vadd.f32 %v4453_v4, %v4245_v24  ;;  %v7276_v24 = vld [vmem:[%s14380_s0 + $0x290] sm:$0xf]  ;;  %v9514_v52 = vld [vmem:[%s14380_s0 + $0x2c0] sm:$0xf0] }
 0x390   :  { %v5080_v40 = vpop.f32.mrf.mxu0 }
 0x391   :  { %5128 = vmatmul.bf16.gmra.mxu1 %v7213_v51  ;;  %5337 = vmatmul.bf16.gmra.mxu2 %v7217_v16  ;;  %v12152_v20 = vadd.f32 %v5077_v48, %v4869_v22  ;;  %v7262_v48 = vld [vmem:[%s14380_s0 + $0x2b4] sm:$0xf0]  ;;  %v14494_v51 = vld [vmem:[#allocation34_spill] sm:$0xff] }
 0x392   :  { %5546 = vmatmul.bf16.gmra.mxu3 %v7221_v15  ;;  %v4250_v16 = vadd.f32 %v11868_v42, %v14494_v51 }
 0x393   :  { %14491 = vst [vmem:[#allocation30_spill] sm:$0xff] %v12152_v20  ;;  %5755 = vmatmul.bf16.gmra.mxu0 %v7225_v32  ;;  %v7265_v32 = vor.u32 %v9506_v12, %v7262_v48  ;;  %v14496_v20 = vld [vmem:[#allocation36_spill] sm:$0xff] }
 0x394   :  { %v4662_v6 = vpop.f32.mrf.mxu2  ;;  %v4252_v51 = vadd.f32 %v11868_v42, %v14496_v20  ;;  %v7320_v20 = vld [vmem:[%s14380_s0 + $0x2f0] sm:$0xf] }
 0x395   :  { %v4663_v10 = vadd.f32 %v4662_v6, %v4454_v29  ;;  %v4871_v3 = vpop.f32.mrf.mxu3  ;;  %v9513_v6 = vld [vmem:[%s14380_s0 + $0x2b8] sm:$0xf0] }
 0x396   :  { %v4455_v34 = vpop.f32.mrf.mxu1  ;;  %v7269_v22 = vor.u32 %v9513_v6, %v7268_v11 }
 0x397   :  { %v4872_v8 = vadd.f32 %v4871_v3, %v4663_v10  ;;  %v4456_v54 = vadd.f32 %v4455_v34, %v4247_v59  ;;  %v7277_v59 = vor.u32 %v9514_v52, %v7276_v24  ;;  %v9520_v24 = vld [vmem:[%s14380_s0 + $0x2f4] sm:$0xf]  ;;  %v7322_v52 = vld [vmem:[%s14380_s0 + $0x324] sm:$0xf0] }
 0x398   :  { %v5082_v57 = vpop.f32.mrf.mxu0 }
 0x399   :  { %v12162_v60 = vadd.f32 %v5080_v40, %v4872_v8  ;;  %v7273_v40 = vor.u32 %v9507_v37, %v7270_v18  ;;  %v9519_v37 = vld [vmem:[%s14380_s0 + $0x2ec] sm:$0xf] }
 0x39b   :  { %14493 = vst [vmem:[#allocation32_spill] sm:$0xff] %v12162_v60 }
 0x39c   :  { %v4664_v33 = vpop.f32.mrf.mxu2 }
 0x39d   :  { %v4665_v4 = vadd.f32 %v4664_v33, %v4456_v54  ;;  %v4873_v15 = vpop.f32.mrf.mxu3 }
 0x39e   :  { %v4458_v29 = vpop.f32.mrf.mxu1 }
 0x39f   :  { %v4874_v10 = vadd.f32 %v4873_v15, %v4665_v4  ;;  %v4459_v3 = vadd.f32 %v4458_v29, %v4250_v16  ;;  %v7328_v16 = vld [vmem:[%s14380_s0 + $0x2f8] sm:$0xf]  ;;  %v9527_v4 = vld [vmem:[%s14380_s0 + $0x328] sm:$0xf0] }
 0x3a0   :  { %v5085_v34 = vpop.f32.mrf.mxu0 }
 0x3a1   :  { %5133 = vmatmul.bf16.gmra.mxu1 %v7265_v32  ;;  %5342 = vmatmul.bf16.gmra.mxu2 %v7269_v22  ;;  %v12184_v8 = vadd.f32 %v5082_v57, %v4874_v10  ;;  %v7314_v57 = vld [vmem:[%s14380_s0 + $0x31c] sm:$0xf0] }
 0x3a2   :  { %5551 = vmatmul.bf16.gmra.mxu3 %v7273_v40  ;;  %v14498_v32 = vld [vmem:[#allocation38_spill] sm:$0xff] }
 0x3a3   :  { %14495 = vst [vmem:[#allocation34_spill] sm:$0xff] %v12184_v8  ;;  %5760 = vmatmul.bf16.gmra.mxu0 %v7277_v59  ;;  %v4255_v22 = vadd.f32 %v11868_v42, %v14498_v32  ;;  %v7317_v59 = vor.u32 %v9519_v37, %v7314_v57  ;;  %v14499_v8 = vld [vmem:[#allocation40_spill] sm:$0xff] }
 0x3a4   :  { %v4667_v60 = vpop.f32.mrf.mxu2  ;;  %v4257_v32 = vadd.f32 %v11868_v42, %v14499_v8  ;;  %v7372_v42 = vld [vmem:[%s14380_s0 + $0x358] sm:$0xf]  ;;  %v9539_v8 = vld [vmem:[%s14380_s0 + $0x388] sm:$0xf0] }
 0x3a5   :  { %v4668_v54 = vadd.f32 %v4667_v60, %v4459_v3  ;;  %v4876_v33 = vpop.f32.mrf.mxu3  ;;  %v9526_v60 = vld [vmem:[%s14380_s0 + $0x320] sm:$0xf0] }
 0x3a6   :  { %v4460_v12 = vpop.f32.mrf.mxu1  ;;  %v7321_v10 = vor.u32 %v9526_v60, %v7320_v20 }
 0x3a7   :  { %v4877_v48 = vadd.f32 %v4876_v33, %v4668_v54  ;;  %v4461_v11 = vadd.f32 %v4460_v12, %v4252_v51  ;;  %v7329_v51 = vor.u32 %v9527_v4, %v7328_v16  ;;  %v7374_v16 = vld [vmem:[%s14380_s0 + $0x38c] sm:$0xf0]  ;;  %v7380_v4 = vld [vmem:[%s14380_s0 + $0x360] sm:$0xf] }
 0x3a8   :  { %v5087_v6 = vpop.f32.mrf.mxu0 }
 0x3a9   :  { %v12194_v18 = vadd.f32 %v5085_v34, %v4877_v48  ;;  %v7325_v34 = vor.u32 %v9520_v24, %v7322_v52  ;;  %v9532_v24 = vld [vmem:[%s14380_s0 + $0x354] sm:$0xf] }
 0x3ab   :  { %14497 = vst [vmem:[#allocation36_spill] sm:$0xff] %v12194_v18 }
 0x3ac   :  { %v4669_v15 = vpop.f32.mrf.mxu2 }
 0x3ad   :  { %v4670_v29 = vadd.f32 %v4669_v15, %v4461_v11  ;;  %v4878_v40 = vpop.f32.mrf.mxu3 }
 0x3ae   :  { %v4463_v3 = vpop.f32.mrf.mxu1 }
 0x3af   :  { %v4879_v54 = vadd.f32 %v4878_v40, %v4670_v29  ;;  %v4464_v33 = vadd.f32 %v4463_v3, %v4255_v22  ;;  %v9540_v22 = vld [vmem:[%s14380_s0 + $0x390] sm:$0xf0]  ;;  %v7373_v3 = vor.u32 %v9539_v8, %v7372_v42 }
 0x3b0   :  { %v5090_v12 = vpop.f32.mrf.mxu0 }
 0x3b1   :  { %5138 = vmatmul.bf16.gmra.mxu1 %v7317_v59  ;;  %5347 = vmatmul.bf16.gmra.mxu2 %v7321_v10  ;;  %v12216_v48 = vadd.f32 %v5087_v6, %v4879_v54  ;;  %v7366_v6 = vld [vmem:[%s14380_s0 + $0x384] sm:$0xf0]  ;;  %v7381_v54 = vor.u32 %v9540_v22, %v7380_v4  ;;  %v9545_v22 = vld [vmem:[%s14380_s0 + $0x3bc] sm:$0xf] }
 0x3b2   :  { %5556 = vmatmul.bf16.gmra.mxu3 %v7325_v34  ;;  %v7369_v10 = vor.u32 %v9532_v24, %v7366_v6  ;;  %v10047_v4 = vld [vmem:[%s14378_s1 + $0x328] sm:$0xff] }
 0x3b3   :  { %5765 = vmatmul.bf16.gmra.mxu0 %v7329_v51 }
 0x3b4   :  { %v4672_v18 = vpop.f32.mrf.mxu2  ;;  %6560 = vmatpush.bf16.msrb.mxu0 %v10047_v4 }
 0x3b5   :  { %v4673_v11 = vadd.f32 %v4672_v18, %v4464_v33  ;;  %v4881_v15 = vpop.f32.mrf.mxu3  ;;  %v9533_v18 = vld [vmem:[%s14380_s0 + $0x35c] sm:$0xf] }
 0x3b6   :  { %v4465_v37 = vpop.f32.mrf.mxu1  ;;  %v7377_v51 = vor.u32 %v9533_v18, %v7374_v16  ;;  %v10023_v16 = vld [vmem:[%s14378_s1 + $0x268] sm:$0xff] }
 0x3b7   :  { %v4882_v57 = vadd.f32 %v4881_v15, %v4673_v11  ;;  %v4466_v20 = vadd.f32 %v4465_v37, %v4257_v32  ;;  %v10031_v37 = vld [vmem:[%s14378_s1 + $0x2a8] sm:$0xff]  ;;  %5933 = vmatpush.bf16.msrb.mxu1 %v10023_v16 }
 0x3b8   :  { %v5092_v60 = vpop.f32.mrf.mxu0  ;;  %6142 = vmatpush.bf16.msrb.mxu2 %v10031_v37 }
 0x3b9   :  { %v12226_v52 = vadd.f32 %v5090_v12, %v4882_v57  ;;  %v14500_v12 = vld [vmem:[#allocation41_spill] sm:$0xff]  ;;  %v10039_v57 = vld [vmem:[%s14378_s1 + $0x2e8] sm:$0xff] }
 0x3ba   :  { %6351 = vmatpush.bf16.msrb.mxu3 %v10039_v57 }
 0x3bc   :  { %v4674_v29 = vpop.f32.mrf.mxu2 }
 0x3bd   :  { %v4675_v40 = vadd.f32 %v4674_v29, %v4466_v20  ;;  %v4883_v59 = vpop.f32.mrf.mxu3  ;;  %v7418_v29 = vld [vmem:[%s14380_s0 + $0x3ec] sm:$0xf0] }
 0x3be   :  { %v5104_v34 = vpop.f32.mrf.mxu1 }
 0x3bf   :  { %v4884_v33 = vadd.f32 %v4883_v59, %v4675_v40  ;;  %v5105_v32 = vadd.f32 %v5104_v34, %v14500_v12  ;;  %v7424_v40 = vld [vmem:[%s14380_s0 + $0x3c0] sm:$0xf]  ;;  %v9552_v59 = vld [vmem:[%s14380_s0 + $0x3f0] sm:$0xf0]  ;;  %v7432_v34 = vld [vmem:[%s14380_s0 + $0x3c8] sm:$0xf] }
 0x3c0   :  { %v5731_v11 = vpop.f32.mrf.mxu0 }
 0x3c1   :  { %5143 = vmatmul.bf16.gmra.mxu1 %v7369_v10  ;;  %5352 = vmatmul.bf16.gmra.mxu2 %v7373_v3  ;;  %v12247_v15 = vadd.f32 %v5092_v60, %v4884_v33  ;;  %v9546_v10 = vld [vmem:[%s14380_s0 + $0x3c4] sm:$0xf]  ;;  %v7426_v3 = vld [vmem:[%s14380_s0 + $0x3f4] sm:$0xf0] }
 0x3c2   :  { %5561 = vmatmul.bf16.gmra.mxu3 %v7377_v51  ;;  %v9553_v51 = vld [vmem:[%s14380_s0 + $0x3f8] sm:$0xf0]  ;;  %v7429_v57 = vor.u32 %v9546_v10, %v7426_v3  ;;  %v7478_v10 = vld [vmem:[%s14380_s0 + $0x45c] sm:$0xf0]  ;;  %v7484_v3 = vld [vmem:[%s14380_s0 + $0x430] sm:$0xf] }
 0x3c3   :  { %5770 = vmatmul.bf16.gmra.mxu0 %v7381_v54 }
 0x3c4   :  { %v5313_v20 = vpop.f32.mrf.mxu2 }
 0x3c5   :  { %v5314_v24 = vadd.f32 %v5313_v20, %v5105_v32  ;;  %v5522_v6 = vpop.f32.mrf.mxu3  ;;  %v7421_v32 = vor.u32 %v9545_v22, %v7418_v29  ;;  %v7433_v20 = vor.u32 %v9553_v51, %v7432_v34  ;;  %v9566_v34 = vld [vmem:[%s14380_s0 + $0x460] sm:$0xf0] }
 0x3c6   :  { %v5106_v42 = vpop.f32.mrf.mxu1 }
 0x3c7   :  { %v5523_v8 = vadd.f32 %v5522_v6, %v5314_v24  ;;  %v5107_v60 = vadd.f32 %v5106_v42, %v10906_v46 }
 0x3c8   :  { %v5733_v18 = vpop.f32.mrf.mxu0 }
 0x3c9   :  { %v12268_v46 = vadd.f32 %v5731_v11, %v5523_v8  ;;  %v7425_v11 = vor.u32 %v9552_v59, %v7424_v40  ;;  %v9558_v40 = vld [vmem:[%s14380_s0 + $0x424] sm:$0xf]  ;;  %v7476_v59 = vld [vmem:[%s14380_s0 + $0x428] sm:$0xf] }
 0x3cb   :  { %14501 = vst [vmem:[#allocation38_spill] sm:$0xff] %v12268_v46 }
 0x3cc   :  { %v5315_v54 = vpop.f32.mrf.mxu2 }
 0x3cd   :  { %v5316_v33 = vadd.f32 %v5315_v54, %v5107_v60  ;;  %v5524_v12 = vpop.f32.mrf.mxu3 }
 0x3ce   :  { %v5109_v37 = vpop.f32.mrf.mxu1 }
 0x3cf   :  { %v5525_v24 = vadd.f32 %v5524_v12, %v5316_v33  ;;  %v5110_v6 = vadd.f32 %v5109_v37, %v10916_v27  ;;  %v7470_v27 = vld [vmem:[%s14380_s0 + $0x454] sm:$0xf0] }
 0x3d0   :  { %v5736_v42 = vpop.f32.mrf.mxu0 }
 0x3d1   :  { %5148 = vmatmul.bf16.gmra.mxu1 %v7421_v32  ;;  %5357 = vmatmul.bf16.gmra.mxu2 %v7425_v11  ;;  %v12289_v8 = vadd.f32 %v5733_v18, %v5525_v24  ;;  %v7473_v32 = vor.u32 %v9558_v40, %v7470_v27 }
 0x3d2   :  { %5566 = vmatmul.bf16.gmra.mxu3 %v7429_v57 }
 0x3d3   :  { %5775 = vmatmul.bf16.gmra.mxu0 %v7433_v20  ;;  %v7485_v20 = vor.u32 %v9566_v34, %v7484_v3  ;;  %v7536_v3 = vld [vmem:[%s14380_s0 + $0x498] sm:$0xf]  ;;  %v9579_v34 = vld [vmem:[%s14380_s0 + $0x4c8] sm:$0xf0] }
 0x3d4   :  { %v5318_v16 = vpop.f32.mrf.mxu2 }
 0x3d5   :  { %v5319_v4 = vadd.f32 %v5318_v16, %v5110_v6  ;;  %v5527_v46 = vpop.f32.mrf.mxu3 }
 0x3d6   :  { %v5111_v60 = vpop.f32.mrf.mxu1 }
 0x3d7   :  { %v5528_v54 = vadd.f32 %v5527_v46, %v5319_v4  ;;  %v5112_v22 = vadd.f32 %v5111_v60, %v10938_v17  ;;  %v9565_v46 = vld [vmem:[%s14380_s0 + $0x458] sm:$0xf0]  ;;  %v9559_v17 = vld [vmem:[%s14380_s0 + $0x42c] sm:$0xf] }
 0x3d8   :  { %v5738_v29 = vpop.f32.mrf.mxu0  ;;  %v7477_v11 = vor.u32 %v9565_v46, %v7476_v59  ;;  %v7481_v57 = vor.u32 %v9559_v17, %v7478_v10  ;;  %v9571_v59 = vld [vmem:[%s14380_s0 + $0x48c] sm:$0xf]  ;;  %v7528_v46 = vld [vmem:[%s14380_s0 + $0x490] sm:$0xf]  ;;  %v9578_v17 = vld [vmem:[%s14380_s0 + $0x4c0] sm:$0xf0] }
 0x3d9   :  { %v12298_v18 = vadd.f32 %v5736_v42, %v5528_v54  ;;  %v7530_v10 = vld [vmem:[%s14380_s0 + $0x4c4] sm:$0xf0] }
 0x3dc   :  { %v5320_v51 = vpop.f32.mrf.mxu2 }
 0x3dd   :  { %v5321_v33 = vadd.f32 %v5320_v51, %v5112_v22  ;;  %v5529_v12 = vpop.f32.mrf.mxu3 }
 0x3de   :  { %v5114_v37 = vpop.f32.mrf.mxu1 }
 0x3df   :  { %v5530_v24 = vadd.f32 %v5529_v12, %v5321_v33  ;;  %v5115_v6 = vadd.f32 %v5114_v37, %v10948_v0  ;;  %v7522_v0 = vld [vmem:[%s14380_s0 + $0x4bc] sm:$0xf0]  ;;  %v7529_v37 = vor.u32 %v9578_v17, %v7528_v46  ;;  %v9584_v46 = vld [vmem:[%s14380_s0 + $0x4f4] sm:$0xf]  ;;  %v7580_v17 = vld [vmem:[%s14380_s0 + $0x4f8] sm:$0xf] }
 0x3e0   :  { %v5741_v42 = vpop.f32.mrf.mxu0 }
 0x3e1   :  { %5153 = vmatmul.bf16.gmra.mxu1 %v7473_v32  ;;  %5362 = vmatmul.bf16.gmra.mxu2 %v7477_v11  ;;  %v12319_v16 = vadd.f32 %v5738_v29, %v5530_v24  ;;  %v7525_v11 = vor.u32 %v9571_v59, %v7522_v0  ;;  %v7537_v24 = vor.u32 %v9579_v34, %v7536_v3  ;;  %v7588_v3 = vld [vmem:[%s14380_s0 + $0x500] sm:$0xf]  ;;  %v9592_v34 = vld [vmem:[%s14380_s0 + $0x530] sm:$0xf0] }
 0x3e2   :  { %5571 = vmatmul.bf16.gmra.mxu3 %v7481_v57 }
 0x3e3   :  { %5780 = vmatmul.bf16.gmra.mxu0 %v7485_v20 }
 0x3e4   :  { %v5323_v4 = vpop.f32.mrf.mxu2 }
 0x3e5   :  { %v5324_v60 = vadd.f32 %v5323_v4, %v5115_v6  ;;  %v5532_v54 = vpop.f32.mrf.mxu3 }
 0x3e6   :  { %v5116_v22 = vpop.f32.mrf.mxu1 }
 0x3e7   :  { %v5533_v51 = vadd.f32 %v5532_v54, %v5324_v60  ;;  %v5117_v40 = vadd.f32 %v5116_v22, %v10970_v63  ;;  %v9572_v63 = vld [vmem:[%s14380_s0 + $0x494] sm:$0xf] }
 0x3e8   :  { %v5743_v27 = vpop.f32.mrf.mxu0  ;;  %v7533_v20 = vor.u32 %v9572_v63, %v7530_v10  ;;  %v9591_v63 = vld [vmem:[%s14380_s0 + $0x528] sm:$0xf0]  ;;  %v7582_v10 = vld [vmem:[%s14380_s0 + $0x52c] sm:$0xf0] }
 0x3e9   :  { %v12328_v29 = vadd.f32 %v5741_v42, %v5533_v51 }
 0x3ec   :  { %v5325_v33 = vpop.f32.mrf.mxu2 }
 0x3ed   :  { %v5326_v12 = vadd.f32 %v5325_v33, %v5117_v40  ;;  %v5534_v32 = vpop.f32.mrf.mxu3 }
 0x3ee   :  { %v5119_v57 = vpop.f32.mrf.mxu1 }
 0x3ef   :  { %v5535_v6 = vadd.f32 %v5534_v32, %v5326_v12  ;;  %v5120_v42 = vadd.f32 %v5119_v57, %v10980_v21  ;;  %v7574_v21 = vld [vmem:[%s14380_s0 + $0x524] sm:$0xf0]  ;;  %v7581_v57 = vor.u32 %v9591_v63, %v7580_v17  ;;  %v9597_v17 = vld [vmem:[%s14380_s0 + $0x55c] sm:$0xf]  ;;  %v7632_v63 = vld [vmem:[%s14380_s0 + $0x560] sm:$0xf] }
 0x3f0   :  { %v5746_v4 = vpop.f32.mrf.mxu0 }
 0x3f1   :  { %5158 = vmatmul.bf16.gmra.mxu1 %v7525_v11  ;;  %5367 = vmatmul.bf16.gmra.mxu2 %v7529_v37  ;;  %v12349_v60 = vadd.f32 %v5743_v27, %v5535_v6  ;;  %v7577_v37 = vor.u32 %v9584_v46, %v7574_v21  ;;  %v7589_v6 = vor.u32 %v9592_v34, %v7588_v3  ;;  %v7640_v3 = vld [vmem:[%s14380_s0 + $0x568] sm:$0xf]  ;;  %v9605_v34 = vld [vmem:[%s14380_s0 + $0x598] sm:$0xf0] }
 0x3f2   :  { %5576 = vmatmul.bf16.gmra.mxu3 %v7533_v20 }
 0x3f3   :  { %5785 = vmatmul.bf16.gmra.mxu0 %v7537_v24 }
 0x3f4   :  { %v5328_v54 = vpop.f32.mrf.mxu2 }
 0x3f5   :  { %v5329_v22 = vadd.f32 %v5328_v54, %v5120_v42  ;;  %v5537_v51 = vpop.f32.mrf.mxu3 }
 0x3f6   :  { %v5121_v40 = vpop.f32.mrf.mxu1 }
 0x3f7   :  { %v5538_v33 = vadd.f32 %v5537_v51, %v5329_v22  ;;  %v5122_v59 = vadd.f32 %v5121_v40, %v11002_v2  ;;  %v9585_v2 = vld [vmem:[%s14380_s0 + $0x4fc] sm:$0xf] }
 0x3f8   :  { %v5748_v0 = vpop.f32.mrf.mxu0  ;;  %v7585_v24 = vor.u32 %v9585_v2, %v7582_v10  ;;  %v9604_v2 = vld [vmem:[%s14380_s0 + $0x590] sm:$0xf0]  ;;  %v7634_v10 = vld [vmem:[%s14380_s0 + $0x594] sm:$0xf0] }
 0x3f9   :  { %v12358_v27 = vadd.f32 %v5746_v4, %v5538_v33 }
 0x3fc   :  { %v5330_v12 = vpop.f32.mrf.mxu2 }
 0x3fd   :  { %v5331_v32 = vadd.f32 %v5330_v12, %v5122_v59  ;;  %v5539_v11 = vpop.f32.mrf.mxu3 }
 0x3fe   :  { %v5124_v20 = vpop.f32.mrf.mxu1 }
 0x3ff   :  { %v5540_v42 = vadd.f32 %v5539_v11, %v5331_v32  ;;  %v5125_v4 = vadd.f32 %v5124_v20, %v11012_v36  ;;  %v7626_v36 = vld [vmem:[%s14380_s0 + $0x58c] sm:$0xf0]  ;;  %v7633_v20 = vor.u32 %v9604_v2, %v7632_v63  ;;  %v10022_v2 = vld [vmem:[%s14378_s1 + $0x260] sm:$0xff] }
 0x400   :  { %v5751_v54 = vpop.f32.mrf.mxu0  ;;  %5934 = vmatpush.bf16.msrb.mxu1 %v10022_v2 }
 0x401   :  { %5163 = vmatmul.bf16.gmra.mxu1 %v7577_v37  ;;  %5372 = vmatmul.bf16.gmra.mxu2 %v7581_v57  ;;  %v12379_v22 = vadd.f32 %v5748_v0, %v5540_v42  ;;  %v7629_v57 = vor.u32 %v9597_v17, %v7626_v36  ;;  %v7641_v42 = vor.u32 %v9605_v34, %v7640_v3  ;;  %v7678_v3 = vld [vmem:[%s14380_s0 + $0x5f4] sm:$0xf0]  ;;  %v7684_v34 = vld [vmem:[%s14380_s0 + $0x5c8] sm:$0xf] }
 0x402   :  { %5581 = vmatmul.bf16.gmra.mxu3 %v7585_v24 }
 0x403   :  { %5790 = vmatmul.bf16.gmra.mxu0 %v7589_v6 }
 0x404   :  { %v5333_v51 = vpop.f32.mrf.mxu2 }
 0x405   :  { %v5334_v40 = vadd.f32 %v5333_v51, %v5125_v4  ;;  %v5542_v33 = vpop.f32.mrf.mxu3 }
 0x406   :  { %v5126_v59 = vpop.f32.mrf.mxu1 }
 0x407   :  { %v5543_v12 = vadd.f32 %v5542_v33, %v5334_v40  ;;  %v5127_v46 = vadd.f32 %v5126_v59, %v11034_v14  ;;  %v9598_v14 = vld [vmem:[%s14380_s0 + $0x564] sm:$0xf] }
 0x408   :  { %v5753_v21 = vpop.f32.mrf.mxu0  ;;  %v7637_v6 = vor.u32 %v9598_v14, %v7634_v10  ;;  %v10030_v33 = vld [vmem:[%s14378_s1 + $0x2a0] sm:$0xff] }
 0x409   :  { %v12388_v0 = vadd.f32 %v5751_v54, %v5543_v12  ;;  %v10038_v59 = vld [vmem:[%s14378_s1 + $0x2e0] sm:$0xff]  ;;  %6143 = vmatpush.bf16.msrb.mxu2 %v10030_v33 }
 0x40a   :  { %6352 = vmatpush.bf16.msrb.mxu3 %v10038_v59  ;;  %v10046_v14 = vld [vmem:[%s14378_s1 + $0x320] sm:$0xff] }
 0x40b   :  { %v9610_v10 = vld [vmem:[%s14380_s0 + $0x5c4] sm:$0xf]  ;;  %6561 = vmatpush.bf16.msrb.mxu0 %v10046_v14 }
 0x40c   :  { %v5335_v32 = vpop.f32.mrf.mxu2 }
 0x40d   :  { %v5336_v11 = vadd.f32 %v5335_v32, %v5127_v46  ;;  %v5544_v37 = vpop.f32.mrf.mxu3  ;;  %v9617_v32 = vld [vmem:[%s14380_s0 + $0x5f8] sm:$0xf0] }
 0x40e   :  { %v5129_v24 = vpop.f32.mrf.mxu1 }
 0x40f   :  { %v5545_v4 = vadd.f32 %v5544_v37, %v5336_v11  ;;  %v5130_v54 = vadd.f32 %v5129_v24, %v11056_v1  ;;  %v9611_v11 = vld [vmem:[%s14380_s0 + $0x5cc] sm:$0xf]  ;;  %v7686_v37 = vld [vmem:[%s14380_s0 + $0x5fc] sm:$0xf0] }
 0x410   :  { %v5756_v51 = vpop.f32.mrf.mxu0  ;;  %v7689_v33 = vor.u32 %v9611_v11, %v7686_v37  ;;  %v9630_v11 = vld [vmem:[%s14380_s0 + $0x660] sm:$0xf0]  ;;  %v7738_v37 = vld [vmem:[%s14380_s0 + $0x664] sm:$0xf0] }
 0x411   :  { %5168 = vmatmul.bf16.gmra.mxu1 %v7629_v57  ;;  %5377 = vmatmul.bf16.gmra.mxu2 %v7633_v20  ;;  %v12409_v40 = vadd.f32 %v5753_v21, %v5545_v4  ;;  %v7692_v57 = vld [vmem:[%s14380_s0 + $0x5d0] sm:$0xf]  ;;  %v9618_v20 = vld [vmem:[%s14380_s0 + $0x600] sm:$0xf0]  ;;  %v7681_v4 = vor.u32 %v9610_v10, %v7678_v3 }
 0x412   :  { %5586 = vmatmul.bf16.gmra.mxu3 %v7637_v6  ;;  %v7693_v59 = vor.u32 %v9618_v20, %v7692_v57  ;;  %v7744_v57 = vld [vmem:[%s14380_s0 + $0x638] sm:$0xf]  ;;  %v9631_v20 = vld [vmem:[%s14380_s0 + $0x668] sm:$0xf0] }
 0x413   :  { %5795 = vmatmul.bf16.gmra.mxu0 %v7641_v42 }
 0x414   :  { %v5338_v12 = vpop.f32.mrf.mxu2 }
 0x415   :  { %v5339_v46 = vadd.f32 %v5338_v12, %v5130_v54  ;;  %v5547_v1 = vpop.f32.mrf.mxu3  ;;  %v7685_v54 = vor.u32 %v9617_v32, %v7684_v34  ;;  %v9623_v34 = vld [vmem:[%s14380_s0 + $0x62c] sm:$0xf]  ;;  %v7736_v32 = vld [vmem:[%s14380_s0 + $0x630] sm:$0xf] }
 0x416   :  { %v5131_v17 = vpop.f32.mrf.mxu1 }
 0x417   :  { %v5548_v36 = vadd.f32 %v5547_v1, %v5339_v46  ;;  %v5132_v21 = vadd.f32 %v5131_v17, %v11078_v56 }
 0x418   :  { %v5758_v63 = vpop.f32.mrf.mxu0 }
 0x419   :  { %v12430_v56 = vadd.f32 %v5756_v51, %v5548_v36 }
 0x41c   :  { %v5340_v24 = vpop.f32.mrf.mxu2 }
 0x41d   :  { %v5341_v6 = vadd.f32 %v5340_v24, %v5132_v21  ;;  %v5549_v42 = vpop.f32.mrf.mxu3 }
 0x41e   :  { %v5134_v51 = vpop.f32.mrf.mxu1 }
 0x41f   :  { %v5550_v12 = vadd.f32 %v5549_v42, %v5341_v6  ;;  %v5135_v46 = vadd.f32 %v5134_v51, %v11088_v23  ;;  %v7730_v23 = vld [vmem:[%s14380_s0 + $0x65c] sm:$0xf0]  ;;  %v7737_v51 = vor.u32 %v9630_v11, %v7736_v32  ;;  %v9636_v32 = vld [vmem:[%s14380_s0 + $0x694] sm:$0xf]  ;;  %v7788_v11 = vld [vmem:[%s14380_s0 + $0x698] sm:$0xf] }
 0x420   :  { %v5761_v1 = vpop.f32.mrf.mxu0 }
 0x421   :  { %5173 = vmatmul.bf16.gmra.mxu1 %v7681_v4  ;;  %5382 = vmatmul.bf16.gmra.mxu2 %v7685_v54  ;;  %v12451_v17 = vadd.f32 %v5758_v63, %v5550_v12  ;;  %v7733_v54 = vor.u32 %v9623_v34, %v7730_v23  ;;  %v7745_v12 = vor.u32 %v9631_v20, %v7744_v57  ;;  %v7796_v57 = vld [vmem:[%s14380_s0 + $0x6a0] sm:$0xf]  ;;  %v9644_v20 = vld [vmem:[%s14380_s0 + $0x6d0] sm:$0xf0] }
 0x422   :  { %5591 = vmatmul.bf16.gmra.mxu3 %v7689_v33 }
 0x423   :  { %5800 = vmatmul.bf16.gmra.mxu0 %v7693_v59 }
 0x424   :  { %v5343_v36 = vpop.f32.mrf.mxu2 }
 0x425   :  { %v5344_v2 = vadd.f32 %v5343_v36, %v5135_v46  ;;  %v5552_v14 = vpop.f32.mrf.mxu3 }
 0x426   :  { %v5136_v21 = vpop.f32.mrf.mxu1 }
 0x427   :  { %v5553_v24 = vadd.f32 %v5552_v14, %v5344_v2  ;;  %v5137_v10 = vadd.f32 %v5136_v21, %v11110_v28  ;;  %v9624_v28 = vld [vmem:[%s14380_s0 + $0x634] sm:$0xf] }
 0x428   :  { %v5763_v3 = vpop.f32.mrf.mxu0  ;;  %v7741_v59 = vor.u32 %v9624_v28, %v7738_v37  ;;  %v9643_v28 = vld [vmem:[%s14380_s0 + $0x6c8] sm:$0xf0]  ;;  %v7790_v37 = vld [vmem:[%s14380_s0 + $0x6cc] sm:$0xf0] }
 0x429   :  { %v12460_v63 = vadd.f32 %v5761_v1, %v5553_v24 }
 0x42c   :  { %v5345_v6 = vpop.f32.mrf.mxu2 }
 0x42d   :  { %v5346_v42 = vadd.f32 %v5345_v6, %v5137_v10  ;;  %v5554_v4 = vpop.f32.mrf.mxu3 }
 0x42e   :  { %v5139_v33 = vpop.f32.mrf.mxu1 }
 0x42f   :  { %v5555_v46 = vadd.f32 %v5554_v4, %v5346_v42  ;;  %v5140_v1 = vadd.f32 %v5139_v33, %v11120_v55  ;;  %v7782_v55 = vld [vmem:[%s14380_s0 + $0x6c4] sm:$0xf0]  ;;  %v7789_v33 = vor.u32 %v9643_v28, %v7788_v11  ;;  %v9649_v11 = vld [vmem:[%s14380_s0 + $0x6fc] sm:$0xf]  ;;  %v7840_v28 = vld [vmem:[%s14380_s0 + $0x700] sm:$0xf] }
 0x430   :  { %v5766_v36 = vpop.f32.mrf.mxu0 }
 0x431   :  { %5178 = vmatmul.bf16.gmra.mxu1 %v7733_v54  ;;  %5387 = vmatmul.bf16.gmra.mxu2 %v7737_v51  ;;  %v12481_v2 = vadd.f32 %v5763_v3, %v5555_v46  ;;  %v7785_v51 = vor.u32 %v9636_v32, %v7782_v55  ;;  %v7797_v46 = vor.u32 %v9644_v20, %v7796_v57  ;;  %v7848_v57 = vld [vmem:[%s14380_s0 + $0x708] sm:$0xf]  ;;  %v9657_v20 = vld [vmem:[%s14380_s0 + $0x738] sm:$0xf0] }
 0x432   :  { %5596 = vmatmul.bf16.gmra.mxu3 %v7741_v59 }
 0x433   :  { %5805 = vmatmul.bf16.gmra.mxu0 %v7745_v12 }
 0x434   :  { %v5348_v14 = vpop.f32.mrf.mxu2 }
 0x435   :  { %v5349_v21 = vadd.f32 %v5348_v14, %v5140_v1  ;;  %v5557_v24 = vpop.f32.mrf.mxu3 }
 0x436   :  { %v5141_v10 = vpop.f32.mrf.mxu1 }
 0x437   :  { %v5558_v6 = vadd.f32 %v5557_v24, %v5349_v21  ;;  %v5142_v34 = vadd.f32 %v5141_v10, %v11142_v43  ;;  %v9637_v43 = vld [vmem:[%s14380_s0 + $0x69c] sm:$0xf] }
 0x438   :  { %v5768_v23 = vpop.f32.mrf.mxu0  ;;  %v7793_v12 = vor.u32 %v9637_v43, %v7790_v37  ;;  %v9656_v43 = vld [vmem:[%s14380_s0 + $0x730] sm:$0xf0]  ;;  %v7842_v37 = vld [vmem:[%s14380_s0 + $0x734] sm:$0xf0] }
 0x439   :  { %v12490_v3 = vadd.f32 %v5766_v36, %v5558_v6 }
 0x43c   :  { %v5350_v42 = vpop.f32.mrf.mxu2 }
 0x43d   :  { %v5351_v4 = vadd.f32 %v5350_v42, %v5142_v34  ;;  %v5559_v54 = vpop.f32.mrf.mxu3 }
 0x43e   :  { %v5144_v59 = vpop.f32.mrf.mxu1 }
 0x43f   :  { %v5560_v1 = vadd.f32 %v5559_v54, %v5351_v4  ;;  %v5145_v36 = vadd.f32 %v5144_v59, %v11152_v38  ;;  %v7834_v38 = vld [vmem:[%s14380_s0 + $0x72c] sm:$0xf0]  ;;  %v7841_v59 = vor.u32 %v9656_v43, %v7840_v28  ;;  %v9662_v28 = vld [vmem:[%s14380_s0 + $0x764] sm:$0xf]  ;;  %v7892_v43 = vld [vmem:[%s14380_s0 + $0x768] sm:$0xf] }
 0x440   :  { %v5771_v14 = vpop.f32.mrf.mxu0 }
 0x441   :  { %5183 = vmatmul.bf16.gmra.mxu1 %v7785_v51  ;;  %5392 = vmatmul.bf16.gmra.mxu2 %v7789_v33  ;;  %v12511_v21 = vadd.f32 %v5768_v23, %v5560_v1  ;;  %v7837_v33 = vor.u32 %v9649_v11, %v7834_v38  ;;  %v7849_v1 = vor.u32 %v9657_v20, %v7848_v57  ;;  %v7900_v57 = vld [vmem:[%s14380_s0 + $0x770] sm:$0xf]  ;;  %v9670_v20 = vld [vmem:[%s14380_s0 + $0x7a0] sm:$0xf0] }
 0x442   :  { %5601 = vmatmul.bf16.gmra.mxu3 %v7793_v12 }
 0x443   :  { %5810 = vmatmul.bf16.gmra.mxu0 %v7797_v46 }
 0x444   :  { %v5353_v24 = vpop.f32.mrf.mxu2 }
 0x445   :  { %v5354_v10 = vadd.f32 %v5353_v24, %v5145_v36  ;;  %v5562_v6 = vpop.f32.mrf.mxu3 }
 0x446   :  { %v5146_v34 = vpop.f32.mrf.mxu1 }
 0x447   :  { %v5563_v42 = vadd.f32 %v5562_v6, %v5354_v10  ;;  %v5147_v32 = vadd.f32 %v5146_v34, %v11174_v25  ;;  %v9650_v25 = vld [vmem:[%s14380_s0 + $0x704] sm:$0xf] }
 0x448   :  { %v5773_v55 = vpop.f32.mrf.mxu0  ;;  %v7845_v46 = vor.u32 %v9650_v25, %v7842_v37  ;;  %v9669_v25 = vld [vmem:[%s14380_s0 + $0x798] sm:$0xf0]  ;;  %v7894_v37 = vld [vmem:[%s14380_s0 + $0x79c] sm:$0xf0] }
 0x449   :  { %v12520_v23 = vadd.f32 %v5771_v14, %v5563_v42 }
 0x44c   :  { %v5355_v4 = vpop.f32.mrf.mxu2 }
 0x44d   :  { %v5356_v54 = vadd.f32 %v5355_v4, %v5147_v32  ;;  %v5564_v51 = vpop.f32.mrf.mxu3 }
 0x44e   :  { %v5149_v12 = vpop.f32.mrf.mxu1 }
 0x44f   :  { %v5565_v36 = vadd.f32 %v5564_v51, %v5356_v54  ;;  %v5150_v14 = vadd.f32 %v5149_v12, %v11184_v61  ;;  %v7886_v61 = vld [vmem:[%s14380_s0 + $0x794] sm:$0xf0]  ;;  %v7893_v12 = vor.u32 %v9669_v25, %v7892_v43 }
 0x450   :  { %v5776_v24 = vpop.f32.mrf.mxu0  ;;  %v10021_v25 = vld [vmem:[%s14378_s1 + $0x258] sm:$0xff] }
 0x451   :  { %5188 = vmatmul.bf16.gmra.mxu1 %v7837_v33  ;;  %5397 = vmatmul.bf16.gmra.mxu2 %v7841_v59  ;;  %v12541_v10 = vadd.f32 %v5773_v55, %v5565_v36  ;;  %v7889_v59 = vor.u32 %v9662_v28, %v7886_v61  ;;  %v7901_v36 = vor.u32 %v9670_v20, %v7900_v57  ;;  %v7938_v57 = vld [vmem:[%s14380_s0 + $0x7fc] sm:$0xf0]  ;;  %v7944_v20 = vld [vmem:[%s14380_s0 + $0x7d0] sm:$0xf] }
 0x452   :  { %5606 = vmatmul.bf16.gmra.mxu3 %v7845_v46  ;;  %5935 = vmatpush.bf16.msrb.mxu1 %v10021_v25 }
 0x453   :  { %5815 = vmatmul.bf16.gmra.mxu0 %v7849_v1 }
 0x454   :  { %v5358_v6 = vpop.f32.mrf.mxu2 }
 0x455   :  { %v5359_v34 = vadd.f32 %v5358_v6, %v5150_v14  ;;  %v5567_v42 = vpop.f32.mrf.mxu3 }
 0x456   :  { %v5151_v32 = vpop.f32.mrf.mxu1 }
 0x457   :  { %v5568_v4 = vadd.f32 %v5567_v42, %v5359_v34  ;;  %v5152_v11 = vadd.f32 %v5151_v32, %v11206_v47  ;;  %v9663_v47 = vld [vmem:[%s14380_s0 + $0x76c] sm:$0xf]  ;;  %v10029_v42 = vld [vmem:[%s14378_s1 + $0x298] sm:$0xff] }
 0x458   :  { %v5778_v38 = vpop.f32.mrf.mxu0  ;;  %v7897_v1 = vor.u32 %v9663_v47, %v7894_v37  ;;  %v10037_v32 = vld [vmem:[%s14378_s1 + $0x2d8] sm:$0xff]  ;;  %6144 = vmatpush.bf16.msrb.mxu2 %v10029_v42  ;;  %v9675_v37 = vld [vmem:[%s14380_s0 + $0x7cc] sm:$0xf] }
 0x459   :  { %v12550_v55 = vadd.f32 %v5776_v24, %v5568_v4  ;;  %6353 = vmatpush.bf16.msrb.mxu3 %v10037_v32  ;;  %v10045_v47 = vld [vmem:[%s14378_s1 + $0x318] sm:$0xff] }
 0x45a   :  { %6562 = vmatpush.bf16.msrb.mxu0 %v10045_v47 }
 0x45c   :  { %v5360_v54 = vpop.f32.mrf.mxu2 }
 0x45d   :  { %v5361_v51 = vadd.f32 %v5360_v54, %v5152_v11  ;;  %v5569_v33 = vpop.f32.mrf.mxu3  ;;  %v9682_v54 = vld [vmem:[%s14380_s0 + $0x800] sm:$0xf0] }
 0x45e   :  { %v5154_v46 = vpop.f32.mrf.mxu1 }
 0x45f   :  { %v5570_v14 = vadd.f32 %v5569_v33, %v5361_v51  ;;  %v5155_v24 = vadd.f32 %v5154_v46, %v11228_v44  ;;  %v9676_v51 = vld [vmem:[%s14380_s0 + $0x7d4] sm:$0xf]  ;;  %v7946_v33 = vld [vmem:[%s14380_s0 + $0x804] sm:$0xf0] }
 0x460   :  { %v5781_v6 = vpop.f32.mrf.mxu0  ;;  %v7949_v42 = vor.u32 %v9676_v51, %v7946_v33  ;;  %v9695_v51 = vld [vmem:[%s14380_s0 + $0x868] sm:$0xf0]  ;;  %v7998_v33 = vld [vmem:[%s14380_s0 + $0x86c] sm:$0xf0] }
 0x461   :  { %5193 = vmatmul.bf16.gmra.mxu1 %v7889_v59  ;;  %5402 = vmatmul.bf16.gmra.mxu2 %v7893_v12  ;;  %v12571_v34 = vadd.f32 %v5778_v38, %v5570_v14  ;;  %v7952_v59 = vld [vmem:[%s14380_s0 + $0x7d8] sm:$0xf]  ;;  %v9683_v12 = vld [vmem:[%s14380_s0 + $0x808] sm:$0xf0]  ;;  %v7941_v14 = vor.u32 %v9675_v37, %v7938_v57 }
 0x462   :  { %5611 = vmatmul.bf16.gmra.mxu3 %v7897_v1  ;;  %v7953_v32 = vor.u32 %v9683_v12, %v7952_v59  ;;  %v8004_v59 = vld [vmem:[%s14380_s0 + $0x840] sm:$0xf]  ;;  %v9696_v12 = vld [vmem:[%s14380_s0 + $0x870] sm:$0xf0] }
 0x463   :  { %5820 = vmatmul.bf16.gmra.mxu0 %v7901_v36 }
 0x464   :  { %v5363_v4 = vpop.f32.mrf.mxu2 }
 0x465   :  { %v5364_v11 = vadd.f32 %v5363_v4, %v5155_v24  ;;  %v5572_v44 = vpop.f32.mrf.mxu3  ;;  %v7945_v24 = vor.u32 %v9682_v54, %v7944_v20  ;;  %v9688_v20 = vld [vmem:[%s14380_s0 + $0x834] sm:$0xf]  ;;  %v7996_v54 = vld [vmem:[%s14380_s0 + $0x838] sm:$0xf] }
 0x466   :  { %v5156_v28 = vpop.f32.mrf.mxu1 }
 0x467   :  { %v5573_v61 = vadd.f32 %v5572_v44, %v5364_v11  ;;  %v5157_v38 = vadd.f32 %v5156_v28, %v11250_v9 }
 0x468   :  { %v5783_v43 = vpop.f32.mrf.mxu0 }
 0x469   :  { %v12592_v9 = vadd.f32 %v5781_v6, %v5573_v61 }
 0x46c   :  { %v5365_v46 = vpop.f32.mrf.mxu2 }
 0x46d   :  { %v5366_v1 = vadd.f32 %v5365_v46, %v5157_v38  ;;  %v5574_v36 = vpop.f32.mrf.mxu3 }
 0x46e   :  { %v5159_v6 = vpop.f32.mrf.mxu1 }
 0x46f   :  { %v5575_v4 = vadd.f32 %v5574_v36, %v5366_v1  ;;  %v5160_v11 = vadd.f32 %v5159_v6, %v11260_v39  ;;  %v7990_v39 = vld [vmem:[%s14380_s0 + $0x864] sm:$0xf0]  ;;  %v7997_v6 = vor.u32 %v9695_v51, %v7996_v54  ;;  %v9701_v54 = vld [vmem:[%s14380_s0 + $0x89c] sm:$0xf]  ;;  %v8048_v51 = vld [vmem:[%s14380_s0 + $0x8a0] sm:$0xf] }
 0x470   :  { %v5786_v44 = vpop.f32.mrf.mxu0 }
 0x471   :  { %5198 = vmatmul.bf16.gmra.mxu1 %v7941_v14  ;;  %5407 = vmatmul.bf16.gmra.mxu2 %v7945_v24  ;;  %v12613_v28 = vadd.f32 %v5783_v43, %v5575_v4  ;;  %v7993_v24 = vor.u32 %v9688_v20, %v7990_v39  ;;  %v8005_v4 = vor.u32 %v9696_v12, %v8004_v59  ;;  %v8056_v59 = vld [vmem:[%s14380_s0 + $0x8a8] sm:$0xf]  ;;  %v9709_v12 = vld [vmem:[%s14380_s0 + $0x8d8] sm:$0xf0] }
 0x472   :  { %5616 = vmatmul.bf16.gmra.mxu3 %v7949_v42 }
 0x473   :  { %5825 = vmatmul.bf16.gmra.mxu0 %v7953_v32 }
 0x474   :  { %v5368_v61 = vpop.f32.mrf.mxu2 }
 0x475   :  { %v5369_v25 = vadd.f32 %v5368_v61, %v5160_v11  ;;  %v5577_v47 = vpop.f32.mrf.mxu3 }
 0x476   :  { %v5161_v38 = vpop.f32.mrf.mxu1 }
 0x477   :  { %v5578_v46 = vadd.f32 %v5577_v47, %v5369_v25  ;;  %v5162_v37 = vadd.f32 %v5161_v38, %v11282_v50  ;;  %v9689_v50 = vld [vmem:[%s14380_s0 + $0x83c] sm:$0xf] }
 0x478   :  { %v5788_v57 = vpop.f32.mrf.mxu0  ;;  %v8001_v32 = vor.u32 %v9689_v50, %v7998_v33  ;;  %v9708_v50 = vld [vmem:[%s14380_s0 + $0x8d0] sm:$0xf0]  ;;  %v8050_v33 = vld [vmem:[%s14380_s0 + $0x8d4] sm:$0xf0] }
 0x479   :  { %v12622_v43 = vadd.f32 %v5786_v44, %v5578_v46 }
 0x47c   :  { %v5370_v1 = vpop.f32.mrf.mxu2 }
 0x47d   :  { %v5371_v36 = vadd.f32 %v5370_v1, %v5162_v37  ;;  %v5579_v14 = vpop.f32.mrf.mxu3 }
 0x47e   :  { %v5164_v42 = vpop.f32.mrf.mxu1 }
 0x47f   :  { %v5580_v11 = vadd.f32 %v5579_v14, %v5371_v36  ;;  %v5165_v44 = vadd.f32 %v5164_v42, %v11292_v41  ;;  %v8042_v41 = vld [vmem:[%s14380_s0 + $0x8cc] sm:$0xf0]  ;;  %v8049_v42 = vor.u32 %v9708_v50, %v8048_v51  ;;  %v9714_v51 = vld [vmem:[%s14380_s0 + $0x904] sm:$0xf]  ;;  %v8100_v50 = vld [vmem:[%s14380_s0 + $0x908] sm:$0xf] }
 0x480   :  { %v5791_v61 = vpop.f32.mrf.mxu0 }
 0x481   :  { %5203 = vmatmul.bf16.gmra.mxu1 %v7993_v24  ;;  %5412 = vmatmul.bf16.gmra.mxu2 %v7997_v6  ;;  %v12643_v25 = vadd.f32 %v5788_v57, %v5580_v11  ;;  %v8045_v6 = vor.u32 %v9701_v54, %v8042_v41  ;;  %v8057_v11 = vor.u32 %v9709_v12, %v8056_v59  ;;  %v8108_v59 = vld [vmem:[%s14380_s0 + $0x910] sm:$0xf]  ;;  %v9722_v12 = vld [vmem:[%s14380_s0 + $0x940] sm:$0xf0] }
 0x482   :  { %5621 = vmatmul.bf16.gmra.mxu3 %v8001_v32 }
 0x483   :  { %5830 = vmatmul.bf16.gmra.mxu0 %v8005_v4 }
 0x484   :  { %v5373_v47 = vpop.f32.mrf.mxu2 }
 0x485   :  { %v5374_v38 = vadd.f32 %v5373_v47, %v5165_v44  ;;  %v5582_v46 = vpop.f32.mrf.mxu3 }
 0x486   :  { %v5166_v37 = vpop.f32.mrf.mxu1 }
 0x487   :  { %v5583_v1 = vadd.f32 %v5582_v46, %v5374_v38  ;;  %v5167_v20 = vadd.f32 %v5166_v37, %v11314_v45  ;;  %v9702_v45 = vld [vmem:[%s14380_s0 + $0x8a4] sm:$0xf] }
 0x488   :  { %v5793_v39 = vpop.f32.mrf.mxu0  ;;  %v8053_v4 = vor.u32 %v9702_v45, %v8050_v33  ;;  %v9721_v45 = vld [vmem:[%s14380_s0 + $0x938] sm:$0xf0]  ;;  %v8102_v33 = vld [vmem:[%s14380_s0 + $0x93c] sm:$0xf0] }
 0x489   :  { %v12652_v57 = vadd.f32 %v5791_v61, %v5583_v1 }
 0x48c   :  { %v5375_v36 = vpop.f32.mrf.mxu2 }
 0x48d   :  { %v5376_v14 = vadd.f32 %v5375_v36, %v5167_v20  ;;  %v5584_v24 = vpop.f32.mrf.mxu3 }
 0x48e   :  { %v5169_v32 = vpop.f32.mrf.mxu1 }
 0x48f   :  { %v5585_v44 = vadd.f32 %v5584_v24, %v5376_v14  ;;  %v5170_v61 = vadd.f32 %v5169_v32, %v11324_v49  ;;  %v8094_v49 = vld [vmem:[%s14380_s0 + $0x934] sm:$0xf0]  ;;  %v8101_v32 = vor.u32 %v9721_v45, %v8100_v50  ;;  %v9727_v50 = vld [vmem:[%s14380_s0 + $0x96c] sm:$0xf]  ;;  %v8152_v45 = vld [vmem:[%s14380_s0 + $0x970] sm:$0xf] }
 0x490   :  { %v5796_v47 = vpop.f32.mrf.mxu0 }
 0x491   :  { %5208 = vmatmul.bf16.gmra.mxu1 %v8045_v6  ;;  %5417 = vmatmul.bf16.gmra.mxu2 %v8049_v42  ;;  %v12673_v38 = vadd.f32 %v5793_v39, %v5585_v44  ;;  %v8097_v42 = vor.u32 %v9714_v51, %v8094_v49  ;;  %v8109_v44 = vor.u32 %v9722_v12, %v8108_v59  ;;  %v8160_v59 = vld [vmem:[%s14380_s0 + $0x978] sm:$0xf]  ;;  %v9735_v12 = vld [vmem:[%s14380_s0 + $0x9a8] sm:$0xf0] }
 0x492   :  { %5626 = vmatmul.bf16.gmra.mxu3 %v8053_v4 }
 0x493   :  { %5835 = vmatmul.bf16.gmra.mxu0 %v8057_v11 }
 0x494   :  { %v5378_v46 = vpop.f32.mrf.mxu2 }
 0x495   :  { %v5379_v37 = vadd.f32 %v5378_v46, %v5170_v61  ;;  %v5587_v1 = vpop.f32.mrf.mxu3 }
 0x496   :  { %v5171_v20 = vpop.f32.mrf.mxu1 }
 0x497   :  { %v5588_v36 = vadd.f32 %v5587_v1, %v5379_v37  ;;  %v5172_v54 = vadd.f32 %v5171_v20, %v11346_v58  ;;  %v9715_v58 = vld [vmem:[%s14380_s0 + $0x90c] sm:$0xf] }
 0x498   :  { %v5798_v41 = vpop.f32.mrf.mxu0  ;;  %v8105_v11 = vor.u32 %v9715_v58, %v8102_v33  ;;  %v9734_v58 = vld [vmem:[%s14380_s0 + $0x9a0] sm:$0xf0]  ;;  %v8154_v33 = vld [vmem:[%s14380_s0 + $0x9a4] sm:$0xf0] }
 0x499   :  { %v12682_v39 = vadd.f32 %v5796_v47, %v5588_v36 }
 0x49c   :  { %v5380_v14 = vpop.f32.mrf.mxu2 }
 0x49d   :  { %v5381_v24 = vadd.f32 %v5380_v14, %v5172_v54  ;;  %v5589_v6 = vpop.f32.mrf.mxu3 }
 0x49e   :  { %v5174_v4 = vpop.f32.mrf.mxu1 }
 0x49f   :  { %v5590_v61 = vadd.f32 %v5589_v6, %v5381_v24  ;;  %v5175_v47 = vadd.f32 %v5174_v4, %v11361_v31  ;;  %v8146_v31 = vld [vmem:[%s14380_s0 + $0x99c] sm:$0xf0]  ;;  %v8153_v4 = vor.u32 %v9734_v58, %v8152_v45  ;;  %v10020_v58 = vld [vmem:[%s14378_s1 + $0x250] sm:$0xff] }
 0x4a0   :  { %v5801_v46 = vpop.f32.mrf.mxu0  ;;  %5936 = vmatpush.bf16.msrb.mxu1 %v10020_v58 }
 0x4a1   :  { %5213 = vmatmul.bf16.gmra.mxu1 %v8097_v42  ;;  %5422 = vmatmul.bf16.gmra.mxu2 %v8101_v32  ;;  %v12703_v37 = vadd.f32 %v5798_v41, %v5590_v61  ;;  %v8149_v32 = vor.u32 %v9727_v50, %v8146_v31  ;;  %v8161_v61 = vor.u32 %v9735_v12, %v8160_v59  ;;  %v8198_v59 = vld [vmem:[%s14380_s0 + $0xa04] sm:$0xf0]  ;;  %v8204_v12 = vld [vmem:[%s14380_s0 + $0x9d8] sm:$0xf] }
 0x4a2   :  { %5631 = vmatmul.bf16.gmra.mxu3 %v8105_v11 }
 0x4a3   :  { %5840 = vmatmul.bf16.gmra.mxu0 %v8109_v44 }
 0x4a4   :  { %v5383_v1 = vpop.f32.mrf.mxu2 }
 0x4a5   :  { %v5384_v20 = vadd.f32 %v5383_v1, %v5175_v47  ;;  %v5592_v36 = vpop.f32.mrf.mxu3 }
 0x4a6   :  { %v5176_v54 = vpop.f32.mrf.mxu1 }
 0x4a7   :  { %v5593_v14 = vadd.f32 %v5592_v36, %v5384_v20  ;;  %v5177_v51 = vadd.f32 %v5176_v54, %v11383_v13  ;;  %v9728_v13 = vld [vmem:[%s14380_s0 + $0x974] sm:$0xf] }
 0x4a8   :  { %v5803_v49 = vpop.f32.mrf.mxu0  ;;  %v8157_v44 = vor.u32 %v9728_v13, %v8154_v33  ;;  %v10028_v36 = vld [vmem:[%s14378_s1 + $0x290] sm:$0xff] }
 0x4a9   :  { %v12712_v41 = vadd.f32 %v5801_v46, %v5593_v14  ;;  %v10036_v54 = vld [vmem:[%s14378_s1 + $0x2d0] sm:$0xff]  ;;  %6145 = vmatpush.bf16.msrb.mxu2 %v10028_v36 }
 0x4aa   :  { %6354 = vmatpush.bf16.msrb.mxu3 %v10036_v54  ;;  %v10044_v13 = vld [vmem:[%s14378_s1 + $0x310] sm:$0xff] }
 0x4ab   :  { %v9740_v33 = vld [vmem:[%s14380_s0 + $0x9d4] sm:$0xf]  ;;  %6563 = vmatpush.bf16.msrb.mxu0 %v10044_v13 }
 0x4ac   :  { %v5385_v24 = vpop.f32.mrf.mxu2 }
 0x4ad   :  { %v5386_v6 = vadd.f32 %v5385_v24, %v5177_v51  ;;  %v5594_v42 = vpop.f32.mrf.mxu3  ;;  %v9747_v24 = vld [vmem:[%s14380_s0 + $0xa08] sm:$0xf0] }
 0x4ae   :  { %v5179_v11 = vpop.f32.mrf.mxu1 }
 0x4af   :  { %v5595_v47 = vadd.f32 %v5594_v42, %v5386_v6  ;;  %v5180_v46 = vadd.f32 %v5179_v11, %v11405_v62  ;;  %v9741_v6 = vld [vmem:[%s14380_s0 + $0x9dc] sm:$0xf]  ;;  %v8206_v42 = vld [vmem:[%s14380_s0 + $0xa0c] sm:$0xf0] }
 0x4b0   :  { %v5806_v1 = vpop.f32.mrf.mxu0  ;;  %v8209_v36 = vor.u32 %v9741_v6, %v8206_v42  ;;  %v9760_v6 = vld [vmem:[%s14380_s0 + $0xa70] sm:$0xf0]  ;;  %v8258_v42 = vld [vmem:[%s14380_s0 + $0xa74] sm:$0xf0] }
 0x4b1   :  { %5218 = vmatmul.bf16.gmra.mxu1 %v8149_v32  ;;  %5427 = vmatmul.bf16.gmra.mxu2 %v8153_v4  ;;  %v12733_v20 = vadd.f32 %v5803_v49, %v5595_v47  ;;  %v8212_v32 = vld [vmem:[%s14380_s0 + $0x9e0] sm:$0xf]  ;;  %v9748_v4 = vld [vmem:[%s14380_s0 + $0xa10] sm:$0xf0]  ;;  %v8201_v47 = vor.u32 %v9740_v33, %v8198_v59 }
 0x4b2   :  { %5636 = vmatmul.bf16.gmra.mxu3 %v8157_v44  ;;  %v8213_v54 = vor.u32 %v9748_v4, %v8212_v32  ;;  %v8264_v32 = vld [vmem:[%s14380_s0 + $0xa48] sm:$0xf]  ;;  %v9761_v4 = vld [vmem:[%s14380_s0 + $0xa78] sm:$0xf0] }
 0x4b3   :  { %5845 = vmatmul.bf16.gmra.mxu0 %v8161_v61 }
 0x4b4   :  { %v5388_v14 = vpop.f32.mrf.mxu2 }
 0x4b5   :  { %v5389_v51 = vadd.f32 %v5388_v14, %v5180_v46  ;;  %v5597_v62 = vpop.f32.mrf.mxu3  ;;  %v8205_v46 = vor.u32 %v9747_v24, %v8204_v12  ;;  %v9753_v12 = vld [vmem:[%s14380_s0 + $0xa3c] sm:$0xf]  ;;  %v8256_v24 = vld [vmem:[%s14380_s0 + $0xa40] sm:$0xf] }
 0x4b6   :  { %v5181_v50 = vpop.f32.mrf.mxu1 }
 0x4b7   :  { %v5598_v31 = vadd.f32 %v5597_v62, %v5389_v51  ;;  %v5182_v49 = vadd.f32 %v5181_v50, %v11427_v7 }
 0x4b8   :  { %v5808_v45 = vpop.f32.mrf.mxu0 }
 0x4b9   :  { %v12754_v7 = vadd.f32 %v5806_v1, %v5598_v31 }
 0x4bc   :  { %v5390_v11 = vpop.f32.mrf.mxu2 }
 0x4bd   :  { %v5391_v44 = vadd.f32 %v5390_v11, %v5182_v49  ;;  %v5599_v61 = vpop.f32.mrf.mxu3 }
 0x4be   :  { %v5184_v1 = vpop.f32.mrf.mxu1 }
 0x4bf   :  { %v5600_v14 = vadd.f32 %v5599_v61, %v5391_v44  ;;  %v5185_v51 = vadd.f32 %v5184_v1, %v11437_v19  ;;  %v8250_v19 = vld [vmem:[%s14380_s0 + $0xa6c] sm:$0xf0]  ;;  %v8257_v1 = vor.u32 %v9760_v6, %v8256_v24  ;;  %v9766_v24 = vld [vmem:[%s14380_s0 + $0xaa4] sm:$0xf]  ;;  %v8308_v6 = vld [vmem:[%s14380_s0 + $0xaa8] sm:$0xf] }
 0x4c0   :  { %v5811_v62 = vpop.f32.mrf.mxu0 }
 0x4c1   :  { %5223 = vmatmul.bf16.gmra.mxu1 %v8201_v47  ;;  %5432 = vmatmul.bf16.gmra.mxu2 %v8205_v46  ;;  %v12775_v50 = vadd.f32 %v5808_v45, %v5600_v14  ;;  %v8253_v46 = vor.u32 %v9753_v12, %v8250_v19  ;;  %v8265_v14 = vor.u32 %v9761_v4, %v8264_v32  ;;  %v8316_v32 = vld [vmem:[%s14380_s0 + $0xab0] sm:$0xf]  ;;  %v9774_v4 = vld [vmem:[%s14380_s0 + $0xae0] sm:$0xf0] }
 0x4c2   :  { %5641 = vmatmul.bf16.gmra.mxu3 %v8209_v36 }
 0x4c3   :  { %5850 = vmatmul.bf16.gmra.mxu0 %v8213_v54 }
 0x4c4   :  { %v5393_v31 = vpop.f32.mrf.mxu2 }
 0x4c5   :  { %v5394_v58 = vadd.f32 %v5393_v31, %v5185_v51  ;;  %v5602_v13 = vpop.f32.mrf.mxu3 }
 0x4c6   :  { %v5186_v49 = vpop.f32.mrf.mxu1 }
 0x4c7   :  { %v5603_v11 = vadd.f32 %v5602_v13, %v5394_v58  ;;  %v5187_v33 = vadd.f32 %v5186_v49, %v11459_v26  ;;  %v9754_v26 = vld [vmem:[%s14380_s0 + $0xa44] sm:$0xf] }
 0x4c8   :  { %v5813_v59 = vpop.f32.mrf.mxu0  ;;  %v8261_v54 = vor.u32 %v9754_v26, %v8258_v42  ;;  %v9773_v26 = vld [vmem:[%s14380_s0 + $0xad8] sm:$0xf0]  ;;  %v8310_v42 = vld [vmem:[%s14380_s0 + $0xadc] sm:$0xf0] }
 0x4c9   :  { %v12784_v45 = vadd.f32 %v5811_v62, %v5603_v11 }
 0x4cc   :  { %v5395_v44 = vpop.f32.mrf.mxu2 }
 0x4cd   :  { %v5396_v61 = vadd.f32 %v5395_v44, %v5187_v33  ;;  %v5604_v47 = vpop.f32.mrf.mxu3 }
 0x4ce   :  { %v5189_v36 = vpop.f32.mrf.mxu1 }
 0x4cf   :  { %v5605_v51 = vadd.f32 %v5604_v47, %v5396_v61  ;;  %v5190_v62 = vadd.f32 %v5189_v36, %v11469_v53  ;;  %v8302_v53 = vld [vmem:[%s14380_s0 + $0xad4] sm:$0xf0]  ;;  %v8309_v36 = vor.u32 %v9773_v26, %v8308_v6  ;;  %v9779_v6 = vld [vmem:[%s14380_s0 + $0xb0c] sm:$0xf]  ;;  %v8360_v26 = vld [vmem:[%s14380_s0 + $0xb10] sm:$0xf] }
 0x4d0   :  { %v5816_v31 = vpop.f32.mrf.mxu0 }
 0x4d1   :  { %5228 = vmatmul.bf16.gmra.mxu1 %v8253_v46  ;;  %5437 = vmatmul.bf16.gmra.mxu2 %v8257_v1  ;;  %v12805_v58 = vadd.f32 %v5813_v59, %v5605_v51  ;;  %v8305_v1 = vor.u32 %v9766_v24, %v8302_v53  ;;  %v8317_v51 = vor.u32 %v9774_v4, %v8316_v32  ;;  %v8368_v32 = vld [vmem:[%s14380_s0 + $0xb18] sm:$0xf]  ;;  %v9787_v4 = vld [vmem:[%s14380_s0 + $0xb48] sm:$0xf0] }
 0x4d2   :  { %5646 = vmatmul.bf16.gmra.mxu3 %v8261_v54 }
 0x4d3   :  { %5855 = vmatmul.bf16.gmra.mxu0 %v8265_v14 }
 0x4d4   :  { %v5398_v13 = vpop.f32.mrf.mxu2 }
 0x4d5   :  { %v5399_v49 = vadd.f32 %v5398_v13, %v5190_v62  ;;  %v5607_v11 = vpop.f32.mrf.mxu3 }
 0x4d6   :  { %v5191_v33 = vpop.f32.mrf.mxu1 }
 0x4d7   :  { %v5608_v44 = vadd.f32 %v5607_v11, %v5399_v49  ;;  %v5192_v12 = vadd.f32 %v5191_v33, %v11491_v35  ;;  %v9767_v35 = vld [vmem:[%s14380_s0 + $0xaac] sm:$0xf] }
 0x4d8   :  { %v5818_v19 = vpop.f32.mrf.mxu0  ;;  %v8313_v14 = vor.u32 %v9767_v35, %v8310_v42  ;;  %v9786_v35 = vld [vmem:[%s14380_s0 + $0xb40] sm:$0xf0]  ;;  %v8362_v42 = vld [vmem:[%s14380_s0 + $0xb44] sm:$0xf0] }
 0x4d9   :  { %v12814_v59 = vadd.f32 %v5816_v31, %v5608_v44 }
 0x4dc   :  { %v5400_v61 = vpop.f32.mrf.mxu2 }
 0x4dd   :  { %v5401_v47 = vadd.f32 %v5400_v61, %v5192_v12  ;;  %v5609_v46 = vpop.f32.mrf.mxu3 }
 0x4de   :  { %v5194_v54 = vpop.f32.mrf.mxu1 }
 0x4df   :  { %v5610_v62 = vadd.f32 %v5609_v46, %v5401_v47  ;;  %v5195_v31 = vadd.f32 %v5194_v54, %v11501_v30  ;;  %v8354_v30 = vld [vmem:[%s14380_s0 + $0xb3c] sm:$0xf0]  ;;  %v8361_v54 = vor.u32 %v9786_v35, %v8360_v26  ;;  %v9792_v35 = vld [vmem:[%s14380_s0 + $0xb74] sm:$0xf] }
 0x4e0   :  { %v5821_v13 = vpop.f32.mrf.mxu0 }
 0x4e1   :  { %5233 = vmatmul.bf16.gmra.mxu1 %v8305_v1  ;;  %5442 = vmatmul.bf16.gmra.mxu2 %v8309_v36  ;;  %v12835_v49 = vadd.f32 %v5818_v19, %v5610_v62  ;;  %v8357_v36 = vor.u32 %v9779_v6, %v8354_v30  ;;  %v8369_v62 = vor.u32 %v9787_v4, %v8368_v32  ;;  %v14505_v6 = vld [vmem:[#allocation43_spill] sm:$0xff]  ;;  %v9793_v32 = vld [vmem:[%s14380_s0 + $0xb7c] sm:$0xf]  ;;  %v8414_v4 = vld [vmem:[%s14380_s0 + $0xbac] sm:$0xf0] }
 0x4e2   :  { %5651 = vmatmul.bf16.gmra.mxu3 %v8313_v14 }
 0x4e3   :  { %5860 = vmatmul.bf16.gmra.mxu0 %v8317_v51 }
 0x4e4   :  { %v5403_v11 = vpop.f32.mrf.mxu2 }
 0x4e5   :  { %v5404_v33 = vadd.f32 %v5403_v11, %v5195_v31  ;;  %v5612_v44 = vpop.f32.mrf.mxu3 }
 0x4e6   :  { %v5196_v12 = vpop.f32.mrf.mxu1 }
 0x4e7   :  { %v5613_v61 = vadd.f32 %v5612_v44, %v5404_v33  ;;  %v5197_v24 = vadd.f32 %v5196_v12, %v11523_v5  ;;  %v9780_v5 = vld [vmem:[%s14380_s0 + $0xb14] sm:$0xf] }
 0x4e8   :  { %v5823_v53 = vpop.f32.mrf.mxu0  ;;  %v8365_v51 = vor.u32 %v9780_v5, %v8362_v42  ;;  %v8406_v5 = vld [vmem:[%s14380_s0 + $0xba4] sm:$0xf0]  ;;  %v8412_v42 = vld [vmem:[%s14380_s0 + $0xb78] sm:$0xf] }
 0x4e9   :  { %v12844_v19 = vadd.f32 %v5821_v13, %v5613_v61  ;;  %v14503_v13 = vld [vmem:[#allocation42_spill] sm:$0xff] }
 0x4eb   :  { %14502 = vst [vmem:[#allocation40_spill] sm:$0xff] %v12844_v19 }
 0x4ec   :  { %v5405_v47 = vpop.f32.mrf.mxu2 }
 0x4ed   :  { %v5406_v46 = vadd.f32 %v5405_v47, %v5197_v24  ;;  %v5614_v1 = vpop.f32.mrf.mxu3 }
 0x4ee   :  { %v5199_v14 = vpop.f32.mrf.mxu1 }
 0x4ef   :  { %v5615_v31 = vadd.f32 %v5614_v1, %v5406_v46  ;;  %v5200_v11 = vadd.f32 %v5199_v14, %v14503_v13  ;;  %v8420_v46 = vld [vmem:[%s14380_s0 + $0xb80] sm:$0xf]  ;;  %v9800_v1 = vld [vmem:[%s14380_s0 + $0xbb0] sm:$0xf0]  ;;  %v8417_v13 = vor.u32 %v9793_v32, %v8414_v4  ;;  %v14509_v4 = vld [vmem:[#allocation5_spill] sm:$0xff] }
 0x4f0   :  { %v5826_v33 = vpop.f32.mrf.mxu0 }
 0x4f1   :  { %5238 = vmatmul.bf16.gmra.mxu1 %v8357_v36  ;;  %5447 = vmatmul.bf16.gmra.mxu2 %v8361_v54  ;;  %v12865_v44 = vadd.f32 %v5823_v53, %v5615_v31 }
 0x4f2   :  { %5656 = vmatmul.bf16.gmra.mxu3 %v8365_v51  ;;  %v8409_v51 = vor.u32 %v9792_v35, %v8406_v5 }
 0x4f3   :  { %14504 = vst [vmem:[#allocation41_spill] sm:$0xff] %v12865_v44  ;;  %5865 = vmatmul.bf16.gmra.mxu0 %v8369_v62 }
 0x4f4   :  { %v5408_v12 = vpop.f32.mrf.mxu2 }
 0x4f5   :  { %v5409_v61 = vadd.f32 %v5408_v12, %v5200_v11  ;;  %v5617_v19 = vpop.f32.mrf.mxu3  ;;  %v8421_v11 = vor.u32 %v9800_v1, %v8420_v46  ;;  %v14507_v12 = vld [vmem:[#allocation3_spill] sm:$0xff] }
 0x4f6   :  { %v5201_v24 = vpop.f32.mrf.mxu1  ;;  %v10019_v1 = vld [vmem:[%s14378_s1 + $0x248] sm:$0xff] }
 0x4f7   :  { %v5618_v47 = vadd.f32 %v5617_v19, %v5409_v61  ;;  %v5202_v30 = vadd.f32 %v5201_v24, %v14505_v6  ;;  %v9799_v19 = vld [vmem:[%s14380_s0 + $0xba8] sm:$0xf0]  ;;  %5937 = vmatpush.bf16.msrb.mxu1 %v10019_v1 }
 0x4f8   :  { %v5828_v26 = vpop.f32.mrf.mxu0  ;;  %v8413_v62 = vor.u32 %v9799_v19, %v8412_v42  ;;  %v10027_v6 = vld [vmem:[%s14378_s1 + $0x288] sm:$0xff] }
 0x4f9   :  { %v12874_v53 = vadd.f32 %v5826_v33, %v5618_v47  ;;  %6146 = vmatpush.bf16.msrb.mxu2 %v10027_v6 }
 0x4fb   :  { %14506 = vst [vmem:[#allocation42_spill] sm:$0xff] %v12874_v53 }
 0x4fc   :  { %v5410_v36 = vpop.f32.mrf.mxu2 }
 0x4fd   :  { %v5411_v54 = vadd.f32 %v5410_v36, %v5202_v30  ;;  %v5619_v14 = vpop.f32.mrf.mxu3  ;;  %v10035_v30 = vld [vmem:[%s14378_s1 + $0x2c8] sm:$0xff] }
 0x4fe   :  { %v5204_v31 = vpop.f32.mrf.mxu1  ;;  %6355 = vmatpush.bf16.msrb.mxu3 %v10035_v30  ;;  %v10043_v36 = vld [vmem:[%s14378_s1 + $0x308] sm:$0xff] }
 0x4ff   :  { %v5620_v33 = vadd.f32 %v5619_v14, %v5411_v54  ;;  %v5205_v61 = vadd.f32 %v5204_v31, %v14507_v12  ;;  %v9805_v54 = vld [vmem:[%s14380_s0 + $0xbdc] sm:$0xf]  ;;  %v8458_v14 = vld [vmem:[%s14380_s0 + $0xc0c] sm:$0xf0]  ;;  %6564 = vmatpush.bf16.msrb.mxu0 %v10043_v36  ;;  %v9812_v31 = vld [vmem:[%s14380_s0 + $0xc10] sm:$0xf0] }
 0x500   :  { %v5831_v24 = vpop.f32.mrf.mxu0  ;;  %v9813_v12 = vld [vmem:[%s14380_s0 + $0xc18] sm:$0xf0]  ;;  %v8461_v30 = vor.u32 %v9805_v54, %v8458_v14 }
 0x501   :  { %5243 = vmatmul.bf16.gmra.mxu1 %v8409_v51  ;;  %5452 = vmatmul.bf16.gmra.mxu2 %v8413_v62  ;;  %v12895_v47 = vadd.f32 %v5828_v26, %v5620_v33  ;;  %v8464_v62 = vld [vmem:[%s14380_s0 + $0xbe0] sm:$0xf]  ;;  %v8472_v33 = vld [vmem:[%s14380_s0 + $0xbe8] sm:$0xf]  ;;  %v14513_v54 = vld [vmem:[#allocation9_spill] sm:$0xff] }
 0x502   :  { %5661 = vmatmul.bf16.gmra.mxu3 %v8417_v13  ;;  %v9806_v13 = vld [vmem:[%s14380_s0 + $0xbe4] sm:$0xf] }
 0x503   :  { %14508 = vst [vmem:[#allocation43_spill] sm:$0xff] %v12895_v47  ;;  %5870 = vmatmul.bf16.gmra.mxu0 %v8421_v11  ;;  %v8466_v11 = vld [vmem:[%s14380_s0 + $0xc14] sm:$0xf0] }
 0x504   :  { %v5413_v35 = vpop.f32.mrf.mxu2 }
 0x505   :  { %v5414_v5 = vadd.f32 %v5413_v35, %v5205_v61  ;;  %v5622_v42 = vpop.f32.mrf.mxu3  ;;  %v8465_v35 = vor.u32 %v9812_v31, %v8464_v62  ;;  %v9818_v31 = vld [vmem:[%s14380_s0 + $0xc44] sm:$0xf] }
 0x506   :  { %v5206_v19 = vpop.f32.mrf.mxu1 }
 0x507   :  { %v5623_v32 = vadd.f32 %v5622_v42, %v5414_v5  ;;  %v5207_v26 = vadd.f32 %v5206_v19, %v14509_v4  ;;  %v8469_v42 = vor.u32 %v9806_v13, %v8466_v11  ;;  %v8473_v19 = vor.u32 %v9813_v12, %v8472_v33  ;;  %v14511_v4 = vld [vmem:[#allocation7_spill] sm:$0xff]  ;;  %v8510_v13 = vld [vmem:[%s14380_s0 + $0xc74] sm:$0xf0]  ;;  %v8518_v11 = vld [vmem:[%s14380_s0 + $0xc7c] sm:$0xf0] }
 0x508   :  { %v5833_v46 = vpop.f32.mrf.mxu0  ;;  %v8524_v33 = vld [vmem:[%s14380_s0 + $0xc50] sm:$0xf]  ;;  %v9826_v12 = vld [vmem:[%s14380_s0 + $0xc80] sm:$0xf0] }
 0x509   :  { %v12916_v51 = vadd.f32 %v5831_v24, %v5623_v32 }
 0x50b   :  { %14510 = vst [vmem:[#allocation3_spill] sm:$0xff] %v12916_v51 }
 0x50c   :  { %v5415_v61 = vpop.f32.mrf.mxu2 }
 0x50d   :  { %v5416_v24 = vadd.f32 %v5415_v61, %v5207_v26  ;;  %v5624_v6 = vpop.f32.mrf.mxu3 }
 0x50e   :  { %v5209_v5 = vpop.f32.mrf.mxu1 }
 0x50f   :  { %v5625_v32 = vadd.f32 %v5624_v6, %v5416_v24  ;;  %v5210_v1 = vadd.f32 %v5209_v5, %v14511_v4 }
 0x510   :  { %v5836_v36 = vpop.f32.mrf.mxu0 }
 0x511   :  { %5248 = vmatmul.bf16.gmra.mxu1 %v8461_v30  ;;  %5457 = vmatmul.bf16.gmra.mxu2 %v8465_v35  ;;  %v12937_v51 = vadd.f32 %v5833_v46, %v5625_v32  ;;  %v8513_v35 = vor.u32 %v9818_v31, %v8510_v13  ;;  %v8525_v32 = vor.u32 %v9826_v12, %v8524_v33  ;;  %v14517_v31 = vld [vmem:[#allocation13_spill] sm:$0xff]  ;;  %v8570_v33 = vld [vmem:[%s14380_s0 + $0xce4] sm:$0xf0] }
 0x512   :  { %5666 = vmatmul.bf16.gmra.mxu3 %v8469_v42  ;;  %v8576_v12 = vld [vmem:[%s14380_s0 + $0xcb8] sm:$0xf] }
 0x513   :  { %14512 = vst [vmem:[#allocation5_spill] sm:$0xff] %v12937_v51  ;;  %5875 = vmatmul.bf16.gmra.mxu0 %v8473_v19 }
 0x514   :  { %v5418_v47 = vpop.f32.mrf.mxu2 }
 0x515   :  { %v5419_v53 = vadd.f32 %v5418_v47, %v5210_v1  ;;  %v5627_v44 = vpop.f32.mrf.mxu3  ;;  %v8516_v47 = vld [vmem:[%s14380_s0 + $0xc48] sm:$0xf] }
 0x516   :  { %v5211_v26 = vpop.f32.mrf.mxu1  ;;  %v14515_v1 = vld [vmem:[#allocation11_spill] sm:$0xff] }
 0x517   :  { %v5628_v61 = vadd.f32 %v5627_v44, %v5419_v53  ;;  %v5212_v14 = vadd.f32 %v5211_v26, %v14513_v54  ;;  %v9825_v44 = vld [vmem:[%s14380_s0 + $0xc78] sm:$0xf0]  ;;  %v9819_v53 = vld [vmem:[%s14380_s0 + $0xc4c] sm:$0xf] }
 0x518   :  { %v5838_v62 = vpop.f32.mrf.mxu0  ;;  %v8517_v5 = vor.u32 %v9825_v44, %v8516_v47  ;;  %v8521_v19 = vor.u32 %v9819_v53, %v8518_v11  ;;  %v9831_v44 = vld [vmem:[%s14380_s0 + $0xcac] sm:$0xf]  ;;  %v8562_v53 = vld [vmem:[%s14380_s0 + $0xcdc] sm:$0xf0]  ;;  %v8568_v11 = vld [vmem:[%s14380_s0 + $0xcb0] sm:$0xf] }
 0x519   :  { %v12946_v46 = vadd.f32 %v5836_v36, %v5628_v61 }
 0x51b   :  { %14514 = vst [vmem:[#allocation7_spill] sm:$0xff] %v12946_v46 }
 0x51c   :  { %v5420_v24 = vpop.f32.mrf.mxu2 }
 0x51d   :  { %v5421_v6 = vadd.f32 %v5420_v24, %v5212_v14  ;;  %v5629_v30 = vpop.f32.mrf.mxu3 }
 0x51e   :  { %v5214_v42 = vpop.f32.mrf.mxu1 }
 0x51f   :  { %v5630_v4 = vadd.f32 %v5629_v30, %v5421_v6  ;;  %v5215_v36 = vadd.f32 %v5214_v42, %v14515_v1  ;;  %v9839_v6 = vld [vmem:[%s14380_s0 + $0xce8] sm:$0xf0]  ;;  %v8565_v42 = vor.u32 %v9831_v44, %v8562_v53  ;;  %v14521_v44 = vld [vmem:[#allocation17_spill] sm:$0xff] }
 0x520   :  { %v5841_v26 = vpop.f32.mrf.mxu0  ;;  %v8577_v1 = vor.u32 %v9839_v6, %v8576_v12  ;;  %v8622_v12 = vld [vmem:[%s14380_s0 + $0xd4c] sm:$0xf0]  ;;  %v8628_v6 = vld [vmem:[%s14380_s0 + $0xd20] sm:$0xf] }
 0x521   :  { %5253 = vmatmul.bf16.gmra.mxu1 %v8513_v35  ;;  %5462 = vmatmul.bf16.gmra.mxu2 %v8517_v5  ;;  %v12967_v61 = vadd.f32 %v5838_v62, %v5630_v4 }
 0x522   :  { %5671 = vmatmul.bf16.gmra.mxu3 %v8521_v19 }
 0x523   :  { %14516 = vst [vmem:[#allocation9_spill] sm:$0xff] %v12967_v61  ;;  %5880 = vmatmul.bf16.gmra.mxu0 %v8525_v32 }
 0x524   :  { %v5423_v54 = vpop.f32.mrf.mxu2 }
 0x525   :  { %v5424_v46 = vadd.f32 %v5423_v54, %v5215_v36  ;;  %v5632_v51 = vpop.f32.mrf.mxu3 }
 0x526   :  { %v5216_v14 = vpop.f32.mrf.mxu1 }
 0x527   :  { %v5633_v24 = vadd.f32 %v5632_v51, %v5424_v46  ;;  %v5217_v13 = vadd.f32 %v5216_v14, %v14517_v31  ;;  %v9838_v51 = vld [vmem:[%s14380_s0 + $0xce0] sm:$0xf0]  ;;  %v9832_v46 = vld [vmem:[%s14380_s0 + $0xcb4] sm:$0xf] }
 0x528   :  { %v5843_v47 = vpop.f32.mrf.mxu0  ;;  %v8569_v19 = vor.u32 %v9838_v51, %v8568_v11  ;;  %v8573_v4 = vor.u32 %v9832_v46, %v8570_v33  ;;  %v9844_v51 = vld [vmem:[%s14380_s0 + $0xd14] sm:$0xf]  ;;  %v8614_v46 = vld [vmem:[%s14380_s0 + $0xd44] sm:$0xf0]  ;;  %v8620_v33 = vld [vmem:[%s14380_s0 + $0xd18] sm:$0xf] }
 0x529   :  { %v12976_v62 = vadd.f32 %v5841_v26, %v5633_v24  ;;  %v14519_v26 = vld [vmem:[#allocation15_spill] sm:$0xff] }
 0x52b   :  { %14518 = vst [vmem:[#allocation11_spill] sm:$0xff] %v12976_v62 }
 0x52c   :  { %v5425_v30 = vpop.f32.mrf.mxu2 }
 0x52d   :  { %v5426_v35 = vadd.f32 %v5425_v30, %v5217_v13  ;;  %v5634_v5 = vpop.f32.mrf.mxu3 }
 0x52e   :  { %v5219_v32 = vpop.f32.mrf.mxu1 }
 0x52f   :  { %v5635_v36 = vadd.f32 %v5634_v5, %v5426_v35  ;;  %v5220_v54 = vadd.f32 %v5219_v32, %v14519_v26  ;;  %v9852_v35 = vld [vmem:[%s14380_s0 + $0xd50] sm:$0xf0]  ;;  %v8617_v32 = vor.u32 %v9844_v51, %v8614_v46  ;;  %v14525_v51 = vld [vmem:[#allocation21_spill] sm:$0xff] }
 0x530   :  { %v5846_v14 = vpop.f32.mrf.mxu0  ;;  %v8629_v26 = vor.u32 %v9852_v35, %v8628_v6  ;;  %v8674_v6 = vld [vmem:[%s14380_s0 + $0xdb4] sm:$0xf0]  ;;  %v8680_v35 = vld [vmem:[%s14380_s0 + $0xd88] sm:$0xf] }
 0x531   :  { %5258 = vmatmul.bf16.gmra.mxu1 %v8565_v42  ;;  %5467 = vmatmul.bf16.gmra.mxu2 %v8569_v19  ;;  %v12997_v24 = vadd.f32 %v5843_v47, %v5635_v36 }
 0x532   :  { %5676 = vmatmul.bf16.gmra.mxu3 %v8573_v4 }
 0x533   :  { %14520 = vst [vmem:[#allocation13_spill] sm:$0xff] %v12997_v24  ;;  %5885 = vmatmul.bf16.gmra.mxu0 %v8577_v1 }
 0x534   :  { %v5428_v31 = vpop.f32.mrf.mxu2 }
 0x535   :  { %v5429_v62 = vadd.f32 %v5428_v31, %v5220_v54  ;;  %v5637_v61 = vpop.f32.mrf.mxu3 }
 0x536   :  { %v5221_v13 = vpop.f32.mrf.mxu1 }
 0x537   :  { %v5638_v30 = vadd.f32 %v5637_v61, %v5429_v62  ;;  %v5222_v53 = vadd.f32 %v5221_v13, %v14521_v44  ;;  %v9851_v61 = vld [vmem:[%s14380_s0 + $0xd48] sm:$0xf0]  ;;  %v9845_v62 = vld [vmem:[%s14380_s0 + $0xd1c] sm:$0xf] }
 0x538   :  { %v5848_v11 = vpop.f32.mrf.mxu0  ;;  %v8621_v4 = vor.u32 %v9851_v61, %v8620_v33  ;;  %v8625_v36 = vor.u32 %v9845_v62, %v8622_v12  ;;  %v9857_v61 = vld [vmem:[%s14380_s0 + $0xd7c] sm:$0xf]  ;;  %v8666_v62 = vld [vmem:[%s14380_s0 + $0xdac] sm:$0xf0]  ;;  %v8672_v12 = vld [vmem:[%s14380_s0 + $0xd80] sm:$0xf] }
 0x539   :  { %v13006_v47 = vadd.f32 %v5846_v14, %v5638_v30  ;;  %v14523_v14 = vld [vmem:[#allocation19_spill] sm:$0xff] }
 0x53b   :  { %14522 = vst [vmem:[#allocation15_spill] sm:$0xff] %v13006_v47 }
 0x53c   :  { %v5430_v5 = vpop.f32.mrf.mxu2 }
 0x53d   :  { %v5431_v42 = vadd.f32 %v5430_v5, %v5222_v53  ;;  %v5639_v19 = vpop.f32.mrf.mxu3 }
 0x53e   :  { %v5224_v1 = vpop.f32.mrf.mxu1 }
 0x53f   :  { %v5640_v54 = vadd.f32 %v5639_v19, %v5431_v42  ;;  %v5225_v31 = vadd.f32 %v5224_v1, %v14523_v14  ;;  %v9865_v42 = vld [vmem:[%s14380_s0 + $0xdb8] sm:$0xf0]  ;;  %v8669_v1 = vor.u32 %v9857_v61, %v8666_v62 }
 0x540   :  { %v5851_v13 = vpop.f32.mrf.mxu0  ;;  %v8681_v14 = vor.u32 %v9865_v42, %v8680_v35  ;;  %v10018_v42 = vld [vmem:[%s14378_s1 + $0x240] sm:$0xff] }
 0x541   :  { %5263 = vmatmul.bf16.gmra.mxu1 %v8617_v32  ;;  %5472 = vmatmul.bf16.gmra.mxu2 %v8621_v4  ;;  %v13027_v30 = vadd.f32 %v5848_v11, %v5640_v54 }
 0x542   :  { %5681 = vmatmul.bf16.gmra.mxu3 %v8625_v36  ;;  %5938 = vmatpush.bf16.msrb.mxu1 %v10018_v42 }
 0x543   :  { %14524 = vst [vmem:[#allocation17_spill] sm:$0xff] %v13027_v30  ;;  %5890 = vmatmul.bf16.gmra.mxu0 %v8629_v26 }
 0x544   :  { %v5433_v44 = vpop.f32.mrf.mxu2 }
 0x545   :  { %v5434_v47 = vadd.f32 %v5433_v44, %v5225_v31  ;;  %v5642_v24 = vpop.f32.mrf.mxu3 }
 0x546   :  { %v5226_v53 = vpop.f32.mrf.mxu1 }
 0x547   :  { %v5643_v5 = vadd.f32 %v5642_v24, %v5434_v47  ;;  %v5227_v46 = vadd.f32 %v5226_v53, %v14525_v51  ;;  %v9864_v24 = vld [vmem:[%s14380_s0 + $0xdb0] sm:$0xf0]  ;;  %v9858_v47 = vld [vmem:[%s14380_s0 + $0xd84] sm:$0xf] }
 0x548   :  { %v5853_v33 = vpop.f32.mrf.mxu0  ;;  %v8673_v36 = vor.u32 %v9864_v24, %v8672_v12  ;;  %v8677_v54 = vor.u32 %v9858_v47, %v8674_v6  ;;  %v10026_v51 = vld [vmem:[%s14378_s1 + $0x280] sm:$0xff]  ;;  %v14529_v6 = vld [vmem:[#allocation25_spill] sm:$0xff] }
 0x549   :  { %v13036_v11 = vadd.f32 %v5851_v13, %v5643_v5  ;;  %v14527_v13 = vld [vmem:[#allocation23_spill] sm:$0xff]  ;;  %6147 = vmatpush.bf16.msrb.mxu2 %v10026_v51 }
 0x54b   :  { %14526 = vst [vmem:[#allocation19_spill] sm:$0xff] %v13036_v11 }
 0x54c   :  { %v5435_v19 = vpop.f32.mrf.mxu2 }
 0x54d   :  { %v5436_v32 = vadd.f32 %v5435_v19, %v5227_v46  ;;  %v5644_v4 = vpop.f32.mrf.mxu3  ;;  %v10034_v46 = vld [vmem:[%s14378_s1 + $0x2c0] sm:$0xff] }
 0x54e   :  { %v5229_v26 = vpop.f32.mrf.mxu1  ;;  %6356 = vmatpush.bf16.msrb.mxu3 %v10034_v46  ;;  %v10042_v19 = vld [vmem:[%s14378_s1 + $0x300] sm:$0xff] }
 0x54f   :  { %v5645_v31 = vadd.f32 %v5644_v4, %v5436_v32  ;;  %v5230_v44 = vadd.f32 %v5229_v26, %v14527_v13  ;;  %v9870_v32 = vld [vmem:[%s14380_s0 + $0xde4] sm:$0xf]  ;;  %v8718_v4 = vld [vmem:[%s14380_s0 + $0xe14] sm:$0xf0]  ;;  %6565 = vmatpush.bf16.msrb.mxu0 %v10042_v19  ;;  %v9877_v26 = vld [vmem:[%s14380_s0 + $0xe18] sm:$0xf0] }
 0x550   :  { %v5856_v53 = vpop.f32.mrf.mxu0  ;;  %v9878_v13 = vld [vmem:[%s14380_s0 + $0xe20] sm:$0xf0]  ;;  %v8721_v46 = vor.u32 %v9870_v32, %v8718_v4  ;;  %v14533_v32 = vld [vmem:[#allocation29_spill] sm:$0xff] }
 0x551   :  { %5268 = vmatmul.bf16.gmra.mxu1 %v8669_v1  ;;  %5477 = vmatmul.bf16.gmra.mxu2 %v8673_v36  ;;  %v13057_v5 = vadd.f32 %v5853_v33, %v5645_v31  ;;  %v8724_v36 = vld [vmem:[%s14380_s0 + $0xde8] sm:$0xf]  ;;  %v8732_v31 = vld [vmem:[%s14380_s0 + $0xdf0] sm:$0xf] }
 0x552   :  { %5686 = vmatmul.bf16.gmra.mxu3 %v8677_v54  ;;  %v9871_v54 = vld [vmem:[%s14380_s0 + $0xdec] sm:$0xf] }
 0x553   :  { %14528 = vst [vmem:[#allocation21_spill] sm:$0xff] %v13057_v5  ;;  %5895 = vmatmul.bf16.gmra.mxu0 %v8681_v14  ;;  %v8726_v14 = vld [vmem:[%s14380_s0 + $0xe1c] sm:$0xf0] }
 0x554   :  { %v5438_v61 = vpop.f32.mrf.mxu2 }
 0x555   :  { %v5439_v62 = vadd.f32 %v5438_v61, %v5230_v44  ;;  %v5647_v12 = vpop.f32.mrf.mxu3  ;;  %v8725_v61 = vor.u32 %v9877_v26, %v8724_v36  ;;  %v9883_v26 = vld [vmem:[%s14380_s0 + $0xe4c] sm:$0xf] }
 0x556   :  { %v5231_v24 = vpop.f32.mrf.mxu1 }
 0x557   :  { %v5648_v47 = vadd.f32 %v5647_v12, %v5439_v62  ;;  %v5232_v33 = vadd.f32 %v5231_v24, %v14529_v6  ;;  %v8729_v12 = vor.u32 %v9871_v54, %v8726_v14  ;;  %v8733_v24 = vor.u32 %v9878_v13, %v8732_v31  ;;  %v14531_v6 = vld [vmem:[#allocation27_spill] sm:$0xff]  ;;  %v8770_v54 = vld [vmem:[%s14380_s0 + $0xe7c] sm:$0xf0]  ;;  %v8784_v31 = vld [vmem:[%s14380_s0 + $0xe58] sm:$0xf] }
 0x558   :  { %v5858_v35 = vpop.f32.mrf.mxu0  ;;  %v8778_v14 = vld [vmem:[%s14380_s0 + $0xe84] sm:$0xf0]  ;;  %v9891_v13 = vld [vmem:[%s14380_s0 + $0xe88] sm:$0xf0] }
 0x559   :  { %v13078_v1 = vadd.f32 %v5856_v53, %v5648_v47 }
 0x55b   :  { %14530 = vst [vmem:[#allocation23_spill] sm:$0xff] %v13078_v1 }
 0x55c   :  { %v5440_v44 = vpop.f32.mrf.mxu2 }
 0x55d   :  { %v5441_v53 = vadd.f32 %v5440_v44, %v5232_v33  ;;  %v5649_v51 = vpop.f32.mrf.mxu3 }
 0x55e   :  { %v5234_v62 = vpop.f32.mrf.mxu1 }
 0x55f   :  { %v5650_v47 = vadd.f32 %v5649_v51, %v5441_v53  ;;  %v5235_v42 = vadd.f32 %v5234_v62, %v14531_v6 }
 0x560   :  { %v5861_v19 = vpop.f32.mrf.mxu0 }
 0x561   :  { %5273 = vmatmul.bf16.gmra.mxu1 %v8721_v46  ;;  %5482 = vmatmul.bf16.gmra.mxu2 %v8725_v61  ;;  %v13099_v1 = vadd.f32 %v5858_v35, %v5650_v47  ;;  %v8773_v61 = vor.u32 %v9883_v26, %v8770_v54  ;;  %v8785_v47 = vor.u32 %v9891_v13, %v8784_v31  ;;  %v14537_v26 = vld [vmem:[#allocation33_spill] sm:$0xff]  ;;  %v8830_v31 = vld [vmem:[%s14380_s0 + $0xeec] sm:$0xf0]  ;;  %v8836_v13 = vld [vmem:[%s14380_s0 + $0xec0] sm:$0xf] }
 0x562   :  { %5691 = vmatmul.bf16.gmra.mxu3 %v8729_v12 }
 0x563   :  { %14532 = vst [vmem:[#allocation25_spill] sm:$0xff] %v13099_v1  ;;  %5900 = vmatmul.bf16.gmra.mxu0 %v8733_v24 }
 0x564   :  { %v5443_v5 = vpop.f32.mrf.mxu2 }
 0x565   :  { %v5444_v11 = vadd.f32 %v5443_v5, %v5235_v42  ;;  %v5652_v30 = vpop.f32.mrf.mxu3  ;;  %v8776_v5 = vld [vmem:[%s14380_s0 + $0xe50] sm:$0xf]  ;;  %v14535_v42 = vld [vmem:[#allocation31_spill] sm:$0xff] }
 0x566   :  { %v5236_v33 = vpop.f32.mrf.mxu1 }
 0x567   :  { %v5653_v44 = vadd.f32 %v5652_v30, %v5444_v11  ;;  %v5237_v4 = vadd.f32 %v5236_v33, %v14533_v32  ;;  %v9890_v30 = vld [vmem:[%s14380_s0 + $0xe80] sm:$0xf0]  ;;  %v9884_v11 = vld [vmem:[%s14380_s0 + $0xe54] sm:$0xf] }
 0x568   :  { %v5863_v36 = vpop.f32.mrf.mxu0  ;;  %v8777_v62 = vor.u32 %v9890_v30, %v8776_v5  ;;  %v8781_v24 = vor.u32 %v9884_v11, %v8778_v14  ;;  %v9896_v30 = vld [vmem:[%s14380_s0 + $0xeb4] sm:$0xf]  ;;  %v8822_v11 = vld [vmem:[%s14380_s0 + $0xee4] sm:$0xf0]  ;;  %v8828_v14 = vld [vmem:[%s14380_s0 + $0xeb8] sm:$0xf] }
 0x569   :  { %v13108_v35 = vadd.f32 %v5861_v19, %v5653_v44 }
 0x56b   :  { %14534 = vst [vmem:[#allocation27_spill] sm:$0xff] %v13108_v35 }
 0x56c   :  { %v5445_v53 = vpop.f32.mrf.mxu2 }
 0x56d   :  { %v5446_v51 = vadd.f32 %v5445_v53, %v5237_v4  ;;  %v5654_v46 = vpop.f32.mrf.mxu3 }
 0x56e   :  { %v5239_v12 = vpop.f32.mrf.mxu1 }
 0x56f   :  { %v5655_v6 = vadd.f32 %v5654_v46, %v5446_v51  ;;  %v5240_v19 = vadd.f32 %v5239_v12, %v14535_v42  ;;  %v9904_v51 = vld [vmem:[%s14380_s0 + $0xef0] sm:$0xf0]  ;;  %v8825_v12 = vor.u32 %v9896_v30, %v8822_v11  ;;  %v14541_v30 = vld [vmem:[#allocation37_spill] sm:$0xff] }
 0x570   :  { %v5866_v33 = vpop.f32.mrf.mxu0  ;;  %v8837_v42 = vor.u32 %v9904_v51, %v8836_v13  ;;  %v8882_v13 = vld [vmem:[%s14380_s0 + $0xf54] sm:$0xf0]  ;;  %v8888_v51 = vld [vmem:[%s14380_s0 + $0xf28] sm:$0xf] }
 0x571   :  { %5278 = vmatmul.bf16.gmra.mxu1 %v8773_v61  ;;  %5487 = vmatmul.bf16.gmra.mxu2 %v8777_v62  ;;  %v13129_v44 = vadd.f32 %v5863_v36, %v5655_v6 }
 0x572   :  { %5696 = vmatmul.bf16.gmra.mxu3 %v8781_v24 }
 0x573   :  { %14536 = vst [vmem:[#allocation29_spill] sm:$0xff] %v13129_v44  ;;  %5905 = vmatmul.bf16.gmra.mxu0 %v8785_v47 }
 0x574   :  { %v5448_v32 = vpop.f32.mrf.mxu2 }
 0x575   :  { %v5449_v35 = vadd.f32 %v5448_v32, %v5240_v19  ;;  %v5657_v1 = vpop.f32.mrf.mxu3 }
 0x576   :  { %v5241_v4 = vpop.f32.mrf.mxu1 }
 0x577   :  { %v5658_v53 = vadd.f32 %v5657_v1, %v5449_v35  ;;  %v5242_v54 = vadd.f32 %v5241_v4, %v14537_v26  ;;  %v9903_v1 = vld [vmem:[%s14380_s0 + $0xee8] sm:$0xf0]  ;;  %v9897_v35 = vld [vmem:[%s14380_s0 + $0xebc] sm:$0xf] }
 0x578   :  { %v5868_v5 = vpop.f32.mrf.mxu0  ;;  %v8829_v24 = vor.u32 %v9903_v1, %v8828_v14  ;;  %v8833_v6 = vor.u32 %v9897_v35, %v8830_v31  ;;  %v9909_v1 = vld [vmem:[%s14380_s0 + $0xf1c] sm:$0xf]  ;;  %v8874_v35 = vld [vmem:[%s14380_s0 + $0xf4c] sm:$0xf0]  ;;  %v8880_v31 = vld [vmem:[%s14380_s0 + $0xf20] sm:$0xf] }
 0x579   :  { %v13138_v36 = vadd.f32 %v5866_v33, %v5658_v53  ;;  %v14539_v33 = vld [vmem:[#allocation35_spill] sm:$0xff] }
 0x57b   :  { %14538 = vst [vmem:[#allocation31_spill] sm:$0xff] %v13138_v36 }
 0x57c   :  { %v5450_v46 = vpop.f32.mrf.mxu2 }
 0x57d   :  { %v5451_v61 = vadd.f32 %v5450_v46, %v5242_v54  ;;  %v5659_v62 = vpop.f32.mrf.mxu3 }
 0x57e   :  { %v5244_v47 = vpop.f32.mrf.mxu1 }
 0x57f   :  { %v5660_v19 = vadd.f32 %v5659_v62, %v5451_v61  ;;  %v5245_v32 = vadd.f32 %v5244_v47, %v14539_v33  ;;  %v9917_v61 = vld [vmem:[%s14380_s0 + $0xf58] sm:$0xf0]  ;;  %v8877_v47 = vor.u32 %v9909_v1, %v8874_v35  ;;  %v14545_v1 = vld [vmem:[#allocation2_spill] sm:$0xff] }
 0x580   :  { %v5871_v4 = vpop.f32.mrf.mxu0  ;;  %v8889_v33 = vor.u32 %v9917_v61, %v8888_v51  ;;  %v8934_v51 = vld [vmem:[%s14380_s0 + $0xfbc] sm:$0xf0]  ;;  %v8940_v61 = vld [vmem:[%s14380_s0 + $0xf90] sm:$0xf] }
 0x581   :  { %5283 = vmatmul.bf16.gmra.mxu1 %v8825_v12  ;;  %5492 = vmatmul.bf16.gmra.mxu2 %v8829_v24  ;;  %v13159_v53 = vadd.f32 %v5868_v5, %v5660_v19 }
 0x582   :  { %5701 = vmatmul.bf16.gmra.mxu3 %v8833_v6 }
 0x583   :  { %14540 = vst [vmem:[#allocation33_spill] sm:$0xff] %v13159_v53  ;;  %5910 = vmatmul.bf16.gmra.mxu0 %v8837_v42 }
 0x584   :  { %v5453_v26 = vpop.f32.mrf.mxu2 }
 0x585   :  { %v5454_v36 = vadd.f32 %v5453_v26, %v5245_v32  ;;  %v5662_v44 = vpop.f32.mrf.mxu3 }
 0x586   :  { %v5246_v54 = vpop.f32.mrf.mxu1 }
 0x587   :  { %v5663_v46 = vadd.f32 %v5662_v44, %v5454_v36  ;;  %v5247_v11 = vadd.f32 %v5246_v54, %v14541_v30  ;;  %v9916_v44 = vld [vmem:[%s14380_s0 + $0xf50] sm:$0xf0]  ;;  %v9910_v36 = vld [vmem:[%s14380_s0 + $0xf24] sm:$0xf] }
 0x588   :  { %v5873_v14 = vpop.f32.mrf.mxu0  ;;  %v8881_v6 = vor.u32 %v9916_v44, %v8880_v31  ;;  %v8885_v19 = vor.u32 %v9910_v36, %v8882_v13  ;;  %v9922_v44 = vld [vmem:[%s14380_s0 + $0xf84] sm:$0xf]  ;;  %v8926_v36 = vld [vmem:[%s14380_s0 + $0xfb4] sm:$0xf0]  ;;  %v8932_v13 = vld [vmem:[%s14380_s0 + $0xf88] sm:$0xf] }
 0x589   :  { %v13168_v5 = vadd.f32 %v5871_v4, %v5663_v46  ;;  %v14543_v4 = vld [vmem:[#allocation39_spill] sm:$0xff] }
 0x58b   :  { %14542 = vst [vmem:[#allocation35_spill] sm:$0xff] %v13168_v5 }
 0x58c   :  { %v5455_v62 = vpop.f32.mrf.mxu2 }
 0x58d   :  { %v5456_v12 = vadd.f32 %v5455_v62, %v5247_v11  ;;  %v5664_v24 = vpop.f32.mrf.mxu3 }
 0x58e   :  { %v5249_v42 = vpop.f32.mrf.mxu1 }
 0x58f   :  { %v5665_v32 = vadd.f32 %v5664_v24, %v5456_v12  ;;  %v5250_v26 = vadd.f32 %v5249_v42, %v14543_v4  ;;  %v9930_v12 = vld [vmem:[%s14380_s0 + $0xfc0] sm:$0xf0]  ;;  %v8929_v42 = vor.u32 %v9922_v44, %v8926_v36 }
 0x590   :  { %v5876_v54 = vpop.f32.mrf.mxu0  ;;  %v8941_v4 = vor.u32 %v9930_v12, %v8940_v61  ;;  %v14549_v44 = vld [vmem:[#allocation6_spill] sm:$0xff]  ;;  %v8986_v61 = vld [vmem:[%s14380_s0 + $0x1024] sm:$0xf0]  ;;  %v8992_v12 = vld [vmem:[%s14380_s0 + $0xff8] sm:$0xf] }
 0x591   :  { %5288 = vmatmul.bf16.gmra.mxu1 %v8877_v47  ;;  %5497 = vmatmul.bf16.gmra.mxu2 %v8881_v6  ;;  %v13189_v46 = vadd.f32 %v5873_v14, %v5665_v32 }
 0x592   :  { %5706 = vmatmul.bf16.gmra.mxu3 %v8885_v19 }
 0x593   :  { %14544 = vst [vmem:[#allocation37_spill] sm:$0xff] %v13189_v46  ;;  %5915 = vmatmul.bf16.gmra.mxu0 %v8889_v33 }
 0x594   :  { %v5458_v30 = vpop.f32.mrf.mxu2 }
 0x595   :  { %v5459_v5 = vadd.f32 %v5458_v30, %v5250_v26  ;;  %v5667_v53 = vpop.f32.mrf.mxu3 }
 0x596   :  { %v5251_v11 = vpop.f32.mrf.mxu1 }
 0x597   :  { %v5668_v62 = vadd.f32 %v5667_v53, %v5459_v5  ;;  %v5252_v35 = vadd.f32 %v5251_v11, %v14545_v1  ;;  %v9929_v53 = vld [vmem:[%s14380_s0 + $0xfb8] sm:$0xf0]  ;;  %v9923_v5 = vld [vmem:[%s14380_s0 + $0xf8c] sm:$0xf] }
 0x598   :  { %v5878_v31 = vpop.f32.mrf.mxu0  ;;  %v8933_v19 = vor.u32 %v9929_v53, %v8932_v13  ;;  %v8937_v32 = vor.u32 %v9923_v5, %v8934_v51  ;;  %v9935_v53 = vld [vmem:[%s14380_s0 + $0xfec] sm:$0xf]  ;;  %v8978_v5 = vld [vmem:[%s14380_s0 + $0x101c] sm:$0xf0]  ;;  %v8984_v51 = vld [vmem:[%s14380_s0 + $0xff0] sm:$0xf] }
 0x599   :  { %v13198_v14 = vadd.f32 %v5876_v54, %v5668_v62  ;;  %v14547_v54 = vld [vmem:[#allocation4_spill] sm:$0xff] }
 0x59b   :  { %14546 = vst [vmem:[#allocation39_spill] sm:$0xff] %v13198_v14 }
 0x59c   :  { %v5460_v24 = vpop.f32.mrf.mxu2 }
 0x59d   :  { %v5461_v47 = vadd.f32 %v5460_v24, %v5252_v35  ;;  %v5669_v6 = vpop.f32.mrf.mxu3 }
 0x59e   :  { %v5254_v33 = vpop.f32.mrf.mxu1 }
 0x59f   :  { %v5670_v26 = vadd.f32 %v5669_v6, %v5461_v47  ;;  %v5255_v30 = vadd.f32 %v5254_v33, %v14547_v54  ;;  %v9943_v47 = vld [vmem:[%s14380_s0 + $0x1028] sm:$0xf0]  ;;  %v8981_v33 = vor.u32 %v9935_v53, %v8978_v5  ;;  %v14553_v53 = vld [vmem:[#allocation10_spill] sm:$0xff] }
 0x5a0   :  { %v5881_v11 = vpop.f32.mrf.mxu0  ;;  %v8993_v54 = vor.u32 %v9943_v47, %v8992_v12  ;;  %v6974_v12 = vld [vmem:[%s14380_s0 + $0x5c] sm:$0xf0]  ;;  %v6980_v47 = vld [vmem:[%s14380_s0 + $0x30] sm:$0xf] }
 0x5a1   :  { %5293 = vmatmul.bf16.gmra.mxu1 %v8929_v42  ;;  %5502 = vmatmul.bf16.gmra.mxu2 %v8933_v19  ;;  %v13219_v62 = vadd.f32 %v5878_v31, %v5670_v26 }
 0x5a2   :  { %5711 = vmatmul.bf16.gmra.mxu3 %v8937_v32 }
 0x5a3   :  { %14548 = vst [vmem:[#allocation2_spill] sm:$0xff] %v13219_v62  ;;  %5920 = vmatmul.bf16.gmra.mxu0 %v8941_v4 }
 0x5a4   :  { %v5463_v1 = vpop.f32.mrf.mxu2 }
 0x5a5   :  { %v5464_v14 = vadd.f32 %v5463_v1, %v5255_v30  ;;  %v5672_v46 = vpop.f32.mrf.mxu3 }
 0x5a6   :  { %v5256_v35 = vpop.f32.mrf.mxu1 }
 0x5a7   :  { %v5673_v24 = vadd.f32 %v5672_v46, %v5464_v14  ;;  %v5257_v36 = vadd.f32 %v5256_v35, %v14549_v44  ;;  %v9942_v46 = vld [vmem:[%s14380_s0 + $0x1020] sm:$0xf0]  ;;  %v9936_v14 = vld [vmem:[%s14380_s0 + $0xff4] sm:$0xf] }
 0x5a8   :  { %v5883_v13 = vpop.f32.mrf.mxu0  ;;  %v8985_v32 = vor.u32 %v9942_v46, %v8984_v51  ;;  %v8989_v26 = vor.u32 %v9936_v14, %v8986_v61  ;;  %v9430_v46 = vld [vmem:[%s14380_s0 + $0x24] sm:$0xf]  ;;  %v6966_v14 = vld [vmem:[%s14380_s0 + $0x54] sm:$0xf0]  ;;  %v6972_v61 = vld [vmem:[%s14380_s0 + $0x28] sm:$0xf] }
 0x5a9   :  { %v13228_v31 = vadd.f32 %v5881_v11, %v5673_v24  ;;  %v14551_v11 = vld [vmem:[#allocation8_spill] sm:$0xff] }
 0x5ab   :  { %14550 = vst [vmem:[#allocation4_spill] sm:$0xff] %v13228_v31 }
 0x5ac   :  { %v5465_v6 = vpop.f32.mrf.mxu2 }
 0x5ad   :  { %v5466_v42 = vadd.f32 %v5465_v6, %v5257_v36  ;;  %v5674_v19 = vpop.f32.mrf.mxu3 }
 0x5ae   :  { %v5259_v4 = vpop.f32.mrf.mxu1 }
 0x5af   :  { %v5675_v30 = vadd.f32 %v5674_v19, %v5466_v42  ;;  %v5260_v1 = vadd.f32 %v5259_v4, %v14551_v11  ;;  %v9438_v42 = vld [vmem:[%s14380_s0 + $0x60] sm:$0xf0]  ;;  %v6969_v4 = vor.u32 %v9430_v46, %v6966_v14 }
 0x5b0   :  { %v5886_v35 = vpop.f32.mrf.mxu0  ;;  %v6981_v11 = vor.u32 %v9438_v42, %v6980_v47  ;;  %v14557_v46 = vld [vmem:[#allocation14_spill] sm:$0xff]  ;;  %v7026_v47 = vld [vmem:[%s14380_s0 + $0xc4] sm:$0xf0]  ;;  %v7032_v42 = vld [vmem:[%s14380_s0 + $0x98] sm:$0xf] }
 0x5b1   :  { %5298 = vmatmul.bf16.gmra.mxu1 %v8981_v33  ;;  %5507 = vmatmul.bf16.gmra.mxu2 %v8985_v32  ;;  %v13249_v24 = vadd.f32 %v5883_v13, %v5675_v30 }
 0x5b2   :  { %5716 = vmatmul.bf16.gmra.mxu3 %v8989_v26 }
 0x5b3   :  { %14552 = vst [vmem:[#allocation6_spill] sm:$0xff] %v13249_v24  ;;  %5925 = vmatmul.bf16.gmra.mxu0 %v8993_v54 }
 0x5b4   :  { %v5468_v44 = vpop.f32.mrf.mxu2 }
 0x5b5   :  { %v5469_v31 = vadd.f32 %v5468_v44, %v5260_v1  ;;  %v5677_v62 = vpop.f32.mrf.mxu3 }
 0x5b6   :  { %v5261_v36 = vpop.f32.mrf.mxu1 }
 0x5b7   :  { %v5678_v6 = vadd.f32 %v5677_v62, %v5469_v31  ;;  %v5262_v5 = vadd.f32 %v5261_v36, %v14553_v53  ;;  %v9437_v62 = vld [vmem:[%s14380_s0 + $0x58] sm:$0xf0]  ;;  %v9431_v31 = vld [vmem:[%s14380_s0 + $0x2c] sm:$0xf] }
 0x5b8   :  { %v5888_v51 = vpop.f32.mrf.mxu0  ;;  %v6973_v26 = vor.u32 %v9437_v62, %v6972_v61  ;;  %v6977_v30 = vor.u32 %v9431_v31, %v6974_v12  ;;  %v9443_v62 = vld [vmem:[%s14380_s0 + $0x8c] sm:$0xf]  ;;  %v7018_v31 = vld [vmem:[%s14380_s0 + $0xbc] sm:$0xf0]  ;;  %v7024_v12 = vld [vmem:[%s14380_s0 + $0x90] sm:$0xf] }
 0x5b9   :  { %v13258_v13 = vadd.f32 %v5886_v35, %v5678_v6  ;;  %v14555_v35 = vld [vmem:[#allocation12_spill] sm:$0xff] }
 0x5bb   :  { %14554 = vst [vmem:[#allocation8_spill] sm:$0xff] %v13258_v13 }
 0x5bc   :  { %v5470_v19 = vpop.f32.mrf.mxu2 }
 0x5bd   :  { %v5471_v33 = vadd.f32 %v5470_v19, %v5262_v5  ;;  %v5679_v32 = vpop.f32.mrf.mxu3 }
 0x5be   :  { %v5264_v54 = vpop.f32.mrf.mxu1 }
 0x5bf   :  { %v5680_v1 = vadd.f32 %v5679_v32, %v5471_v33  ;;  %v5265_v44 = vadd.f32 %v5264_v54, %v14555_v35  ;;  %v9451_v33 = vld [vmem:[%s14380_s0 + $0xc8] sm:$0xf0]  ;;  %v7021_v54 = vor.u32 %v9443_v62, %v7018_v31  ;;  %v14561_v62 = vld [vmem:[#allocation18_spill] sm:$0xff] }
 0x5c0   :  { %v5891_v36 = vpop.f32.mrf.mxu0  ;;  %v7033_v35 = vor.u32 %v9451_v33, %v7032_v42  ;;  %v7078_v42 = vld [vmem:[%s14380_s0 + $0x12c] sm:$0xf0]  ;;  %v7084_v33 = vld [vmem:[%s14380_s0 + $0x100] sm:$0xf] }
 0x5c1   :  { %5939 = vmatmul.bf16.vlgmr.msrb.gmra.mxu1 %v6969_v4  ;;  %6148 = vmatmul.bf16.vlgmr.msrb.gmra.mxu2 %v6973_v26  ;;  %v13279_v6 = vadd.f32 %v5888_v51, %v5680_v1 }
 0x5c2   :  { %6357 = vmatmul.bf16.vlgmr.msrb.gmra.mxu3 %v6977_v30 }
 0x5c3   :  { %14556 = vst [vmem:[#allocation10_spill] sm:$0xff] %v13279_v6  ;;  %6566 = vmatmul.bf16.vlgmr.msrb.gmra.mxu0 %v6981_v11 }
 0x5c4   :  { %v5473_v53 = vpop.f32.mrf.mxu2 }
 0x5c5   :  { %v5474_v13 = vadd.f32 %v5473_v53, %v5265_v44  ;;  %v5682_v24 = vpop.f32.mrf.mxu3 }
 0x5c6   :  { %v5266_v5 = vpop.f32.mrf.mxu1 }
 0x5c7   :  { %v5683_v19 = vadd.f32 %v5682_v24, %v5474_v13  ;;  %v5267_v14 = vadd.f32 %v5266_v5, %v14557_v46  ;;  %v9450_v24 = vld [vmem:[%s14380_s0 + $0xc0] sm:$0xf0]  ;;  %v9444_v13 = vld [vmem:[%s14380_s0 + $0x94] sm:$0xf] }
 0x5c8   :  { %v5893_v61 = vpop.f32.mrf.mxu0  ;;  %v7025_v30 = vor.u32 %v9450_v24, %v7024_v12  ;;  %v7029_v1 = vor.u32 %v9444_v13, %v7026_v47  ;;  %v9456_v24 = vld [vmem:[%s14380_s0 + $0xf4] sm:$0xf]  ;;  %v7070_v13 = vld [vmem:[%s14380_s0 + $0x124] sm:$0xf0]  ;;  %v7076_v47 = vld [vmem:[%s14380_s0 + $0xf8] sm:$0xf] }
 0x5c9   :  { %v13288_v51 = vadd.f32 %v5891_v36, %v5683_v19  ;;  %v14559_v36 = vld [vmem:[#allocation16_spill] sm:$0xff] }
 0x5cb   :  { %14558 = vst [vmem:[#allocation12_spill] sm:$0xff] %v13288_v51 }
 0x5cc   :  { %v5475_v32 = vpop.f32.mrf.mxu2 }
 0x5cd   :  { %v5476_v4 = vadd.f32 %v5475_v32, %v5267_v14  ;;  %v5684_v26 = vpop.f32.mrf.mxu3 }
 0x5ce   :  { %v5269_v11 = vpop.f32.mrf.mxu1 }
 0x5cf   :  { %v5685_v44 = vadd.f32 %v5684_v26, %v5476_v4  ;;  %v5270_v53 = vadd.f32 %v5269_v11, %v14559_v36  ;;  %v9464_v4 = vld [vmem:[%s14380_s0 + $0x130] sm:$0xf0]  ;;  %v7073_v11 = vor.u32 %v9456_v24, %v7070_v13  ;;  %v14565_v24 = vld [vmem:[#allocation22_spill] sm:$0xff] }
 0x5d0   :  { %v5896_v5 = vpop.f32.mrf.mxu0  ;;  %v7085_v36 = vor.u32 %v9464_v4, %v7084_v33  ;;  %v7130_v33 = vld [vmem:[%s14380_s0 + $0x194] sm:$0xf0]  ;;  %v7136_v4 = vld [vmem:[%s14380_s0 + $0x168] sm:$0xf] }
 0x5d1   :  { %5944 = vmatmul.bf16.gmra.mxu1 %v7021_v54  ;;  %6153 = vmatmul.bf16.gmra.mxu2 %v7025_v30  ;;  %v13309_v19 = vadd.f32 %v5893_v61, %v5685_v44 }
 0x5d2   :  { %6362 = vmatmul.bf16.gmra.mxu3 %v7029_v1 }
 0x5d3   :  { %14560 = vst [vmem:[#allocation14_spill] sm:$0xff] %v13309_v19  ;;  %6571 = vmatmul.bf16.gmra.mxu0 %v7033_v35 }
 0x5d4   :  { %v5478_v46 = vpop.f32.mrf.mxu2 }
 0x5d5   :  { %v5479_v51 = vadd.f32 %v5478_v46, %v5270_v53  ;;  %v5687_v6 = vpop.f32.mrf.mxu3 }
 0x5d6   :  { %v5271_v14 = vpop.f32.mrf.mxu1 }
 0x5d7   :  { %v5688_v32 = vadd.f32 %v5687_v6, %v5479_v51  ;;  %v5272_v31 = vadd.f32 %v5271_v14, %v14561_v62  ;;  %v9463_v6 = vld [vmem:[%s14380_s0 + $0x128] sm:$0xf0]  ;;  %v9457_v51 = vld [vmem:[%s14380_s0 + $0xfc] sm:$0xf] }
 0x5d8   :  { %v5898_v12 = vpop.f32.mrf.mxu0  ;;  %v7077_v1 = vor.u32 %v9463_v6, %v7076_v47  ;;  %v7081_v44 = vor.u32 %v9457_v51, %v7078_v42  ;;  %v9469_v6 = vld [vmem:[%s14380_s0 + $0x15c] sm:$0xf]  ;;  %v7122_v51 = vld [vmem:[%s14380_s0 + $0x18c] sm:$0xf0]  ;;  %v7128_v42 = vld [vmem:[%s14380_s0 + $0x160] sm:$0xf] }
 0x5d9   :  { %v13318_v61 = vadd.f32 %v5896_v5, %v5688_v32  ;;  %v14563_v5 = vld [vmem:[#allocation20_spill] sm:$0xff] }
 0x5db   :  { %14562 = vst [vmem:[#allocation16_spill] sm:$0xff] %v13318_v61 }
 0x5dc   :  { %v5480_v26 = vpop.f32.mrf.mxu2 }
 0x5dd   :  { %v5481_v54 = vadd.f32 %v5480_v26, %v5272_v31  ;;  %v5689_v30 = vpop.f32.mrf.mxu3 }
 0x5de   :  { %v5274_v35 = vpop.f32.mrf.mxu1 }
 0x5df   :  { %v5690_v53 = vadd.f32 %v5689_v30, %v5481_v54  ;;  %v5275_v46 = vadd.f32 %v5274_v35, %v14563_v5  ;;  %v9477_v54 = vld [vmem:[%s14380_s0 + $0x198] sm:$0xf0]  ;;  %v7125_v35 = vor.u32 %v9469_v6, %v7122_v51  ;;  %v14569_v6 = vld [vmem:[#allocation26_spill] sm:$0xff] }
 0x5e0   :  { %v5901_v14 = vpop.f32.mrf.mxu0  ;;  %v7137_v5 = vor.u32 %v9477_v54, %v7136_v4  ;;  %v7182_v4 = vld [vmem:[%s14380_s0 + $0x1fc] sm:$0xf0]  ;;  %v7188_v54 = vld [vmem:[%s14380_s0 + $0x1d0] sm:$0xf] }
 0x5e1   :  { %5949 = vmatmul.bf16.gmra.mxu1 %v7073_v11  ;;  %6158 = vmatmul.bf16.gmra.mxu2 %v7077_v1  ;;  %v13339_v32 = vadd.f32 %v5898_v12, %v5690_v53 }
 0x5e2   :  { %6367 = vmatmul.bf16.gmra.mxu3 %v7081_v44 }
 0x5e3   :  { %14564 = vst [vmem:[#allocation18_spill] sm:$0xff] %v13339_v32  ;;  %6576 = vmatmul.bf16.gmra.mxu0 %v7085_v36 }
 0x5e4   :  { %v5483_v62 = vpop.f32.mrf.mxu2 }
 0x5e5   :  { %v5484_v61 = vadd.f32 %v5483_v62, %v5275_v46  ;;  %v5692_v19 = vpop.f32.mrf.mxu3 }
 0x5e6   :  { %v5276_v31 = vpop.f32.mrf.mxu1 }
 0x5e7   :  { %v5693_v26 = vadd.f32 %v5692_v19, %v5484_v61  ;;  %v5277_v13 = vadd.f32 %v5276_v31, %v14565_v24  ;;  %v9476_v19 = vld [vmem:[%s14380_s0 + $0x190] sm:$0xf0]  ;;  %v9470_v61 = vld [vmem:[%s14380_s0 + $0x164] sm:$0xf] }
 0x5e8   :  { %v5903_v47 = vpop.f32.mrf.mxu0  ;;  %v7129_v44 = vor.u32 %v9476_v19, %v7128_v42  ;;  %v7133_v53 = vor.u32 %v9470_v61, %v7130_v33  ;;  %v9482_v19 = vld [vmem:[%s14380_s0 + $0x1c4] sm:$0xf]  ;;  %v7174_v61 = vld [vmem:[%s14380_s0 + $0x1f4] sm:$0xf0]  ;;  %v7180_v33 = vld [vmem:[%s14380_s0 + $0x1c8] sm:$0xf] }
 0x5e9   :  { %v13348_v12 = vadd.f32 %v5901_v14, %v5693_v26  ;;  %v14567_v14 = vld [vmem:[#allocation24_spill] sm:$0xff] }
 0x5eb   :  { %14566 = vst [vmem:[#allocation20_spill] sm:$0xff] %v13348_v12 }
 0x5ec   :  { %v5485_v30 = vpop.f32.mrf.mxu2 }
 0x5ed   :  { %v5486_v11 = vadd.f32 %v5485_v30, %v5277_v13  ;;  %v5694_v1 = vpop.f32.mrf.mxu3 }
 0x5ee   :  { %v5279_v36 = vpop.f32.mrf.mxu1 }
 0x5ef   :  { %v5695_v46 = vadd.f32 %v5694_v1, %v5486_v11  ;;  %v5280_v62 = vadd.f32 %v5279_v36, %v14567_v14  ;;  %v9490_v11 = vld [vmem:[%s14380_s0 + $0x200] sm:$0xf0]  ;;  %v7177_v36 = vor.u32 %v9482_v19, %v7174_v61 }
 0x5f0   :  { %v5906_v31 = vpop.f32.mrf.mxu0  ;;  %v7189_v14 = vor.u32 %v9490_v11, %v7188_v54  ;;  %v14573_v19 = vld [vmem:[#allocation30_spill] sm:$0xff]  ;;  %v7234_v54 = vld [vmem:[%s14380_s0 + $0x264] sm:$0xf0]  ;;  %v7240_v11 = vld [vmem:[%s14380_s0 + $0x238] sm:$0xf] }
 0x5f1   :  { %5954 = vmatmul.bf16.gmra.mxu1 %v7125_v35  ;;  %6163 = vmatmul.bf16.gmra.mxu2 %v7129_v44  ;;  %v13369_v26 = vadd.f32 %v5903_v47, %v5695_v46 }
 0x5f2   :  { %6372 = vmatmul.bf16.gmra.mxu3 %v7133_v53 }
 0x5f3   :  { %14568 = vst [vmem:[#allocation22_spill] sm:$0xff] %v13369_v26  ;;  %6581 = vmatmul.bf16.gmra.mxu0 %v7137_v5 }
 0x5f4   :  { %v5488_v24 = vpop.f32.mrf.mxu2 }
 0x5f5   :  { %v5489_v12 = vadd.f32 %v5488_v24, %v5280_v62  ;;  %v5697_v32 = vpop.f32.mrf.mxu3 }
 0x5f6   :  { %v5281_v13 = vpop.f32.mrf.mxu1 }
 0x5f7   :  { %v5698_v30 = vadd.f32 %v5697_v32, %v5489_v12  ;;  %v5282_v51 = vadd.f32 %v5281_v13, %v14569_v6  ;;  %v9489_v32 = vld [vmem:[%s14380_s0 + $0x1f8] sm:$0xf0]  ;;  %v9483_v12 = vld [vmem:[%s14380_s0 + $0x1cc] sm:$0xf] }
 0x5f8   :  { %v5908_v42 = vpop.f32.mrf.mxu0  ;;  %v7181_v53 = vor.u32 %v9489_v32, %v7180_v33  ;;  %v7185_v46 = vor.u32 %v9483_v12, %v7182_v4  ;;  %v9495_v32 = vld [vmem:[%s14380_s0 + $0x22c] sm:$0xf]  ;;  %v7226_v12 = vld [vmem:[%s14380_s0 + $0x25c] sm:$0xf0]  ;;  %v7232_v4 = vld [vmem:[%s14380_s0 + $0x230] sm:$0xf] }
 0x5f9   :  { %v13378_v47 = vadd.f32 %v5906_v31, %v5698_v30  ;;  %v14571_v31 = vld [vmem:[#allocation28_spill] sm:$0xff] }
 0x5fb   :  { %14570 = vst [vmem:[#allocation24_spill] sm:$0xff] %v13378_v47 }
 0x5fc   :  { %v5490_v1 = vpop.f32.mrf.mxu2 }
 0x5fd   :  { %v5491_v35 = vadd.f32 %v5490_v1, %v5282_v51  ;;  %v5699_v44 = vpop.f32.mrf.mxu3 }
 0x5fe   :  { %v5284_v5 = vpop.f32.mrf.mxu1 }
 0x5ff   :  { %v5700_v62 = vadd.f32 %v5699_v44, %v5491_v35  ;;  %v5285_v24 = vadd.f32 %v5284_v5, %v14571_v31  ;;  %v9503_v35 = vld [vmem:[%s14380_s0 + $0x268] sm:$0xf0]  ;;  %v7229_v5 = vor.u32 %v9495_v32, %v7226_v12  ;;  %v14577_v32 = vld [vmem:[#allocation34_spill] sm:$0xff] }
 0x600   :  { %v5911_v13 = vpop.f32.mrf.mxu0  ;;  %v7241_v31 = vor.u32 %v9503_v35, %v7240_v11  ;;  %v7286_v11 = vld [vmem:[%s14380_s0 + $0x2cc] sm:$0xf0]  ;;  %v7292_v35 = vld [vmem:[%s14380_s0 + $0x2a0] sm:$0xf] }
 0x601   :  { %5959 = vmatmul.bf16.gmra.mxu1 %v7177_v36  ;;  %6168 = vmatmul.bf16.gmra.mxu2 %v7181_v53  ;;  %v13399_v30 = vadd.f32 %v5908_v42, %v5700_v62 }
 0x602   :  { %6377 = vmatmul.bf16.gmra.mxu3 %v7185_v46 }
 0x603   :  { %14572 = vst [vmem:[#allocation26_spill] sm:$0xff] %v13399_v30  ;;  %6586 = vmatmul.bf16.gmra.mxu0 %v7189_v14 }
 0x604   :  { %v5493_v6 = vpop.f32.mrf.mxu2 }
 0x605   :  { %v5494_v47 = vadd.f32 %v5493_v6, %v5285_v24  ;;  %v5702_v26 = vpop.f32.mrf.mxu3 }
 0x606   :  { %v5286_v51 = vpop.f32.mrf.mxu1 }
 0x607   :  { %v5703_v1 = vadd.f32 %v5702_v26, %v5494_v47  ;;  %v5287_v61 = vadd.f32 %v5286_v51, %v14573_v19  ;;  %v9502_v26 = vld [vmem:[%s14380_s0 + $0x260] sm:$0xf0]  ;;  %v9496_v47 = vld [vmem:[%s14380_s0 + $0x234] sm:$0xf] }
 0x608   :  { %v5913_v33 = vpop.f32.mrf.mxu0  ;;  %v7233_v46 = vor.u32 %v9502_v26, %v7232_v4  ;;  %v7237_v62 = vor.u32 %v9496_v47, %v7234_v54  ;;  %v9508_v26 = vld [vmem:[%s14380_s0 + $0x294] sm:$0xf]  ;;  %v7278_v47 = vld [vmem:[%s14380_s0 + $0x2c4] sm:$0xf0]  ;;  %v7284_v54 = vld [vmem:[%s14380_s0 + $0x298] sm:$0xf] }
 0x609   :  { %v13408_v42 = vadd.f32 %v5911_v13, %v5703_v1  ;;  %v14575_v13 = vld [vmem:[#allocation32_spill] sm:$0xff] }
 0x60b   :  { %14574 = vst [vmem:[#allocation28_spill] sm:$0xff] %v13408_v42 }
 0x60c   :  { %v5495_v44 = vpop.f32.mrf.mxu2 }
 0x60d   :  { %v5496_v36 = vadd.f32 %v5495_v44, %v5287_v61  ;;  %v5704_v53 = vpop.f32.mrf.mxu3 }
 0x60e   :  { %v5289_v14 = vpop.f32.mrf.mxu1 }
 0x60f   :  { %v5705_v24 = vadd.f32 %v5704_v53, %v5496_v36  ;;  %v5290_v6 = vadd.f32 %v5289_v14, %v14575_v13  ;;  %v9516_v36 = vld [vmem:[%s14380_s0 + $0x2d0] sm:$0xf0]  ;;  %v7281_v14 = vor.u32 %v9508_v26, %v7278_v47 }
 0x610   :  { %v5916_v51 = vpop.f32.mrf.mxu0  ;;  %v7293_v13 = vor.u32 %v9516_v36, %v7292_v35  ;;  %v9529_v35 = vld [vmem:[%s14380_s0 + $0x338] sm:$0xf0] }
 0x611   :  { %5964 = vmatmul.bf16.gmra.mxu1 %v7229_v5  ;;  %6173 = vmatmul.bf16.gmra.mxu2 %v7233_v46  ;;  %v13429_v1 = vadd.f32 %v5913_v33, %v5705_v24 }
 0x612   :  { %6382 = vmatmul.bf16.gmra.mxu3 %v7237_v62 }
 0x613   :  { %14576 = vst [vmem:[#allocation30_spill] sm:$0xff] %v13429_v1  ;;  %6591 = vmatmul.bf16.gmra.mxu0 %v7241_v31 }
 0x614   :  { %v5498_v19 = vpop.f32.mrf.mxu2 }
 0x615   :  { %v5499_v42 = vadd.f32 %v5498_v19, %v5290_v6  ;;  %v5707_v30 = vpop.f32.mrf.mxu3 }
 0x616   :  { %v5291_v61 = vpop.f32.mrf.mxu1 }
 0x617   :  { %v5708_v44 = vadd.f32 %v5707_v30, %v5499_v42  ;;  %v5292_v12 = vadd.f32 %v5291_v61, %v14577_v32  ;;  %v9515_v30 = vld [vmem:[%s14380_s0 + $0x2c8] sm:$0xf0]  ;;  %v9509_v42 = vld [vmem:[%s14380_s0 + $0x29c] sm:$0xf] }
 0x618   :  { %v5918_v4 = vpop.f32.mrf.mxu0  ;;  %v7285_v62 = vor.u32 %v9515_v30, %v7284_v54  ;;  %v7289_v24 = vor.u32 %v9509_v42, %v7286_v11  ;;  %v9521_v54 = vld [vmem:[%s14380_s0 + $0x2fc] sm:$0xf]  ;;  %v7330_v30 = vld [vmem:[%s14380_s0 + $0x32c] sm:$0xf0]  ;;  %v7336_v42 = vld [vmem:[%s14380_s0 + $0x300] sm:$0xf] }
 0x619   :  { %v13438_v33 = vadd.f32 %v5916_v51, %v5708_v44  ;;  %v14579_v51 = vld [vmem:[#allocation36_spill] sm:$0xff]  ;;  %v7344_v11 = vld [vmem:[%s14380_s0 + $0x308] sm:$0xf] }
 0x61b   :  { %14578 = vst [vmem:[#allocation32_spill] sm:$0xff] %v13438_v33 }
 0x61c   :  { %v5500_v53 = vpop.f32.mrf.mxu2 }
 0x61d   :  { %v5501_v5 = vadd.f32 %v5500_v53, %v5292_v12  ;;  %v5709_v46 = vpop.f32.mrf.mxu3 }
 0x61e   :  { %v5294_v31 = vpop.f32.mrf.mxu1 }
 0x61f   :  { %v5710_v6 = vadd.f32 %v5709_v46, %v5501_v5  ;;  %v5295_v19 = vadd.f32 %v5294_v31, %v14579_v51 }
 0x620   :  { %v5921_v61 = vpop.f32.mrf.mxu0 }
 0x621   :  { %5969 = vmatmul.bf16.gmra.mxu1 %v7281_v14  ;;  %6178 = vmatmul.bf16.gmra.mxu2 %v7285_v62  ;;  %v13459_v44 = vadd.f32 %v5918_v4, %v5710_v6  ;;  %v7333_v14 = vor.u32 %v9521_v54, %v7330_v30 }
 0x622   :  { %6387 = vmatmul.bf16.gmra.mxu3 %v7289_v24 }
 0x623   :  { %6596 = vmatmul.bf16.gmra.mxu0 %v7293_v13  ;;  %v7345_v13 = vor.u32 %v9529_v35, %v7344_v11  ;;  %v7396_v11 = vld [vmem:[%s14380_s0 + $0x370] sm:$0xf]  ;;  %v9542_v35 = vld [vmem:[%s14380_s0 + $0x3a0] sm:$0xf0] }
 0x624   :  { %v5503_v32 = vpop.f32.mrf.mxu2 }
 0x625   :  { %v5504_v33 = vadd.f32 %v5503_v32, %v5295_v19  ;;  %v5712_v1 = vpop.f32.mrf.mxu3 }
 0x626   :  { %v5296_v12 = vpop.f32.mrf.mxu1 }
 0x627   :  { %v5713_v53 = vadd.f32 %v5712_v1, %v5504_v33  ;;  %v5297_v26 = vadd.f32 %v5296_v12, %v12216_v48  ;;  %v9528_v1 = vld [vmem:[%s14380_s0 + $0x330] sm:$0xf0]  ;;  %v9522_v48 = vld [vmem:[%s14380_s0 + $0x304] sm:$0xf]  ;;  %v7338_v33 = vld [vmem:[%s14380_s0 + $0x334] sm:$0xf0] }
 0x628   :  { %v5923_v47 = vpop.f32.mrf.mxu0  ;;  %v7337_v62 = vor.u32 %v9528_v1, %v7336_v42  ;;  %v7341_v24 = vor.u32 %v9522_v48, %v7338_v33  ;;  %v9534_v42 = vld [vmem:[%s14380_s0 + $0x364] sm:$0xf]  ;;  %v7388_v1 = vld [vmem:[%s14380_s0 + $0x368] sm:$0xf]  ;;  %v9541_v48 = vld [vmem:[%s14380_s0 + $0x398] sm:$0xf0] }
 0x629   :  { %v13468_v4 = vadd.f32 %v5921_v61, %v5713_v53  ;;  %v7390_v33 = vld [vmem:[%s14380_s0 + $0x39c] sm:$0xf0] }
 0x62c   :  { %v5505_v36 = vpop.f32.mrf.mxu2 }
 0x62d   :  { %v5506_v5 = vadd.f32 %v5505_v36, %v5297_v26  ;;  %v5714_v46 = vpop.f32.mrf.mxu3 }
 0x62e   :  { %v5299_v31 = vpop.f32.mrf.mxu1 }
 0x62f   :  { %v5715_v6 = vadd.f32 %v5714_v46, %v5506_v5  ;;  %v5300_v51 = vadd.f32 %v5299_v31, %v12226_v52  ;;  %v7382_v52 = vld [vmem:[%s14380_s0 + $0x394] sm:$0xf0]  ;;  %v7389_v31 = vor.u32 %v9541_v48, %v7388_v1  ;;  %v9547_v48 = vld [vmem:[%s14380_s0 + $0x3cc] sm:$0xf] }
 0x630   :  { %v5926_v19 = vpop.f32.mrf.mxu0 }
 0x631   :  { %5974 = vmatmul.bf16.gmra.mxu1 %v7333_v14  ;;  %6183 = vmatmul.bf16.gmra.mxu2 %v7337_v62  ;;  %v13489_v61 = vadd.f32 %v5923_v47, %v5715_v6  ;;  %v7385_v62 = vor.u32 %v9534_v42, %v7382_v52  ;;  %v7397_v6 = vor.u32 %v9542_v35, %v7396_v11  ;;  %v7448_v11 = vld [vmem:[%s14380_s0 + $0x3d8] sm:$0xf]  ;;  %v9555_v35 = vld [vmem:[%s14380_s0 + $0x408] sm:$0xf0] }
 0x632   :  { %6392 = vmatmul.bf16.gmra.mxu3 %v7341_v24 }
 0x633   :  { %6601 = vmatmul.bf16.gmra.mxu0 %v7345_v13 }
 0x634   :  { %v5508_v32 = vpop.f32.mrf.mxu2 }
 0x635   :  { %v5509_v12 = vadd.f32 %v5508_v32, %v5300_v51  ;;  %v5717_v53 = vpop.f32.mrf.mxu3 }
 0x636   :  { %v5301_v26 = vpop.f32.mrf.mxu1 }
 0x637   :  { %v5718_v36 = vadd.f32 %v5717_v53, %v5509_v12  ;;  %v5302_v54 = vadd.f32 %v5301_v26, %v12247_v15  ;;  %v9535_v15 = vld [vmem:[%s14380_s0 + $0x36c] sm:$0xf] }
 0x638   :  { %v5928_v30 = vpop.f32.mrf.mxu0  ;;  %v7393_v13 = vor.u32 %v9535_v15, %v7390_v33  ;;  %v7440_v15 = vld [vmem:[%s14380_s0 + $0x3d0] sm:$0xf]  ;;  %v7442_v33 = vld [vmem:[%s14380_s0 + $0x404] sm:$0xf0] }
 0x639   :  { %v13498_v47 = vadd.f32 %v5926_v19, %v5718_v36  ;;  %v14581_v19 = vld [vmem:[#allocation38_spill] sm:$0xff] }
 0x63b   :  { %14580 = vst [vmem:[#allocation34_spill] sm:$0xff] %v13498_v47 }
 0x63c   :  { %v5510_v5 = vpop.f32.mrf.mxu2 }
 0x63d   :  { %v5511_v46 = vadd.f32 %v5510_v5, %v5302_v54  ;;  %v5719_v14 = vpop.f32.mrf.mxu3 }
 0x63e   :  { %v5940_v24 = vpop.f32.mrf.mxu1 }
 0x63f   :  { %v5720_v51 = vadd.f32 %v5719_v14, %v5511_v46  ;;  %v5941_v32 = vadd.f32 %v5940_v24, %v14581_v19 }
 0x640   :  { %v6567_v12 = vpop.f32.mrf.mxu0 }
 0x641   :  { %5979 = vmatmul.bf16.gmra.mxu1 %v7385_v62  ;;  %6188 = vmatmul.bf16.gmra.mxu2 %v7389_v31  ;;  %v13519_v53 = vadd.f32 %v5928_v30, %v5720_v51  ;;  %v7434_v30 = vld [vmem:[%s14380_s0 + $0x3fc] sm:$0xf0]  ;;  %v7449_v51 = vor.u32 %v9555_v35, %v7448_v11  ;;  %v9568_v11 = vld [vmem:[%s14380_s0 + $0x470] sm:$0xf0] }
 0x642   :  { %6397 = vmatmul.bf16.gmra.mxu3 %v7393_v13  ;;  %v7437_v31 = vor.u32 %v9547_v48, %v7434_v30 }
 0x643   :  { %14582 = vst [vmem:[#allocation36_spill] sm:$0xff] %v13519_v53  ;;  %6606 = vmatmul.bf16.gmra.mxu0 %v7397_v6 }
 0x644   :  { %v6149_v26 = vpop.f32.mrf.mxu2 }
 0x645   :  { %v6150_v36 = vadd.f32 %v6149_v26, %v5941_v32  ;;  %v6358_v47 = vpop.f32.mrf.mxu3 }
 0x646   :  { %v5942_v54 = vpop.f32.mrf.mxu1 }
 0x647   :  { %v6359_v5 = vadd.f32 %v6358_v47, %v6150_v36  ;;  %v5943_v42 = vadd.f32 %v5942_v54, %v12289_v8  ;;  %v9554_v47 = vld [vmem:[%s14380_s0 + $0x400] sm:$0xf0]  ;;  %v9548_v8 = vld [vmem:[%s14380_s0 + $0x3d4] sm:$0xf] }
 0x648   :  { %v6569_v52 = vpop.f32.mrf.mxu0  ;;  %v7441_v24 = vor.u32 %v9554_v47, %v7440_v15  ;;  %v7445_v6 = vor.u32 %v9548_v8, %v7442_v33  ;;  %v7494_v8 = vld [vmem:[%s14380_s0 + $0x46c] sm:$0xf0]  ;;  %v7500_v33 = vld [vmem:[%s14380_s0 + $0x440] sm:$0xf] }
 0x649   :  { %v6568_v1 = vadd.f32 %v6567_v12, %v6359_v5 }
 0x64c   :  { %v6151_v46 = vpop.f32.mrf.mxu2 }
 0x64d   :  { %v6152_v14 = vadd.f32 %v6151_v46, %v5943_v42  ;;  %v6360_v62 = vpop.f32.mrf.mxu3 }
 0x64e   :  { %v5945_v13 = vpop.f32.mrf.mxu1 }
 0x64f   :  { %v6361_v19 = vadd.f32 %v6360_v62, %v6152_v14  ;;  %v5946_v32 = vadd.f32 %v5945_v13, %v12298_v18  ;;  %v9560_v18 = vld [vmem:[%s14380_s0 + $0x434] sm:$0xf] }
 0x650   :  { %v6572_v12 = vpop.f32.mrf.mxu0 }
 0x651   :  { %v6570_v26 = vadd.f32 %v6569_v52, %v6361_v19  ;;  %5984 = vmatmul.bf16.gmra.mxu1 %v7437_v31  ;;  %6193 = vmatmul.bf16.gmra.mxu2 %v7441_v24  ;;  %v7486_v52 = vld [vmem:[%s14380_s0 + $0x464] sm:$0xf0] }
 0x652   :  { %6402 = vmatmul.bf16.gmra.mxu3 %v7445_v6  ;;  %v7489_v31 = vor.u32 %v9560_v18, %v7486_v52 }
 0x653   :  { %6611 = vmatmul.bf16.gmra.mxu0 %v7449_v51  ;;  %v6767_v36 = vmax.f32 %v6568_v1, %v6570_v26  ;;  %v7492_v1 = vld [vmem:[%s14380_s0 + $0x438] sm:$0xf]  ;;  %v7501_v51 = vor.u32 %v9568_v11, %v7500_v33  ;;  %v9581_v33 = vld [vmem:[%s14380_s0 + $0x4d8] sm:$0xf0] }
 0x654   :  { %v6154_v54 = vpop.f32.mrf.mxu2 }
 0x655   :  { %v6155_v5 = vadd.f32 %v6154_v54, %v5946_v32  ;;  %v6363_v53 = vpop.f32.mrf.mxu3 }
 0x656   :  { %v5947_v42 = vpop.f32.mrf.mxu1 }
 0x657   :  { %v6364_v46 = vadd.f32 %v6363_v53, %v6155_v5  ;;  %v5948_v48 = vadd.f32 %v5947_v42, %v12319_v16  ;;  %v9567_v53 = vld [vmem:[%s14380_s0 + $0x468] sm:$0xf0]  ;;  %v9561_v16 = vld [vmem:[%s14380_s0 + $0x43c] sm:$0xf] }
 0x658   :  { %v6574_v30 = vpop.f32.mrf.mxu0  ;;  %v7493_v24 = vor.u32 %v9567_v53, %v7492_v1  ;;  %v7497_v6 = vor.u32 %v9561_v16, %v7494_v8  ;;  %v7544_v1 = vld [vmem:[%s14380_s0 + $0x4a0] sm:$0xf]  ;;  %v9580_v53 = vld [vmem:[%s14380_s0 + $0x4d0] sm:$0xf0]  ;;  %v7552_v8 = vld [vmem:[%s14380_s0 + $0x4a8] sm:$0xf] }
 0x659   :  { %v6573_v15 = vadd.f32 %v6572_v12, %v6364_v46 }
 0x65b   :  { %v6768_v47 = vmax.f32 %v6767_v36, %v6573_v15 }
 0x65c   :  { %v6156_v35 = vpop.f32.mrf.mxu2 }
 0x65d   :  { %v6157_v14 = vadd.f32 %v6156_v35, %v5948_v48  ;;  %v6365_v62 = vpop.f32.mrf.mxu3 }
 0x65e   :  { %v5950_v13 = vpop.f32.mrf.mxu1 }
 0x65f   :  { %v6366_v19 = vadd.f32 %v6365_v62, %v6157_v14  ;;  %v5951_v32 = vadd.f32 %v5950_v13, %v12328_v29  ;;  %v9573_v29 = vld [vmem:[%s14380_s0 + $0x49c] sm:$0xf] }
 0x660   :  { %v6577_v12 = vpop.f32.mrf.mxu0 }
 0x661   :  { %v6575_v26 = vadd.f32 %v6574_v30, %v6366_v19  ;;  %5989 = vmatmul.bf16.gmra.mxu1 %v7489_v31  ;;  %6198 = vmatmul.bf16.gmra.mxu2 %v7493_v24  ;;  %v7538_v30 = vld [vmem:[%s14380_s0 + $0x4cc] sm:$0xf0]  ;;  %v7545_v31 = vor.u32 %v9580_v53, %v7544_v1  ;;  %v7598_v53 = vld [vmem:[%s14380_s0 + $0x53c] sm:$0xf0] }
 0x662   :  { %6407 = vmatmul.bf16.gmra.mxu3 %v7497_v6  ;;  %v7541_v62 = vor.u32 %v9573_v29, %v7538_v30  ;;  %v7553_v6 = vor.u32 %v9581_v33, %v7552_v8  ;;  %v7596_v29 = vld [vmem:[%s14380_s0 + $0x508] sm:$0xf]  ;;  %v9593_v30 = vld [vmem:[%s14380_s0 + $0x538] sm:$0xf0] }
 0x663   :  { %6616 = vmatmul.bf16.gmra.mxu0 %v7501_v51  ;;  %v6769_v36 = vmax.f32 %v6768_v47, %v6575_v26  ;;  %v7546_v47 = vld [vmem:[%s14380_s0 + $0x4d4] sm:$0xf0] }
 0x664   :  { %v6159_v54 = vpop.f32.mrf.mxu2 }
 0x665   :  { %v6160_v5 = vadd.f32 %v6159_v54, %v5951_v32  ;;  %v6368_v42 = vpop.f32.mrf.mxu3 }
 0x666   :  { %v5952_v46 = vpop.f32.mrf.mxu1 }
 0x667   :  { %v6369_v48 = vadd.f32 %v6368_v42, %v6160_v5  ;;  %v5953_v15 = vadd.f32 %v5952_v46, %v12349_v60  ;;  %v9574_v60 = vld [vmem:[%s14380_s0 + $0x4a4] sm:$0xf] }
 0x668   :  { %v6579_v18 = vpop.f32.mrf.mxu0  ;;  %v7549_v13 = vor.u32 %v9574_v60, %v7546_v47  ;;  %v7604_v60 = vld [vmem:[%s14380_s0 + $0x510] sm:$0xf] }
 0x669   :  { %v6578_v52 = vadd.f32 %v6577_v12, %v6369_v48 }
 0x66b   :  { %v6770_v16 = vmax.f32 %v6769_v36, %v6578_v52 }
 0x66c   :  { %v6161_v11 = vpop.f32.mrf.mxu2 }
 0x66d   :  { %v6162_v35 = vadd.f32 %v6161_v11, %v5953_v15  ;;  %v6370_v14 = vpop.f32.mrf.mxu3 }
 0x66e   :  { %v5955_v24 = vpop.f32.mrf.mxu1 }
 0x66f   :  { %v6371_v51 = vadd.f32 %v6370_v14, %v6162_v35  ;;  %v5956_v19 = vadd.f32 %v5955_v24, %v12358_v27  ;;  %v9586_v27 = vld [vmem:[%s14380_s0 + $0x504] sm:$0xf]  ;;  %v7597_v35 = vor.u32 %v9593_v30, %v7596_v29  ;;  %v9607_v29 = vld [vmem:[%s14380_s0 + $0x5a8] sm:$0xf0] }
 0x670   :  { %v6582_v32 = vpop.f32.mrf.mxu0 }
 0x671   :  { %v6580_v12 = vadd.f32 %v6579_v18, %v6371_v51  ;;  %5994 = vmatmul.bf16.gmra.mxu1 %v7541_v62  ;;  %6203 = vmatmul.bf16.gmra.mxu2 %v7545_v31  ;;  %v7590_v18 = vld [vmem:[%s14380_s0 + $0x534] sm:$0xf0] }
 0x672   :  { %6412 = vmatmul.bf16.gmra.mxu3 %v7549_v13  ;;  %v7593_v11 = vor.u32 %v9586_v27, %v7590_v18  ;;  %v7650_v27 = vld [vmem:[%s14380_s0 + $0x5a4] sm:$0xf0]  ;;  %v7656_v18 = vld [vmem:[%s14380_s0 + $0x578] sm:$0xf] }
 0x673   :  { %6621 = vmatmul.bf16.gmra.mxu0 %v7553_v6  ;;  %v6771_v26 = vmax.f32 %v6770_v16, %v6580_v12  ;;  %v9594_v16 = vld [vmem:[%s14380_s0 + $0x540] sm:$0xf0] }
 0x674   :  { %v6164_v36 = vpop.f32.mrf.mxu2  ;;  %v7605_v31 = vor.u32 %v9594_v16, %v7604_v60 }
 0x675   :  { %v6165_v54 = vadd.f32 %v6164_v36, %v5956_v19  ;;  %v6373_v5 = vpop.f32.mrf.mxu3 }
 0x676   :  { %v5957_v42 = vpop.f32.mrf.mxu1 }
 0x677   :  { %v6374_v46 = vadd.f32 %v6373_v5, %v6165_v54  ;;  %v5958_v48 = vadd.f32 %v5957_v42, %v12379_v22  ;;  %v9587_v22 = vld [vmem:[%s14380_s0 + $0x50c] sm:$0xf] }
 0x678   :  { %v6584_v15 = vpop.f32.mrf.mxu0  ;;  %v7601_v62 = vor.u32 %v9587_v22, %v7598_v53 }
 0x679   :  { %v6583_v52 = vadd.f32 %v6582_v32, %v6374_v46 }
 0x67b   :  { %v6772_v1 = vmax.f32 %v6771_v26, %v6583_v52  ;;  %v9606_v52 = vld [vmem:[%s14380_s0 + $0x5a0] sm:$0xf0] }
 0x67c   :  { %v6166_v47 = vpop.f32.mrf.mxu2 }
 0x67d   :  { %v6167_v8 = vadd.f32 %v6166_v47, %v5958_v48  ;;  %v6375_v33 = vpop.f32.mrf.mxu3  ;;  %v7642_v48 = vld [vmem:[%s14380_s0 + $0x59c] sm:$0xf0] }
 0x67e   :  { %v5960_v14 = vpop.f32.mrf.mxu1 }
 0x67f   :  { %v6376_v24 = vadd.f32 %v6375_v33, %v6167_v8  ;;  %v5961_v13 = vadd.f32 %v5960_v14, %v12388_v0  ;;  %v9599_v0 = vld [vmem:[%s14380_s0 + $0x56c] sm:$0xf]  ;;  %v7657_v8 = vor.u32 %v9607_v29, %v7656_v18 }
 0x680   :  { %v6587_v6 = vpop.f32.mrf.mxu0  ;;  %v7645_v53 = vor.u32 %v9599_v0, %v7642_v48  ;;  %v7708_v0 = vld [vmem:[%s14380_s0 + $0x5e0] sm:$0xf]  ;;  %v9620_v48 = vld [vmem:[%s14380_s0 + $0x610] sm:$0xf0] }
 0x681   :  { %v6585_v51 = vadd.f32 %v6584_v15, %v6376_v24  ;;  %5999 = vmatmul.bf16.gmra.mxu1 %v7593_v11  ;;  %6208 = vmatmul.bf16.gmra.mxu2 %v7597_v35  ;;  %v7648_v15 = vld [vmem:[%s14380_s0 + $0x570] sm:$0xf] }
 0x682   :  { %6417 = vmatmul.bf16.gmra.mxu3 %v7601_v62  ;;  %v7649_v60 = vor.u32 %v9606_v52, %v7648_v15 }
 0x683   :  { %6626 = vmatmul.bf16.gmra.mxu0 %v7605_v31  ;;  %v13625_v19 = vmax.f32 %v6772_v1, %v6585_v51 }
 0x684   :  { %v6169_v32 = vpop.f32.mrf.mxu2 }
 0x685   :  { %v6170_v12 = vadd.f32 %v6169_v32, %v5961_v13  ;;  %v6378_v26 = vpop.f32.mrf.mxu3 }
 0x686   :  { %v5962_v36 = vpop.f32.mrf.mxu1 }
 0x687   :  { %v6379_v54 = vadd.f32 %v6378_v26, %v6170_v12  ;;  %v5963_v5 = vadd.f32 %v5962_v36, %v12409_v40  ;;  %v9600_v40 = vld [vmem:[%s14380_s0 + $0x574] sm:$0xf]  ;;  %v7694_v36 = vld [vmem:[%s14380_s0 + $0x604] sm:$0xf0] }
 0x688   :  { %v6589_v42 = vpop.f32.mrf.mxu0  ;;  %v7653_v47 = vor.u32 %v9600_v40, %v7650_v27 }
 0x689   :  { %v6588_v46 = vadd.f32 %v6587_v6, %v6379_v54  ;;  %v7700_v54 = vld [vmem:[%s14380_s0 + $0x5d8] sm:$0xf] }
 0x68c   :  { %v6171_v30 = vpop.f32.mrf.mxu2 }
 0x68d   :  { %v6172_v22 = vadd.f32 %v6171_v30, %v5963_v5  ;;  %v6380_v1 = vpop.f32.mrf.mxu3  ;;  %v9619_v5 = vld [vmem:[%s14380_s0 + $0x608] sm:$0xf0] }
 0x68e   :  { %v5965_v16 = vpop.f32.mrf.mxu1  ;;  %v7701_v18 = vor.u32 %v9619_v5, %v7700_v54 }
 0x68f   :  { %v6381_v33 = vadd.f32 %v6380_v1, %v6172_v22  ;;  %v5966_v11 = vadd.f32 %v5965_v16, %v12430_v56  ;;  %v9612_v56 = vld [vmem:[%s14380_s0 + $0x5d4] sm:$0xf]  ;;  %v7709_v22 = vor.u32 %v9620_v48, %v7708_v0 }
 0x690   :  { %v6592_v35 = vpop.f32.mrf.mxu0  ;;  %v7697_v27 = vor.u32 %v9612_v56, %v7694_v36  ;;  %v9633_v56 = vld [vmem:[%s14380_s0 + $0x678] sm:$0xf0] }
 0x691   :  { %v6590_v14 = vadd.f32 %v6589_v42, %v6381_v33  ;;  %6004 = vmatmul.bf16.gmra.mxu1 %v7645_v53  ;;  %6213 = vmatmul.bf16.gmra.mxu2 %v7649_v60 }
 0x692   :  { %6422 = vmatmul.bf16.gmra.mxu3 %v7653_v47 }
 0x693   :  { %6631 = vmatmul.bf16.gmra.mxu0 %v7657_v8  ;;  %v6780_v62 = vmax.f32 %v6588_v46, %v6590_v14  ;;  %v7702_v46 = vld [vmem:[%s14380_s0 + $0x60c] sm:$0xf0] }
 0x694   :  { %v6174_v31 = vpop.f32.mrf.mxu2 }
 0x695   :  { %v6175_v24 = vadd.f32 %v6174_v31, %v5966_v11  ;;  %v6383_v13 = vpop.f32.mrf.mxu3 }
 0x696   :  { %v5967_v6 = vpop.f32.mrf.mxu1 }
 0x697   :  { %v6384_v51 = vadd.f32 %v6383_v13, %v6175_v24  ;;  %v5968_v32 = vadd.f32 %v5967_v6, %v12451_v17  ;;  %v9613_v17 = vld [vmem:[%s14380_s0 + $0x5dc] sm:$0xf]  ;;  %v7746_v13 = vld [vmem:[%s14380_s0 + $0x66c] sm:$0xf0]  ;;  %v7752_v6 = vld [vmem:[%s14380_s0 + $0x640] sm:$0xf] }
 0x698   :  { %v6594_v12 = vpop.f32.mrf.mxu0  ;;  %v7705_v30 = vor.u32 %v9613_v17, %v7702_v46 }
 0x699   :  { %v6593_v26 = vadd.f32 %v6592_v35, %v6384_v51  ;;  %v9632_v51 = vld [vmem:[%s14380_s0 + $0x670] sm:$0xf0] }
 0x69b   :  { %v6781_v42 = vmax.f32 %v6780_v62, %v6593_v26  ;;  %v7760_v26 = vld [vmem:[%s14380_s0 + $0x648] sm:$0xf] }
 0x69c   :  { %v6176_v15 = vpop.f32.mrf.mxu2  ;;  %v7761_v48 = vor.u32 %v9633_v56, %v7760_v26 }
 0x69d   :  { %v6177_v52 = vadd.f32 %v6176_v15, %v5968_v32  ;;  %v6385_v40 = vpop.f32.mrf.mxu3 }
 0x69e   :  { %v5970_v29 = vpop.f32.mrf.mxu1 }
 0x69f   :  { %v6386_v1 = vadd.f32 %v6385_v40, %v6177_v52  ;;  %v5971_v53 = vadd.f32 %v5970_v29, %v12460_v63  ;;  %v9625_v63 = vld [vmem:[%s14380_s0 + $0x63c] sm:$0xf] }
 0x6a0   :  { %v6597_v60 = vpop.f32.mrf.mxu0  ;;  %v7749_v17 = vor.u32 %v9625_v63, %v7746_v13 }
 0x6a1   :  { %v6595_v16 = vadd.f32 %v6594_v12, %v6386_v1  ;;  %6009 = vmatmul.bf16.gmra.mxu1 %v7697_v27  ;;  %6218 = vmatmul.bf16.gmra.mxu2 %v7701_v18  ;;  %v7754_v12 = vld [vmem:[%s14380_s0 + $0x674] sm:$0xf0] }
 0x6a2   :  { %6427 = vmatmul.bf16.gmra.mxu3 %v7705_v30 }
 0x6a3   :  { %6636 = vmatmul.bf16.gmra.mxu0 %v7709_v22  ;;  %v6782_v47 = vmax.f32 %v6781_v42, %v6595_v16  ;;  %v7753_v42 = vor.u32 %v9632_v51, %v7752_v6 }
 0x6a4   :  { %v6179_v8 = vpop.f32.mrf.mxu2 }
 0x6a5   :  { %v6180_v33 = vadd.f32 %v6179_v8, %v5971_v53  ;;  %v6388_v11 = vpop.f32.mrf.mxu3 }
 0x6a6   :  { %v5972_v35 = vpop.f32.mrf.mxu1 }
 0x6a7   :  { %v6389_v14 = vadd.f32 %v6388_v11, %v6180_v33  ;;  %v5973_v62 = vadd.f32 %v5972_v35, %v12481_v2  ;;  %v9626_v2 = vld [vmem:[%s14380_s0 + $0x644] sm:$0xf]  ;;  %v7798_v33 = vld [vmem:[%s14380_s0 + $0x6d4] sm:$0xf0]  ;;  %v7804_v11 = vld [vmem:[%s14380_s0 + $0x6a8] sm:$0xf] }
 0x6a8   :  { %v6599_v31 = vpop.f32.mrf.mxu0  ;;  %v7757_v0 = vor.u32 %v9626_v2, %v7754_v12  ;;  %v9639_v35 = vld [vmem:[%s14380_s0 + $0x6ac] sm:$0xf] }
 0x6a9   :  { %v6598_v24 = vadd.f32 %v6597_v60, %v6389_v14 }
 0x6ab   :  { %v6783_v32 = vmax.f32 %v6782_v47, %v6598_v24  ;;  %v6774_v47 = vrot.slane %v13625_v19, 4  ;;  %v9646_v24 = vld [vmem:[%s14380_s0 + $0x6e0] sm:$0xf0] }
 0x6ac   :  { %v6181_v36 = vpop.f32.mrf.mxu2 }
 0x6ad   :  { %v6182_v54 = vadd.f32 %v6181_v36, %v5973_v62  ;;  %v6390_v5 = vpop.f32.mrf.mxu3  ;;  %v7806_v62 = vld [vmem:[%s14380_s0 + $0x6dc] sm:$0xf0]  ;;  %v6775_v13 = vmax.f32 %v13625_v19, %v6774_v47  ;;  %v9652_v47 = vld [vmem:[%s14380_s0 + $0x714] sm:$0xf] }
 0x6ae   :  { %v5975_v46 = vpop.f32.mrf.mxu1  ;;  %v7809_v26 = vor.u32 %v9639_v35, %v7806_v62 }
 0x6af   :  { %v6391_v15 = vadd.f32 %v6390_v5, %v6182_v54  ;;  %v5976_v52 = vadd.f32 %v5975_v46, %v12490_v3  ;;  %v9638_v3 = vld [vmem:[%s14380_s0 + $0x6a4] sm:$0xf] }
 0x6b0   :  { %v6602_v40 = vpop.f32.mrf.mxu0  ;;  %v7801_v2 = vor.u32 %v9638_v3, %v7798_v33  ;;  %v7858_v3 = vld [vmem:[%s14380_s0 + $0x744] sm:$0xf0]  ;;  %v7864_v33 = vld [vmem:[%s14380_s0 + $0x718] sm:$0xf] }
 0x6b1   :  { %v6600_v27 = vadd.f32 %v6599_v31, %v6391_v15  ;;  %6014 = vmatmul.bf16.gmra.mxu1 %v7749_v17  ;;  %6223 = vmatmul.bf16.gmra.mxu2 %v7753_v42  ;;  %v7812_v31 = vld [vmem:[%s14380_s0 + $0x6b0] sm:$0xf]  ;;  %v6776_v17 = vrot.slane %v6775_v13, 2 }
 0x6b2   :  { %6432 = vmatmul.bf16.gmra.mxu3 %v7757_v0  ;;  %v7813_v56 = vor.u32 %v9646_v24, %v7812_v31 }
 0x6b3   :  { %6641 = vmatmul.bf16.gmra.mxu0 %v7761_v48  ;;  %v6784_v18 = vmax.f32 %v6783_v32, %v6600_v27  ;;  %v6777_v19 = vmax.f32 %v6775_v13, %v6776_v17  ;;  %v7861_v13 = vor.u32 %v9652_v47, %v7858_v3 }
 0x6b4   :  { %v6184_v29 = vpop.f32.mrf.mxu2 }
 0x6b5   :  { %v6185_v30 = vadd.f32 %v6184_v29, %v5976_v52  ;;  %v6393_v22 = vpop.f32.mrf.mxu3 }
 0x6b6   :  { %v5977_v1 = vpop.f32.mrf.mxu1 }
 0x6b7   :  { %v6394_v53 = vadd.f32 %v6393_v22, %v6185_v30  ;;  %v5978_v60 = vadd.f32 %v5977_v1, %v12511_v21  ;;  %v9645_v21 = vld [vmem:[%s14380_s0 + $0x6d8] sm:$0xf0] }
 0x6b8   :  { %v6604_v16 = vpop.f32.mrf.mxu0  ;;  %v7805_v32 = vor.u32 %v9645_v21, %v7804_v11  ;;  %v9659_v11 = vld [vmem:[%s14380_s0 + $0x748] sm:$0xf0] }
 0x6b9   :  { %v6603_v8 = vadd.f32 %v6602_v40, %v6394_v53  ;;  %v9651_v53 = vld [vmem:[%s14380_s0 + $0x70c] sm:$0xf] }
 0x6bb   :  { %v6785_v14 = vmax.f32 %v6784_v18, %v6603_v8 }
 0x6bc   :  { %v6186_v63 = vpop.f32.mrf.mxu2 }
 0x6bd   :  { %v6187_v6 = vadd.f32 %v6186_v63, %v5978_v60  ;;  %v6395_v51 = vpop.f32.mrf.mxu3  ;;  %v7850_v60 = vld [vmem:[%s14380_s0 + $0x73c] sm:$0xf0] }
 0x6be   :  { %v5980_v12 = vpop.f32.mrf.mxu1  ;;  %v7853_v31 = vor.u32 %v9651_v53, %v7850_v60 }
 0x6bf   :  { %v6396_v36 = vadd.f32 %v6395_v51, %v6187_v6  ;;  %v5981_v54 = vadd.f32 %v5980_v12, %v12520_v23  ;;  %v6778_v23 = vrot.slane %v6777_v19, 1  ;;  %v7865_v6 = vor.u32 %v9659_v11, %v7864_v33 }
 0x6c0   :  { %v6607_v5 = vpop.f32.mrf.mxu0 }
 0x6c1   :  { %v6605_v42 = vadd.f32 %v6604_v16, %v6396_v36  ;;  %6019 = vmatmul.bf16.gmra.mxu1 %v7801_v2  ;;  %6228 = vmatmul.bf16.gmra.mxu2 %v7805_v32  ;;  %v7856_v16 = vld [vmem:[%s14380_s0 + $0x710] sm:$0xf]  ;;  %v6779_v51 = vmax.f32 %v6777_v19, %v6778_v23  ;;  %v9672_v23 = vld [vmem:[%s14380_s0 + $0x7b0] sm:$0xf0] }
 0x6c2   :  { %6437 = vmatmul.bf16.gmra.mxu3 %v7809_v26 }
 0x6c3   :  { %6646 = vmatmul.bf16.gmra.mxu0 %v7813_v56  ;;  %v6786_v46 = vmax.f32 %v6785_v14, %v6605_v42 }
 0x6c4   :  { %v6189_v0 = vpop.f32.mrf.mxu2 }
 0x6c5   :  { %v6787_v48 = vrot.slane %v6786_v46, 4  ;;  %v6190_v15 = vadd.f32 %v6189_v0, %v5981_v54  ;;  %v6398_v52 = vpop.f32.mrf.mxu3 }
 0x6c6   :  { %v5982_v40 = vpop.f32.mrf.mxu1 }
 0x6c7   :  { %v6788_v27 = vmax.f32 %v6786_v46, %v6787_v48  ;;  %v6399_v18 = vadd.f32 %v6398_v52, %v6190_v15  ;;  %v5983_v29 = vadd.f32 %v5982_v40, %v12541_v10  ;;  %v9658_v10 = vld [vmem:[%s14380_s0 + $0x740] sm:$0xf0]  ;;  %v7902_v52 = vld [vmem:[%s14380_s0 + $0x7a4] sm:$0xf0]  ;;  %v7908_v40 = vld [vmem:[%s14380_s0 + $0x778] sm:$0xf] }
 0x6c8   :  { %v6609_v30 = vpop.f32.mrf.mxu0  ;;  %v7857_v24 = vor.u32 %v9658_v10, %v7856_v16 }
 0x6c9   :  { %v6789_v22 = vrot.slane %v6788_v27, 2  ;;  %v6608_v1 = vadd.f32 %v6607_v5, %v6399_v18 }
 0x6cb   :  { %v6790_v8 = vmax.f32 %v6788_v27, %v6789_v22  ;;  %v9671_v27 = vld [vmem:[%s14380_s0 + $0x7a8] sm:$0xf0] }
 0x6cc   :  { %v6191_v21 = vpop.f32.mrf.mxu2  ;;  %v7909_v16 = vor.u32 %v9671_v27, %v7908_v40 }
 0x6cd   :  { %v6791_v35 = vrot.slane %v6790_v8, 1  ;;  %v6192_v14 = vadd.f32 %v6191_v21, %v5983_v29  ;;  %v6400_v62 = vpop.f32.mrf.mxu3  ;;  %v7910_v29 = vld [vmem:[%s14380_s0 + $0x7ac] sm:$0xf0] }
 0x6ce   :  { %v5985_v63 = vpop.f32.mrf.mxu1 }
 0x6cf   :  { %v6792_v2 = vmax.f32 %v6790_v8, %v6791_v35  ;;  %v6401_v32 = vadd.f32 %v6400_v62, %v6192_v14  ;;  %v5986_v12 = vadd.f32 %v5985_v63, %v12550_v55  ;;  %v9664_v55 = vld [vmem:[%s14380_s0 + $0x774] sm:$0xf] }
 0x6d0   :  { %v6612_v26 = vpop.f32.mrf.mxu0  ;;  %v7905_v60 = vor.u32 %v9664_v55, %v7902_v52 }
 0x6d1   :  { %v13760_v56 = vsel %vm6907_vm0, %v6792_v2, %v6779_v51  ;;  %v6610_v36 = vadd.f32 %v6609_v30, %v6401_v32  ;;  %6024 = vmatmul.bf16.gmra.mxu1 %v7853_v31  ;;  %6233 = vmatmul.bf16.gmra.mxu2 %v7857_v24  ;;  %v7916_v30 = vld [vmem:[%s14380_s0 + $0x780] sm:$0xf]  ;;  %v7954_v2 = vld [vmem:[%s14380_s0 + $0x80c] sm:$0xf0] }
 0x6d2   :  { %6442 = vmatmul.bf16.gmra.mxu3 %v7861_v13  ;;  %v7917_v8 = vor.u32 %v9672_v23, %v7916_v30  ;;  %v7960_v32 = vld [vmem:[%s14380_s0 + $0x7e0] sm:$0xf] }
 0x6d3   :  { %6651 = vmatmul.bf16.gmra.mxu0 %v7865_v6  ;;  %v6793_v54 = vmax.f32 %v6608_v1, %v6610_v36  ;;  %v7962_v36 = vld [vmem:[%s14380_s0 + $0x814] sm:$0xf0] }
 0x6d4   :  { %v6194_v5 = vpop.f32.mrf.mxu2 }
 0x6d5   :  { %v6195_v17 = vadd.f32 %v6194_v5, %v5986_v12  ;;  %v6403_v42 = vpop.f32.mrf.mxu3  ;;  %v9684_v12 = vld [vmem:[%s14380_s0 + $0x810] sm:$0xf0]  ;;  %v9685_v5 = vld [vmem:[%s14380_s0 + $0x818] sm:$0xf0] }
 0x6d6   :  { %v5987_v46 = vpop.f32.mrf.mxu1 }
 0x6d7   :  { %v6404_v0 = vadd.f32 %v6403_v42, %v6195_v17  ;;  %v5988_v19 = vadd.f32 %v5987_v46, %v12571_v34  ;;  %v9665_v34 = vld [vmem:[%s14380_s0 + $0x77c] sm:$0xf] }
 0x6d8   :  { %v6614_v48 = vpop.f32.mrf.mxu0  ;;  %v7913_v47 = vor.u32 %v9665_v34, %v7910_v29 }
 0x6d9   :  { %v6613_v15 = vadd.f32 %v6612_v26, %v6404_v0 }
 0x6db   :  { %v6794_v18 = vmax.f32 %v6793_v54, %v6613_v15  ;;  %v7968_v54 = vld [vmem:[%s14380_s0 + $0x7e8] sm:$0xf] }
 0x6dc   :  { %v6196_v22 = vpop.f32.mrf.mxu2  ;;  %v7969_v55 = vor.u32 %v9685_v5, %v7968_v54 }
 0x6dd   :  { %v6197_v1 = vadd.f32 %v6196_v22, %v5988_v19  ;;  %v6405_v53 = vpop.f32.mrf.mxu3  ;;  %v7961_v19 = vor.u32 %v9684_v12, %v7960_v32 }
 0x6de   :  { %v5990_v10 = vpop.f32.mrf.mxu1 }
 0x6df   :  { %v6406_v3 = vadd.f32 %v6405_v53, %v6197_v1  ;;  %v5991_v33 = vadd.f32 %v5990_v10, %v12592_v9  ;;  %v9677_v9 = vld [vmem:[%s14380_s0 + $0x7dc] sm:$0xf]  ;;  %v8006_v10 = vld [vmem:[%s14380_s0 + $0x874] sm:$0xf0] }
 0x6e0   :  { %v6617_v11 = vpop.f32.mrf.mxu0  ;;  %v7957_v0 = vor.u32 %v9677_v9, %v7954_v2 }
 0x6e1   :  { %v6615_v21 = vadd.f32 %v6614_v48, %v6406_v3  ;;  %6029 = vmatmul.bf16.gmra.mxu1 %v7905_v60  ;;  %6238 = vmatmul.bf16.gmra.mxu2 %v7909_v16 }
 0x6e2   :  { %6447 = vmatmul.bf16.gmra.mxu3 %v7913_v47  ;;  %v8012_v47 = vld [vmem:[%s14380_s0 + $0x848] sm:$0xf] }
 0x6e3   :  { %6656 = vmatmul.bf16.gmra.mxu0 %v7917_v8  ;;  %v6795_v35 = vmax.f32 %v6794_v18, %v6615_v21  ;;  %v9697_v8 = vld [vmem:[%s14380_s0 + $0x878] sm:$0xf0]  ;;  %v9698_v21 = vld [vmem:[%s14380_s0 + $0x880] sm:$0xf0] }
 0x6e4   :  { %v6199_v14 = vpop.f32.mrf.mxu2 }
 0x6e5   :  { %v6200_v62 = vadd.f32 %v6199_v14, %v5991_v33  ;;  %v6408_v31 = vpop.f32.mrf.mxu3  ;;  %v8014_v33 = vld [vmem:[%s14380_s0 + $0x87c] sm:$0xf0] }
 0x6e6   :  { %v5992_v24 = vpop.f32.mrf.mxu1 }
 0x6e7   :  { %v6409_v63 = vadd.f32 %v6408_v31, %v6200_v62  ;;  %v5993_v13 = vadd.f32 %v5992_v24, %v12613_v28  ;;  %v9678_v28 = vld [vmem:[%s14380_s0 + $0x7e4] sm:$0xf]  ;;  %v8013_v24 = vor.u32 %v9697_v8, %v8012_v47 }
 0x6e8   :  { %v6619_v6 = vpop.f32.mrf.mxu0  ;;  %v7965_v15 = vor.u32 %v9678_v28, %v7962_v36 }
 0x6e9   :  { %v6618_v51 = vadd.f32 %v6617_v11, %v6409_v63  ;;  %v8020_v11 = vld [vmem:[%s14380_s0 + $0x850] sm:$0xf] }
 0x6eb   :  { %v6796_v26 = vmax.f32 %v6795_v35, %v6618_v51 }
 0x6ec   :  { %v6201_v17 = vpop.f32.mrf.mxu2 }
 0x6ed   :  { %v6202_v42 = vadd.f32 %v6201_v17, %v5993_v13  ;;  %v6410_v46 = vpop.f32.mrf.mxu3 }
 0x6ee   :  { %v5995_v48 = vpop.f32.mrf.mxu1 }
 0x6ef   :  { %v6411_v52 = vadd.f32 %v6410_v46, %v6202_v42  ;;  %v5996_v40 = vadd.f32 %v5995_v48, %v12622_v43  ;;  %v9690_v43 = vld [vmem:[%s14380_s0 + $0x844] sm:$0xf] }
 0x6f0   :  { %v6622_v27 = vpop.f32.mrf.mxu0  ;;  %v8009_v31 = vor.u32 %v9690_v43, %v8006_v10 }
 0x6f1   :  { %v6620_v34 = vadd.f32 %v6619_v6, %v6411_v52  ;;  %6034 = vmatmul.bf16.gmra.mxu1 %v7957_v0  ;;  %6243 = vmatmul.bf16.gmra.mxu2 %v7961_v19  ;;  %v8021_v6 = vor.u32 %v9698_v21, %v8020_v11  ;;  %v9710_v52 = vld [vmem:[%s14380_s0 + $0x8e0] sm:$0xf0] }
 0x6f2   :  { %6452 = vmatmul.bf16.gmra.mxu3 %v7965_v15  ;;  %v8058_v15 = vld [vmem:[%s14380_s0 + $0x8dc] sm:$0xf0] }
 0x6f3   :  { %6661 = vmatmul.bf16.gmra.mxu0 %v7969_v55  ;;  %v6797_v18 = vmax.f32 %v6796_v26, %v6620_v34  ;;  %v8064_v55 = vld [vmem:[%s14380_s0 + $0x8b0] sm:$0xf]  ;;  %v8072_v34 = vld [vmem:[%s14380_s0 + $0x8b8] sm:$0xf] }
 0x6f4   :  { %v6204_v29 = vpop.f32.mrf.mxu2 }
 0x6f5   :  { %v6205_v30 = vadd.f32 %v6204_v29, %v5996_v40  ;;  %v6413_v23 = vpop.f32.mrf.mxu3 }
 0x6f6   :  { %v5997_v22 = vpop.f32.mrf.mxu1 }
 0x6f7   :  { %v6414_v1 = vadd.f32 %v6413_v23, %v6205_v30  ;;  %v5998_v53 = vadd.f32 %v5997_v22, %v12643_v25  ;;  %v9691_v25 = vld [vmem:[%s14380_s0 + $0x84c] sm:$0xf] }
 0x6f8   :  { %v6624_v60 = vpop.f32.mrf.mxu0  ;;  %v8017_v13 = vor.u32 %v9691_v25, %v8014_v33 }
 0x6f9   :  { %v6623_v16 = vadd.f32 %v6622_v27, %v6414_v1  ;;  %v8066_v27 = vld [vmem:[%s14380_s0 + $0x8e4] sm:$0xf0] }
 0x6fb   :  { %v6798_v3 = vmax.f32 %v6797_v18, %v6623_v16  ;;  %v9711_v18 = vld [vmem:[%s14380_s0 + $0x8e8] sm:$0xf0] }
 0x6fc   :  { %v6206_v35 = vpop.f32.mrf.mxu2  ;;  %v8073_v43 = vor.u32 %v9711_v18, %v8072_v34 }
 0x6fd   :  { %v6207_v14 = vadd.f32 %v6206_v35, %v5998_v53  ;;  %v6415_v62 = vpop.f32.mrf.mxu3  ;;  %v8065_v53 = vor.u32 %v9710_v52, %v8064_v55 }
 0x6fe   :  { %v6000_v63 = vpop.f32.mrf.mxu1 }
 0x6ff   :  { %v6416_v51 = vadd.f32 %v6415_v62, %v6207_v14  ;;  %v6001_v9 = vadd.f32 %v6000_v63, %v12652_v57  ;;  %v9703_v57 = vld [vmem:[%s14380_s0 + $0x8ac] sm:$0xf] }
 0x700   :  { %v6627_v2 = vpop.f32.mrf.mxu0  ;;  %v8061_v1 = vor.u32 %v9703_v57, %v8058_v15 }
 0x701   :  { %v6625_v32 = vadd.f32 %v6624_v60, %v6416_v51  ;;  %6039 = vmatmul.bf16.gmra.mxu1 %v8009_v31  ;;  %6248 = vmatmul.bf16.gmra.mxu2 %v8013_v24  ;;  %v9723_v51 = vld [vmem:[%s14380_s0 + $0x948] sm:$0xf0] }
 0x702   :  { %6457 = vmatmul.bf16.gmra.mxu3 %v8017_v13 }
 0x703   :  { %6666 = vmatmul.bf16.gmra.mxu0 %v8021_v6  ;;  %v6799_v12 = vmax.f32 %v6798_v3, %v6625_v32  ;;  %v8116_v6 = vld [vmem:[%s14380_s0 + $0x918] sm:$0xf]  ;;  %v8124_v32 = vld [vmem:[%s14380_s0 + $0x920] sm:$0xf] }
 0x704   :  { %v6209_v28 = vpop.f32.mrf.mxu2 }
 0x705   :  { %v6800_v26 = vrot.slane %v6799_v12, 4  ;;  %v6210_v36 = vadd.f32 %v6209_v28, %v6001_v9  ;;  %v6418_v54 = vpop.f32.mrf.mxu3 }
 0x706   :  { %v6002_v5 = vpop.f32.mrf.mxu1 }
 0x707   :  { %v6801_v17 = vmax.f32 %v6799_v12, %v6800_v26  ;;  %v6419_v42 = vadd.f32 %v6418_v54, %v6210_v36  ;;  %v6003_v46 = vadd.f32 %v6002_v5, %v12673_v38  ;;  %v9704_v38 = vld [vmem:[%s14380_s0 + $0x8b4] sm:$0xf]  ;;  %v8117_v5 = vor.u32 %v9723_v51, %v8116_v6 }
 0x708   :  { %v6629_v0 = vpop.f32.mrf.mxu0  ;;  %v8069_v16 = vor.u32 %v9704_v38, %v8066_v27  ;;  %v9724_v12 = vld [vmem:[%s14380_s0 + $0x950] sm:$0xf0] }
 0x709   :  { %v6802_v19 = vrot.slane %v6801_v17, 2  ;;  %v6628_v48 = vadd.f32 %v6627_v2, %v6419_v42  ;;  %v8118_v2 = vld [vmem:[%s14380_s0 + $0x94c] sm:$0xf0] }
 0x70b   :  { %v6803_v40 = vmax.f32 %v6801_v17, %v6802_v19 }
 0x70c   :  { %v6211_v29 = vpop.f32.mrf.mxu2 }
 0x70d   :  { %v6804_v30 = vrot.slane %v6803_v40, 1  ;;  %v6212_v23 = vadd.f32 %v6211_v29, %v6003_v46  ;;  %v6420_v22 = vpop.f32.mrf.mxu3  ;;  %v8125_v46 = vor.u32 %v9724_v12, %v8124_v32  ;;  %v8220_v32 = vld [vmem:[%s14380_s0 + $0x9e8] sm:$0xf]  ;;  %v9749_v12 = vld [vmem:[%s14380_s0 + $0xa18] sm:$0xf0] }
 0x70e   :  { %v6005_v60 = vpop.f32.mrf.mxu1 }
 0x70f   :  { %v6805_v10 = vmax.f32 %v6803_v40, %v6804_v30  ;;  %v6421_v47 = vadd.f32 %v6420_v22, %v6212_v23  ;;  %v6006_v8 = vadd.f32 %v6005_v60, %v12682_v39  ;;  %v9716_v39 = vld [vmem:[%s14380_s0 + $0x914] sm:$0xf]  ;;  %v8162_v30 = vld [vmem:[%s14380_s0 + $0x9ac] sm:$0xf0]  ;;  %v8168_v23 = vld [vmem:[%s14380_s0 + $0x980] sm:$0xf] }
 0x710   :  { %v6632_v25 = vpop.f32.mrf.mxu0  ;;  %v9736_v22 = vld [vmem:[%s14380_s0 + $0x9b0] sm:$0xf0]  ;;  %v8176_v60 = vld [vmem:[%s14380_s0 + $0x988] sm:$0xf] }
 0x711   :  { %v13867_v3 = vsel %vm6909_vm1, %v6805_v10, %v13760_v56  ;;  %v6630_v33 = vadd.f32 %v6629_v0, %v6421_v47  ;;  %6044 = vmatmul.bf16.gmra.mxu1 %v8061_v1  ;;  %6253 = vmatmul.bf16.gmra.mxu2 %v8065_v53  ;;  %v8110_v56 = vld [vmem:[%s14380_s0 + $0x944] sm:$0xf0]  ;;  %v8170_v53 = vld [vmem:[%s14380_s0 + $0x9b4] sm:$0xf0] }
 0x712   :  { %6462 = vmatmul.bf16.gmra.mxu3 %v8069_v16  ;;  %v8113_v54 = vor.u32 %v9716_v39, %v8110_v56  ;;  %v9737_v16 = vld [vmem:[%s14380_s0 + $0x9b8] sm:$0xf0] }
 0x713   :  { %6671 = vmatmul.bf16.gmra.mxu0 %v8073_v43  ;;  %v6806_v11 = vmax.f32 %v6628_v48, %v6630_v33 }
 0x714   :  { %v6214_v21 = vpop.f32.mrf.mxu2 }
 0x715   :  { %v6215_v35 = vadd.f32 %v6214_v21, %v6006_v8  ;;  %v6423_v14 = vpop.f32.mrf.mxu3  ;;  %v8177_v21 = vor.u32 %v9737_v16, %v8176_v60  ;;  %v8266_v60 = vld [vmem:[%s14380_s0 + $0xa7c] sm:$0xf0]  ;;  %v8272_v16 = vld [vmem:[%s14380_s0 + $0xa50] sm:$0xf] }
 0x716   :  { %v6007_v62 = vpop.f32.mrf.mxu1 }
 0x717   :  { %v6424_v31 = vadd.f32 %v6423_v14, %v6215_v35  ;;  %v6008_v24 = vadd.f32 %v6007_v62, %v12703_v37  ;;  %v9717_v37 = vld [vmem:[%s14380_s0 + $0x91c] sm:$0xf] }
 0x718   :  { %v6634_v63 = vpop.f32.mrf.mxu0  ;;  %v8121_v42 = vor.u32 %v9717_v37, %v8118_v2  ;;  %v8214_v2 = vld [vmem:[%s14380_s0 + $0xa14] sm:$0xf0] }
 0x719   :  { %v6633_v13 = vadd.f32 %v6632_v25, %v6424_v31  ;;  %v8169_v25 = vor.u32 %v9736_v22, %v8168_v23 }
 0x71b   :  { %v6807_v9 = vmax.f32 %v6806_v11, %v6633_v13 }
 0x71c   :  { %v6216_v28 = vpop.f32.mrf.mxu2 }
 0x71d   :  { %v6217_v26 = vadd.f32 %v6216_v28, %v6008_v24  ;;  %v6425_v36 = vpop.f32.mrf.mxu3 }
 0x71e   :  { %v6010_v17 = vpop.f32.mrf.mxu1 }
 0x71f   :  { %v6426_v0 = vadd.f32 %v6425_v36, %v6217_v26  ;;  %v6011_v19 = vadd.f32 %v6010_v17, %v12712_v41  ;;  %v9729_v41 = vld [vmem:[%s14380_s0 + $0x97c] sm:$0xf]  ;;  %v8222_v26 = vld [vmem:[%s14380_s0 + $0xa1c] sm:$0xf0]  ;;  %v8228_v36 = vld [vmem:[%s14380_s0 + $0x9f0] sm:$0xf] }
 0x720   :  { %v6637_v48 = vpop.f32.mrf.mxu0  ;;  %v8165_v8 = vor.u32 %v9729_v41, %v8162_v30 }
 0x721   :  { %v6635_v57 = vadd.f32 %v6634_v63, %v6426_v0  ;;  %6049 = vmatmul.bf16.gmra.mxu1 %v8113_v54  ;;  %6258 = vmatmul.bf16.gmra.mxu2 %v8117_v5  ;;  %v9750_v54 = vld [vmem:[%s14380_s0 + $0xa20] sm:$0xf0]  ;;  %v8221_v0 = vor.u32 %v9749_v12, %v8220_v32 }
 0x722   :  { %6467 = vmatmul.bf16.gmra.mxu3 %v8121_v42 }
 0x723   :  { %6676 = vmatmul.bf16.gmra.mxu0 %v8125_v46  ;;  %v6808_v15 = vmax.f32 %v6807_v9, %v6635_v57  ;;  %v8229_v57 = vor.u32 %v9750_v54, %v8228_v36  ;;  %v8324_v54 = vld [vmem:[%s14380_s0 + $0xab8] sm:$0xf] }
 0x724   :  { %v6219_v55 = vpop.f32.mrf.mxu2 }
 0x725   :  { %v6220_v52 = vadd.f32 %v6219_v55, %v6011_v19  ;;  %v6428_v38 = vpop.f32.mrf.mxu3 }
 0x726   :  { %v6012_v40 = vpop.f32.mrf.mxu1 }
 0x727   :  { %v6429_v27 = vadd.f32 %v6428_v38, %v6220_v52  ;;  %v6013_v34 = vadd.f32 %v6012_v40, %v12733_v20  ;;  %v9730_v20 = vld [vmem:[%s14380_s0 + $0x984] sm:$0xf] }
 0x728   :  { %v6639_v18 = vpop.f32.mrf.mxu0  ;;  %v8173_v11 = vor.u32 %v9730_v20, %v8170_v53 }
 0x729   :  { %v6638_v29 = vadd.f32 %v6637_v48, %v6429_v27 }
 0x72b   :  { %v6809_v1 = vmax.f32 %v6808_v15, %v6638_v29 }
 0x72c   :  { %v6221_v43 = vpop.f32.mrf.mxu2 }
 0x72d   :  { %v6222_v10 = vadd.f32 %v6221_v43, %v6013_v34  ;;  %v6430_v47 = vpop.f32.mrf.mxu3  ;;  %v9762_v43 = vld [vmem:[%s14380_s0 + $0xa80] sm:$0xf0] }
 0x72e   :  { %v6015_v33 = vpop.f32.mrf.mxu1 }
 0x72f   :  { %v6431_v35 = vadd.f32 %v6430_v47, %v6222_v10  ;;  %v6016_v14 = vadd.f32 %v6015_v33, %v12754_v7  ;;  %v9742_v7 = vld [vmem:[%s14380_s0 + $0x9e4] sm:$0xf]  ;;  %v8274_v47 = vld [vmem:[%s14380_s0 + $0xa84] sm:$0xf0] }
 0x730   :  { %v6642_v62 = vpop.f32.mrf.mxu0  ;;  %v8217_v46 = vor.u32 %v9742_v7, %v8214_v2 }
 0x731   :  { %v6640_v31 = vadd.f32 %v6639_v18, %v6431_v35  ;;  %6054 = vmatmul.bf16.gmra.mxu1 %v8165_v8  ;;  %6263 = vmatmul.bf16.gmra.mxu2 %v8169_v25  ;;  %v8280_v8 = vld [vmem:[%s14380_s0 + $0xa58] sm:$0xf]  ;;  %v9763_v25 = vld [vmem:[%s14380_s0 + $0xa88] sm:$0xf0] }
 0x732   :  { %6472 = vmatmul.bf16.gmra.mxu3 %v8173_v11 }
 0x733   :  { %6681 = vmatmul.bf16.gmra.mxu0 %v8177_v21  ;;  %v6810_v24 = vmax.f32 %v6809_v1, %v6640_v31 }
 0x734   :  { %v6224_v63 = vpop.f32.mrf.mxu2 }
 0x735   :  { %v6225_v13 = vadd.f32 %v6224_v63, %v6016_v14  ;;  %v6433_v39 = vpop.f32.mrf.mxu3  ;;  %v8281_v63 = vor.u32 %v9763_v25, %v8280_v8  ;;  %v9788_v8 = vld [vmem:[%s14380_s0 + $0xb50] sm:$0xf0]  ;;  %v9782_v25 = vld [vmem:[%s14380_s0 + $0xb24] sm:$0xf] }
 0x736   :  { %v6017_v56 = vpop.f32.mrf.mxu1 }
 0x737   :  { %v6434_v6 = vadd.f32 %v6433_v39, %v6225_v13  ;;  %v6018_v51 = vadd.f32 %v6017_v56, %v12775_v50  ;;  %v9743_v50 = vld [vmem:[%s14380_s0 + $0x9ec] sm:$0xf] }
 0x738   :  { %v6644_v37 = vpop.f32.mrf.mxu0  ;;  %v8225_v48 = vor.u32 %v9743_v50, %v8222_v26 }
 0x739   :  { %v6643_v9 = vadd.f32 %v6642_v62, %v6434_v6  ;;  %v8273_v62 = vor.u32 %v9762_v43, %v8272_v16 }
 0x73b   :  { %v6811_v28 = vmax.f32 %v6810_v24, %v6643_v9 }
 0x73c   :  { %v6226_v5 = vpop.f32.mrf.mxu2 }
 0x73d   :  { %v6227_v17 = vadd.f32 %v6226_v5, %v6018_v51  ;;  %v6435_v42 = vpop.f32.mrf.mxu3  ;;  %v9775_v5 = vld [vmem:[%s14380_s0 + $0xae8] sm:$0xf0] }
 0x73e   :  { %v6020_v19 = vpop.f32.mrf.mxu1 }
 0x73f   :  { %v6436_v15 = vadd.f32 %v6435_v42, %v6227_v17  ;;  %v6021_v55 = vadd.f32 %v6020_v19, %v12784_v45  ;;  %v9755_v45 = vld [vmem:[%s14380_s0 + $0xa4c] sm:$0xf]  ;;  %v8326_v42 = vld [vmem:[%s14380_s0 + $0xaec] sm:$0xf0] }
 0x740   :  { %v6647_v52 = vpop.f32.mrf.mxu0  ;;  %v8269_v14 = vor.u32 %v9755_v45, %v8266_v60  ;;  %v14584_v45 = vld [vmem:[#allocation41_spill] sm:$0xff] }
 0x741   :  { %v6645_v38 = vadd.f32 %v6644_v37, %v6436_v15  ;;  %6059 = vmatmul.bf16.gmra.mxu1 %v8217_v46  ;;  %6268 = vmatmul.bf16.gmra.mxu2 %v8221_v0  ;;  %v8332_v46 = vld [vmem:[%s14380_s0 + $0xac0] sm:$0xf]  ;;  %v9776_v0 = vld [vmem:[%s14380_s0 + $0xaf0] sm:$0xf0] }
 0x742   :  { %6477 = vmatmul.bf16.gmra.mxu3 %v8225_v48 }
 0x743   :  { %6686 = vmatmul.bf16.gmra.mxu0 %v8229_v57  ;;  %v6812_v40 = vmax.f32 %v6811_v28, %v6645_v38 }
 0x744   :  { %v6229_v27 = vpop.f32.mrf.mxu2 }
 0x745   :  { %v6813_v34 = vrot.slane %v6812_v40, 4  ;;  %v6230_v18 = vadd.f32 %v6229_v27, %v6021_v55  ;;  %v6438_v29 = vpop.f32.mrf.mxu3  ;;  %v8325_v55 = vor.u32 %v9775_v5, %v8324_v54 }
 0x746   :  { %v6022_v41 = vpop.f32.mrf.mxu1 }
 0x747   :  { %v6814_v30 = vmax.f32 %v6812_v40, %v6813_v34  ;;  %v6439_v23 = vadd.f32 %v6438_v29, %v6230_v18  ;;  %v6023_v22 = vadd.f32 %v6022_v41, %v12805_v58  ;;  %v9756_v58 = vld [vmem:[%s14380_s0 + $0xa54] sm:$0xf]  ;;  %v8333_v40 = vor.u32 %v9776_v0, %v8332_v46  ;;  %v9801_v46 = vld [vmem:[%s14380_s0 + $0xbb8] sm:$0xf0]  ;;  %v9795_v0 = vld [vmem:[%s14380_s0 + $0xb8c] sm:$0xf] }
 0x748   :  { %v6649_v20 = vpop.f32.mrf.mxu0  ;;  %v8277_v24 = vor.u32 %v9756_v58, %v8274_v47  ;;  %v14583_v34 = vld [vmem:[#allocation40_spill] sm:$0xff]  ;;  %v9781_v58 = vld [vmem:[%s14380_s0 + $0xb1c] sm:$0xf]  ;;  %v8376_v47 = vld [vmem:[%s14380_s0 + $0xb20] sm:$0xf] }
 0x749   :  { %v6815_v1 = vrot.slane %v6814_v30, 2  ;;  %v6648_v53 = vadd.f32 %v6647_v52, %v6439_v23 }
 0x74b   :  { %v6816_v10 = vmax.f32 %v6814_v30, %v6815_v1 }
 0x74c   :  { %v6231_v33 = vpop.f32.mrf.mxu2 }
 0x74d   :  { %v6817_v11 = vrot.slane %v6816_v10, 1  ;;  %v6232_v21 = vadd.f32 %v6231_v33, %v6023_v22  ;;  %v6440_v35 = vpop.f32.mrf.mxu3 }
 0x74e   :  { %v6025_v31 = vpop.f32.mrf.mxu1 }
 0x74f   :  { %v6818_v13 = vmax.f32 %v6816_v10, %v6817_v11  ;;  %v6441_v39 = vadd.f32 %v6440_v35, %v6232_v21  ;;  %v6026_v56 = vadd.f32 %v6025_v31, %v12814_v59  ;;  %v9768_v59 = vld [vmem:[%s14380_s0 + $0xab4] sm:$0xf]  ;;  %v8370_v10 = vld [vmem:[%s14380_s0 + $0xb4c] sm:$0xf0]  ;;  %v8378_v11 = vld [vmem:[%s14380_s0 + $0xb54] sm:$0xf0] }
 0x750   :  { %v6652_v6 = vpop.f32.mrf.mxu0  ;;  %v8384_v21 = vld [vmem:[%s14380_s0 + $0xb28] sm:$0xf]  ;;  %v9789_v35 = vld [vmem:[%s14380_s0 + $0xb58] sm:$0xf0] }
 0x751   :  { %v13974_v51 = vsel %vm6911_vm2, %v6818_v13, %v13867_v3  ;;  %v6650_v37 = vadd.f32 %v6649_v20, %v6441_v39  ;;  %6064 = vmatmul.bf16.gmra.mxu1 %v8269_v14  ;;  %6273 = vmatmul.bf16.gmra.mxu2 %v8273_v62  ;;  %v8318_v3 = vld [vmem:[%s14380_s0 + $0xae4] sm:$0xf0]  ;;  %v8381_v39 = vor.u32 %v9782_v25, %v8378_v11 }
 0x752   :  { %6482 = vmatmul.bf16.gmra.mxu3 %v8277_v24  ;;  %v8321_v15 = vor.u32 %v9768_v59, %v8318_v3  ;;  %v8373_v24 = vor.u32 %v9781_v58, %v8370_v10  ;;  %v14586_v59 = vld [vmem:[#allocation43_spill] sm:$0xff] }
 0x753   :  { %6691 = vmatmul.bf16.gmra.mxu0 %v8281_v63  ;;  %v6819_v9 = vmax.f32 %v6648_v53, %v6650_v37  ;;  %v8377_v63 = vor.u32 %v9788_v8, %v8376_v47  ;;  %v14585_v37 = vld [vmem:[#allocation42_spill] sm:$0xff]  ;;  %v14588_v47 = vld [vmem:[#allocation5_spill] sm:$0xff] }
 0x754   :  { %v6234_v7 = vpop.f32.mrf.mxu2 }
 0x755   :  { %v6235_v2 = vadd.f32 %v6234_v7, %v6026_v56  ;;  %v6443_v32 = vpop.f32.mrf.mxu3  ;;  %v8385_v56 = vor.u32 %v9789_v35, %v8384_v21  ;;  %v9807_v21 = vld [vmem:[%s14380_s0 + $0xbec] sm:$0xf]  ;;  %v8474_v35 = vld [vmem:[%s14380_s0 + $0xc1c] sm:$0xf0] }
 0x756   :  { %v6027_v12 = vpop.f32.mrf.mxu1 }
 0x757   :  { %v6444_v50 = vadd.f32 %v6443_v32, %v6235_v2  ;;  %v6028_v28 = vadd.f32 %v6027_v12, %v12835_v49  ;;  %v9769_v49 = vld [vmem:[%s14380_s0 + $0xabc] sm:$0xf] }
 0x758   :  { %v6654_v26 = vpop.f32.mrf.mxu0  ;;  %v8329_v38 = vor.u32 %v9769_v49, %v8326_v42  ;;  %v9794_v49 = vld [vmem:[%s14380_s0 + $0xb84] sm:$0xf]  ;;  %v8428_v42 = vld [vmem:[%s14380_s0 + $0xb88] sm:$0xf] }
 0x759   :  { %v6653_v36 = vadd.f32 %v6652_v6, %v6444_v50 }
 0x75b   :  { %v6820_v17 = vmax.f32 %v6819_v9, %v6653_v36 }
 0x75c   :  { %v6236_v19 = vpop.f32.mrf.mxu2 }
 0x75d   :  { %v6237_v48 = vadd.f32 %v6236_v19, %v6028_v28  ;;  %v6445_v57 = vpop.f32.mrf.mxu3 }
 0x75e   :  { %v6030_v52 = vpop.f32.mrf.mxu1 }
 0x75f   :  { %v6446_v27 = vadd.f32 %v6445_v57, %v6237_v48  ;;  %v6031_v18 = vadd.f32 %v6030_v52, %v14583_v34  ;;  %v8430_v48 = vld [vmem:[%s14380_s0 + $0xbbc] sm:$0xf0]  ;;  %v8436_v57 = vld [vmem:[%s14380_s0 + $0xb90] sm:$0xf] }
 0x760   :  { %v6657_v29 = vpop.f32.mrf.mxu0 }
 0x761   :  { %v6655_v41 = vadd.f32 %v6654_v26, %v6446_v27  ;;  %6069 = vmatmul.bf16.gmra.mxu1 %v8321_v15  ;;  %6278 = vmatmul.bf16.gmra.mxu2 %v8325_v55  ;;  %v9802_v15 = vld [vmem:[%s14380_s0 + $0xbc0] sm:$0xf0]  ;;  %v8429_v27 = vor.u32 %v9801_v46, %v8428_v42 }
 0x762   :  { %6487 = vmatmul.bf16.gmra.mxu3 %v8329_v38 }
 0x763   :  { %6696 = vmatmul.bf16.gmra.mxu0 %v8333_v40  ;;  %v6821_v30 = vmax.f32 %v6820_v17, %v6655_v41  ;;  %v8422_v17 = vld [vmem:[%s14380_s0 + $0xbb4] sm:$0xf0] }
 0x764   :  { %v6239_v23 = vpop.f32.mrf.mxu2  ;;  %v8425_v40 = vor.u32 %v9794_v49, %v8422_v17 }
 0x765   :  { %v6240_v22 = vadd.f32 %v6239_v23, %v6031_v18  ;;  %v6448_v20 = vpop.f32.mrf.mxu3  ;;  %v8433_v18 = vor.u32 %v9795_v0, %v8430_v48  ;;  %v14590_v48 = vld [vmem:[#allocation9_spill] sm:$0xff] }
 0x766   :  { %v6032_v1 = vpop.f32.mrf.mxu1 }
 0x767   :  { %v6449_v53 = vadd.f32 %v6448_v20, %v6240_v22  ;;  %v6033_v60 = vadd.f32 %v6032_v1, %v14584_v45 }
 0x768   :  { %v6659_v16 = vpop.f32.mrf.mxu0 }
 0x769   :  { %v6658_v43 = vadd.f32 %v6657_v29, %v6449_v53  ;;  %v8437_v29 = vor.u32 %v9802_v15, %v8436_v57 }
 0x76b   :  { %v6822_v33 = vmax.f32 %v6821_v30, %v6658_v43  ;;  %v14587_v30 = vld [vmem:[#allocation3_spill] sm:$0xff] }
 0x76c   :  { %v6241_v14 = vpop.f32.mrf.mxu2 }
 0x76d   :  { %v6242_v62 = vadd.f32 %v6241_v14, %v6033_v60  ;;  %v6450_v31 = vpop.f32.mrf.mxu3  ;;  %v8480_v14 = vld [vmem:[%s14380_s0 + $0xbf0] sm:$0xf] }
 0x76e   :  { %v6035_v13 = vpop.f32.mrf.mxu1 }
 0x76f   :  { %v6451_v6 = vadd.f32 %v6450_v31, %v6242_v62  ;;  %v6036_v9 = vadd.f32 %v6035_v13, %v14585_v37  ;;  %v9814_v62 = vld [vmem:[%s14380_s0 + $0xc20] sm:$0xf0]  ;;  %v9808_v31 = vld [vmem:[%s14380_s0 + $0xbf4] sm:$0xf]  ;;  %v8488_v13 = vld [vmem:[%s14380_s0 + $0xbf8] sm:$0xf] }
 0x770   :  { %v6662_v7 = vpop.f32.mrf.mxu0 }
 0x771   :  { %v6660_v2 = vadd.f32 %v6659_v16, %v6451_v6  ;;  %6074 = vmatmul.bf16.gmra.mxu1 %v8373_v24  ;;  %6283 = vmatmul.bf16.gmra.mxu2 %v8377_v63  ;;  %v8482_v63 = vld [vmem:[%s14380_s0 + $0xc24] sm:$0xf0] }
 0x772   :  { %6492 = vmatmul.bf16.gmra.mxu3 %v8381_v39  ;;  %v9815_v39 = vld [vmem:[%s14380_s0 + $0xc28] sm:$0xf0] }
 0x773   :  { %6701 = vmatmul.bf16.gmra.mxu0 %v8385_v56  ;;  %v6823_v32 = vmax.f32 %v6822_v33, %v6660_v2  ;;  %v8481_v2 = vor.u32 %v9814_v62, %v8480_v14  ;;  %v14592_v14 = vld [vmem:[#allocation13_spill] sm:$0xff] }
 0x774   :  { %v6244_v12 = vpop.f32.mrf.mxu2 }
 0x775   :  { %v6245_v50 = vadd.f32 %v6244_v12, %v6036_v9  ;;  %v6453_v28 = vpop.f32.mrf.mxu3  ;;  %v8485_v12 = vor.u32 %v9808_v31, %v8482_v63  ;;  %v9833_v63 = vld [vmem:[%s14380_s0 + $0xcbc] sm:$0xf] }
 0x776   :  { %v6037_v26 = vpop.f32.mrf.mxu1 }
 0x777   :  { %v6454_v36 = vadd.f32 %v6453_v28, %v6245_v50  ;;  %v6038_v3 = vadd.f32 %v6037_v26, %v14586_v59  ;;  %v8489_v50 = vor.u32 %v9815_v39, %v8488_v13  ;;  %v8578_v13 = vld [vmem:[%s14380_s0 + $0xcec] sm:$0xf0]  ;;  %v8584_v39 = vld [vmem:[%s14380_s0 + $0xcc0] sm:$0xf] }
 0x778   :  { %v6664_v54 = vpop.f32.mrf.mxu0 }
 0x779   :  { %v6663_v5 = vadd.f32 %v6662_v7, %v6454_v36  ;;  %v8477_v7 = vor.u32 %v9807_v21, %v8474_v35  ;;  %v14589_v36 = vld [vmem:[#allocation7_spill] sm:$0xff] }
 0x77b   :  { %v6824_v19 = vmax.f32 %v6823_v32, %v6663_v5 }
 0x77c   :  { %v6246_v55 = vpop.f32.mrf.mxu2 }
 0x77d   :  { %v6247_v52 = vadd.f32 %v6246_v55, %v6038_v3  ;;  %v6455_v38 = vpop.f32.mrf.mxu3 }
 0x77e   :  { %v6040_v34 = vpop.f32.mrf.mxu1 }
 0x77f   :  { %v6456_v41 = vadd.f32 %v6455_v38, %v6247_v52  ;;  %v6041_v23 = vadd.f32 %v6040_v34, %v14587_v30  ;;  %v8526_v52 = vld [vmem:[%s14380_s0 + $0xc84] sm:$0xf0]  ;;  %v8532_v38 = vld [vmem:[%s14380_s0 + $0xc58] sm:$0xf] }
 0x780   :  { %v6667_v22 = vpop.f32.mrf.mxu0 }
 0x781   :  { %v6665_v20 = vadd.f32 %v6664_v54, %v6456_v41  ;;  %6079 = vmatmul.bf16.gmra.mxu1 %v8425_v40  ;;  %6288 = vmatmul.bf16.gmra.mxu2 %v8429_v27  ;;  %v9827_v40 = vld [vmem:[%s14380_s0 + $0xc88] sm:$0xf0]  ;;  %v9821_v27 = vld [vmem:[%s14380_s0 + $0xc5c] sm:$0xf]  ;;  %v9828_v41 = vld [vmem:[%s14380_s0 + $0xc90] sm:$0xf0] }
 0x782   :  { %6497 = vmatmul.bf16.gmra.mxu3 %v8433_v18  ;;  %v8534_v18 = vld [vmem:[%s14380_s0 + $0xc8c] sm:$0xf0] }
 0x783   :  { %6706 = vmatmul.bf16.gmra.mxu0 %v8437_v29  ;;  %v6825_v1 = vmax.f32 %v6824_v19, %v6665_v20  ;;  %v8540_v29 = vld [vmem:[%s14380_s0 + $0xc60] sm:$0xf] }
 0x784   :  { %v6249_v53 = vpop.f32.mrf.mxu2 }
 0x785   :  { %v6826_v45 = vrot.slane %v6825_v1, 4  ;;  %v6250_v60 = vadd.f32 %v6249_v53, %v6041_v23  ;;  %v6458_v16 = vpop.f32.mrf.mxu3 }
 0x786   :  { %v6042_v43 = vpop.f32.mrf.mxu1 }
 0x787   :  { %v6827_v58 = vmax.f32 %v6825_v1, %v6826_v45  ;;  %v6459_v10 = vadd.f32 %v6458_v16, %v6250_v60  ;;  %v6043_v8 = vadd.f32 %v6042_v43, %v14588_v47  ;;  %v8533_v1 = vor.u32 %v9827_v40, %v8532_v38  ;;  %v14591_v43 = vld [vmem:[#allocation11_spill] sm:$0xff] }
 0x788   :  { %v6669_v25 = vpop.f32.mrf.mxu0  ;;  %v8537_v45 = vor.u32 %v9821_v27, %v8534_v18  ;;  %v8541_v60 = vor.u32 %v9828_v41, %v8540_v29  ;;  %v9846_v27 = vld [vmem:[%s14380_s0 + $0xd24] sm:$0xf]  ;;  %v8636_v18 = vld [vmem:[%s14380_s0 + $0xd28] sm:$0xf]  ;;  %v9853_v29 = vld [vmem:[%s14380_s0 + $0xd58] sm:$0xf0] }
 0x789   :  { %v6828_v33 = vrot.slane %v6827_v58, 2  ;;  %v6668_v11 = vadd.f32 %v6667_v22, %v6459_v10  ;;  %v9847_v41 = vld [vmem:[%s14380_s0 + $0xd2c] sm:$0xf] }
 0x78b   :  { %v6829_v24 = vmax.f32 %v6827_v58, %v6828_v33 }
 0x78c   :  { %v6251_v56 = vpop.f32.mrf.mxu2 }
 0x78d   :  { %v6830_v6 = vrot.slane %v6829_v24, 1  ;;  %v6252_v37 = vadd.f32 %v6251_v56, %v6043_v8  ;;  %v6460_v9 = vpop.f32.mrf.mxu3  ;;  %v9840_v56 = vld [vmem:[%s14380_s0 + $0xcf0] sm:$0xf0] }
 0x78e   :  { %v6045_v32 = vpop.f32.mrf.mxu1 }
 0x78f   :  { %v6831_v28 = vmax.f32 %v6829_v24, %v6830_v6  ;;  %v6461_v26 = vadd.f32 %v6460_v9, %v6252_v37  ;;  %v6046_v59 = vadd.f32 %v6045_v32, %v14589_v36  ;;  %v9834_v6 = vld [vmem:[%s14380_s0 + $0xcc4] sm:$0xf]  ;;  %v8586_v9 = vld [vmem:[%s14380_s0 + $0xcf4] sm:$0xf0] }
 0x790   :  { %v6672_v3 = vpop.f32.mrf.mxu0 }
 0x791   :  { %v14081_v54 = vsel %vm6913_vm3, %v6831_v28, %v13974_v51  ;;  %v6670_v5 = vadd.f32 %v6669_v25, %v6461_v26  ;;  %6084 = vmatmul.bf16.gmra.mxu1 %v8477_v7  ;;  %6293 = vmatmul.bf16.gmra.mxu2 %v8481_v2  ;;  %v9820_v51 = vld [vmem:[%s14380_s0 + $0xc54] sm:$0xf]  ;;  %v8592_v7 = vld [vmem:[%s14380_s0 + $0xcc8] sm:$0xf]  ;;  %v9841_v2 = vld [vmem:[%s14380_s0 + $0xcf8] sm:$0xf0]  ;;  %v8581_v28 = vor.u32 %v9833_v63, %v8578_v13 }
 0x792   :  { %6502 = vmatmul.bf16.gmra.mxu3 %v8485_v12  ;;  %v8529_v20 = vor.u32 %v9820_v51, %v8526_v52  ;;  %v8585_v26 = vor.u32 %v9840_v56, %v8584_v39  ;;  %v14594_v51 = vld [vmem:[#allocation17_spill] sm:$0xff] }
 0x793   :  { %6711 = vmatmul.bf16.gmra.mxu0 %v8489_v50  ;;  %v6832_v49 = vmax.f32 %v6668_v11, %v6670_v5  ;;  %v14596_v39 = vld [vmem:[#allocation21_spill] sm:$0xff] }
 0x794   :  { %v6254_v17 = vpop.f32.mrf.mxu2 }
 0x795   :  { %v6255_v42 = vadd.f32 %v6254_v17, %v6046_v59  ;;  %v6463_v46 = vpop.f32.mrf.mxu3  ;;  %v8589_v59 = vor.u32 %v9834_v6, %v8586_v9 }
 0x796   :  { %v6047_v0 = vpop.f32.mrf.mxu1 }
 0x797   :  { %v6464_v19 = vadd.f32 %v6463_v46, %v6255_v42  ;;  %v6048_v57 = vadd.f32 %v6047_v0, %v14590_v48 }
 0x798   :  { %v6674_v15 = vpop.f32.mrf.mxu0 }
 0x799   :  { %v6673_v55 = vadd.f32 %v6672_v3, %v6464_v19  ;;  %v8593_v3 = vor.u32 %v9841_v2, %v8592_v7  ;;  %v9859_v7 = vld [vmem:[%s14380_s0 + $0xd8c] sm:$0xf]  ;;  %v8682_v2 = vld [vmem:[%s14380_s0 + $0xdbc] sm:$0xf0] }
 0x79b   :  { %v6833_v34 = vmax.f32 %v6832_v49, %v6673_v55  ;;  %v14593_v49 = vld [vmem:[#allocation15_spill] sm:$0xff] }
 0x79c   :  { %v6256_v30 = vpop.f32.mrf.mxu2 }
 0x79d   :  { %v6257_v23 = vadd.f32 %v6256_v30, %v6048_v57  ;;  %v6465_v22 = vpop.f32.mrf.mxu3 }
 0x79e   :  { %v6050_v53 = vpop.f32.mrf.mxu1 }
 0x79f   :  { %v6466_v16 = vadd.f32 %v6465_v22, %v6257_v23  ;;  %v6051_v58 = vadd.f32 %v6050_v53, %v14591_v43  ;;  %v8638_v23 = vld [vmem:[%s14380_s0 + $0xd5c] sm:$0xf0]  ;;  %v8644_v22 = vld [vmem:[%s14380_s0 + $0xd30] sm:$0xf] }
 0x7a0   :  { %v6677_v10 = vpop.f32.mrf.mxu0 }
 0x7a1   :  { %v6675_v47 = vadd.f32 %v6674_v15, %v6466_v16  ;;  %6089 = vmatmul.bf16.gmra.mxu1 %v8529_v20  ;;  %6298 = vmatmul.bf16.gmra.mxu2 %v8533_v1  ;;  %v9854_v20 = vld [vmem:[%s14380_s0 + $0xd60] sm:$0xf0]  ;;  %v8637_v16 = vor.u32 %v9853_v29, %v8636_v18 }
 0x7a2   :  { %6507 = vmatmul.bf16.gmra.mxu3 %v8537_v45 }
 0x7a3   :  { %6716 = vmatmul.bf16.gmra.mxu0 %v8541_v60  ;;  %v6834_v8 = vmax.f32 %v6833_v34, %v6675_v47  ;;  %v8630_v34 = vld [vmem:[%s14380_s0 + $0xd54] sm:$0xf0] }
 0x7a4   :  { %v6259_v25 = vpop.f32.mrf.mxu2  ;;  %v8633_v60 = vor.u32 %v9846_v27, %v8630_v34 }
 0x7a5   :  { %v6260_v33 = vadd.f32 %v6259_v25, %v6051_v58  ;;  %v6468_v11 = vpop.f32.mrf.mxu3  ;;  %v8641_v58 = vor.u32 %v9847_v41, %v8638_v23  ;;  %v14598_v23 = vld [vmem:[#allocation25_spill] sm:$0xff] }
 0x7a6   :  { %v6052_v21 = vpop.f32.mrf.mxu1 }
 0x7a7   :  { %v6469_v35 = vadd.f32 %v6468_v11, %v6260_v33  ;;  %v6053_v62 = vadd.f32 %v6052_v21, %v14592_v14 }
 0x7a8   :  { %v6679_v31 = vpop.f32.mrf.mxu0 }
 0x7a9   :  { %v6678_v24 = vadd.f32 %v6677_v10, %v6469_v35  ;;  %v8645_v10 = vor.u32 %v9854_v20, %v8644_v22 }
 0x7ab   :  { %v6835_v37 = vmax.f32 %v6834_v8, %v6678_v24  ;;  %v14595_v8 = vld [vmem:[#allocation19_spill] sm:$0xff] }
 0x7ac   :  { %v6261_v32 = vpop.f32.mrf.mxu2 }
 0x7ad   :  { %v6262_v12 = vadd.f32 %v6261_v32, %v6053_v62  ;;  %v6470_v50 = vpop.f32.mrf.mxu3  ;;  %v8688_v32 = vld [vmem:[%s14380_s0 + $0xd90] sm:$0xf] }
 0x7ae   :  { %v6055_v36 = vpop.f32.mrf.mxu1 }
 0x7af   :  { %v6471_v5 = vadd.f32 %v6470_v50, %v6262_v12  ;;  %v6056_v17 = vadd.f32 %v6055_v36, %v14593_v49  ;;  %v9866_v12 = vld [vmem:[%s14380_s0 + $0xdc0] sm:$0xf0]  ;;  %v9860_v50 = vld [vmem:[%s14380_s0 + $0xd94] sm:$0xf]  ;;  %v8696_v36 = vld [vmem:[%s14380_s0 + $0xd98] sm:$0xf] }
 0x7b0   :  { %v6682_v42 = vpop.f32.mrf.mxu0 }
 0x7b1   :  { %v6680_v46 = vadd.f32 %v6679_v31, %v6471_v5  ;;  %6094 = vmatmul.bf16.gmra.mxu1 %v8581_v28  ;;  %6303 = vmatmul.bf16.gmra.mxu2 %v8585_v26  ;;  %v8690_v26 = vld [vmem:[%s14380_s0 + $0xdc4] sm:$0xf0] }
 0x7b2   :  { %6512 = vmatmul.bf16.gmra.mxu3 %v8589_v59  ;;  %v9867_v59 = vld [vmem:[%s14380_s0 + $0xdc8] sm:$0xf0] }
 0x7b3   :  { %6721 = vmatmul.bf16.gmra.mxu0 %v8593_v3  ;;  %v6836_v0 = vmax.f32 %v6835_v37, %v6680_v46  ;;  %v8689_v46 = vor.u32 %v9866_v12, %v8688_v32  ;;  %v14600_v32 = vld [vmem:[#allocation29_spill] sm:$0xff] }
 0x7b4   :  { %v6264_v19 = vpop.f32.mrf.mxu2 }
 0x7b5   :  { %v6265_v48 = vadd.f32 %v6264_v19, %v6056_v17  ;;  %v6473_v57 = vpop.f32.mrf.mxu3  ;;  %v8693_v19 = vor.u32 %v9860_v50, %v8690_v26  ;;  %v9885_v26 = vld [vmem:[%s14380_s0 + $0xe5c] sm:$0xf] }
 0x7b6   :  { %v6057_v15 = vpop.f32.mrf.mxu1 }
 0x7b7   :  { %v6474_v55 = vadd.f32 %v6473_v57, %v6265_v48  ;;  %v6058_v52 = vadd.f32 %v6057_v15, %v14594_v51  ;;  %v8697_v48 = vor.u32 %v9867_v59, %v8696_v36  ;;  %v8786_v36 = vld [vmem:[%s14380_s0 + $0xe8c] sm:$0xf0]  ;;  %v8792_v59 = vld [vmem:[%s14380_s0 + $0xe60] sm:$0xf] }
 0x7b8   :  { %v6684_v38 = vpop.f32.mrf.mxu0 }
 0x7b9   :  { %v6683_v40 = vadd.f32 %v6682_v42, %v6474_v55  ;;  %v8685_v42 = vor.u32 %v9859_v7, %v8682_v2  ;;  %v14597_v55 = vld [vmem:[#allocation23_spill] sm:$0xff] }
 0x7bb   :  { %v6837_v30 = vmax.f32 %v6836_v0, %v6683_v40 }
 0x7bc   :  { %v6266_v1 = vpop.f32.mrf.mxu2 }
 0x7bd   :  { %v6267_v53 = vadd.f32 %v6266_v1, %v6058_v52  ;;  %v6475_v45 = vpop.f32.mrf.mxu3 }
 0x7be   :  { %v6060_v43 = vpop.f32.mrf.mxu1 }
 0x7bf   :  { %v6476_v47 = vadd.f32 %v6475_v45, %v6267_v53  ;;  %v6061_v25 = vadd.f32 %v6060_v43, %v14595_v8  ;;  %v8734_v53 = vld [vmem:[%s14380_s0 + $0xe24] sm:$0xf0]  ;;  %v8740_v45 = vld [vmem:[%s14380_s0 + $0xdf8] sm:$0xf] }
 0x7c0   :  { %v6687_v33 = vpop.f32.mrf.mxu0 }
 0x7c1   :  { %v6685_v11 = vadd.f32 %v6684_v38, %v6476_v47  ;;  %6099 = vmatmul.bf16.gmra.mxu1 %v8633_v60  ;;  %6308 = vmatmul.bf16.gmra.mxu2 %v8637_v16  ;;  %v9879_v60 = vld [vmem:[%s14380_s0 + $0xe28] sm:$0xf0]  ;;  %v9873_v16 = vld [vmem:[%s14380_s0 + $0xdfc] sm:$0xf]  ;;  %v9880_v47 = vld [vmem:[%s14380_s0 + $0xe30] sm:$0xf0] }
 0x7c2   :  { %6517 = vmatmul.bf16.gmra.mxu3 %v8641_v58  ;;  %v8742_v58 = vld [vmem:[%s14380_s0 + $0xe2c] sm:$0xf0] }
 0x7c3   :  { %6726 = vmatmul.bf16.gmra.mxu0 %v8645_v10  ;;  %v6838_v21 = vmax.f32 %v6837_v30, %v6685_v11  ;;  %v8748_v10 = vld [vmem:[%s14380_s0 + $0xe00] sm:$0xf] }
 0x7c4   :  { %v6269_v35 = vpop.f32.mrf.mxu2 }
 0x7c5   :  { %v6839_v14 = vrot.slane %v6838_v21, 4  ;;  %v6270_v62 = vadd.f32 %v6269_v35, %v6061_v25  ;;  %v6478_v31 = vpop.f32.mrf.mxu3 }
 0x7c6   :  { %v6062_v24 = vpop.f32.mrf.mxu1 }
 0x7c7   :  { %v6840_v63 = vmax.f32 %v6838_v21, %v6839_v14  ;;  %v6479_v13 = vadd.f32 %v6478_v31, %v6270_v62  ;;  %v6063_v56 = vadd.f32 %v6062_v24, %v14596_v39  ;;  %v8741_v21 = vor.u32 %v9879_v60, %v8740_v45  ;;  %v14599_v24 = vld [vmem:[#allocation27_spill] sm:$0xff]  ;;  %v9898_v45 = vld [vmem:[%s14380_s0 + $0xec4] sm:$0xf]  ;;  %v8838_v60 = vld [vmem:[%s14380_s0 + $0xef4] sm:$0xf0] }
 0x7c8   :  { %v6689_v6 = vpop.f32.mrf.mxu0  ;;  %v8745_v14 = vor.u32 %v9873_v16, %v8742_v58  ;;  %v8749_v62 = vor.u32 %v9880_v47, %v8748_v10  ;;  %v8844_v16 = vld [vmem:[%s14380_s0 + $0xec8] sm:$0xf]  ;;  %v9899_v58 = vld [vmem:[%s14380_s0 + $0xecc] sm:$0xf]  ;;  %v14602_v47 = vld [vmem:[#allocation33_spill] sm:$0xff] }
 0x7c9   :  { %v6841_v37 = vrot.slane %v6840_v63, 2  ;;  %v6688_v9 = vadd.f32 %v6687_v33, %v6479_v13 }
 0x7cb   :  { %v6842_v28 = vmax.f32 %v6840_v63, %v6841_v37 }
 0x7cc   :  { %v6271_v3 = vpop.f32.mrf.mxu2 }
 0x7cd   :  { %v6843_v5 = vrot.slane %v6842_v28, 1  ;;  %v6272_v49 = vadd.f32 %v6271_v3, %v6063_v56  ;;  %v6480_v17 = vpop.f32.mrf.mxu3  ;;  %v9892_v3 = vld [vmem:[%s14380_s0 + $0xe90] sm:$0xf0] }
 0x7ce   :  { %v6065_v0 = vpop.f32.mrf.mxu1 }
 0x7cf   :  { %v6844_v57 = vmax.f32 %v6842_v28, %v6843_v5  ;;  %v6481_v15 = vadd.f32 %v6480_v17, %v6272_v49  ;;  %v6066_v51 = vadd.f32 %v6065_v0, %v14597_v55  ;;  %v9886_v5 = vld [vmem:[%s14380_s0 + $0xe64] sm:$0xf]  ;;  %v8794_v17 = vld [vmem:[%s14380_s0 + $0xe94] sm:$0xf0] }
 0x7d0   :  { %v6692_v52 = vpop.f32.mrf.mxu0 }
 0x7d1   :  { %v14188_v38 = vsel %vm6915_vm4, %v6844_v57, %v14081_v54  ;;  %v6690_v40 = vadd.f32 %v6689_v6, %v6481_v15  ;;  %6104 = vmatmul.bf16.gmra.mxu1 %v8685_v42  ;;  %6313 = vmatmul.bf16.gmra.mxu2 %v8689_v46  ;;  %v9872_v54 = vld [vmem:[%s14380_s0 + $0xdf4] sm:$0xf]  ;;  %v8800_v42 = vld [vmem:[%s14380_s0 + $0xe68] sm:$0xf]  ;;  %v9893_v46 = vld [vmem:[%s14380_s0 + $0xe98] sm:$0xf0]  ;;  %v8789_v57 = vor.u32 %v9885_v26, %v8786_v36 }
 0x7d2   :  { %6522 = vmatmul.bf16.gmra.mxu3 %v8693_v19  ;;  %v8737_v11 = vor.u32 %v9872_v54, %v8734_v53  ;;  %v8793_v15 = vor.u32 %v9892_v3, %v8792_v59  ;;  %v9911_v3 = vld [vmem:[%s14380_s0 + $0xf2c] sm:$0xf] }
 0x7d3   :  { %6731 = vmatmul.bf16.gmra.mxu0 %v8697_v48  ;;  %v6845_v27 = vmax.f32 %v6688_v9, %v6690_v40 }
 0x7d4   :  { %v6274_v34 = vpop.f32.mrf.mxu2 }
 0x7d5   :  { %v6275_v18 = vadd.f32 %v6274_v34, %v6066_v51  ;;  %v6483_v29 = vpop.f32.mrf.mxu3  ;;  %v8797_v51 = vor.u32 %v9886_v5, %v8794_v17  ;;  %v8890_v5 = vld [vmem:[%s14380_s0 + $0xf5c] sm:$0xf0]  ;;  %v9918_v17 = vld [vmem:[%s14380_s0 + $0xf60] sm:$0xf0] }
 0x7d6   :  { %v6067_v41 = vpop.f32.mrf.mxu1 }
 0x7d7   :  { %v6484_v30 = vadd.f32 %v6483_v29, %v6275_v18  ;;  %v6068_v22 = vadd.f32 %v6067_v41, %v14598_v23 }
 0x7d8   :  { %v6694_v20 = vpop.f32.mrf.mxu0 }
 0x7d9   :  { %v6693_v1 = vadd.f32 %v6692_v52, %v6484_v30  ;;  %v8801_v52 = vor.u32 %v9893_v46, %v8800_v42  ;;  %v9912_v42 = vld [vmem:[%s14380_s0 + $0xf34] sm:$0xf] }
 0x7db   :  { %v6846_v43 = vmax.f32 %v6845_v27, %v6693_v1  ;;  %v14601_v27 = vld [vmem:[#allocation31_spill] sm:$0xff] }
 0x7dc   :  { %v6276_v8 = vpop.f32.mrf.mxu2 }
 0x7dd   :  { %v6277_v25 = vadd.f32 %v6276_v8, %v6068_v22  ;;  %v6485_v33 = vpop.f32.mrf.mxu3 }
 0x7de   :  { %v6070_v35 = vpop.f32.mrf.mxu1 }
 0x7df   :  { %v6486_v31 = vadd.f32 %v6485_v33, %v6277_v25  ;;  %v6071_v63 = vadd.f32 %v6070_v35, %v14599_v24  ;;  %v8846_v25 = vld [vmem:[%s14380_s0 + $0xefc] sm:$0xf0]  ;;  %v8852_v33 = vld [vmem:[%s14380_s0 + $0xed0] sm:$0xf] }
 0x7e0   :  { %v6697_v13 = vpop.f32.mrf.mxu0 }
 0x7e1   :  { %v6695_v39 = vadd.f32 %v6694_v20, %v6486_v31  ;;  %6109 = vmatmul.bf16.gmra.mxu1 %v8737_v11  ;;  %6318 = vmatmul.bf16.gmra.mxu2 %v8741_v21  ;;  %v9906_v11 = vld [vmem:[%s14380_s0 + $0xf00] sm:$0xf0] }
 0x7e2   :  { %6527 = vmatmul.bf16.gmra.mxu3 %v8745_v14 }
 0x7e3   :  { %6736 = vmatmul.bf16.gmra.mxu0 %v8749_v62  ;;  %v6847_v56 = vmax.f32 %v6846_v43, %v6695_v39  ;;  %v9905_v43 = vld [vmem:[%s14380_s0 + $0xef8] sm:$0xf0]  ;;  %v8841_v62 = vor.u32 %v9898_v45, %v8838_v60  ;;  %v14605_v60 = vld [vmem:[#allocation39_spill] sm:$0xff] }
 0x7e4   :  { %v6279_v6 = vpop.f32.mrf.mxu2  ;;  %v8845_v31 = vor.u32 %v9905_v43, %v8844_v16 }
 0x7e5   :  { %v6280_v37 = vadd.f32 %v6279_v6, %v6071_v63  ;;  %v6488_v9 = vpop.f32.mrf.mxu3  ;;  %v8849_v63 = vor.u32 %v9899_v58, %v8846_v25 }
 0x7e6   :  { %v6072_v7 = vpop.f32.mrf.mxu1 }
 0x7e7   :  { %v6489_v2 = vadd.f32 %v6488_v9, %v6280_v37  ;;  %v6073_v12 = vadd.f32 %v6072_v7, %v14600_v32 }
 0x7e8   :  { %v6699_v50 = vpop.f32.mrf.mxu0 }
 0x7e9   :  { %v6698_v28 = vadd.f32 %v6697_v13, %v6489_v2  ;;  %v8853_v13 = vor.u32 %v9906_v11, %v8852_v33  ;;  %v8942_v11 = vld [vmem:[%s14380_s0 + $0xfc4] sm:$0xf0] }
 0x7eb   :  { %v6848_v49 = vmax.f32 %v6847_v56, %v6698_v28 }
 0x7ec   :  { %v6281_v0 = vpop.f32.mrf.mxu2 }
 0x7ed   :  { %v6282_v19 = vadd.f32 %v6281_v0, %v6073_v12  ;;  %v6490_v48 = vpop.f32.mrf.mxu3  ;;  %v14604_v0 = vld [vmem:[#allocation37_spill] sm:$0xff] }
 0x7ee   :  { %v6075_v55 = vpop.f32.mrf.mxu1 }
 0x7ef   :  { %v6491_v40 = vadd.f32 %v6490_v48, %v6282_v19  ;;  %v6076_v34 = vadd.f32 %v6075_v55, %v14601_v27  ;;  %v8898_v48 = vld [vmem:[%s14380_s0 + $0xf64] sm:$0xf0] }
 0x7f0   :  { %v6702_v18 = vpop.f32.mrf.mxu0 }
 0x7f1   :  { %v6700_v29 = vadd.f32 %v6699_v50, %v6491_v40  ;;  %6114 = vmatmul.bf16.gmra.mxu1 %v8789_v57  ;;  %6323 = vmatmul.bf16.gmra.mxu2 %v8793_v15  ;;  %v14603_v50 = vld [vmem:[#allocation35_spill] sm:$0xff]  ;;  %v8904_v57 = vld [vmem:[%s14380_s0 + $0xf38] sm:$0xf] }
 0x7f2   :  { %6532 = vmatmul.bf16.gmra.mxu3 %v8797_v51  ;;  %v9919_v15 = vld [vmem:[%s14380_s0 + $0xf68] sm:$0xf0]  ;;  %v8893_v51 = vor.u32 %v9911_v3, %v8890_v5 }
 0x7f3   :  { %6741 = vmatmul.bf16.gmra.mxu0 %v8801_v52  ;;  %v6849_v41 = vmax.f32 %v6848_v49, %v6700_v29  ;;  %v8896_v49 = vld [vmem:[%s14380_s0 + $0xf30] sm:$0xf] }
 0x7f4   :  { %v6284_v30 = vpop.f32.mrf.mxu2 }
 0x7f5   :  { %v6285_v23 = vadd.f32 %v6284_v30, %v6076_v34  ;;  %v6493_v22 = vpop.f32.mrf.mxu3  ;;  %v8905_v30 = vor.u32 %v9919_v15, %v8904_v57  ;;  %v8994_v57 = vld [vmem:[%s14380_s0 + $0x102c] sm:$0xf0]  ;;  %v9000_v15 = vld [vmem:[%s14380_s0 + $0x1000] sm:$0xf] }
 0x7f6   :  { %v6077_v20 = vpop.f32.mrf.mxu1 }
 0x7f7   :  { %v6494_v1 = vadd.f32 %v6493_v22, %v6285_v23  ;;  %v6078_v8 = vadd.f32 %v6077_v20, %v14602_v47 }
 0x7f8   :  { %v6704_v54 = vpop.f32.mrf.mxu0 }
 0x7f9   :  { %v6703_v53 = vadd.f32 %v6702_v18, %v6494_v1  ;;  %v8897_v18 = vor.u32 %v9918_v17, %v8896_v49 }
 0x7fb   :  { %v6850_v10 = vmax.f32 %v6849_v41, %v6703_v53  ;;  %v8901_v41 = vor.u32 %v9912_v42, %v8898_v48  ;;  %v9937_v48 = vld [vmem:[%s14380_s0 + $0xffc] sm:$0xf] }
 0x7fc   :  { %v6286_v21 = vpop.f32.mrf.mxu2 }
 0x7fd   :  { %v6287_v35 = vadd.f32 %v6286_v21, %v6078_v8  ;;  %v6495_v14 = vpop.f32.mrf.mxu3  ;;  %v8948_v21 = vld [vmem:[%s14380_s0 + $0xf98] sm:$0xf] }
 0x7fe   :  { %v6080_v24 = vpop.f32.mrf.mxu1 }
 0x7ff   :  { %v6496_v39 = vadd.f32 %v6495_v14, %v6287_v35  ;;  %v6081_v28 = vadd.f32 %v6080_v24, %v14603_v50  ;;  %v9931_v35 = vld [vmem:[%s14380_s0 + $0xfc8] sm:$0xf0]  ;;  %v9925_v14 = vld [vmem:[%s14380_s0 + $0xf9c] sm:$0xf] }
 0x800   :  { %v6707_v56 = vpop.f32.mrf.mxu0 }
 0x801   :  { %v6705_v6 = vadd.f32 %v6704_v54, %v6496_v39  ;;  %6119 = vmatmul.bf16.gmra.mxu1 %v8841_v62  ;;  %6328 = vmatmul.bf16.gmra.mxu2 %v8845_v31  ;;  %v14606_v31 = vld [vmem:[#allocation2_spill] sm:$0xff]  ;;  %v9932_v39 = vld [vmem:[%s14380_s0 + $0xfd0] sm:$0xf0] }
 0x802   :  { %6537 = vmatmul.bf16.gmra.mxu3 %v8849_v63  ;;  %v8950_v63 = vld [vmem:[%s14380_s0 + $0xfcc] sm:$0xf0] }
 0x803   :  { %6746 = vmatmul.bf16.gmra.mxu0 %v8853_v13  ;;  %v6851_v37 = vmax.f32 %v6850_v10, %v6705_v6  ;;  %v8956_v13 = vld [vmem:[%s14380_s0 + $0xfa0] sm:$0xf] }
 0x804   :  { %v6289_v9 = vpop.f32.mrf.mxu2 }
 0x805   :  { %v6852_v7 = vrot.slane %v6851_v37, 4  ;;  %v6498_v2 = vpop.f32.mrf.mxu3  ;;  %v6290_v59 = vadd.f32 %v6289_v9, %v6081_v28 }
 0x806   :  { %v6082_v32 = vpop.f32.mrf.mxu1 }
 0x807   :  { %v6853_v12 = vmax.f32 %v6851_v37, %v6852_v7  ;;  %v6083_v19 = vadd.f32 %v6082_v32, %v14604_v0  ;;  %v6499_v40 = vadd.f32 %v6498_v2, %v6290_v59  ;;  %v8949_v7 = vor.u32 %v9931_v35, %v8948_v21  ;;  %v14607_v59 = vld [vmem:[#allocation4_spill] sm:$0xff] }
 0x808   :  { %v6709_v26 = vpop.f32.mrf.mxu0  ;;  %v8953_v32 = vor.u32 %v9925_v14, %v8950_v63 }
 0x809   :  { %v6854_v36 = vrot.slane %v6853_v12, 2  ;;  %v6708_v54 = vadd.f32 %v6707_v56, %v6499_v40  ;;  %v14608_v40 = vld [vmem:[#allocation6_spill] sm:$0xff] }
 0x80b   :  { %v6855_v46 = vmax.f32 %v6853_v12, %v6854_v36  ;;  %v8957_v12 = vor.u32 %v9932_v39, %v8956_v13 }
 0x80c   :  { %v6291_v55 = vpop.f32.mrf.mxu2 }
 0x80d   :  { %v6856_v52 = vrot.slane %v6855_v46, 1  ;;  %v6292_v27 = vadd.f32 %v6291_v55, %v6083_v19  ;;  %v6500_v34 = vpop.f32.mrf.mxu3  ;;  %v9944_v55 = vld [vmem:[%s14380_s0 + $0x1030] sm:$0xf0] }
 0x80e   :  { %v6085_v29 = vpop.f32.mrf.mxu1 }
 0x80f   :  { %v6857_v23 = vmax.f32 %v6855_v46, %v6856_v52  ;;  %v6501_v22 = vadd.f32 %v6500_v34, %v6292_v27  ;;  %v6086_v16 = vadd.f32 %v6085_v29, %v14605_v60  ;;  %v9002_v34 = vld [vmem:[%s14380_s0 + $0x1034] sm:$0xf0]  ;;  %v9945_v29 = vld [vmem:[%s14380_s0 + $0x1038] sm:$0xf0] }
 0x810   :  { %v6712_v20 = vpop.f32.mrf.mxu0 }
 0x811   :  { %v14294_v1 = vsel %vm6917_vm5, %v6857_v23, %v14188_v38  ;;  %v6710_v53 = vadd.f32 %v6709_v26, %v6501_v22  ;;  %6124 = vmatmul.bf16.gmra.mxu1 %v8893_v51  ;;  %6333 = vmatmul.bf16.gmra.mxu2 %v8897_v18  ;;  %v9924_v38 = vld [vmem:[%s14380_s0 + $0xf94] sm:$0xf]  ;;  %v9938_v51 = vld [vmem:[%s14380_s0 + $0x1004] sm:$0xf]  ;;  %v9008_v18 = vld [vmem:[%s14380_s0 + $0x1008] sm:$0xf]  ;;  %v8997_v22 = vor.u32 %v9937_v48, %v8994_v57 }
 0x812   :  { %6542 = vmatmul.bf16.gmra.mxu3 %v8901_v41  ;;  %v8945_v9 = vor.u32 %v9924_v38, %v8942_v11 }
 0x813   :  { %6751 = vmatmul.bf16.gmra.mxu0 %v8905_v30  ;;  %v6858_v45 = vmax.f32 %v6708_v54, %v6710_v53  ;;  %v9005_v53 = vor.u32 %v9938_v51, %v9002_v34 }
 0x814   :  { %v6294_v43 = vpop.f32.mrf.mxu2 }
 0x815   :  { %v6295_v58 = vadd.f32 %v6294_v43, %v6086_v16  ;;  %v6503_v10 = vpop.f32.mrf.mxu3 }
 0x816   :  { %v6087_v47 = vpop.f32.mrf.mxu1 }
 0x817   :  { %v6504_v8 = vadd.f32 %v6503_v10, %v6295_v58  ;;  %v6088_v24 = vadd.f32 %v6087_v47, %v14606_v31  ;;  %v14609_v10 = vld [vmem:[#allocation8_spill] sm:$0xff] }
 0x818   :  { %v6714_v25 = vpop.f32.mrf.mxu0 }
 0x819   :  { %v6713_v33 = vadd.f32 %v6712_v20, %v6504_v8  ;;  %v9001_v20 = vor.u32 %v9944_v55, %v9000_v15 }
 0x81b   :  { %v6859_v62 = vmax.f32 %v6858_v45, %v6713_v33  ;;  %v9009_v45 = vor.u32 %v9945_v29, %v9008_v18 }
 0x81c   :  { %v6296_v56 = vpop.f32.mrf.mxu2 }
 0x81d   :  { %v6297_v6 = vadd.f32 %v6296_v56, %v6088_v24  ;;  %v6505_v37 = vpop.f32.mrf.mxu3 }
 0x81e   :  { %v6090_v2 = vpop.f32.mrf.mxu1 }
 0x81f   :  { %v6506_v50 = vadd.f32 %v6505_v37, %v6297_v6  ;;  %v6091_v3 = vadd.f32 %v6090_v2, %v14607_v59  ;;  %v14611_v6 = vld [vmem:[#allocation12_spill] sm:$0xff] }
 0x820   :  { %v6717_v28 = vpop.f32.mrf.mxu0 }
 0x821   :  { %v6715_v26 = vadd.f32 %v6714_v25, %v6506_v50  ;;  %6129 = vmatmul.bf16.gmra.mxu1 %v8945_v9  ;;  %6338 = vmatmul.bf16.gmra.mxu2 %v8949_v7 }
 0x822   :  { %6547 = vmatmul.bf16.gmra.mxu3 %v8953_v32 }
 0x823   :  { %6756 = vmatmul.bf16.gmra.mxu0 %v8957_v12  ;;  %v6860_v36 = vmax.f32 %v6859_v62, %v6715_v26  ;;  %v14610_v62 = vld [vmem:[#allocation10_spill] sm:$0xff] }
 0x824   :  { %v6299_v5 = vpop.f32.mrf.mxu2 }
 0x825   :  { %v6300_v49 = vadd.f32 %v6299_v5, %v6091_v3  ;;  %v6508_v17 = vpop.f32.mrf.mxu3  ;;  %v14612_v3 = vld [vmem:[#allocation14_spill] sm:$0xff] }
 0x826   :  { %v6092_v42 = vpop.f32.mrf.mxu1 }
 0x827   :  { %v6509_v46 = vadd.f32 %v6508_v17, %v6300_v49  ;;  %v6093_v27 = vadd.f32 %v6092_v42, %v14608_v40 }
 0x828   :  { %v6719_v0 = vpop.f32.mrf.mxu0 }
 0x829   :  { %v6718_v19 = vadd.f32 %v6717_v28, %v6509_v46 }
 0x82b   :  { %v6861_v52 = vmax.f32 %v6860_v36, %v6718_v19 }
 0x82c   :  { %v6301_v41 = vpop.f32.mrf.mxu2 }
 0x82d   :  { %v6302_v30 = vadd.f32 %v6301_v41, %v6093_v27  ;;  %v6510_v23 = vpop.f32.mrf.mxu3 }
 0x82e   :  { %v6095_v54 = vpop.f32.mrf.mxu1 }
 0x82f   :  { %v6511_v60 = vadd.f32 %v6510_v23, %v6302_v30  ;;  %v6096_v47 = vadd.f32 %v6095_v54, %v14609_v10  ;;  %v14614_v54 = vld [vmem:[#allocation18_spill] sm:$0xff] }
 0x830   :  { %v6722_v16 = vpop.f32.mrf.mxu0 }
 0x831   :  { %v6720_v43 = vadd.f32 %v6719_v0, %v6511_v60  ;;  %6134 = vmatmul.bf16.gmra.mxu1 %v8997_v22  ;;  %6343 = vmatmul.bf16.gmra.mxu2 %v9001_v20 }
 0x832   :  { %6552 = vmatmul.bf16.gmra.mxu3 %v9005_v53 }
 0x833   :  { %6761 = vmatmul.bf16.gmra.mxu0 %v9009_v45  ;;  %v6862_v58 = vmax.f32 %v6861_v52, %v6720_v43  ;;  %v14613_v52 = vld [vmem:[#allocation16_spill] sm:$0xff] }
 0x834   :  { %v6304_v8 = vpop.f32.mrf.mxu2 }
 0x835   :  { %v6305_v25 = vadd.f32 %v6304_v8, %v6096_v47  ;;  %v6513_v33 = vpop.f32.mrf.mxu3  ;;  %v14615_v8 = vld [vmem:[#allocation20_spill] sm:$0xff] }
 0x836   :  { %v6097_v38 = vpop.f32.mrf.mxu1 }
 0x837   :  { %v6514_v11 = vadd.f32 %v6513_v33, %v6305_v25  ;;  %v6098_v31 = vadd.f32 %v6097_v38, %v14610_v62 }
 0x838   :  { %v6724_v21 = vpop.f32.mrf.mxu0 }
 0x839   :  { %v6723_v35 = vadd.f32 %v6722_v16, %v6514_v11 }
 0x83b   :  { %v6863_v14 = vmax.f32 %v6862_v58, %v6723_v35 }
 0x83c   :  { %v6306_v24 = vpop.f32.mrf.mxu2 }
 0x83d   :  { %v6307_v63 = vadd.f32 %v6306_v24, %v6098_v31  ;;  %v6515_v13 = vpop.f32.mrf.mxu3  ;;  %v14616_v24 = vld [vmem:[#allocation22_spill] sm:$0xff] }
 0x83e   :  { %v6100_v39 = vpop.f32.mrf.mxu1 }
 0x83f   :  { %v6516_v56 = vadd.f32 %v6515_v13, %v6307_v63  ;;  %v6101_v37 = vadd.f32 %v6100_v39, %v14611_v6 }
 0x840   :  { %v6727_v9 = vpop.f32.mrf.mxu0 }
 0x841   :  { %v6725_v7 = vadd.f32 %v6724_v21, %v6516_v56 }
 0x843   :  { %v6864_v2 = vmax.f32 %v6863_v14, %v6725_v7 }
 0x844   :  { %v6309_v32 = vpop.f32.mrf.mxu2 }
 0x845   :  { %v6865_v12 = vrot.slane %v6864_v2, 4  ;;  %v6310_v50 = vadd.f32 %v6309_v32, %v6101_v37  ;;  %v6518_v28 = vpop.f32.mrf.mxu3  ;;  %v14617_v32 = vld [vmem:[#allocation24_spill] sm:$0xff] }
 0x846   :  { %v6102_v26 = vpop.f32.mrf.mxu1 }
 0x847   :  { %v6866_v36 = vmax.f32 %v6864_v2, %v6865_v12  ;;  %v6519_v59 = vadd.f32 %v6518_v28, %v6310_v50  ;;  %v6103_v5 = vadd.f32 %v6102_v26, %v14612_v3 }
 0x848   :  { %v6729_v49 = vpop.f32.mrf.mxu0 }
 0x849   :  { %v6867_v17 = vrot.slane %v6866_v36, 2  ;;  %v6728_v42 = vadd.f32 %v6727_v9, %v6519_v59 }
 0x84b   :  { %v6868_v46 = vmax.f32 %v6866_v36, %v6867_v17  ;;  %v14618_v17 = vld [vmem:[#allocation26_spill] sm:$0xff] }
 0x84c   :  { %v6311_v0 = vpop.f32.mrf.mxu2 }
 0x84d   :  { %v6869_v19 = vrot.slane %v6868_v46, 1  ;;  %v6312_v48 = vadd.f32 %v6311_v0, %v6103_v5  ;;  %v6520_v57 = vpop.f32.mrf.mxu3 }
 0x84e   :  { %v6105_v15 = vpop.f32.mrf.mxu1 }
 0x84f   :  { %v6870_v55 = vmax.f32 %v6868_v46, %v6869_v19  ;;  %v6521_v51 = vadd.f32 %v6520_v57, %v6312_v48  ;;  %v6106_v40 = vadd.f32 %v6105_v15, %v14613_v52 }
 0x850   :  { %v6732_v27 = vpop.f32.mrf.mxu0 }
 0x851   :  { %v6920_v34 = vsel %vm6919_vm6, %v6870_v55, %v14294_v1  ;;  %v6730_v18 = vadd.f32 %v6729_v49, %v6521_v51 }
 0x852   :  { %6924 = vst [vmem:[%s14381_s3] sm:$0xff] %v6920_v34 }
 0x853   :  { %v6871_v29 = vmax.f32 %v6728_v42, %v6730_v18 }
 0x854   :  { %v6314_v41 = vpop.f32.mrf.mxu2 }
 0x855   :  { %v6315_v30 = vadd.f32 %v6314_v41, %v6106_v40  ;;  %v6523_v23 = vpop.f32.mrf.mxu3  ;;  %v14619_v41 = vld [vmem:[#allocation28_spill] sm:$0xff] }
 0x856   :  { %v6107_v22 = vpop.f32.mrf.mxu1 }
 0x857   :  { %v6524_v20 = vadd.f32 %v6523_v23, %v6315_v30  ;;  %v6108_v53 = vadd.f32 %v6107_v22, %v14614_v54 }
 0x858   :  { %v6734_v45 = vpop.f32.mrf.mxu0 }
 0x859   :  { %v6733_v60 = vadd.f32 %v6732_v27, %v6524_v20  ;;  %v14620_v20 = vld [vmem:[#allocation30_spill] sm:$0xff] }
 0x85b   :  { %v6872_v16 = vmax.f32 %v6871_v29, %v6733_v60 }
 0x85c   :  { %v6316_v43 = vpop.f32.mrf.mxu2 }
 0x85d   :  { %v6317_v58 = vadd.f32 %v6316_v43, %v6108_v53  ;;  %v6525_v10 = vpop.f32.mrf.mxu3 }
 0x85e   :  { %v6110_v1 = vpop.f32.mrf.mxu1 }
 0x85f   :  { %v6526_v47 = vadd.f32 %v6525_v10, %v6317_v58  ;;  %v6111_v25 = vadd.f32 %v6110_v1, %v14615_v8 }
 0x860   :  { %v6737_v33 = vpop.f32.mrf.mxu0 }
 0x861   :  { %v6735_v38 = vadd.f32 %v6734_v45, %v6526_v47 }
 0x863   :  { %v6873_v11 = vmax.f32 %v6872_v16, %v6735_v38 }
 0x864   :  { %v6319_v21 = vpop.f32.mrf.mxu2 }
 0x865   :  { %v6320_v35 = vadd.f32 %v6319_v21, %v6111_v25  ;;  %v6528_v14 = vpop.f32.mrf.mxu3  ;;  %v14621_v25 = vld [vmem:[#allocation32_spill] sm:$0xff] }
 0x866   :  { %v6112_v62 = vpop.f32.mrf.mxu1 }
 0x867   :  { %v6529_v31 = vadd.f32 %v6528_v14, %v6320_v35  ;;  %v6113_v63 = vadd.f32 %v6112_v62, %v14616_v24 }
 0x868   :  { %v6739_v13 = vpop.f32.mrf.mxu0 }
 0x869   :  { %v6738_v39 = vadd.f32 %v6737_v33, %v6529_v31 }
 0x86b   :  { %v6874_v56 = vmax.f32 %v6873_v11, %v6738_v39 }
 0x86c   :  { %v6321_v6 = vpop.f32.mrf.mxu2 }
 0x86d   :  { %v6322_v37 = vadd.f32 %v6321_v6, %v6113_v63  ;;  %v6530_v9 = vpop.f32.mrf.mxu3 }
 0x86e   :  { %v6115_v7 = vpop.f32.mrf.mxu1 }
 0x86f   :  { %v6531_v2 = vadd.f32 %v6530_v9, %v6322_v37  ;;  %v6116_v12 = vadd.f32 %v6115_v7, %v14617_v32 }
 0x870   :  { %v6742_v50 = vpop.f32.mrf.mxu0 }
 0x871   :  { %v6740_v28 = vadd.f32 %v6739_v13, %v6531_v2 }
 0x873   :  { %v6875_v26 = vmax.f32 %v6874_v56, %v6740_v28 }
 0x874   :  { %v6324_v36 = vpop.f32.mrf.mxu2 }
 0x875   :  { %v6325_v59 = vadd.f32 %v6324_v36, %v6116_v12  ;;  %v6533_v3 = vpop.f32.mrf.mxu3 }
 0x876   :  { %v6117_v5 = vpop.f32.mrf.mxu1 }
 0x877   :  { %v6534_v49 = vadd.f32 %v6533_v3, %v6325_v59  ;;  %v6118_v42 = vadd.f32 %v6117_v5, %v14618_v17 }
 0x878   :  { %v6744_v46 = vpop.f32.mrf.mxu0 }
 0x879   :  { %v6743_v0 = vadd.f32 %v6742_v50, %v6534_v49 }
 0x87b   :  { %v6876_v19 = vmax.f32 %v6875_v26, %v6743_v0 }
 0x87c   :  { %v6326_v48 = vpop.f32.mrf.mxu2 }
 0x87d   :  { %v6327_v57 = vadd.f32 %v6326_v48, %v6118_v42  ;;  %v6535_v15 = vpop.f32.mrf.mxu3 }
 0x87e   :  { %v6120_v55 = vpop.f32.mrf.mxu1 }
 0x87f   :  { %v6536_v51 = vadd.f32 %v6535_v15, %v6327_v57  ;;  %v6121_v30 = vadd.f32 %v6120_v55, %v14619_v41  ;;  %v14622_v57 = vld [vmem:[#allocation34_spill] sm:$0xff]  ;;  %v14623_v41 = vld [vmem:[#allocation36_spill] sm:$0xff] }
 0x880   :  { %v6747_v52 = vpop.f32.mrf.mxu0 }
 0x881   :  { %v6745_v40 = vadd.f32 %v6744_v46, %v6536_v51 }
 0x883   :  { %v14362_v27 = vmax.f32 %v6876_v19, %v6745_v40 }
 0x884   :  { %v6329_v34 = vpop.f32.mrf.mxu2 }
 0x885   :  { %v6538_v18 = vpop.f32.mrf.mxu3  ;;  %v6330_v22 = vadd.f32 %v6329_v34, %v6121_v30 }
 0x886   :  { %v6122_v29 = vpop.f32.mrf.mxu1 }
 0x887   :  { %v6123_v54 = vadd.f32 %v6122_v29, %v14620_v20  ;;  %v6539_v45 = vadd.f32 %v6538_v18, %v6330_v22  ;;  %v6878_v29 = vrot.slane %v14362_v27, 4 }
 0x888   :  { %v6749_v23 = vpop.f32.mrf.mxu0 }
 0x889   :  { %v6748_v1 = vadd.f32 %v6747_v52, %v6539_v45 }
 0x88c   :  { %v6331_v53 = vpop.f32.mrf.mxu2 }
 0x88d   :  { %v6332_v60 = vadd.f32 %v6331_v53, %v6123_v54  ;;  %v6540_v16 = vpop.f32.mrf.mxu3  ;;  %v6879_v54 = vmax.f32 %v14362_v27, %v6878_v29 }
 0x88e   :  { %v6125_v43 = vpop.f32.mrf.mxu1 }
 0x88f   :  { %v6541_v58 = vadd.f32 %v6540_v16, %v6332_v60  ;;  %v6126_v33 = vadd.f32 %v6125_v43, %v14621_v25  ;;  %v6880_v16 = vrot.slane %v6879_v54, 2 }
 0x890   :  { %v6752_v10 = vpop.f32.mrf.mxu0 }
 0x891   :  { %v6750_v47 = vadd.f32 %v6749_v23, %v6541_v58 }
 0x893   :  { %v6884_v8 = vmax.f32 %v6748_v1, %v6750_v47 }
 0x894   :  { %v6334_v38 = vpop.f32.mrf.mxu2 }
 0x895   :  { %v6335_v11 = vadd.f32 %v6334_v38, %v6126_v33  ;;  %v6543_v21 = vpop.f32.mrf.mxu3 }
 0x896   :  { %v6127_v35 = vpop.f32.mrf.mxu1 }
 0x897   :  { %v6544_v14 = vadd.f32 %v6543_v21, %v6335_v11  ;;  %v6128_v63 = vadd.f32 %v6127_v35, %v13459_v44 }
 0x898   :  { %v6754_v62 = vpop.f32.mrf.mxu0 }
 0x899   :  { %v6753_v31 = vadd.f32 %v6752_v10, %v6544_v14  ;;  %v6881_v10 = vmax.f32 %v6879_v54, %v6880_v16 }
 0x89b   :  { %v6885_v24 = vmax.f32 %v6884_v8, %v6753_v31  ;;  %v6882_v8 = vrot.slane %v6881_v10, 1 }
 0x89c   :  { %v6336_v13 = vpop.f32.mrf.mxu2 }
 0x89d   :  { %v6337_v39 = vadd.f32 %v6336_v13, %v6128_v63  ;;  %v6545_v56 = vpop.f32.mrf.mxu3  ;;  %v6883_v38 = vmax.f32 %v6881_v10, %v6882_v8 }
 0x89e   :  { %v6130_v6 = vpop.f32.mrf.mxu1 }
 0x89f   :  { %v6546_v37 = vadd.f32 %v6545_v56, %v6337_v39  ;;  %v6131_v32 = vadd.f32 %v6130_v6, %v13468_v4 }
 0x8a0   :  { %v6757_v7 = vpop.f32.mrf.mxu0 }
 0x8a1   :  { %v6755_v9 = vadd.f32 %v6754_v62, %v6546_v37 }
 0x8a3   :  { %v6886_v2 = vmax.f32 %v6885_v24, %v6755_v9 }
 0x8a4   :  { %v6339_v12 = vpop.f32.mrf.mxu2 }
 0x8a5   :  { %v6340_v50 = vadd.f32 %v6339_v12, %v6131_v32  ;;  %v6548_v28 = vpop.f32.mrf.mxu3 }
 0x8a6   :  { %v6132_v26 = vpop.f32.mrf.mxu1 }
 0x8a7   :  { %v6549_v36 = vadd.f32 %v6548_v28, %v6340_v50  ;;  %v6133_v5 = vadd.f32 %v6132_v26, %v13489_v61 }
 0x8a8   :  { %v6759_v44 = vpop.f32.mrf.mxu0 }
 0x8a9   :  { %v6758_v59 = vadd.f32 %v6757_v7, %v6549_v36 }
 0x8ab   :  { %v6887_v3 = vmax.f32 %v6886_v2, %v6758_v59 }
 0x8ac   :  { %v6341_v49 = vpop.f32.mrf.mxu2 }
 0x8ad   :  { %v6342_v17 = vadd.f32 %v6341_v49, %v6133_v5  ;;  %v6550_v42 = vpop.f32.mrf.mxu3 }
 0x8ae   :  { %v6135_v46 = vpop.f32.mrf.mxu1 }
 0x8af   :  { %v6551_v0 = vadd.f32 %v6550_v42, %v6342_v17  ;;  %v6136_v15 = vadd.f32 %v6135_v46, %v14622_v57 }
 0x8b0   :  { %v6762_v52 = vpop.f32.mrf.mxu0 }
 0x8b1   :  { %v6760_v19 = vadd.f32 %v6759_v44, %v6551_v0 }
 0x8b3   :  { %v6888_v48 = vmax.f32 %v6887_v3, %v6760_v19 }
 0x8b4   :  { %v6344_v4 = vpop.f32.mrf.mxu2 }
 0x8b5   :  { %v6345_v55 = vadd.f32 %v6344_v4, %v6136_v15  ;;  %v6553_v51 = vpop.f32.mrf.mxu3 }
 0x8b6   :  { %v6137_v34 = vpop.f32.mrf.mxu1 }
 0x8b7   :  { %v6554_v40 = vadd.f32 %v6553_v51, %v6345_v55  ;;  %v6138_v30 = vadd.f32 %v6137_v34, %v14623_v41 }
 0x8b8   :  { %v6764_v45 = vpop.f32.mrf.mxu0 }
 0x8b9   :  { %v6763_v18 = vadd.f32 %v6762_v52, %v6554_v40 }
 0x8bb   :  { %v6889_v61 = vmax.f32 %v6888_v48, %v6763_v18 }
 0x8bc   :  { %v6346_v23 = vpop.f32.mrf.mxu2 }
 0x8bd   :  { %v6347_v22 = vadd.f32 %v6346_v23, %v6138_v30  ;;  %v6555_v20 = vpop.f32.mrf.mxu3 }
 0x8bf   :  { %v6556_v53 = vadd.f32 %v6555_v20, %v6347_v22 }
 0x8c1   :  { %v6765_v60 = vadd.f32 %v6764_v45, %v6556_v53 }
 0x8c3   :  { %v6890_v43 = vmax.f32 %v6889_v61, %v6765_v60 }
 0x8c5   :  { %v6891_v58 = vrot.slane %v6890_v43, 4 }
 0x8c7   :  { %v6892_v1 = vmax.f32 %v6890_v43, %v6891_v58 }
 0x8c9   :  { %v6893_v47 = vrot.slane %v6892_v1, 2 }
 0x8cb   :  { %v6894_v25 = vmax.f32 %v6892_v1, %v6893_v47 }
 0x8cd   :  { %v6895_v33 = vrot.slane %v6894_v25, 1 }
 0x8cf   :  { %v6896_v11 = vmax.f32 %v6894_v25, %v6895_v33 }
 0x8d1   :  { %v6921_v21 = vsel %vm6907_vm0, %v6896_v11, %v6883_v38 }
 0x8d2   :  { %6925 = vst [vmem:[%s14381_s3 + $0x8] sm:$0x3] %v6921_v21 }

// kernel: attention_rcnn_feature_path.3
= control target key start
LH: loop header
LB: loop body
LE: loop exit
PB: predicated region body
PF: predicated region fallthrough
CT: control target
= control target key end

     0   :  { %s1868_s21 = smov 0   ;;  %s4810_s0 = inlined_call_operand.vmem [shape: f32[2,5,128], index: 0, kind: input, shape index: {}]   ;;  %s4811_s1 = inlined_call_operand.vmem [shape: f32[128,256], index: 1, kind: input, shape index: {}]   ;;  %s4812_s2 = inlined_call_operand.vmem [shape: f32[1,256], index: 2, kind: input, shape index: {}]   ;;  %s4813_s3 = inlined_call_operand.vmem [shape: bf16[2,64,945], index: 3, kind: input, shape index: {}]   ;;  %s4814_s4 = inlined_call_operand.vmem [shape: bf16[2,4,64,945], index: 4, kind: input, shape index: {}]   ;;  %s4815_s5 = inlined_call_operand.vmem [shape: f32[2,64,945], index: 5, kind: output, shape index: {0}]   ;;  %s4816_s6 = inlined_call_operand.vmem [shape: f32[2,4,1], index: 6, kind: output, shape index: {1}]  }
   0x1 LB: > { %s1693_s22 = sadd.s32 4294967295, %s1828_s21   ;;  %p1697_p0 = scmp.ge.s32.totalorder %s1828_s21, 1  ;;  %s1828_s21 = sphi %s1868_s21, %s17_s21  }
   0x2   : > { %p234_p1 = scmp.lt.s32.totalorder %s1828_s21, 3 }
   0x4   : > { %p235_p2 = pnand %p1697_p0, %p234_p1 }
   0x6   : > { %238 = sbr.rel (%p235_p2) target bundleno = 856 (0x358), region = 40 }
   0xb   : > { %v331_v0 = vld [vmem:[%s4811_s1 + $0xf0] sm:$0xff]  ;;  %v329_v1 = vld [vmem:[%s4811_s1 + $0xe0] sm:$0xff]  ;;  %v332_v2 = vld [vmem:[%s4811_s1 + $0xf8] sm:$0xff]  ;;  %p277_p3 = scmp.lt.s32.totalorder %s1693_s22, 1  ;;  %s1830_s27 = smov 32   ;;  %vm381_vm0 = vcmask 258049  }
   0xc   : > { %339 = vmatpush.msra.mxu0 %v331_v0  ;;  %359 = vmatpush.msra.mxu1 %v332_v2  ;;  %v330_v3 = vld [vmem:[%s4811_s1 + $0xe8] sm:$0xff]  ;;  %v327_v4 = vld [vmem:[%s4811_s1 + $0xd0] sm:$0xff]  ;;  %v328_v5 = vld [vmem:[%s4811_s1 + $0xd8] sm:$0xff]  ;;  %s1831_s28 = smov 96   ;;  %s1832_s29 = smov 64   ;;  %vm404_vm1 = vcmask 7168  }
   0xd   : > { %v325_v6 = vld [vmem:[%s4811_s1 + $0xc0] sm:$0xff]  ;;  %v326_v7 = vld [vmem:[%s4811_s1 + $0xc8] sm:$0xff]  ;;  %v323_v8 = vld [vmem:[%s4811_s1 + $0xb0] sm:$0xff]  ;;  %s5883_s22 = smov (!%p277_p3, %s1693_s22), 1  ;;  %vm406_vm2 = vcmask 15360   ;;  %vm408_vm3 = vcmask 23552  }
   0xe   : > { %340 = vmatpush.msra.mxu0 %v329_v1  ;;  %360 = vmatpush.msra.mxu1 %v330_v3  ;;  %v324_v9 = vld [vmem:[%s4811_s1 + $0xb8] sm:$0xff]  ;;  %v321_v10 = vld [vmem:[%s4811_s1 + $0xa0] sm:$0xff]  ;;  %v322_v11 = vld [vmem:[%s4811_s1 + $0xa8] sm:$0xff]  ;;  %s1698_s7 = sshll.u32 %s5883_s22, 3  ;;  %vm411_vm4 = vcmask 28673   ;;  %vm425_vm5 = vcmask 27648  }
   0xf   : > { %v319_v12 = vld [vmem:[%s4811_s1 + $0x90] sm:$0xff]  ;;  %v320_v13 = vld [vmem:[%s4811_s1 + $0x98] sm:$0xff]  ;;  %v317_v14 = vld [vmem:[%s4811_s1 + $0x80] sm:$0xff]  ;;  %s280_s18 = scalar_lea.vmem %s4810_s0, %s1698_s7  ;;  %s1804_s30 = sshll.u32 %s5883_s22, 8  ;;  %vm452_vm10 = vcmask 4097   ;;  %vm1525_vm11 = vcmask 400384  }
  0x10   : > { %341 = vmatpush.msra.mxu0 %v327_v4  ;;  %361 = vmatpush.msra.mxu1 %v328_v5  ;;  %v318_v15 = vld [vmem:[%s4811_s1 + $0x88] sm:$0xff]  ;;  %v315_v16 = vld [vmem:[%s4811_s1 + $0x70] sm:$0xff]  ;;  %v316_v17 = vld [vmem:[%s4811_s1 + $0x78] sm:$0xff]  ;;  %s1991_s9 = scalar_lea.vmem %s4813_s3, %s1804_s30  ;;  %s1805_s10 = sshll.u32 %s5883_s22, 10 }
  0x11   : > { %v313_v18 = vld [vmem:[%s4811_s1 + $0x60] sm:$0xff]  ;;  %v314_v19 = vld [vmem:[%s4811_s1 + $0x68] sm:$0xff]  ;;  %v311_v20 = vld [vmem:[%s4811_s1 + $0x50] sm:$0xff]  ;;  %s2309_s13 = scalar_lea.vmem %s4814_s4, %s1805_s10  ;;  %s1705_s14 = sshll.u32 %s5883_s22, 2 }
  0x12   : > { %342 = vmatpush.msra.mxu0 %v325_v6  ;;  %362 = vmatpush.msra.mxu1 %v326_v7  ;;  %v312_v21 = vld [vmem:[%s4811_s1 + $0x58] sm:$0xff]  ;;  %v309_v22 = vld [vmem:[%s4811_s1 + $0x40] sm:$0xff]  ;;  %v310_v23 = vld [vmem:[%s4811_s1 + $0x48] sm:$0xff]  ;;  %s299_s17 = scalar_lea.vmem %s4816_s6, %s1705_s14 }
  0x13   : > { %v307_v24 = vld [vmem:[%s4811_s1 + $0x30] sm:$0xff]  ;;  %v308_v25 = vld [vmem:[%s4811_s1 + $0x38] sm:$0xff]  ;;  %v305_v26 = vld [vmem:[%s4811_s1 + $0x20] sm:$0xff] }
  0x14   : > { %343 = vmatpush.msra.mxu0 %v323_v8  ;;  %363 = vmatpush.msra.mxu1 %v324_v9  ;;  %v306_v27 = vld [vmem:[%s4811_s1 + $0x28] sm:$0xff]  ;;  %v303_v28 = vld [vmem:[%s4811_s1 + $0x10] sm:$0xff]  ;;  %v304_v29 = vld [vmem:[%s4811_s1 + $0x18] sm:$0xff] }
  0x15   : > { %v301_v30 = vld [vmem:[%s4811_s1] sm:$0xff]  ;;  %v302_v31 = vld [vmem:[%s4811_s1 + $0x8] sm:$0xff] }
  0x16   : > { %344 = vmatpush.msra.mxu0 %v321_v10  ;;  %364 = vmatpush.msra.mxu1 %v322_v11  ;;  %v300_v32 = vld [vmem:[%s280_s18] sm:$0x1f]  ;;  %s1806_s18 = sshll.u32 %s5883_s22, 9 }
  0x17   : > { %v333_v33 = vld [vmem:[%s4812_s2] sm:$0x3]  ;;  %s4342_s20 = scalar_lea.vmem %s4815_s5, %s1806_s18 }
  0x18   : > { %345 = vmatpush.msra.mxu0 %v319_v12  ;;  %365 = vmatpush.msra.mxu1 %v320_v13  ;;  %v335_v34 = vperm.slane %v333_v33, 0  ;;  %v336_v35 = vperm.slane %v333_v33, 1  ;;  %v2020_v33 = vld [vmem:[%s1991_s9 + $0x40] sm:$0xff] }
  0x1a   : > { %346 = vmatpush.msra.mxu0 %v317_v14  ;;  %366 = vmatpush.msra.mxu1 %v318_v15 }
  0x1c   : > { %347 = vmatpush.msra.mxu0 %v315_v16  ;;  %367 = vmatpush.msra.mxu1 %v316_v17 }
  0x1e   : > { %348 = vmatpush.msra.mxu0 %v313_v18  ;;  %368 = vmatpush.msra.mxu1 %v314_v19 }
  0x20   : > { %349 = vmatpush.msra.mxu0 %v311_v20  ;;  %369 = vmatpush.msra.mxu1 %v312_v21 }
  0x22   : > { %350 = vmatpush.msra.mxu0 %v309_v22  ;;  %370 = vmatpush.msra.mxu1 %v310_v23  ;;  %v1994_v23 = vld [vmem:[%s1991_s9] sm:$0xff] }
  0x24   : > { %351 = vmatpush.msra.mxu0 %v307_v24  ;;  %371 = vmatpush.msra.mxu1 %v308_v25  ;;  %v1997_v24 = vld [vmem:[%s1991_s9 + $0x8] sm:$0xff]  ;;  %v2000_v25 = vld [vmem:[%s1991_s9 + $0x10] sm:$0xff] }
  0x26   : > { %352 = vmatpush.msra.mxu0 %v305_v26  ;;  %372 = vmatpush.msra.mxu1 %v306_v27  ;;  %v2003_v26 = vld [vmem:[%s1991_s9 + $0x18] sm:$0xff]  ;;  %v2006_v27 = vld [vmem:[%s1991_s9 + $0x20] sm:$0xff] }
  0x28   : > { %353 = vmatpush.msra.mxu0 %v303_v28  ;;  %373 = vmatpush.msra.mxu1 %v304_v29  ;;  %v2009_v28 = vld [vmem:[%s1991_s9 + $0x28] sm:$0xff]  ;;  %v2012_v29 = vld [vmem:[%s1991_s9 + $0x30] sm:$0xff] }
  0x2a   : > { %354 = vmatpush.msra.mxu0 %v301_v30  ;;  %374 = vmatpush.msra.mxu1 %v302_v31  ;;  %v486_v30 = vunpack.c.l.bf16 %v1994_v23  ;;  %v487_v31 = vunpack.c.h.bf16 %v1994_v23 }
  0x2b   : > { %355 = vmatmul.f32.vlgmr.msra.gmra.mxu0 %v300_v32  ;;  %375 = vmatmul.f32.vlgmr.msra.gmra.mxu1 %v300_v32  ;;  %v2017_v32 = vld [vmem:[%s1991_s9 + $0x38] sm:$0xff] }
  0xa8   : > { %v356_v36 = vpop.f32.mrf.mxu0  ;;  %v376_v37 = vpop.f32.mrf.mxu1 }
  0xa9   : > { %v357_v38 = vadd.f32 %v356_v36, %v335_v34  ;;  %v377_v39 = vadd.f32 %v376_v37, %v336_v35  ;;  %v488_v34 = vunpack.c.l.bf16 %v1997_v24  ;;  %v489_v35 = vunpack.c.h.bf16 %v1997_v24 }
  0xaa   : > { %v490_v36 = vunpack.c.l.bf16 %v2000_v25  ;;  %v491_v37 = vunpack.c.h.bf16 %v2000_v25 }
  0xab   : > { %v379_v40 = vperm.slane %v357_v38, 0  ;;  %v2027_v38 = vld [vmem:[%s1991_s9 + $0x48] sm:$0xff] }
  0xad   : > { %v380_v41 = vmul.f32 %v379_v40, %v377_v39  ;;  %v2030_v39 = vld [vmem:[%s1991_s9 + $0x50] sm:$0xff]  ;;  %v492_v40 = vunpack.c.l.bf16 %v2003_v26 }
  0xaf   : > { %398 = vrot.lane.b32.xlu1 %v380_v41, %s1830_s27  ;;  %386 = vrot.lane.b32.xlu0 %v380_v41, %s1831_s28  ;;  %v382_v42 = vsel %vm381_vm0, %v380_v41, 0.0  ;;  %v2179_v23 = vmul.f32 0.5, %v492_v40 }
  0xb7   : > { %392 = vrot.lane.b32.xlu0 %v380_v41, %s1832_s29  ;;  %v493_v41 = vunpack.c.h.bf16 %v2003_v26 }
  0xd9   : > { %383 = vadd.xlane.f32.xlu1 %v382_v42  ;;  %v494_v42 = vunpack.c.l.bf16 %v2006_v27 }
  0xdb   : > { %v2187_v24 = vmul.f32 0.5, %v494_v42 }
 0x121   : > { %v399_v43 = vpop.permute.xlu1 %398  ;;  %v387_v44 = vpop.permute.xlu0 %386 }
 0x122   : > { %v401_v45 = vsel %vm381_vm0, %v399_v43, 0.0  ;;  %v389_v46 = vsel %vm381_vm0, %v387_v44, 0.0  ;;  %v495_v43 = vunpack.c.h.bf16 %v2006_v27  ;;  %v2037_v44 = vld [vmem:[%s1991_s9 + $0x58] sm:$0xff] }
 0x123   : > { %402 = vadd.xlane.f32.xlu0 %v401_v45  ;;  %390 = vadd.xlane.f32.xlu2 %v389_v46  ;;  %v2040_v45 = vld [vmem:[%s1991_s9 + $0x60] sm:$0xff]  ;;  %v496_v46 = vunpack.c.l.bf16 %v2009_v28 }
 0x125   : > { %v2195_v25 = vmul.f32 0.5, %v496_v46  ;;  %v5026_v46 = vunpack.c.h.bf16 %v2037_v44 }
 0x129   : > { %v393_v47 = vpop.permute.xlu0 %392 }
 0x12a   : > { %v395_v48 = vsel %vm381_vm0, %v393_v47, 0.0  ;;  %v497_v47 = vunpack.c.h.bf16 %v2009_v28 }
 0x12b   : > { %396 = vadd.xlane.f32.xlu2 %v395_v48  ;;  %v498_v48 = vunpack.c.l.bf16 %v2012_v29 }
 0x12d   : > { %v2203_v26 = vmul.f32 0.5, %v498_v48 }
 0x12f   : > { %5014 = vst [vmem:[#allocation3_spill] sm:$0xff] %v2203_v26  ;;  %v2733_v26 = vld [vmem:[%s2309_s13 + $0x200] sm:$0xff] }
 0x130   : > { %5139 = vst [vmem:[#allocation86_spill] sm:$0xff] %v2733_v26  ;;  %v2846_v26 = vld [vmem:[%s2309_s13 + $0x2b8] sm:$0xff] }
 0x131   : > { %5162 = vst [vmem:[#allocation109_spill] sm:$0xff] %v2846_v26  ;;  %v2936_v26 = vld [vmem:[%s2309_s13 + $0x348] sm:$0xff] }
 0x132   : > { %5180 = vst [vmem:[#allocation127_spill] sm:$0xff] %v2936_v26  ;;  %v3035_v26 = vld [vmem:[%s2309_s13 + $0x3e0] sm:$0xff] }
 0x133   : > { %5200 = vst [vmem:[#allocation147_spill] sm:$0xff] %v3035_v26 }
 0x14c   : > { %v384_v50 = vpop.xlane.xlu1 %383 }
 0x196   : > { %v391_v49 = vpop.xlane.xlu2 %390  ;;  %v403_v53 = vpop.xlane.xlu0 %402 }
 0x197   : > { %v405_v51 = vsel %vm404_vm1, %v384_v50, %v391_v49  ;;  %v499_v49 = vunpack.c.h.bf16 %v2012_v29  ;;  %v2047_v50 = vld [vmem:[%s1991_s9 + $0x68] sm:$0xff] }
 0x19e   : > { %v397_v52 = vpop.xlane.xlu2 %396 }
 0x19f   : > { %v407_v54 = vsel %vm406_vm2, %v405_v51, %v397_v52  ;;  %v2050_v51 = vld [vmem:[%s1991_s9 + $0x70] sm:$0xff]  ;;  %v500_v52 = vunpack.c.l.bf16 %v2017_v32 }
 0x1a0   : > { %v409_v55 = vsel %vm408_vm3, %v407_v54, %v403_v53  ;;  %v501_v53 = vunpack.c.h.bf16 %v2017_v32  ;;  %v502_v54 = vunpack.c.l.bf16 %v2020_v33 }
 0x1a1   : > { %v410_v56 = vmul.f32 0.17677669, %v409_v55  ;;  %v503_v55 = vunpack.c.h.bf16 %v2020_v33  ;;  %v2211_v27 = vmul.f32 0.5, %v500_v52  ;;  %v5024_v33 = vunpack.c.l.bf16 %v2037_v44 }
 0x1a2   : > { %v2219_v28 = vmul.f32 0.5, %v502_v54  ;;  %v5034_v54 = vunpack.c.h.bf16 %v2047_v50  ;;  %v5036_v44 = vunpack.c.l.bf16 %v2050_v51 }
 0x1a3   : > { %v412_v57 = vsel %vm411_vm4, %v410_v56, -inf  ;;  %5016 = vst [vmem:[#allocation5_spill] sm:$0xff] %v2211_v27  ;;  %v2223_v40 = vmul.f32 0.5, %v503_v55  ;;  %v2676_v27 = vld [vmem:[%s2309_s13 + $0x1a8] sm:$0xff] }
 0x1a4   : > { %v413_v58 = vrot.slane %v412_v57, 4  ;;  %5018 = vst [vmem:[#allocation7_spill] sm:$0xff] %v2219_v28  ;;  %v2264_v55 = vmul.f32 0.5, %v5034_v54  ;;  %v2610_v28 = vld [vmem:[%s2309_s13 + $0x148] sm:$0xff] }
 0x1a5   : > { %5019 = vst [vmem:[#allocation8_spill] sm:$0xff] %v2223_v40 }
 0x1a6   : > { %v414_v59 = vmax.f32 %v412_v57, %v413_v58  ;;  %v2060_v57 = vld [vmem:[%s1991_s9 + $0x80] sm:$0xff]  ;;  %v504_v58 = vunpack.c.l.bf16 %v2027_v38  ;;  %5035 = vst [vmem:[#allocation18_spill] sm:$0xff] %v2264_v55 }
 0x1a7   : > { %v2542_v55 = vld [vmem:[%s2309_s13 + $0xe0] sm:$0xff]  ;;  %5117 = vst [vmem:[#allocation64_spill] sm:$0xff] %v2610_v28  ;;  %v2719_v28 = vld [vmem:[%s2309_s13 + $0x1f0] sm:$0xff] }
 0x1a8   : > { %v415_v60 = vrot.slane %v414_v59, 2  ;;  %v2227_v29 = vmul.f32 0.5, %v504_v58  ;;  %v2268_v58 = vmul.f32 0.5, %v5036_v44  ;;  %5129 = vst [vmem:[#allocation76_spill] sm:$0xff] %v2676_v27  ;;  %v2759_v27 = vld [vmem:[%s2309_s13 + $0x228] sm:$0xff] }
 0x1a9   : > { %5138 = vst [vmem:[#allocation85_spill] sm:$0xff] %v2719_v28  ;;  %v2776_v28 = vld [vmem:[%s2309_s13 + $0x248] sm:$0xff] }
 0x1aa   : > { %v416_v61 = vmax.f32 %v414_v59, %v415_v60  ;;  %v505_v59 = vunpack.c.h.bf16 %v2027_v38  ;;  %v506_v60 = vunpack.c.l.bf16 %v2030_v39  ;;  %5020 = vst [vmem:[#allocation9_spill] sm:$0xff] %v2227_v29  ;;  %v5028_v38 = vunpack.c.l.bf16 %v2040_v45  ;;  %v2591_v29 = vld [vmem:[%s2309_s13 + $0x128] sm:$0xff] }
 0x1ab   : > { %5037 = vst [vmem:[#allocation19_spill] sm:$0xff] %v2268_v58  ;;  %v2552_v58 = vld [vmem:[%s2309_s13 + $0xf0] sm:$0xff] }
 0x1ac   : > { %v417_v62 = vrot.slane %v416_v61, 1  ;;  %v2235_v32 = vmul.f32 0.5, %v506_v60  ;;  %v2251_v48 = vmul.f32 0.5, %v5028_v38  ;;  %5113 = vst [vmem:[#allocation60_spill] sm:$0xff] %v2591_v29  ;;  %v2646_v29 = vld [vmem:[%s2309_s13 + $0x180] sm:$0xff] }
 0x1ad   : > { %5124 = vst [vmem:[#allocation71_spill] sm:$0xff] %v2646_v29  ;;  %v2706_v29 = vld [vmem:[%s2309_s13 + $0x1d8] sm:$0xff] }
 0x1ae   : > { %v418_v63 = vmax.f32 %v416_v61, %v417_v62  ;;  %v507_v61 = vunpack.c.h.bf16 %v2030_v39  ;;  %v2067_v62 = vld [vmem:[%s1991_s9 + $0x88] sm:$0xff]  ;;  %5022 = vst [vmem:[#allocation11_spill] sm:$0xff] %v2235_v32  ;;  %v5032_v39 = vunpack.c.l.bf16 %v2047_v50  ;;  %v5044_v50 = vunpack.c.l.bf16 %v2060_v57  ;;  %v2600_v32 = vld [vmem:[%s2309_s13 + $0x138] sm:$0xff] }
 0x1af   : > { %5029 = vst [vmem:[#allocation15_spill] sm:$0xff] %v2251_v48  ;;  %v5050_v44 = vunpack.c.h.bf16 %v2067_v62  ;;  %v2583_v48 = vld [vmem:[%s2309_s13 + $0x118] sm:$0xff] }
 0x1b0   : > { %v419_v0 = vsub.f32 %v410_v56, %v418_v63  ;;  %v2057_v56 = vld [vmem:[%s1991_s9 + $0x78] sm:$0xff]  ;;  %v2070_v63 = vld [vmem:[%s1991_s9 + $0x90] sm:$0xff]  ;;  %v2239_v42 = vmul.f32 0.5, %v507_v61  ;;  %v2284_v38 = vmul.f32 0.5, %v5044_v50  ;;  %5111 = vst [vmem:[#allocation58_spill] sm:$0xff] %v2583_v48 }
 0x1b1   : > { %5115 = vst [vmem:[#allocation62_spill] sm:$0xff] %v2600_v32  ;;  %v2654_v32 = vld [vmem:[%s2309_s13 + $0x188] sm:$0xff]  ;;  %v2679_v48 = vld [vmem:[%s2309_s13 + $0x1b0] sm:$0xff] }
 0x1b2   : > { %v420_v1 = vmul.f32 1.442695, %v419_v0  ;;  %5023 = vst [vmem:[#allocation12_spill] sm:$0xff] %v2239_v42  ;;  %v2573_v42 = vld [vmem:[%s2309_s13 + $0x108] sm:$0xff] }
 0x1b3   : > { %5045 = vst [vmem:[#allocation23_spill] sm:$0xff] %v2284_v38  ;;  %v2620_v38 = vld [vmem:[%s2309_s13 + $0x158] sm:$0xff] }
 0x1b4   : > { %1818 = vpow2.f32 %v420_v1  ;;  %v2155_v1 = vmul.f32 0.5, %v486_v30  ;;  %v2175_v30 = vmul.f32 0.5, %v491_v37  ;;  %v2215_v37 = vmul.f32 0.5, %v501_v53  ;;  %5109 = vst [vmem:[#allocation56_spill] sm:$0xff] %v2573_v42  ;;  %v2762_v42 = vld [vmem:[%s2309_s13 + $0x230] sm:$0xff] }
 0x1b5   : > { %v2260_v53 = vmul.f32 0.5, %v5032_v39  ;;  %5119 = vst [vmem:[#allocation66_spill] sm:$0xff] %v2620_v38  ;;  %v2709_v38 = vld [vmem:[%s2309_s13 + $0x1e0] sm:$0xff] }
 0x1b6   : > { %5017 = vst [vmem:[#allocation6_spill] sm:$0xff] %v2215_v37  ;;  %v2636_v37 = vld [vmem:[%s2309_s13 + $0x170] sm:$0xff] }
 0x1b7   : > { %5033 = vst [vmem:[#allocation17_spill] sm:$0xff] %v2260_v53  ;;  %v2613_v53 = vld [vmem:[%s2309_s13 + $0x150] sm:$0xff] }
 0x1b8   : > { %5118 = vst [vmem:[#allocation65_spill] sm:$0xff] %v2613_v53  ;;  %v2699_v53 = vld [vmem:[%s2309_s13 + $0x1d0] sm:$0xff] }
 0x1b9   : > { %5122 = vst [vmem:[#allocation69_spill] sm:$0xff] %v2636_v37  ;;  %v2750_v37 = vld [vmem:[%s2309_s13 + $0x218] sm:$0xff] }
 0x1ba   : > { %v1819_v2 = vpop.eup %1818  ;;  %5125 = vst [vmem:[#allocation72_spill] sm:$0xff] %v2654_v32  ;;  %v2786_v32 = vld [vmem:[%s2309_s13 + $0x258] sm:$0xff] }
 0x1bb   : > { %v423_v3 = vrot.slane %v1819_v2, 1  ;;  %5130 = vst [vmem:[#allocation77_spill] sm:$0xff] %v2679_v48  ;;  %v2789_v48 = vld [vmem:[%s2309_s13 + $0x260] sm:$0xff] }
 0x1bc   : > { %5134 = vst [vmem:[#allocation81_spill] sm:$0xff] %v2699_v53  ;;  %v2806_v53 = vld [vmem:[%s2309_s13 + $0x278] sm:$0xff] }
 0x1bd   : > { %v426_v4 = vsel %vm425_vm5, %v423_v3, 0.0  ;;  %v2163_v3 = vmul.f32 0.5, %v488_v34  ;;  %v2191_v34 = vmul.f32 0.5, %v495_v43  ;;  %v2243_v43 = vmul.f32 0.5, %v5024_v33  ;;  %5135 = vst [vmem:[#allocation82_spill] sm:$0xff] %v2706_v29  ;;  %v2836_v29 = vld [vmem:[%s2309_s13 + $0x2a8] sm:$0xff] }
 0x1be   : > { %v427_v5 = vrot.slane %v426_v4, 4  ;;  %v5042_v33 = vunpack.c.h.bf16 %v2057_v56  ;;  %5136 = vst [vmem:[#allocation83_spill] sm:$0xff] %v2709_v38  ;;  %v2816_v38 = vld [vmem:[%s2309_s13 + $0x288] sm:$0xff] }
 0x1bf   : > { %5025 = vst [vmem:[#allocation13_spill] sm:$0xff] %v2243_v43  ;;  %v2603_v43 = vld [vmem:[%s2309_s13 + $0x140] sm:$0xff] }
 0x1c0   : > { %v428_v6 = vadd.f32 %v427_v5, %v426_v4  ;;  %v2077_v4 = vld [vmem:[%s1991_s9 + $0x98] sm:$0xff]  ;;  %v2080_v5 = vld [vmem:[%s1991_s9 + $0xa0] sm:$0xff]  ;;  %5116 = vst [vmem:[#allocation63_spill] sm:$0xff] %v2603_v43 }
 0x1c1   : > { %v2689_v43 = vld [vmem:[%s2309_s13 + $0x1c0] sm:$0xff]  ;;  %5142 = vst [vmem:[#allocation89_spill] sm:$0xff] %v2750_v37 }
 0x1c2   : > { %v429_v7 = vrot.slane %v428_v6, 2  ;;  %5132 = vst [vmem:[#allocation79_spill] sm:$0xff] %v2689_v43  ;;  %v2779_v43 = vld [vmem:[%s2309_s13 + $0x250] sm:$0xff]  ;;  %v2809_v37 = vld [vmem:[%s2309_s13 + $0x280] sm:$0xff] }
 0x1c3   : > { %5144 = vst [vmem:[#allocation91_spill] sm:$0xff] %v2759_v27  ;;  %v2819_v27 = vld [vmem:[%s2309_s13 + $0x290] sm:$0xff] }
 0x1c4   : > { %v430_v8 = vadd.f32 %v429_v7, %v428_v6  ;;  %v2130_v6 = vld [vmem:[%s1991_s9 + $0xf0] sm:$0xff]  ;;  %v2171_v7 = vmul.f32 0.5, %v490_v36  ;;  %v2207_v36 = vmul.f32 0.5, %v499_v49  ;;  %v5030_v49 = vunpack.c.h.bf16 %v2040_v45  ;;  %5145 = vst [vmem:[#allocation92_spill] sm:$0xff] %v2762_v42 }
 0x1c5   : > { %v5040_v45 = vunpack.c.l.bf16 %v2057_v56  ;;  %v5052_v56 = vunpack.c.l.bf16 %v2070_v63  ;;  %5148 = vst [vmem:[#allocation95_spill] sm:$0xff] %v2776_v28  ;;  %v2839_v28 = vld [vmem:[%s2309_s13 + $0x2b0] sm:$0xff] }
 0x1c6   : > { %v431_v9 = vrot.slane %v430_v8, 1  ;;  %5015 = vst [vmem:[#allocation4_spill] sm:$0xff] %v2207_v36  ;;  %v2255_v52 = vmul.f32 0.5, %v5030_v49  ;;  %v5046_v49 = vunpack.c.h.bf16 %v2060_v57  ;;  %v5056_v57 = vunpack.c.l.bf16 %v2077_v4  ;;  %v2743_v36 = vld [vmem:[%s2309_s13 + $0x210] sm:$0xff] }
 0x1c7   : > { %v2276_v61 = vmul.f32 0.5, %v5040_v45  ;;  %v2300_v45 = vmul.f32 0.5, %v5052_v56  ;;  %5141 = vst [vmem:[#allocation88_spill] sm:$0xff] %v2743_v36  ;;  %v2856_v36 = vld [vmem:[%s2309_s13 + $0x2c8] sm:$0xff]  ;;  %v2879_v42 = vld [vmem:[%s2309_s13 + $0x2f0] sm:$0xff] }
 0x1c8   : > { %v432_v10 = vadd.f32 %v431_v9, %v430_v8  ;;  %v2117_v9 = vld [vmem:[%s1991_s9 + $0xd8] sm:$0xff]  ;;  %5031 = vst [vmem:[#allocation16_spill] sm:$0xff] %v2255_v52  ;;  %v2288_v39 = vmul.f32 0.5, %v5046_v49  ;;  %v2313_v49 = vmul.f32 0.5, %v5056_v57  ;;  %v2586_v52 = vld [vmem:[%s2309_s13 + $0x120] sm:$0xff] }
 0x1c9   : > { %5041 = vst [vmem:[#allocation21_spill] sm:$0xff] %v2276_v61 }
 0x1ca   : > { %1820 = vrcp.f32 %v432_v10  ;;  %v444_v14 = vand.u32 2147483648, %v432_v10  ;;  %v442_v16 = vand.u32 2147483647, %v432_v10  ;;  %vm438_vm7 = vweird.f32 %v432_v10  ;;  %5047 = vst [vmem:[#allocation24_spill] sm:$0xff] %v2288_v39  ;;  %v2512_v39 = vld [vmem:[%s2309_s13 + $0xb0] sm:$0xff] }
 0x1cb   : > { %5053 = vst [vmem:[#allocation27_spill] sm:$0xff] %v2300_v45  ;;  %v2559_v45 = vld [vmem:[%s2309_s13 + $0xf8] sm:$0xff] }
 0x1cc   : > { %v445_v18 = vor.u32 1.1754944e-38, %v444_v14  ;;  %vm443_vm9 = vcmp.eq.f32.partialorder %v442_v16, 8.507059e+37  ;;  %v2097_v16 = vld [vmem:[%s1991_s9 + $0xb8] sm:$0xff]  ;;  %5057 = vst [vmem:[#allocation29_spill] sm:$0xff] %v2313_v49  ;;  %v2549_v49 = vld [vmem:[%s2309_s13 + $0xe8] sm:$0xff] }
 0x1cd   : > { %5112 = vst [vmem:[#allocation59_spill] sm:$0xff] %v2586_v52  ;;  %v2664_v52 = vld [vmem:[%s2309_s13 + $0x198] sm:$0xff] }
 0x1ce   : > { %5127 = vst [vmem:[#allocation74_spill] sm:$0xff] %v2664_v52  ;;  %v2753_v52 = vld [vmem:[%s2309_s13 + $0x220] sm:$0xff] }
 0x1cf   : > { %5143 = vst [vmem:[#allocation90_spill] sm:$0xff] %v2753_v52  ;;  %v2869_v52 = vld [vmem:[%s2309_s13 + $0x2e0] sm:$0xff] }
 0x1d0   : > { %v1821_v11 = vpop.eup %1820  ;;  %5149 = vst [vmem:[#allocation96_spill] sm:$0xff] %v2779_v43  ;;  %v2900_v43 = vld [vmem:[%s2309_s13 + $0x308] sm:$0xff] }
 0x1d1   : > { %v434_v12 = vmul.f32 %v1821_v11, %v432_v10  ;;  %vm439_vm6 = vweird.f32 %v1821_v11  ;;  %v2087_v10 = vld [vmem:[%s1991_s9 + $0xa8] sm:$0xff]  ;;  %5150 = vst [vmem:[#allocation97_spill] sm:$0xff] %v2786_v32  ;;  %v2849_v32 = vld [vmem:[%s2309_s13 + $0x2c0] sm:$0xff] }
 0x1d2   : > { %vm440_vm8 = vmor %vm438_vm7, %vm439_vm6  ;;  %v5066_v57 = vunpack.c.h.bf16 %v2087_v10  ;;  %5151 = vst [vmem:[#allocation98_spill] sm:$0xff] %v2789_v48  ;;  %v2903_v48 = vld [vmem:[%s2309_s13 + $0x310] sm:$0xff] }
 0x1d3   : > { %v435_v13 = vsub.f32 1.0, %v434_v12  ;;  %5154 = vst [vmem:[#allocation101_spill] sm:$0xff] %v2806_v53  ;;  %v2926_v53 = vld [vmem:[%s2309_s13 + $0x338] sm:$0xff] }
 0x1d4   : > { %v2333_v0 = vmul.f32 0.5, %v5066_v57  ;;  %5155 = vst [vmem:[#allocation102_spill] sm:$0xff] %v2809_v37  ;;  %v2866_v37 = vld [vmem:[%s2309_s13 + $0x2d8] sm:$0xff] }
 0x1d5   : > { %v436_v15 = vmul.f32 %v1821_v11, %v435_v13  ;;  %v2110_v13 = vld [vmem:[%s1991_s9 + $0xd0] sm:$0xff]  ;;  %5156 = vst [vmem:[#allocation103_spill] sm:$0xff] %v2816_v38  ;;  %v2946_v38 = vld [vmem:[%s2309_s13 + $0x358] sm:$0xff] }
 0x1d6   : > { %5067 = vst [vmem:[#allocation34_spill] sm:$0xff] %v2333_v0  ;;  %v2462_v0 = vld [vmem:[%s2309_s13 + $0x60] sm:$0xff] }
 0x1d7   : > { %v437_v17 = vadd.f32 %v1821_v11, %v436_v15  ;;  %v2127_v15 = vld [vmem:[%s1991_s9 + $0xe8] sm:$0xff]  ;;  %5157 = vst [vmem:[#allocation104_spill] sm:$0xff] %v2819_v27 }
 0x1d8   : > { %5160 = vst [vmem:[#allocation107_spill] sm:$0xff] %v2836_v29  ;;  %v2876_v27 = vld [vmem:[%s2309_s13 + $0x2e8] sm:$0xff] }
 0x1d9   : > { %v441_v19 = vsel %vm440_vm8, %v1821_v11, %v437_v17  ;;  %v2090_v11 = vld [vmem:[%s1991_s9 + $0xb0] sm:$0xff]  ;;  %v2100_v17 = vld [vmem:[%s1991_s9 + $0xc0] sm:$0xff]  ;;  %5161 = vst [vmem:[#allocation108_spill] sm:$0xff] %v2839_v28  ;;  %v2919_v29 = vld [vmem:[%s2309_s13 + $0x328] sm:$0xff] }
 0x1da   : > { %v446_v20 = vsel %vm443_vm9, %v445_v18, %v441_v19  ;;  %v2120_v19 = vld [vmem:[%s1991_s9 + $0xe0] sm:$0xff]  ;;  %v2159_v18 = vmul.f32 0.5, %v487_v31  ;;  %v2183_v31 = vmul.f32 0.5, %v493_v41  ;;  %v2231_v41 = vmul.f32 0.5, %v505_v59  ;;  %5163 = vst [vmem:[#allocation110_spill] sm:$0xff] %v2849_v32  ;;  %v2939_v28 = vld [vmem:[%s2309_s13 + $0x350] sm:$0xff] }
 0x1db   : > { %v447_v21 = vmul.f32 %v1819_v2, %v446_v20  ;;  %v2137_v2 = vld [vmem:[%s1991_s9 + $0xf8] sm:$0xff]  ;;  %v5038_v59 = vunpack.c.h.bf16 %v2050_v51  ;;  %v5048_v51 = vunpack.c.l.bf16 %v2067_v62  ;;  %v5058_v62 = vunpack.c.h.bf16 %v2077_v4  ;;  %5164 = vst [vmem:[#allocation111_spill] sm:$0xff] %v2856_v36  ;;  %v2983_v36 = vld [vmem:[%s2309_s13 + $0x390] sm:$0xff]  ;;  %v3015_v32 = vld [vmem:[%s2309_s13 + $0x3c0] sm:$0xff] }
 0x1dc   : > { %5021 = vst [vmem:[#allocation10_spill] sm:$0xff] %v2231_v41  ;;  %v5064_v20 = vunpack.c.l.bf16 %v2087_v10  ;;  %v5068_v4 = vunpack.c.l.bf16 %v2090_v11  ;;  %v5076_v10 = vunpack.c.l.bf16 %v2100_v17  ;;  %v2623_v41 = vld [vmem:[%s2309_s13 + $0x160] sm:$0xff] }
 0x1dd   : > { %v448_v22 = vsel %vm411_vm4, %v447_v21, 0.0  ;;  %v2167_v21 = vmul.f32 0.5, %v489_v35  ;;  %v2199_v35 = vmul.f32 0.5, %v497_v47  ;;  %v2247_v47 = vmul.f32 0.5, %v5026_v46  ;;  %5120 = vst [vmem:[#allocation67_spill] sm:$0xff] %v2623_v41  ;;  %v2740_v41 = vld [vmem:[%s2309_s13 + $0x208] sm:$0xff] }
 0x1de   : > { %449 = vadd.xlane.f32.xlu2 %v448_v22  ;;  %v2107_v22 = vld [vmem:[%s1991_s9 + $0xc8] sm:$0xff]  ;;  %v2272_v60 = vmul.f32 0.5, %v5038_v59  ;;  %v2280_v46 = vmul.f32 0.5, %v5042_v33  ;;  %v2292_v54 = vmul.f32 0.5, %v5048_v51  ;;  %v2296_v59 = vmul.f32 0.5, %v5050_v44  ;;  %5140 = vst [vmem:[#allocation87_spill] sm:$0xff] %v2740_v41 }
 0x1df   : > { %5013 = vst [vmem:[#allocation2_spill] sm:$0xff] %v2199_v35  ;;  %v5054_v33 = vunpack.c.h.bf16 %v2070_v63  ;;  %v2317_v51 = vmul.f32 0.5, %v5058_v62  ;;  %v5060_v44 = vunpack.c.l.bf16 %v2080_v5  ;;  %v5062_v63 = vunpack.c.h.bf16 %v2080_v5  ;;  %v2799_v41 = vld [vmem:[%s2309_s13 + $0x270] sm:$0xff]  ;;  %v2893_v35 = vld [vmem:[%s2309_s13 + $0x300] sm:$0xff] }
 0x1e0   : > { %5027 = vst [vmem:[#allocation14_spill] sm:$0xff] %v2247_v47  ;;  %v2329_v8 = vmul.f32 0.5, %v5064_v20  ;;  %v2337_v62 = vmul.f32 0.5, %v5068_v4  ;;  %v5072_v5 = vunpack.c.l.bf16 %v2097_v16  ;;  %v5074_v20 = vunpack.c.h.bf16 %v2097_v16  ;;  %v2576_v47 = vld [vmem:[%s2309_s13 + $0x110] sm:$0xff] }
 0x1e1   : > { %5039 = vst [vmem:[#allocation20_spill] sm:$0xff] %v2272_v60  ;;  %v2304_v50 = vmul.f32 0.5, %v5054_v33  ;;  %v2321_v56 = vmul.f32 0.5, %v5060_v44  ;;  %v2325_v33 = vmul.f32 0.5, %v5062_v63  ;;  %v5070_v44 = vunpack.c.h.bf16 %v2090_v11  ;;  %v2532_v60 = vld [vmem:[%s2309_s13 + $0xd0] sm:$0xff] }
 0x1e2   : > { %5043 = vst [vmem:[#allocation22_spill] sm:$0xff] %v2280_v46  ;;  %v2345_v63 = vmul.f32 0.5, %v5072_v5  ;;  %v2349_v12 = vmul.f32 0.5, %v5074_v20  ;;  %v2353_v57 = vmul.f32 0.5, %v5076_v10  ;;  %v5078_v4 = vunpack.c.h.bf16 %v2100_v17  ;;  %v2376_v17 = vld [vmem:[%s2309_s13] sm:$0xff] }
 0x1e3   : > { %5049 = vst [vmem:[#allocation25_spill] sm:$0xff] %v2292_v54  ;;  %v2341_v14 = vmul.f32 0.5, %v5070_v44  ;;  %v5080_v11 = vunpack.c.l.bf16 %v2107_v22  ;;  %v5082_v5 = vunpack.c.h.bf16 %v2107_v22  ;;  %v5084_v16 = vunpack.c.l.bf16 %v2110_v13  ;;  %v2522_v46 = vld [vmem:[%s2309_s13 + $0xc0] sm:$0xff] }
 0x1e4   : > { %5051 = vst [vmem:[#allocation26_spill] sm:$0xff] %v2296_v59  ;;  %v5086_v10 = vunpack.c.h.bf16 %v2110_v13  ;;  %v5090_v22 = vunpack.c.h.bf16 %v2117_v9  ;;  %v5094_v13 = vunpack.c.h.bf16 %v2120_v19  ;;  %v2502_v59 = vld [vmem:[%s2309_s13 + $0xa0] sm:$0xff] }
 0x1e5   : > { %5055 = vst [vmem:[#allocation28_spill] sm:$0xff] %v2304_v50  ;;  %v2361_v44 = vmul.f32 0.5, %v5080_v11  ;;  %v2369_v20 = vmul.f32 0.5, %v5084_v16  ;;  %v2492_v50 = vld [vmem:[%s2309_s13 + $0x90] sm:$0xff]  ;;  %v2566_v54 = vld [vmem:[%s2309_s13 + $0x100] sm:$0xff] }
 0x1e6   : > { %5059 = vst [vmem:[#allocation30_spill] sm:$0xff] %v2317_v51  ;;  %v2482_v51 = vld [vmem:[%s2309_s13 + $0x80] sm:$0xff] }
 0x1e7   : > { %5061 = vst [vmem:[#allocation31_spill] sm:$0xff] %v2321_v56  ;;  %v2539_v56 = vld [vmem:[%s2309_s13 + $0xd8] sm:$0xff] }
 0x1e8   : > { %5063 = vst [vmem:[#allocation32_spill] sm:$0xff] %v2325_v33  ;;  %v2472_v33 = vld [vmem:[%s2309_s13 + $0x70] sm:$0xff] }
 0x1e9   : > { %5065 = vst [vmem:[#allocation33_spill] sm:$0xff] %v2329_v8  ;;  %v2529_v8 = vld [vmem:[%s2309_s13 + $0xc8] sm:$0xff] }
 0x1ea   : > { %5069 = vst [vmem:[#allocation35_spill] sm:$0xff] %v2337_v62  ;;  %v2357_v62 = vmul.f32 0.5, %v5078_v4  ;;  %v5088_v4 = vunpack.c.l.bf16 %v2117_v9  ;;  %v5098_v9 = vunpack.c.h.bf16 %v2127_v15 }
 0x1eb   : > { %5071 = vst [vmem:[#allocation36_spill] sm:$0xff] %v2341_v14  ;;  %v2519_v14 = vld [vmem:[%s2309_s13 + $0xb8] sm:$0xff] }
 0x1ec   : > { %5073 = vst [vmem:[#allocation37_spill] sm:$0xff] %v2345_v63  ;;  %v2365_v63 = vmul.f32 0.5, %v5082_v5  ;;  %v2380_v11 = vmul.f32 0.5, %v5088_v4  ;;  %v2384_v5 = vmul.f32 0.5, %v5090_v22  ;;  %v5096_v4 = vunpack.c.l.bf16 %v2127_v15 }
 0x1ed   : > { %5075 = vst [vmem:[#allocation38_spill] sm:$0xff] %v2349_v12  ;;  %v2406_v22 = vmul.f32 0.5, %v5098_v9  ;;  %v5106_v15 = vunpack.c.h.bf16 %v2137_v2  ;;  %v2452_v12 = vld [vmem:[%s2309_s13 + $0x50] sm:$0xff] }
 0x1ee   : > { %5077 = vst [vmem:[#allocation39_spill] sm:$0xff] %v2353_v57  ;;  %v2373_v57 = vmul.f32 0.5, %v5086_v10  ;;  %v2392_v10 = vmul.f32 0.5, %v5094_v13 }
 0x1ef   : > { %5079 = vst [vmem:[#allocation40_spill] sm:$0xff] %v2357_v62  ;;  %v2428_v9 = vmul.f32 0.5, %v5106_v15  ;;  %v2449_v62 = vld [vmem:[%s2309_s13 + $0x48] sm:$0xff]  ;;  %v2479_v15 = vld [vmem:[%s2309_s13 + $0x78] sm:$0xff] }
 0x1f0   : > { %5081 = vst [vmem:[#allocation41_spill] sm:$0xff] %v2361_v44  ;;  %v2509_v44 = vld [vmem:[%s2309_s13 + $0xa8] sm:$0xff] }
 0x1f1   : > { %5083 = vst [vmem:[#allocation42_spill] sm:$0xff] %v2365_v63  ;;  %v5092_v63 = vunpack.c.l.bf16 %v2120_v19  ;;  %v5102_v19 = vunpack.c.h.bf16 %v2130_v6 }
 0x1f2   : > { %5085 = vst [vmem:[#allocation43_spill] sm:$0xff] %v2369_v20  ;;  %v2398_v20 = vld [vmem:[%s2309_s13 + $0x10] sm:$0xff] }
 0x1f3   : > { %5087 = vst [vmem:[#allocation44_spill] sm:$0xff] %v2373_v57  ;;  %v2388_v16 = vmul.f32 0.5, %v5092_v63  ;;  %v2395_v57 = vld [vmem:[%s2309_s13 + $0x8] sm:$0xff]  ;;  %v5100_v63 = vunpack.c.l.bf16 %v2130_v6  ;;  %v2414_v13 = vmul.f32 0.5, %v5102_v19  ;;  %v2434_v6 = vld [vmem:[%s2309_s13 + $0x30] sm:$0xff] }
 0x1f4   : > { %5089 = vst [vmem:[#allocation45_spill] sm:$0xff] %v2380_v11  ;;  %v2402_v11 = vmul.f32 0.5, %v5096_v4  ;;  %v5104_v4 = vunpack.c.l.bf16 %v2137_v2  ;;  %v2459_v2 = vld [vmem:[%s2309_s13 + $0x58] sm:$0xff]  ;;  %v2469_v19 = vld [vmem:[%s2309_s13 + $0x68] sm:$0xff] }
 0x1f5   : > { %5091 = vst [vmem:[#allocation46_spill] sm:$0xff] %v2384_v5  ;;  %v2420_v5 = vld [vmem:[%s2309_s13 + $0x20] sm:$0xff] }
 0x1f6   : > { %5093 = vst [vmem:[#allocation47_spill] sm:$0xff] %v2388_v16  ;;  %v2410_v16 = vmul.f32 0.5, %v5100_v63  ;;  %v2431_v63 = vld [vmem:[%s2309_s13 + $0x28] sm:$0xff] }
 0x1f7   : > { %5095 = vst [vmem:[#allocation48_spill] sm:$0xff] %v2392_v10  ;;  %v2417_v10 = vld [vmem:[%s2309_s13 + $0x18] sm:$0xff] }
 0x1f8   : > { %5097 = vst [vmem:[#allocation49_spill] sm:$0xff] %v2402_v11  ;;  %v2424_v11 = vmul.f32 0.5, %v5104_v4  ;;  %v2489_v4 = vld [vmem:[%s2309_s13 + $0x88] sm:$0xff]  ;;  %v5211_v26 = vunpack.c.l.bf16 %v2417_v10 }
 0x1f9   : > { %5099 = vst [vmem:[#allocation50_spill] sm:$0xff] %v2406_v22  ;;  %v2442_v22 = vld [vmem:[%s2309_s13 + $0x40] sm:$0xff] }
 0x1fa   : > { %5101 = vst [vmem:[#allocation51_spill] sm:$0xff] %v2410_v16  ;;  %v2439_v16 = vld [vmem:[%s2309_s13 + $0x38] sm:$0xff] }
 0x1fb   : > { %5103 = vst [vmem:[#allocation52_spill] sm:$0xff] %v2414_v13  ;;  %v2499_v13 = vld [vmem:[%s2309_s13 + $0x98] sm:$0xff] }
 0x1fc   : > { %5105 = vst [vmem:[#allocation53_spill] sm:$0xff] %v2424_v11  ;;  %v2633_v11 = vld [vmem:[%s2309_s13 + $0x168] sm:$0xff] }
 0x1fd   : > { %5107 = vst [vmem:[#allocation54_spill] sm:$0xff] %v2428_v9  ;;  %v2594_v9 = vld [vmem:[%s2309_s13 + $0x130] sm:$0xff] }
 0x1fe   : > { %5108 = vst [vmem:[#allocation55_spill] sm:$0xff] %v2566_v54  ;;  %v2667_v54 = vld [vmem:[%s2309_s13 + $0x1a0] sm:$0xff] }
 0x1ff   : > { %5110 = vst [vmem:[#allocation57_spill] sm:$0xff] %v2576_v47  ;;  %v2657_v47 = vld [vmem:[%s2309_s13 + $0x190] sm:$0xff] }
 0x200   : > { %5114 = vst [vmem:[#allocation61_spill] sm:$0xff] %v2594_v9  ;;  %v2643_v9 = vld [vmem:[%s2309_s13 + $0x178] sm:$0xff] }
 0x201   : > { %5121 = vst [vmem:[#allocation68_spill] sm:$0xff] %v2633_v11  ;;  %v2686_v11 = vld [vmem:[%s2309_s13 + $0x1b8] sm:$0xff] }
 0x202   : > { %5123 = vst [vmem:[#allocation70_spill] sm:$0xff] %v2643_v9  ;;  %v2766_v9 = vld [vmem:[%s2309_s13 + $0x238] sm:$0xff] }
 0x203   : > { %5126 = vst [vmem:[#allocation73_spill] sm:$0xff] %v2657_v47  ;;  %v2716_v47 = vld [vmem:[%s2309_s13 + $0x1e8] sm:$0xff] }
 0x204   : > { %5128 = vst [vmem:[#allocation75_spill] sm:$0xff] %v2667_v54  ;;  %v2726_v54 = vld [vmem:[%s2309_s13 + $0x1f8] sm:$0xff] }
 0x205   : > { %5131 = vst [vmem:[#allocation78_spill] sm:$0xff] %v2686_v11  ;;  %v2796_v11 = vld [vmem:[%s2309_s13 + $0x268] sm:$0xff] }
 0x206   : > { %5137 = vst [vmem:[#allocation84_spill] sm:$0xff] %v2716_v47  ;;  %v2769_v47 = vld [vmem:[%s2309_s13 + $0x240] sm:$0xff] }
 0x207   : > { %5146 = vst [vmem:[#allocation93_spill] sm:$0xff] %v2766_v9  ;;  %v2829_v9 = vld [vmem:[%s2309_s13 + $0x2a0] sm:$0xff] }
 0x208   : > { %5147 = vst [vmem:[#allocation94_spill] sm:$0xff] %v2769_v47  ;;  %v2922_v47 = vld [vmem:[%s2309_s13 + $0x330] sm:$0xff] }
 0x209   : > { %5152 = vst [vmem:[#allocation99_spill] sm:$0xff] %v2796_v11  ;;  %v2859_v11 = vld [vmem:[%s2309_s13 + $0x2d0] sm:$0xff] }
 0x20a   : > { %5153 = vst [vmem:[#allocation100_spill] sm:$0xff] %v2799_v41  ;;  %v2910_v41 = vld [vmem:[%s2309_s13 + $0x318] sm:$0xff] }
 0x20b   : > { %5159 = vst [vmem:[#allocation106_spill] sm:$0xff] %v2829_v9  ;;  %v2886_v9 = vld [vmem:[%s2309_s13 + $0x2f8] sm:$0xff] }
 0x20c   : > { %5165 = vst [vmem:[#allocation112_spill] sm:$0xff] %v2859_v11  ;;  %v2969_v11 = vld [vmem:[%s2309_s13 + $0x380] sm:$0xff] }
 0x20d   : > { %5166 = vst [vmem:[#allocation113_spill] sm:$0xff] %v2866_v37  ;;  %v2993_v37 = vld [vmem:[%s2309_s13 + $0x3a0] sm:$0xff] }
 0x20e   : > { %5167 = vst [vmem:[#allocation114_spill] sm:$0xff] %v2869_v52  ;;  %v2929_v52 = vld [vmem:[%s2309_s13 + $0x340] sm:$0xff] }
 0x20f   : > { %5168 = vst [vmem:[#allocation115_spill] sm:$0xff] %v2876_v27  ;;  %v2959_v27 = vld [vmem:[%s2309_s13 + $0x370] sm:$0xff] }
 0x210   : > { %5169 = vst [vmem:[#allocation116_spill] sm:$0xff] %v2879_v42  ;;  %v3045_v42 = vld [vmem:[%s2309_s13 + $0x3f0] sm:$0xff] }
 0x211   : > { %5170 = vst [vmem:[#allocation117_spill] sm:$0xff] %v2886_v9  ;;  %v2949_v9 = vld [vmem:[%s2309_s13 + $0x360] sm:$0xff] }
 0x212   : > { %5171 = vst [vmem:[#allocation118_spill] sm:$0xff] %v2893_v35  ;;  %v3003_v35 = vld [vmem:[%s2309_s13 + $0x3b0] sm:$0xff] }
 0x213   : > { %5172 = vst [vmem:[#allocation119_spill] sm:$0xff] %v2900_v43 }
 0x214   : > { %5173 = vst [vmem:[#allocation120_spill] sm:$0xff] %v2903_v48  ;;  %v2956_v48 = vld [vmem:[%s2309_s13 + $0x368] sm:$0xff] }
 0x215   : > { %5174 = vst [vmem:[#allocation121_spill] sm:$0xff] %v2910_v41 }
 0x216   : > { %5176 = vst [vmem:[#allocation123_spill] sm:$0xff] %v2919_v29  ;;  %v3018_v29 = vld [vmem:[%s2309_s13 + $0x3c8] sm:$0xff] }
 0x217   : > { %5177 = vst [vmem:[#allocation124_spill] sm:$0xff] %v2922_v47  ;;  %v2976_v47 = vld [vmem:[%s2309_s13 + $0x388] sm:$0xff] }
 0x218   : > { %5178 = vst [vmem:[#allocation125_spill] sm:$0xff] %v2926_v53  ;;  %v3028_v53 = vld [vmem:[%s2309_s13 + $0x3d8] sm:$0xff] }
 0x219   : > { %5179 = vst [vmem:[#allocation126_spill] sm:$0xff] %v2929_v52  ;;  %v2986_v52 = vld [vmem:[%s2309_s13 + $0x398] sm:$0xff] }
 0x21a   : > { %5181 = vst [vmem:[#allocation128_spill] sm:$0xff] %v2939_v28  ;;  %v2996_v28 = vld [vmem:[%s2309_s13 + $0x3a8] sm:$0xff] }
 0x21b   : > { %5182 = vst [vmem:[#allocation129_spill] sm:$0xff] %v2946_v38  ;;  %v3006_v38 = vld [vmem:[%s2309_s13 + $0x3b8] sm:$0xff] }
 0x21c   : > { %5183 = vst [vmem:[#allocation130_spill] sm:$0xff] %v2949_v9 }
 0x21d   : > { %5184 = vst [vmem:[#allocation131_spill] sm:$0xff] %v2956_v48 }
 0x21e   : > { %5185 = vst [vmem:[#allocation132_spill] sm:$0xff] %v2959_v27 }
 0x21f   : > { %5187 = vst [vmem:[#allocation134_spill] sm:$0xff] %v2969_v11  ;;  %v3025_v11 = vld [vmem:[%s2309_s13 + $0x3d0] sm:$0xff] }
 0x220   : > { %5188 = vst [vmem:[#allocation135_spill] sm:$0xff] %v2976_v47 }
 0x221   : > { %5189 = vst [vmem:[#allocation136_spill] sm:$0xff] %v2983_v36  ;;  %v5204_v36 = vunpack.c.l.bf16 %v2376_v17 }
 0x222   : > { %5190 = vst [vmem:[#allocation137_spill] sm:$0xff] %v2986_v52  ;;  %v5208_v52 = vunpack.c.h.bf16 %v2395_v57 }
 0x223   : > { %5191 = vst [vmem:[#allocation138_spill] sm:$0xff] %v2993_v37  ;;  %v5219_v37 = vunpack.c.l.bf16 %v2439_v16 }
 0x224   : > { %5192 = vst [vmem:[#allocation139_spill] sm:$0xff] %v2996_v28 }
 0x225   : > { %5193 = vst [vmem:[#allocation140_spill] sm:$0xff] %v3003_v35  ;;  %v5205_v35 = vunpack.c.h.bf16 %v2376_v17 }
 0x226   : > { %5194 = vst [vmem:[#allocation141_spill] sm:$0xff] %v3006_v38 }
 0x227   : > { %5196 = vst [vmem:[#allocation143_spill] sm:$0xff] %v3015_v32  ;;  %v5207_v32 = vunpack.c.l.bf16 %v2395_v57  ;;  %v5212_v57 = vunpack.c.h.bf16 %v2417_v10  ;;  %v5216_v10 = vunpack.c.h.bf16 %v2431_v63 }
 0x228   : > { %5197 = vst [vmem:[#allocation144_spill] sm:$0xff] %v3018_v29  ;;  %v5217_v29 = vunpack.c.l.bf16 %v2434_v6 }
 0x229   : > { %5198 = vst [vmem:[#allocation145_spill] sm:$0xff] %v3025_v11  ;;  %v5215_v11 = vunpack.c.l.bf16 %v2431_v63  ;;  %v5220_v63 = vunpack.c.h.bf16 %v2439_v16  ;;  %v5224_v16 = vunpack.c.h.bf16 %v2449_v62 }
 0x22a   : > { %5199 = vst [vmem:[#allocation146_spill] sm:$0xff] %v3028_v53  ;;  %v5213_v53 = vunpack.c.l.bf16 %v2420_v5 }
 0x22b   : > { %5202 = vst [vmem:[#allocation149_spill] sm:$0xff] %v3045_v42  ;;  %v5223_v42 = vunpack.c.l.bf16 %v2449_v62  ;;  %v5230_v62 = vunpack.c.h.bf16 %v2459_v2 }
 0x251   : > { %v450_v61 = vpop.xlane.xlu2 %449 }
 0x252   : > { %v2651_v40 = vmul.f32 0.25, %v450_v61  ;;  %v2696_v61 = vld [vmem:[%s2309_s13 + $0x1c8] sm:$0xff] }
 0x253   : > { %5133 = vst [vmem:[#allocation80_spill] sm:$0xff] %v2696_v61  ;;  %v2826_v61 = vld [vmem:[%s2309_s13 + $0x298] sm:$0xff] }
 0x254   : > { %453 = vst.msk [vmem:[%s299_s17 - $0x1] sm:$0x1e] %vm452_vm10, %v2651_v40  ;;  %v3012_v27 = vmul.f32 0.5, %v2651_v40  ;;  %v3048_v40 = vld [vmem:[%s2309_s13 + $0x3f8] sm:$0xff] }
 0x255   : > { %5158 = vst [vmem:[#allocation105_spill] sm:$0xff] %v2826_v61  ;;  %v2913_v61 = vld [vmem:[%s2309_s13 + $0x320] sm:$0xff] }
 0x256   : > { %5175 = vst [vmem:[#allocation122_spill] sm:$0xff] %v2913_v61  ;;  %v2966_v61 = vld [vmem:[%s2309_s13 + $0x378] sm:$0xff]  ;;  %v3054_v28 = vperm.slane %v3012_v27, 1  ;;  %v3080_v47 = vperm.slane %v3012_v27, 2 }
 0x257   : > { %5186 = vst [vmem:[#allocation133_spill] sm:$0xff] %v2966_v61  ;;  %v3038_v61 = vld [vmem:[%s2309_s13 + $0x3e8] sm:$0xff] }
 0x258   : > { %5195 = vst [vmem:[#allocation142_spill] sm:$0xff] %v3012_v27  ;;  %v3072_v38 = vmul.f32 %v3054_v28, %v5204_v36  ;;  %v3077_v48 = vmul.f32 %v3054_v28, %v5205_v35  ;;  %v3085_v43 = vmul.f32 %v3054_v28, %v5207_v32  ;;  %v3090_v41 = vmul.f32 %v3054_v28, %v5208_v52 }
 0x259   : > { %5201 = vst [vmem:[#allocation148_spill] sm:$0xff] %v3038_v61  ;;  %v5209_v36 = vunpack.c.l.bf16 %v2398_v20  ;;  %v5210_v35 = vunpack.c.h.bf16 %v2398_v20  ;;  %v3105_v32 = vmul.f32 %v3054_v28, %v5211_v26  ;;  %v3110_v52 = vmul.f32 %v3054_v28, %v5212_v57 }
 0x25a   : > { %5203 = vst [vmem:[#allocation150_spill] sm:$0xff] %v3048_v40  ;;  %v5214_v20 = vunpack.c.h.bf16 %v2420_v5  ;;  %v3125_v26 = vmul.f32 %v3054_v28, %v5215_v11  ;;  %v3130_v57 = vmul.f32 %v3054_v28, %v5216_v10  ;;  %v5218_v5 = vunpack.c.h.bf16 %v2434_v6 }
 0x25b   : > { %5206 = vst [vmem:[#allocation151_spill] sm:$0xff] %v3080_v47  ;;  %v3095_v17 = vmul.f32 %v3054_v28, %v5209_v36  ;;  %v3100_v9 = vmul.f32 %v3054_v28, %v5210_v35  ;;  %v3115_v36 = vmul.f32 %v3054_v28, %v5213_v53  ;;  %v3135_v53 = vmul.f32 %v3054_v28, %v5217_v29 }
 0x25c   : > { %v3120_v35 = vmul.f32 %v3054_v28, %v5214_v20  ;;  %v3140_v20 = vmul.f32 %v3054_v28, %v5218_v5  ;;  %v3145_v11 = vmul.f32 %v3054_v28, %v5219_v37  ;;  %v3150_v10 = vmul.f32 %v3054_v28, %v5220_v63 }
 0x25d   : > { %v5221_v40 = vunpack.c.l.bf16 %v2442_v22  ;;  %v5222_v6 = vunpack.c.h.bf16 %v2442_v22  ;;  %v3165_v37 = vmul.f32 %v3054_v28, %v5223_v42  ;;  %v3170_v63 = vmul.f32 %v3054_v28, %v5224_v16 }
 0x25e   : > { %v5226_v61 = vunpack.c.l.bf16 %v2452_v12  ;;  %v5227_v22 = vunpack.c.h.bf16 %v2452_v12  ;;  %v5229_v27 = vunpack.c.l.bf16 %v2459_v2  ;;  %v3190_v16 = vmul.f32 %v3054_v28, %v5230_v62 }
 0x25f   : > { %v3155_v29 = vmul.f32 %v3054_v28, %v5221_v40  ;;  %v3160_v5 = vmul.f32 %v3054_v28, %v5222_v6  ;;  %5225 = vst [vmem:[#allocation152_spill] sm:$0xff] %v3170_v63  ;;  %v5232_v63 = vunpack.c.l.bf16 %v2462_v0  ;;  %v5233_v12 = vunpack.c.h.bf16 %v2462_v0 }
 0x260   : > { %v3175_v40 = vmul.f32 %v3054_v28, %v5226_v61  ;;  %v3180_v6 = vmul.f32 %v3054_v28, %v5227_v22  ;;  %v3185_v42 = vmul.f32 %v3054_v28, %v5229_v27  ;;  %5231 = vst [vmem:[#allocation154_spill] sm:$0xff] %v3190_v16  ;;  %v5236_v2 = vunpack.c.h.bf16 %v2469_v19 }
 0x261   : > { %v3195_v61 = vmul.f32 %v3054_v28, %v5232_v63  ;;  %v3200_v22 = vmul.f32 %v3054_v28, %v5233_v12  ;;  %v5238_v16 = vunpack.c.l.bf16 %v2472_v33  ;;  %v5239_v0 = vunpack.c.h.bf16 %v2472_v33 }
 0x262   : > { %5228 = vst [vmem:[#allocation153_spill] sm:$0xff] %v3180_v6  ;;  %v5235_v6 = vunpack.c.l.bf16 %v2469_v19  ;;  %v3210_v62 = vmul.f32 %v3054_v28, %v5236_v2  ;;  %v5242_v19 = vunpack.c.h.bf16 %v2479_v15  ;;  %v5245_v33 = vunpack.c.h.bf16 %v2482_v51 }
 0x263   : > { %5234 = vst [vmem:[#allocation155_spill] sm:$0xff] %v3200_v22  ;;  %v3215_v63 = vmul.f32 %v3054_v28, %v5238_v16  ;;  %v3220_v12 = vmul.f32 %v3054_v28, %v5239_v0  ;;  %v5241_v22 = vunpack.c.l.bf16 %v2479_v15  ;;  %v5248_v15 = vunpack.c.h.bf16 %v2489_v4 }
 0x264   : > { %v3205_v27 = vmul.f32 %v3054_v28, %v5235_v6  ;;  %5237 = vst [vmem:[#allocation156_spill] sm:$0xff] %v3210_v62  ;;  %v3230_v2 = vmul.f32 %v3054_v28, %v5242_v19  ;;  %v5244_v62 = vunpack.c.l.bf16 %v2482_v51  ;;  %v3240_v0 = vmul.f32 %v3054_v28, %v5245_v33 }
 0x265   : > { %5240 = vst [vmem:[#allocation157_spill] sm:$0xff] %v3220_v12  ;;  %v3225_v6 = vmul.f32 %v3054_v28, %v5241_v22  ;;  %v5247_v12 = vunpack.c.l.bf16 %v2489_v4  ;;  %v3250_v19 = vmul.f32 %v3054_v28, %v5248_v15  ;;  %v5251_v51 = vunpack.c.h.bf16 %v2726_v54 }
 0x266   : > { %5243 = vst [vmem:[#allocation158_spill] sm:$0xff] %v3230_v2  ;;  %v3235_v16 = vmul.f32 %v3054_v28, %v5244_v62  ;;  %v5250_v2 = vunpack.c.l.bf16 %v2726_v54  ;;  %v5253_v4 = vunpack.c.h.bf16 %v2492_v50  ;;  %v5256_v54 = vunpack.c.h.bf16 %v2499_v13 }
 0x267   : > { %5246 = vst [vmem:[#allocation159_spill] sm:$0xff] %v3240_v0  ;;  %v3245_v22 = vmul.f32 %v3054_v28, %v5247_v12  ;;  %v3260_v33 = vmul.f32 %v3080_v47, %v5251_v51  ;;  %v5252_v0 = vunpack.c.l.bf16 %v2492_v50  ;;  %v5259_v50 = vunpack.c.h.bf16 %v2502_v59 }
 0x268   : > { %5249 = vst [vmem:[#allocation160_spill] sm:$0xff] %v3250_v19  ;;  %v3255_v62 = vmul.f32 %v3080_v47, %v5250_v2  ;;  %v3270_v15 = vmul.f32 %v3054_v28, %v5253_v4  ;;  %v5255_v19 = vunpack.c.l.bf16 %v2499_v13  ;;  %v3280_v51 = vmul.f32 %v3054_v28, %v5256_v54 }
 0x269   : > { %v3265_v12 = vmul.f32 %v3054_v28, %v5252_v0  ;;  %v5258_v47 = vunpack.c.l.bf16 %v2502_v59  ;;  %v3290_v4 = vmul.f32 %v3054_v28, %v5259_v50  ;;  %v5262_v13 = vunpack.c.h.bf16 %v2509_v44 }
 0x26a   : > { %5254 = vst [vmem:[#allocation161_spill] sm:$0xff] %v3270_v15  ;;  %v3275_v2 = vmul.f32 %v3054_v28, %v5255_v19  ;;  %v5261_v15 = vunpack.c.l.bf16 %v2509_v44  ;;  %v5265_v59 = vunpack.c.h.bf16 %v2512_v39  ;;  %v5268_v44 = vunpack.c.h.bf16 %v2519_v14 }
 0x26b   : > { %5257 = vst [vmem:[#allocation162_spill] sm:$0xff] %v3280_v51  ;;  %v3285_v0 = vmul.f32 %v3054_v28, %v5258_v47  ;;  %v3300_v54 = vmul.f32 %v3054_v28, %v5262_v13  ;;  %v5264_v51 = vunpack.c.l.bf16 %v2512_v39  ;;  %v5271_v39 = vunpack.c.h.bf16 %v2522_v46 }
 0x26c   : > { %5260 = vst [vmem:[#allocation163_spill] sm:$0xff] %v3290_v4  ;;  %v3295_v19 = vmul.f32 %v3054_v28, %v5261_v15  ;;  %v3310_v50 = vmul.f32 %v3054_v28, %v5265_v59  ;;  %v5267_v4 = vunpack.c.l.bf16 %v2519_v14  ;;  %v3320_v13 = vmul.f32 %v3054_v28, %v5268_v44 }
 0x26d   : > { %5263 = vst [vmem:[#allocation164_spill] sm:$0xff] %v3300_v54  ;;  %v3305_v47 = vmul.f32 %v3054_v28, %v5264_v51  ;;  %v5270_v54 = vunpack.c.l.bf16 %v2522_v46  ;;  %v3330_v59 = vmul.f32 %v3054_v28, %v5271_v39  ;;  %v5274_v14 = vunpack.c.h.bf16 %v2529_v8 }
 0x26e   : > { %5266 = vst [vmem:[#allocation165_spill] sm:$0xff] %v3310_v50  ;;  %v3315_v15 = vmul.f32 %v3054_v28, %v5267_v4  ;;  %v5273_v50 = vunpack.c.l.bf16 %v2529_v8  ;;  %v5277_v46 = vunpack.c.h.bf16 %v2532_v60  ;;  %v5280_v8 = vunpack.c.h.bf16 %v2539_v56 }
 0x26f   : > { %5269 = vst [vmem:[#allocation166_spill] sm:$0xff] %v3320_v13  ;;  %v3325_v51 = vmul.f32 %v3054_v28, %v5270_v54  ;;  %v3340_v44 = vmul.f32 %v3054_v28, %v5274_v14  ;;  %v5276_v13 = vunpack.c.l.bf16 %v2532_v60  ;;  %v5283_v60 = vunpack.c.h.bf16 %v2542_v55 }
 0x270   : > { %5272 = vst [vmem:[#allocation167_spill] sm:$0xff] %v3330_v59  ;;  %v3335_v4 = vmul.f32 %v3054_v28, %v5273_v50  ;;  %v3350_v39 = vmul.f32 %v3054_v28, %v5277_v46  ;;  %v5279_v59 = vunpack.c.l.bf16 %v2539_v56  ;;  %v3360_v14 = vmul.f32 %v3054_v28, %v5280_v8 }
 0x271   : > { %5275 = vst [vmem:[#allocation168_spill] sm:$0xff] %v3340_v44  ;;  %v3345_v54 = vmul.f32 %v3054_v28, %v5276_v13  ;;  %v5282_v44 = vunpack.c.l.bf16 %v2542_v55  ;;  %v3370_v46 = vmul.f32 %v3054_v28, %v5283_v60  ;;  %v5287_v56 = vunpack.c.h.bf16 %v2549_v49 }
 0x272   : > { %5278 = vst [vmem:[#allocation169_spill] sm:$0xff] %v3350_v39  ;;  %v3355_v50 = vmul.f32 %v3054_v28, %v5279_v59  ;;  %v5285_v39 = vunpack.c.l.bf16 %v2549_v49  ;;  %v5289_v55 = vunpack.c.h.bf16 %v2552_v58 }
 0x273   : > { %5281 = vst [vmem:[#allocation170_spill] sm:$0xff] %v3360_v14  ;;  %v3365_v13 = vmul.f32 %v3054_v28, %v5282_v44  ;;  %v3380_v8 = vmul.f32 %v3054_v28, %v5287_v56  ;;  %v5288_v14 = vunpack.c.l.bf16 %v2552_v58  ;;  %v3400_v56 = vadd.f32 %v3072_v38, %v2155_v1  ;;  %v5296_v38 = vld [vmem:[#allocation6_spill] sm:$0xff] }
 0x274   : > { %5284 = vst [vmem:[#allocation171_spill] sm:$0xff] %v3370_v46  ;;  %v3375_v59 = vmul.f32 %v3054_v28, %v5285_v39  ;;  %v3390_v60 = vmul.f32 %v3054_v28, %v5289_v55  ;;  %v5290_v46 = vunpack.c.l.bf16 %v2559_v45  ;;  %v3408_v58 = vadd.f32 %v3085_v43, %v2163_v3  ;;  %v5294_v43 = vld [vmem:[#allocation4_spill] sm:$0xff] }
 0x275   : > { %v3385_v44 = vmul.f32 %v3054_v28, %v5288_v14  ;;  %v3404_v14 = vadd.f32 %v3077_v48, %v2159_v18  ;;  %v3412_v55 = vadd.f32 %v3090_v41, %v2167_v21  ;;  %v3420_v1 = vadd.f32 %v3100_v9, %v2175_v30  ;;  %v5293_v41 = vld [vmem:[#allocation3_spill] sm:$0xff]  ;;  %v5295_v48 = vld [vmem:[#allocation5_spill] sm:$0xff] }
 0x276   : > { %5286 = vst [vmem:[#allocation172_spill] sm:$0xff] %v3375_v59  ;;  %v774_v39 = vmul.f32 %v3054_v28, %v5290_v46  ;;  %v5291_v59 = vunpack.c.h.bf16 %v2559_v45  ;;  %v3416_v45 = vadd.f32 %v3095_v17, %v2171_v7  ;;  %v3424_v18 = vadd.f32 %v3105_v32, %v2179_v23  ;;  %v5297_v9 = vld [vmem:[#allocation7_spill] sm:$0xff]  ;;  %v5298_v32 = vld [vmem:[#allocation8_spill] sm:$0xff] }
 0x277   : > { %v3428_v3 = vadd.f32 %v3110_v52, %v2183_v31  ;;  %v3432_v21 = vadd.f32 %v3115_v36, %v2187_v24  ;;  %v3436_v7 = vadd.f32 %v3120_v35, %v2191_v34  ;;  %v3440_v30 = vadd.f32 %v3125_v26, %v2195_v25  ;;  %v5299_v36 = vld [vmem:[#allocation53_spill] sm:$0xff]  ;;  %v5300_v26 = vld [vmem:[#allocation54_spill] sm:$0xff]  ;;  %v5303_v46 = vld [vmem:[#allocation152_spill] sm:$0xff] }
 0x278   : > { %v775_v49 = vmul.f32 %v3054_v28, %v5291_v59  ;;  %v5292_v28 = vld [vmem:[#allocation2_spill] sm:$0xff]  ;;  %v3448_v31 = vadd.f32 %v3135_v53, %v5293_v41  ;;  %v3452_v24 = vadd.f32 %v3140_v20, %v5294_v43  ;;  %v3456_v34 = vadd.f32 %v3145_v11, %v5295_v48  ;;  %v5301_v53 = vld [vmem:[#allocation9_spill] sm:$0xff]  ;;  %v5304_v59 = vld [vmem:[#allocation11_spill] sm:$0xff] }
 0x279   : > { %v3444_v23 = vadd.f32 %v3130_v57, %v5292_v28  ;;  %v3460_v25 = vadd.f32 %v3150_v10, %v5296_v38  ;;  %v3464_v17 = vadd.f32 %v3155_v29, %v5297_v9  ;;  %v3468_v52 = vadd.f32 %v3160_v5, %v5298_v32  ;;  %v5302_v11 = vld [vmem:[#allocation10_spill] sm:$0xff]  ;;  %v5305_v28 = vld [vmem:[#allocation12_spill] sm:$0xff]  ;;  %v5306_v41 = vld [vmem:[#allocation153_spill] sm:$0xff] }
 0x27a   : > { %v838_v35 = vadd.f32 %v774_v39, %v5299_v36  ;;  %v839_v57 = vadd.f32 %v775_v49, %v5300_v26  ;;  %v3474_v20 = vadd.f32 %v3165_v37, %v5301_v53  ;;  %v3478_v10 = vadd.f32 %v5303_v46, %v5302_v11  ;;  %v5307_v43 = vld [vmem:[#allocation13_spill] sm:$0xff]  ;;  %v5308_v49 = vld [vmem:[#allocation14_spill] sm:$0xff]  ;;  %v5310_v38 = vld [vmem:[#allocation15_spill] sm:$0xff] }
 0x27b   : > { %v3482_v29 = vadd.f32 %v3175_v40, %v5304_v59  ;;  %v3486_v5 = vadd.f32 %v5306_v41, %v5305_v28  ;;  %v3490_v39 = vadd.f32 %v3185_v42, %v5307_v43  ;;  %v5309_v48 = vld [vmem:[#allocation154_spill] sm:$0xff]  ;;  %v3498_v9 = vadd.f32 %v3195_v61, %v5310_v38  ;;  %v5312_v32 = vld [vmem:[#allocation16_spill] sm:$0xff]  ;;  %v5313_v36 = vld [vmem:[#allocation155_spill] sm:$0xff] }
 0x27c   : > { %v3494_v37 = vadd.f32 %v5309_v48, %v5308_v49  ;;  %v3502_v40 = vadd.f32 %v5313_v36, %v5312_v32  ;;  %v5315_v26 = vld [vmem:[#allocation17_spill] sm:$0xff]  ;;  %v5317_v11 = vld [vmem:[#allocation18_spill] sm:$0xff]  ;;  %v5318_v46 = vld [vmem:[#allocation156_spill] sm:$0xff]  ;;  %v3529_v36 = vadd.f32 %v3255_v62, %v838_v35 }
 0x27d   : > { %5311 = vst [vmem:[#allocation2_spill] sm:$0xff] %v3498_v9  ;;  %v3506_v53 = vadd.f32 %v3205_v27, %v5315_v26  ;;  %v3510_v42 = vadd.f32 %v5318_v46, %v5317_v11  ;;  %v5320_v59 = vld [vmem:[#allocation19_spill] sm:$0xff]  ;;  %v5322_v41 = vld [vmem:[#allocation20_spill] sm:$0xff]  ;;  %v5323_v43 = vld [vmem:[#allocation157_spill] sm:$0xff]  ;;  %v3532_v26 = vadd.f32 %v3260_v33, %v839_v57 }
 0x27e   : > { %5314 = vst [vmem:[#allocation3_spill] sm:$0xff] %v3502_v40  ;;  %v3514_v28 = vadd.f32 %v3215_v63, %v5320_v59  ;;  %v3518_v61 = vadd.f32 %v5323_v43, %v5322_v41  ;;  %v5325_v49 = vld [vmem:[#allocation21_spill] sm:$0xff]  ;;  %v5327_v38 = vld [vmem:[#allocation22_spill] sm:$0xff]  ;;  %v5332_v63 = vld [vmem:[#allocation23_spill] sm:$0xff] }
 0x27f   : > { %5316 = vst [vmem:[#allocation4_spill] sm:$0xff] %v3506_v53  ;;  %v3522_v48 = vadd.f32 %v3225_v6, %v5325_v49  ;;  %v5328_v32 = vld [vmem:[#allocation158_spill] sm:$0xff]  ;;  %v3536_v11 = vadd.f32 %v3235_v16, %v5332_v63  ;;  %v5334_v46 = vld [vmem:[#allocation24_spill] sm:$0xff]  ;;  %v5335_v59 = vld [vmem:[#allocation159_spill] sm:$0xff] }
 0x280   : > { %5319 = vst [vmem:[#allocation5_spill] sm:$0xff] %v3510_v42  ;;  %v3526_v27 = vadd.f32 %v5328_v32, %v5327_v38  ;;  %v3540_v41 = vadd.f32 %v5335_v59, %v5334_v46  ;;  %v5337_v6 = vld [vmem:[#allocation25_spill] sm:$0xff]  ;;  %v5339_v49 = vld [vmem:[#allocation26_spill] sm:$0xff]  ;;  %v5340_v38 = vld [vmem:[#allocation160_spill] sm:$0xff] }
 0x281   : > { %5321 = vst [vmem:[#allocation6_spill] sm:$0xff] %v3514_v28  ;;  %v3544_v43 = vadd.f32 %v3245_v22, %v5337_v6  ;;  %v3548_v32 = vadd.f32 %v5340_v38, %v5339_v49  ;;  %v5342_v62 = vld [vmem:[#allocation27_spill] sm:$0xff]  ;;  %v5344_v35 = vld [vmem:[#allocation28_spill] sm:$0xff]  ;;  %v5345_v57 = vld [vmem:[#allocation161_spill] sm:$0xff] }
 0x282   : > { %5324 = vst [vmem:[#allocation7_spill] sm:$0xff] %v3518_v61  ;;  %v3552_v33 = vadd.f32 %v3265_v12, %v5342_v62  ;;  %v3556_v16 = vadd.f32 %v5345_v57, %v5344_v35  ;;  %v5347_v63 = vld [vmem:[#allocation29_spill] sm:$0xff]  ;;  %v5349_v59 = vld [vmem:[#allocation30_spill] sm:$0xff]  ;;  %v5352_v6 = vld [vmem:[#allocation31_spill] sm:$0xff] }
 0x283   : > { %5326 = vst [vmem:[#allocation8_spill] sm:$0xff] %v3522_v48  ;;  %v3560_v46 = vadd.f32 %v3275_v2, %v5347_v63  ;;  %v3568_v49 = vadd.f32 %v3285_v0, %v5352_v6  ;;  %v5354_v38 = vld [vmem:[#allocation32_spill] sm:$0xff]  ;;  %v5357_v62 = vld [vmem:[#allocation33_spill] sm:$0xff]  ;;  %v5359_v57 = vld [vmem:[#allocation34_spill] sm:$0xff] }
 0x284   : > { %5329 = vst [vmem:[#allocation53_spill] sm:$0xff] %v3526_v27  ;;  %v3576_v35 = vadd.f32 %v3295_v19, %v5357_v62  ;;  %v5362_v63 = vld [vmem:[#allocation35_spill] sm:$0xff]  ;;  %v5367_v6 = vld [vmem:[#allocation37_spill] sm:$0xff]  ;;  %v5444_v28 = vld [vmem:[#allocation142_spill] sm:$0xff] }
 0x285   : > { %5330 = vst [vmem:[#allocation54_spill] sm:$0xff] %v3529_v36  ;;  %v5372_v62 = vld [vmem:[#allocation39_spill] sm:$0xff] }
 0x286   : > { %5331 = vst [vmem:[#allocation9_spill] sm:$0xff] %v3532_v26  ;;  %v5435_v26 = vld [vmem:[#allocation65_spill] sm:$0xff]  ;;  %v5441_v48 = vld [vmem:[#allocation67_spill] sm:$0xff] }
 0x287   : > { %5333 = vst [vmem:[#allocation10_spill] sm:$0xff] %v3536_v11  ;;  %v5436_v36 = vunpack.c.l.bf16 %v5435_v26  ;;  %v5438_v11 = vld [vmem:[#allocation66_spill] sm:$0xff]  ;;  %v5442_v61 = vunpack.c.l.bf16 %v5441_v48 }
 0x288   : > { %5336 = vst [vmem:[#allocation152_spill] sm:$0xff] %v3540_v41  ;;  %v5350_v41 = vld [vmem:[#allocation162_spill] sm:$0xff]  ;;  %v5439_v27 = vunpack.c.l.bf16 %v5438_v11 }
 0x289   : > { %5338 = vst [vmem:[#allocation11_spill] sm:$0xff] %v3544_v43  ;;  %v3564_v22 = vadd.f32 %v5350_v41, %v5349_v59  ;;  %v3584_v41 = vadd.f32 %v3305_v47, %v5362_v63  ;;  %v5364_v59 = vld [vmem:[#allocation36_spill] sm:$0xff]  ;;  %v5377_v63 = vld [vmem:[#allocation41_spill] sm:$0xff] }
 0x28a   : > { %5341 = vst [vmem:[#allocation12_spill] sm:$0xff] %v3548_v32  ;;  %v5355_v32 = vld [vmem:[#allocation163_spill] sm:$0xff] }
 0x28b   : > { %5343 = vst [vmem:[#allocation153_spill] sm:$0xff] %v3552_v33  ;;  %v3572_v12 = vadd.f32 %v5355_v32, %v5354_v38  ;;  %v3592_v32 = vadd.f32 %v3315_v15, %v5367_v6  ;;  %v5369_v38 = vld [vmem:[#allocation38_spill] sm:$0xff]  ;;  %v5382_v6 = vld [vmem:[#allocation43_spill] sm:$0xff]  ;;  %v5432_v33 = vld [vmem:[#allocation64_spill] sm:$0xff] }
 0x28c   : > { %5346 = vst [vmem:[#allocation13_spill] sm:$0xff] %v3556_v16  ;;  %v5360_v16 = vld [vmem:[#allocation164_spill] sm:$0xff]  ;;  %v5433_v43 = vunpack.c.l.bf16 %v5432_v33 }
 0x28d   : > { %5348 = vst [vmem:[#allocation14_spill] sm:$0xff] %v3560_v46  ;;  %v3580_v2 = vadd.f32 %v5360_v16, %v5359_v57  ;;  %v3600_v16 = vadd.f32 %v3325_v51, %v5372_v62  ;;  %v5374_v57 = vld [vmem:[#allocation40_spill] sm:$0xff]  ;;  %v5387_v62 = vld [vmem:[#allocation45_spill] sm:$0xff] }
 0x28e   : > { %5351 = vst [vmem:[#allocation154_spill] sm:$0xff] %v3564_v22  ;;  %v5365_v22 = vld [vmem:[#allocation165_spill] sm:$0xff] }
 0x28f   : > { %5353 = vst [vmem:[#allocation15_spill] sm:$0xff] %v3568_v49  ;;  %v3588_v0 = vadd.f32 %v5365_v22, %v5364_v59  ;;  %v3608_v22 = vadd.f32 %v3335_v4, %v5377_v63  ;;  %v5379_v59 = vld [vmem:[#allocation42_spill] sm:$0xff]  ;;  %v5392_v63 = vld [vmem:[#allocation47_spill] sm:$0xff] }
 0x290   : > { %5356 = vst [vmem:[#allocation16_spill] sm:$0xff] %v3572_v12  ;;  %v5370_v12 = vld [vmem:[#allocation166_spill] sm:$0xff]  ;;  %v5429_v49 = vld [vmem:[#allocation63_spill] sm:$0xff] }
 0x291   : > { %5358 = vst [vmem:[#allocation155_spill] sm:$0xff] %v3576_v35  ;;  %v3596_v19 = vadd.f32 %v5370_v12, %v5369_v38  ;;  %v3616_v12 = vadd.f32 %v3345_v54, %v5382_v6  ;;  %v5384_v38 = vld [vmem:[#allocation44_spill] sm:$0xff]  ;;  %v5397_v6 = vld [vmem:[#allocation49_spill] sm:$0xff]  ;;  %v5430_v46 = vunpack.c.l.bf16 %v5429_v49 }
 0x292   : > { %5361 = vst [vmem:[#allocation17_spill] sm:$0xff] %v3580_v2  ;;  %v5375_v2 = vld [vmem:[#allocation167_spill] sm:$0xff] }
 0x293   : > { %5363 = vst [vmem:[#allocation18_spill] sm:$0xff] %v3584_v41  ;;  %v3604_v47 = vadd.f32 %v5375_v2, %v5374_v57  ;;  %v3624_v2 = vadd.f32 %v3355_v50, %v5387_v62  ;;  %v5389_v57 = vld [vmem:[#allocation46_spill] sm:$0xff]  ;;  %v5402_v62 = vld [vmem:[#allocation51_spill] sm:$0xff] }
 0x294   : > { %5366 = vst [vmem:[#allocation156_spill] sm:$0xff] %v3588_v0  ;;  %v5380_v0 = vld [vmem:[#allocation168_spill] sm:$0xff]  ;;  %v5426_v41 = vld [vmem:[#allocation62_spill] sm:$0xff] }
 0x295   : > { %5368 = vst [vmem:[#allocation19_spill] sm:$0xff] %v3592_v32  ;;  %v3612_v15 = vadd.f32 %v5380_v0, %v5379_v59  ;;  %v3632_v0 = vadd.f32 %v3365_v13, %v5392_v63  ;;  %v5394_v59 = vld [vmem:[#allocation48_spill] sm:$0xff]  ;;  %v5404_v63 = vld [vmem:[#allocation55_spill] sm:$0xff]  ;;  %v5427_v35 = vunpack.c.l.bf16 %v5426_v41 }
 0x296   : > { %5371 = vst [vmem:[#allocation20_spill] sm:$0xff] %v3596_v19  ;;  %v5385_v19 = vld [vmem:[#allocation169_spill] sm:$0xff] }
 0x297   : > { %5373 = vst [vmem:[#allocation157_spill] sm:$0xff] %v3600_v16  ;;  %v3620_v51 = vadd.f32 %v5385_v19, %v5384_v38  ;;  %v5400_v38 = vld [vmem:[#allocation50_spill] sm:$0xff]  ;;  %v5423_v16 = vld [vmem:[#allocation61_spill] sm:$0xff] }
 0x298   : > { %5376 = vst [vmem:[#allocation21_spill] sm:$0xff] %v3604_v47  ;;  %v5390_v47 = vld [vmem:[#allocation170_spill] sm:$0xff]  ;;  %v3644_v50 = vadd.f32 %v3380_v8, %v5400_v38  ;;  %v5408_v8 = vld [vmem:[#allocation56_spill] sm:$0xff]  ;;  %v5424_v32 = vunpack.c.l.bf16 %v5423_v16 }
 0x299   : > { %5378 = vst [vmem:[#allocation22_spill] sm:$0xff] %v3608_v22  ;;  %v3628_v4 = vadd.f32 %v5390_v47, %v5389_v57  ;;  %v3648_v47 = vadd.f32 %v3385_v44, %v5402_v62  ;;  %v5403_v57 = vld [vmem:[#allocation52_spill] sm:$0xff]  ;;  %v5409_v38 = vunpack.c.l.bf16 %v5408_v8  ;;  %v5410_v44 = vunpack.c.h.bf16 %v5408_v8  ;;  %v5411_v62 = vld [vmem:[#allocation57_spill] sm:$0xff] }
 0x29a   : > { %5381 = vst [vmem:[#allocation158_spill] sm:$0xff] %v3612_v15  ;;  %v5395_v15 = vld [vmem:[#allocation171_spill] sm:$0xff]  ;;  %v3652_v13 = vadd.f32 %v3390_v60, %v5403_v57  ;;  %v5412_v57 = vunpack.c.l.bf16 %v5411_v62 }
 0x29b   : > { %5383 = vst [vmem:[#allocation23_spill] sm:$0xff] %v3616_v12  ;;  %v3636_v54 = vadd.f32 %v5395_v15, %v5394_v59  ;;  %v5398_v12 = vld [vmem:[#allocation172_spill] sm:$0xff]  ;;  %v5406_v15 = vld [vmem:[#allocation151_spill] sm:$0xff] }
 0x29c   : > { %5386 = vst [vmem:[#allocation24_spill] sm:$0xff] %v3620_v51  ;;  %v3640_v19 = vadd.f32 %v5398_v12, %v5397_v6  ;;  %v5407_v12 = vunpack.c.h.bf16 %v5404_v63  ;;  %v3672_v60 = vmul.f32 %v5406_v15, %v5410_v44  ;;  %v5420_v51 = vld [vmem:[#allocation60_spill] sm:$0xff] }
 0x29d   : > { %5388 = vst [vmem:[#allocation159_spill] sm:$0xff] %v3624_v2  ;;  %v5421_v22 = vunpack.c.l.bf16 %v5420_v51 }
 0x29e   : > { %5391 = vst [vmem:[#allocation25_spill] sm:$0xff] %v3628_v4  ;;  %v3662_v6 = vmul.f32 %v5406_v15, %v5407_v12  ;;  %v5417_v4 = vld [vmem:[#allocation59_spill] sm:$0xff] }
 0x29f   : > { %5393 = vst [vmem:[#allocation26_spill] sm:$0xff] %v3632_v0  ;;  %v5405_v0 = vunpack.c.l.bf16 %v5404_v63  ;;  %v5413_v63 = vunpack.c.h.bf16 %v5411_v62  ;;  %v5418_v2 = vunpack.c.l.bf16 %v5417_v4  ;;  %v5419_v62 = vunpack.c.h.bf16 %v5417_v4 }
 0x2a0   : > { %5396 = vst [vmem:[#allocation160_spill] sm:$0xff] %v3636_v54  ;;  %v5425_v4 = vunpack.c.h.bf16 %v5423_v16  ;;  %v5431_v16 = vunpack.c.h.bf16 %v5429_v49  ;;  %v5437_v49 = vunpack.c.h.bf16 %v5435_v26  ;;  %v3780_v26 = vperm.slane %v5444_v28, 3 }
 0x2a1   : > { %5399 = vst [vmem:[#allocation27_spill] sm:$0xff] %v3640_v19  ;;  %v3657_v59 = vmul.f32 %v5406_v15, %v5405_v0  ;;  %v3677_v0 = vmul.f32 %v5406_v15, %v5412_v57  ;;  %v3682_v12 = vmul.f32 %v5406_v15, %v5413_v63  ;;  %v5414_v19 = vld [vmem:[#allocation58_spill] sm:$0xff]  ;;  %v3697_v57 = vmul.f32 %v5406_v15, %v5418_v2 }
 0x2a2   : > { %5401 = vst [vmem:[#allocation28_spill] sm:$0xff] %v3644_v50  ;;  %v3667_v50 = vmul.f32 %v5406_v15, %v5409_v38  ;;  %v5415_v54 = vunpack.c.l.bf16 %v5414_v19  ;;  %v5416_v8 = vunpack.c.h.bf16 %v5414_v19  ;;  %v3702_v63 = vmul.f32 %v5406_v15, %v5419_v62 }
 0x2a3   : > { %v5422_v19 = vunpack.c.h.bf16 %v5420_v51  ;;  %v3717_v2 = vmul.f32 %v5406_v15, %v5424_v32  ;;  %v3722_v62 = vmul.f32 %v5406_v15, %v5425_v4  ;;  %v5428_v51 = vunpack.c.h.bf16 %v5426_v41  ;;  %5445 = vst [vmem:[#allocation29_spill] sm:$0xff] %v3780_v26 }
 0x2a4   : > { %v3687_v38 = vmul.f32 %v5406_v15, %v5415_v54  ;;  %v3692_v44 = vmul.f32 %v5406_v15, %v5416_v8  ;;  %v3707_v54 = vmul.f32 %v5406_v15, %v5421_v22  ;;  %v3727_v22 = vmul.f32 %v5406_v15, %v5427_v35 }
 0x2a5   : > { %v3712_v8 = vmul.f32 %v5406_v15, %v5422_v19  ;;  %v3732_v19 = vmul.f32 %v5406_v15, %v5428_v51  ;;  %v3737_v32 = vmul.f32 %v5406_v15, %v5430_v46  ;;  %v3742_v4 = vmul.f32 %v5406_v15, %v5431_v16 }
 0x2a6   : > { %v3747_v35 = vmul.f32 %v5406_v15, %v5433_v43  ;;  %v5434_v41 = vunpack.c.h.bf16 %v5432_v33  ;;  %v3757_v46 = vmul.f32 %v5406_v15, %v5436_v36  ;;  %v3762_v16 = vmul.f32 %v5406_v15, %v5437_v49 }
 0x2a7   : > { %v3767_v43 = vmul.f32 %v5406_v15, %v5439_v27  ;;  %v5440_v33 = vunpack.c.h.bf16 %v5438_v11  ;;  %v3777_v36 = vmul.f32 %v5406_v15, %v5442_v61  ;;  %v5446_v49 = vunpack.c.h.bf16 %v5441_v48  ;;  %v5448_v27 = vld [vmem:[#allocation68_spill] sm:$0xff]  ;;  %v5453_v61 = vld [vmem:[#allocation69_spill] sm:$0xff] }
 0x2a8   : > { %v3752_v51 = vmul.f32 %v5406_v15, %v5434_v41  ;;  %v5449_v53 = vunpack.c.l.bf16 %v5448_v27  ;;  %v5456_v48 = vunpack.c.h.bf16 %v5453_v61 }
 0x2a9   : > { %v3772_v41 = vmul.f32 %v5406_v15, %v5440_v33  ;;  %5443 = vst [vmem:[#allocation161_spill] sm:$0xff] %v3777_v36  ;;  %v3785_v42 = vmul.f32 %v5406_v15, %v5446_v49  ;;  %v5451_v33 = vunpack.c.h.bf16 %v5448_v27  ;;  %v5454_v36 = vunpack.c.l.bf16 %v5453_v61 }
 0x2aa   : > { %v3790_v11 = vmul.f32 %v5406_v15, %v5449_v53  ;;  %v3805_v49 = vmul.f32 %v5406_v15, %v5456_v48 }
 0x2ab   : > { %5447 = vst [vmem:[#allocation30_spill] sm:$0xff] %v3785_v42  ;;  %v3795_v40 = vmul.f32 %v5406_v15, %v5451_v33  ;;  %v3800_v28 = vmul.f32 %v5406_v15, %v5454_v36  ;;  %v5458_v42 = vld [vmem:[#allocation70_spill] sm:$0xff] }
 0x2ac   : > { %5450 = vst [vmem:[#allocation162_spill] sm:$0xff] %v3790_v11  ;;  %v5459_v9 = vunpack.c.l.bf16 %v5458_v42  ;;  %v5461_v27 = vunpack.c.h.bf16 %v5458_v42 }
 0x2ad   : > { %5452 = vst [vmem:[#allocation31_spill] sm:$0xff] %v3795_v40  ;;  %v5463_v40 = vld [vmem:[#allocation71_spill] sm:$0xff] }
 0x2ae   : > { %5455 = vst [vmem:[#allocation32_spill] sm:$0xff] %v3800_v28  ;;  %v3810_v53 = vmul.f32 %v5406_v15, %v5459_v9  ;;  %v3815_v33 = vmul.f32 %v5406_v15, %v5461_v27  ;;  %v5464_v11 = vunpack.c.l.bf16 %v5463_v40  ;;  %v5466_v61 = vunpack.c.h.bf16 %v5463_v40 }
 0x2af   : > { %5457 = vst [vmem:[#allocation163_spill] sm:$0xff] %v3805_v49  ;;  %v5468_v49 = vld [vmem:[#allocation72_spill] sm:$0xff] }
 0x2b0   : > { %5460 = vst [vmem:[#allocation33_spill] sm:$0xff] %v3810_v53  ;;  %v3820_v36 = vmul.f32 %v5406_v15, %v5464_v11  ;;  %v3825_v48 = vmul.f32 %v5406_v15, %v5466_v61  ;;  %v5469_v28 = vunpack.c.l.bf16 %v5468_v49  ;;  %v5471_v42 = vunpack.c.h.bf16 %v5468_v49 }
 0x2b1   : > { %5462 = vst [vmem:[#allocation34_spill] sm:$0xff] %v3815_v33  ;;  %v5473_v33 = vld [vmem:[#allocation73_spill] sm:$0xff] }
 0x2b2   : > { %5465 = vst [vmem:[#allocation164_spill] sm:$0xff] %v3820_v36  ;;  %v3830_v9 = vmul.f32 %v5406_v15, %v5469_v28  ;;  %v3835_v27 = vmul.f32 %v5406_v15, %v5471_v42  ;;  %v5474_v53 = vunpack.c.l.bf16 %v5473_v33  ;;  %v5476_v36 = vld [vmem:[#allocation116_spill] sm:$0xff] }
 0x2b3   : > { %5467 = vst [vmem:[#allocation35_spill] sm:$0xff] %v3825_v48  ;;  %v5477_v40 = vunpack.c.l.bf16 %v5476_v36  ;;  %v5479_v48 = vunpack.c.h.bf16 %v5476_v36 }
 0x2b4   : > { %5470 = vst [vmem:[#allocation36_spill] sm:$0xff] %v3830_v9  ;;  %v3840_v11 = vmul.f32 %v5406_v15, %v5474_v53  ;;  %v5481_v9 = vld [vmem:[#allocation117_spill] sm:$0xff] }
 0x2b5   : > { %5472 = vst [vmem:[#allocation165_spill] sm:$0xff] %v3835_v27  ;;  %v3845_v61 = vmul.f32 %v3780_v26, %v5477_v40  ;;  %v3850_v28 = vmul.f32 %v3780_v26, %v5479_v48  ;;  %v5482_v49 = vunpack.c.l.bf16 %v5481_v9  ;;  %v5484_v27 = vunpack.c.h.bf16 %v5481_v9 }
 0x2b6   : > { %5475 = vst [vmem:[#allocation37_spill] sm:$0xff] %v3840_v11  ;;  %v5485_v11 = vunpack.c.h.bf16 %v5473_v33 }
 0x2b7   : > { %5478 = vst [vmem:[#allocation38_spill] sm:$0xff] %v3845_v61  ;;  %v3855_v42 = vmul.f32 %v3780_v26, %v5482_v49  ;;  %v3860_v53 = vmul.f32 %v3780_v26, %v5484_v27  ;;  %v5487_v61 = vld [vmem:[#allocation74_spill] sm:$0xff]  ;;  %v5497_v26 = vld [vmem:[#allocation76_spill] sm:$0xff] }
 0x2b8   : > { %5480 = vst [vmem:[#allocation166_spill] sm:$0xff] %v3850_v28  ;;  %v3865_v40 = vmul.f32 %v5406_v15, %v5485_v11  ;;  %v5488_v36 = vunpack.c.l.bf16 %v5487_v61  ;;  %v5490_v28 = vunpack.c.h.bf16 %v5487_v61  ;;  %v5500_v61 = vunpack.c.h.bf16 %v5497_v26 }
 0x2b9   : > { %5483 = vst [vmem:[#allocation39_spill] sm:$0xff] %v3855_v42  ;;  %v5492_v42 = vld [vmem:[#allocation75_spill] sm:$0xff] }
 0x2ba   : > { %5486 = vst [vmem:[#allocation40_spill] sm:$0xff] %v3865_v40  ;;  %v3870_v48 = vmul.f32 %v5406_v15, %v5488_v36  ;;  %v3875_v49 = vmul.f32 %v5406_v15, %v5490_v28  ;;  %v5493_v9 = vunpack.c.l.bf16 %v5492_v42  ;;  %v5495_v33 = vunpack.c.h.bf16 %v5492_v42 }
 0x2bb   : > { %v5498_v40 = vunpack.c.l.bf16 %v5497_v26  ;;  %v3895_v28 = vmul.f32 %v5406_v15, %v5500_v61 }
 0x2bc   : > { %5489 = vst [vmem:[#allocation167_spill] sm:$0xff] %v3870_v48  ;;  %v3880_v27 = vmul.f32 %v5406_v15, %v5493_v9  ;;  %v3885_v11 = vmul.f32 %v5406_v15, %v5495_v33 }
 0x2bd   : > { %5491 = vst [vmem:[#allocation41_spill] sm:$0xff] %v3875_v49  ;;  %v3890_v36 = vmul.f32 %v5406_v15, %v5498_v40  ;;  %v5502_v49 = vld [vmem:[#allocation77_spill] sm:$0xff] }
 0x2be   : > { %5494 = vst [vmem:[#allocation42_spill] sm:$0xff] %v3880_v27  ;;  %v5503_v48 = vunpack.c.l.bf16 %v5502_v49  ;;  %v5505_v42 = vunpack.c.h.bf16 %v5502_v49 }
 0x2bf   : > { %5496 = vst [vmem:[#allocation168_spill] sm:$0xff] %v3885_v11  ;;  %v5507_v11 = vld [vmem:[#allocation78_spill] sm:$0xff] }
 0x2c0   : > { %5499 = vst [vmem:[#allocation43_spill] sm:$0xff] %v3890_v36  ;;  %v3900_v9 = vmul.f32 %v5406_v15, %v5503_v48  ;;  %v3905_v33 = vmul.f32 %v5406_v15, %v5505_v42  ;;  %v5508_v27 = vunpack.c.l.bf16 %v5507_v11  ;;  %v5510_v26 = vunpack.c.h.bf16 %v5507_v11 }
 0x2c1   : > { %5501 = vst [vmem:[#allocation44_spill] sm:$0xff] %v3895_v28  ;;  %v5512_v28 = vld [vmem:[#allocation79_spill] sm:$0xff] }
 0x2c2   : > { %5504 = vst [vmem:[#allocation169_spill] sm:$0xff] %v3900_v9  ;;  %v3910_v40 = vmul.f32 %v5406_v15, %v5508_v27  ;;  %v3915_v61 = vmul.f32 %v5406_v15, %v5510_v26  ;;  %v5513_v36 = vunpack.c.l.bf16 %v5512_v28  ;;  %v5515_v49 = vunpack.c.h.bf16 %v5512_v28 }
 0x2c3   : > { %5506 = vst [vmem:[#allocation45_spill] sm:$0xff] %v3905_v33  ;;  %v5517_v33 = vld [vmem:[#allocation80_spill] sm:$0xff] }
 0x2c4   : > { %5509 = vst [vmem:[#allocation46_spill] sm:$0xff] %v3910_v40  ;;  %v3920_v48 = vmul.f32 %v5406_v15, %v5513_v36  ;;  %v3925_v42 = vmul.f32 %v5406_v15, %v5515_v49  ;;  %v5518_v9 = vunpack.c.l.bf16 %v5517_v33  ;;  %v5520_v11 = vunpack.c.h.bf16 %v5517_v33 }
 0x2c5   : > { %5511 = vst [vmem:[#allocation170_spill] sm:$0xff] %v3915_v61  ;;  %v5522_v61 = vld [vmem:[#allocation81_spill] sm:$0xff] }
 0x2c6   : > { %5514 = vst [vmem:[#allocation47_spill] sm:$0xff] %v3920_v48  ;;  %v3930_v27 = vmul.f32 %v5406_v15, %v5518_v9  ;;  %v3935_v26 = vmul.f32 %v5406_v15, %v5520_v11  ;;  %v5523_v40 = vunpack.c.l.bf16 %v5522_v61  ;;  %v5525_v28 = vunpack.c.h.bf16 %v5522_v61 }
 0x2c7   : > { %5516 = vst [vmem:[#allocation48_spill] sm:$0xff] %v3925_v42  ;;  %v5527_v42 = vld [vmem:[#allocation82_spill] sm:$0xff] }
 0x2c8   : > { %5519 = vst [vmem:[#allocation171_spill] sm:$0xff] %v3930_v27  ;;  %v3940_v36 = vmul.f32 %v5406_v15, %v5523_v40  ;;  %v3945_v49 = vmul.f32 %v5406_v15, %v5525_v28  ;;  %v5528_v48 = vunpack.c.l.bf16 %v5527_v42  ;;  %v5530_v33 = vunpack.c.h.bf16 %v5527_v42 }
 0x2c9   : > { %5521 = vst [vmem:[#allocation49_spill] sm:$0xff] %v3935_v26  ;;  %v5532_v26 = vld [vmem:[#allocation83_spill] sm:$0xff] }
 0x2ca   : > { %5524 = vst [vmem:[#allocation172_spill] sm:$0xff] %v3940_v36  ;;  %v3950_v9 = vmul.f32 %v5406_v15, %v5528_v48  ;;  %v3955_v11 = vmul.f32 %v5406_v15, %v5530_v33  ;;  %v5533_v27 = vunpack.c.l.bf16 %v5532_v26  ;;  %v5535_v61 = vunpack.c.h.bf16 %v5532_v26 }
 0x2cb   : > { %5526 = vst [vmem:[#allocation50_spill] sm:$0xff] %v3945_v49  ;;  %v5536_v49 = vld [vmem:[#allocation84_spill] sm:$0xff] }
 0x2cc   : > { %5529 = vst [vmem:[#allocation51_spill] sm:$0xff] %v3950_v9  ;;  %v3960_v40 = vmul.f32 %v5406_v15, %v5533_v27  ;;  %v3965_v28 = vmul.f32 %v5406_v15, %v5535_v61  ;;  %v5537_v36 = vunpack.c.l.bf16 %v5536_v49  ;;  %v5538_v42 = vunpack.c.h.bf16 %v5536_v49 }
 0x2cd   : > { %5531 = vst [vmem:[#allocation52_spill] sm:$0xff] %v3955_v11  ;;  %v5539_v11 = vld [vmem:[#allocation85_spill] sm:$0xff]  ;;  %v3985_v61 = vadd.f32 %v3657_v59, %v3400_v56  ;;  %v3993_v49 = vadd.f32 %v3667_v50, %v3408_v58  ;;  %v4005_v56 = vadd.f32 %v3682_v12, %v3420_v1  ;;  %v4013_v58 = vadd.f32 %v3692_v44, %v3428_v3  ;;  %v5556_v44 = vld [vmem:[#allocation6_spill] sm:$0xff] }
 0x2ce   : > { %5534 = vst [vmem:[#allocation55_spill] sm:$0xff] %v3960_v40  ;;  %v3970_v48 = vmul.f32 %v5406_v15, %v5537_v36  ;;  %v3975_v33 = vmul.f32 %v5406_v15, %v5538_v42  ;;  %v5540_v9 = vunpack.c.l.bf16 %v5539_v11  ;;  %v5541_v40 = vunpack.c.h.bf16 %v5539_v11  ;;  %v5545_v59 = vld [vmem:[#allocation161_spill] sm:$0xff] }
 0x2cf   : > { %v3989_v36 = vadd.f32 %v3662_v6, %v3404_v14  ;;  %v3997_v42 = vadd.f32 %v3672_v60, %v3412_v55  ;;  %v4009_v14 = vadd.f32 %v3687_v38, %v3424_v18  ;;  %v4017_v55 = vadd.f32 %v3697_v57, %v3432_v21  ;;  %v5547_v6 = vld [vmem:[#allocation3_spill] sm:$0xff]  ;;  %v5553_v12 = vld [vmem:[#allocation5_spill] sm:$0xff]  ;;  %v5557_v57 = vld [vmem:[#allocation32_spill] sm:$0xff] }
 0x2d0   : > { %v998_v27 = vmul.f32 %v5406_v15, %v5540_v9  ;;  %v999_v26 = vmul.f32 %v5406_v15, %v5541_v40  ;;  %v4001_v9 = vadd.f32 %v3677_v0, %v3416_v45  ;;  %v4021_v45 = vadd.f32 %v3702_v63, %v3436_v7  ;;  %v5544_v15 = vld [vmem:[#allocation2_spill] sm:$0xff]  ;;  %v5554_v38 = vld [vmem:[#allocation31_spill] sm:$0xff] }
 0x2d1   : > { %v4025_v1 = vadd.f32 %v3707_v54, %v3440_v30  ;;  %v4029_v18 = vadd.f32 %v3712_v8, %v3444_v23  ;;  %v4033_v3 = vadd.f32 %v3717_v2, %v3448_v31  ;;  %v4037_v21 = vadd.f32 %v3722_v62, %v3452_v24  ;;  %v5551_v0 = vld [vmem:[#allocation162_spill] sm:$0xff]  ;;  %v5559_v63 = vld [vmem:[#allocation7_spill] sm:$0xff]  ;;  %v5562_v2 = vld [vmem:[#allocation8_spill] sm:$0xff] }
 0x2d2   : > { %v4041_v7 = vadd.f32 %v3727_v22, %v3456_v34  ;;  %v4045_v30 = vadd.f32 %v3732_v19, %v3460_v25  ;;  %v4049_v23 = vadd.f32 %v3737_v32, %v3464_v17  ;;  %v4053_v31 = vadd.f32 %v3742_v4, %v3468_v52  ;;  %v5560_v54 = vld [vmem:[#allocation163_spill] sm:$0xff]  ;;  %v5563_v62 = vld [vmem:[#allocation33_spill] sm:$0xff]  ;;  %v5566_v32 = vld [vmem:[#allocation34_spill] sm:$0xff] }
 0x2d3   : > { %v4057_v24 = vadd.f32 %v3747_v35, %v3474_v20  ;;  %v4061_v34 = vadd.f32 %v3752_v51, %v3478_v10  ;;  %v4065_v25 = vadd.f32 %v3757_v46, %v3482_v29  ;;  %v1062_v50 = vadd.f32 %v998_v27, %v3648_v47  ;;  %v5548_v47 = vld [vmem:[#allocation30_spill] sm:$0xff]  ;;  %v5565_v19 = vld [vmem:[#allocation53_spill] sm:$0xff]  ;;  %v5569_v51 = vld [vmem:[#allocation164_spill] sm:$0xff] }
 0x2d4   : > { %v1063_v17 = vadd.f32 %v999_v26, %v3652_v13  ;;  %v4071_v52 = vadd.f32 %v3762_v16, %v3486_v5  ;;  %v4075_v20 = vadd.f32 %v3767_v43, %v3490_v39  ;;  %v4079_v10 = vadd.f32 %v3772_v41, %v3494_v37  ;;  %v5550_v13 = vld [vmem:[#allocation4_spill] sm:$0xff]  ;;  %v5568_v35 = vld [vmem:[#allocation10_spill] sm:$0xff]  ;;  %v5574_v27 = vld [vmem:[#allocation39_spill] sm:$0xff] }
 0x2d5   : > { %v4083_v29 = vadd.f32 %v5545_v59, %v5544_v15  ;;  %v4087_v60 = vadd.f32 %v5548_v47, %v5547_v6  ;;  %v4091_v5 = vadd.f32 %v5551_v0, %v5550_v13  ;;  %v4095_v39 = vadd.f32 %v5554_v38, %v5553_v12  ;;  %v5571_v16 = vld [vmem:[#allocation38_spill] sm:$0xff]  ;;  %v5575_v15 = vld [vmem:[#allocation9_spill] sm:$0xff]  ;;  %v5577_v6 = vld [vmem:[#allocation152_spill] sm:$0xff] }
 0x2d6   : > { %5542 = vst [vmem:[#allocation151_spill] sm:$0xff] %v4075_v20  ;;  %v4099_v37 = vadd.f32 %v5557_v57, %v5556_v44  ;;  %v4103_v8 = vadd.f32 %v5560_v54, %v5559_v63  ;;  %v4107_v22 = vadd.f32 %v5563_v62, %v5562_v2  ;;  %v4111_v4 = vadd.f32 %v5566_v32, %v5565_v19  ;;  %v5572_v41 = vld [vmem:[#allocation166_spill] sm:$0xff]  ;;  %v5578_v47 = vld [vmem:[#allocation35_spill] sm:$0xff]  ;;  %v5581_v12 = vld [vmem:[#allocation36_spill] sm:$0xff] }
 0x2d7   : > { %5543 = vst [vmem:[#allocation56_spill] sm:$0xff] %v4079_v10  ;;  %v4115_v46 = vadd.f32 %v5569_v51, %v5568_v35  ;;  %v4118_v43 = vadd.f32 %v5571_v16, %v1062_v50  ;;  %v4121_v11 = vadd.f32 %v5572_v41, %v1063_v17  ;;  %v5573_v40 = vld [vmem:[#allocation54_spill] sm:$0xff]  ;;  %v4129_v59 = vadd.f32 %v3860_v53, %v5575_v15  ;;  %v5580_v0 = vld [vmem:[#allocation11_spill] sm:$0xff]  ;;  %v5583_v50 = vld [vmem:[#allocation12_spill] sm:$0xff] }
 0x2d8   : > { %5546 = vst [vmem:[#allocation57_spill] sm:$0xff] %v4083_v29  ;;  %v4125_v26 = vadd.f32 %v5574_v27, %v5573_v40  ;;  %v4133_v13 = vadd.f32 %v5578_v47, %v5577_v6  ;;  %v4137_v38 = vadd.f32 %v5581_v12, %v5580_v0  ;;  %v5584_v44 = vld [vmem:[#allocation165_spill] sm:$0xff]  ;;  %v5590_v62 = vld [vmem:[#allocation40_spill] sm:$0xff]  ;;  %v5592_v19 = vld [vmem:[#allocation14_spill] sm:$0xff] }
 0x2d9   : > { %5549 = vst [vmem:[#allocation58_spill] sm:$0xff] %v4087_v60  ;;  %v4141_v17 = vadd.f32 %v5584_v44, %v5583_v50  ;;  %v5586_v57 = vld [vmem:[#allocation153_spill] sm:$0xff]  ;;  %v5593_v32 = vld [vmem:[#allocation167_spill] sm:$0xff]  ;;  %v5595_v51 = vld [vmem:[#allocation154_spill] sm:$0xff] }
 0x2da   : > { %5552 = vst [vmem:[#allocation59_spill] sm:$0xff] %v4091_v5  ;;  %v5587_v63 = vld [vmem:[#allocation37_spill] sm:$0xff]  ;;  %v4153_v35 = vadd.f32 %v5593_v32, %v5592_v19  ;;  %v5598_v40 = vld [vmem:[#allocation15_spill] sm:$0xff]  ;;  %v5599_v27 = vld [vmem:[#allocation42_spill] sm:$0xff] }
 0x2db   : > { %5555 = vst [vmem:[#allocation60_spill] sm:$0xff] %v4095_v39  ;;  %v4145_v54 = vadd.f32 %v5587_v63, %v5586_v57  ;;  %v5589_v2 = vld [vmem:[#allocation13_spill] sm:$0xff]  ;;  %v4161_v15 = vadd.f32 %v5599_v27, %v5598_v40  ;;  %v5601_v6 = vld [vmem:[#allocation16_spill] sm:$0xff]  ;;  %v5604_v12 = vld [vmem:[#allocation155_spill] sm:$0xff] }
 0x2dc   : > { %5558 = vst [vmem:[#allocation61_spill] sm:$0xff] %v4099_v37  ;;  %v4149_v53 = vadd.f32 %v5590_v62, %v5589_v2  ;;  %v5596_v16 = vld [vmem:[#allocation41_spill] sm:$0xff]  ;;  %v5602_v47 = vld [vmem:[#allocation168_spill] sm:$0xff]  ;;  %v5605_v50 = vld [vmem:[#allocation43_spill] sm:$0xff] }
 0x2dd   : > { %5561 = vst [vmem:[#allocation62_spill] sm:$0xff] %v4103_v8  ;;  %v4157_v41 = vadd.f32 %v5596_v16, %v5595_v51  ;;  %v4165_v0 = vadd.f32 %v5602_v47, %v5601_v6  ;;  %v4169_v44 = vadd.f32 %v5605_v50, %v5604_v12  ;;  %v5607_v57 = vld [vmem:[#allocation17_spill] sm:$0xff]  ;;  %v5608_v63 = vld [vmem:[#allocation44_spill] sm:$0xff]  ;;  %v5610_v62 = vld [vmem:[#allocation18_spill] sm:$0xff] }
 0x2de   : > { %5564 = vst [vmem:[#allocation63_spill] sm:$0xff] %v4107_v22  ;;  %v4173_v2 = vadd.f32 %v5608_v63, %v5607_v57  ;;  %v5611_v19 = vld [vmem:[#allocation169_spill] sm:$0xff]  ;;  %v5613_v51 = vld [vmem:[#allocation156_spill] sm:$0xff]  ;;  %v5616_v27 = vld [vmem:[#allocation19_spill] sm:$0xff] }
 0x2df   : > { %5567 = vst [vmem:[#allocation64_spill] sm:$0xff] %v4111_v4  ;;  %v4177_v32 = vadd.f32 %v5611_v19, %v5610_v62  ;;  %v5614_v16 = vld [vmem:[#allocation45_spill] sm:$0xff]  ;;  %v5619_v47 = vld [vmem:[#allocation20_spill] sm:$0xff]  ;;  %v5628_v19 = vld [vmem:[#allocation22_spill] sm:$0xff] }
 0x2e0   : > { %5570 = vst [vmem:[#allocation65_spill] sm:$0xff] %v4115_v46  ;;  %v4181_v40 = vadd.f32 %v5614_v16, %v5613_v51  ;;  %v5622_v50 = vld [vmem:[#allocation157_spill] sm:$0xff]  ;;  %v5631_v16 = vld [vmem:[#allocation158_spill] sm:$0xff] }
 0x2e1   : > { %5576 = vst [vmem:[#allocation66_spill] sm:$0xff] %v4129_v59  ;;  %v5625_v63 = vld [vmem:[#allocation21_spill] sm:$0xff]  ;;  %v5684_v39 = vld [vmem:[#allocation118_spill] sm:$0xff] }
 0x2e2   : > { %5579 = vst [vmem:[#allocation67_spill] sm:$0xff] %v4133_v13  ;;  %v5676_v13 = vld [vmem:[#allocation93_spill] sm:$0xff]  ;;  %v5685_v5 = vunpack.c.l.bf16 %v5684_v39  ;;  %v5686_v60 = vunpack.c.h.bf16 %v5684_v39 }
 0x2e3   : > { %5582 = vst [vmem:[#allocation68_spill] sm:$0xff] %v4137_v38  ;;  %v5678_v46 = vunpack.c.h.bf16 %v5676_v13 }
 0x2e4   : > { %5585 = vst [vmem:[#allocation69_spill] sm:$0xff] %v4141_v17  ;;  %v5673_v17 = vld [vmem:[#allocation92_spill] sm:$0xff] }
 0x2e5   : > { %5588 = vst [vmem:[#allocation70_spill] sm:$0xff] %v4145_v54  ;;  %v5675_v38 = vunpack.c.h.bf16 %v5673_v17 }
 0x2e6   : > { %5591 = vst [vmem:[#allocation71_spill] sm:$0xff] %v4149_v53 }
 0x2e7   : > { %5594 = vst [vmem:[#allocation72_spill] sm:$0xff] %v4153_v35 }
 0x2e8   : > { %5597 = vst [vmem:[#allocation73_spill] sm:$0xff] %v4157_v41 }
 0x2e9   : > { %5600 = vst [vmem:[#allocation116_spill] sm:$0xff] %v4161_v15  ;;  %v5617_v15 = vld [vmem:[#allocation46_spill] sm:$0xff] }
 0x2ea   : > { %5603 = vst [vmem:[#allocation117_spill] sm:$0xff] %v4165_v0  ;;  %v4185_v6 = vadd.f32 %v5617_v15, %v5616_v27  ;;  %v5620_v0 = vld [vmem:[#allocation170_spill] sm:$0xff]  ;;  %v5634_v27 = vld [vmem:[#allocation23_spill] sm:$0xff] }
 0x2eb   : > { %5606 = vst [vmem:[#allocation74_spill] sm:$0xff] %v4169_v44  ;;  %v4189_v12 = vadd.f32 %v5620_v0, %v5619_v47  ;;  %v5623_v44 = vld [vmem:[#allocation47_spill] sm:$0xff]  ;;  %v5637_v47 = vld [vmem:[#allocation24_spill] sm:$0xff] }
 0x2ec   : > { %5609 = vst [vmem:[#allocation75_spill] sm:$0xff] %v4173_v2  ;;  %v4193_v57 = vadd.f32 %v5623_v44, %v5622_v50  ;;  %v5626_v2 = vld [vmem:[#allocation48_spill] sm:$0xff]  ;;  %v5640_v50 = vld [vmem:[#allocation159_spill] sm:$0xff] }
 0x2ed   : > { %5612 = vst [vmem:[#allocation76_spill] sm:$0xff] %v4177_v32  ;;  %v4197_v62 = vadd.f32 %v5626_v2, %v5625_v63  ;;  %v5629_v32 = vld [vmem:[#allocation171_spill] sm:$0xff]  ;;  %v5643_v63 = vld [vmem:[#allocation25_spill] sm:$0xff] }
 0x2ee   : > { %5615 = vst [vmem:[#allocation77_spill] sm:$0xff] %v4181_v40  ;;  %v4201_v51 = vadd.f32 %v5629_v32, %v5628_v19  ;;  %v5632_v40 = vld [vmem:[#allocation49_spill] sm:$0xff]  ;;  %v5646_v19 = vld [vmem:[#allocation26_spill] sm:$0xff] }
 0x2ef   : > { %5618 = vst [vmem:[#allocation78_spill] sm:$0xff] %v4185_v6  ;;  %v4205_v15 = vadd.f32 %v5632_v40, %v5631_v16  ;;  %v5635_v6 = vld [vmem:[#allocation172_spill] sm:$0xff] }
 0x2f0   : > { %5621 = vst [vmem:[#allocation79_spill] sm:$0xff] %v4189_v12  ;;  %v4209_v0 = vadd.f32 %v5635_v6, %v5634_v27  ;;  %v5638_v12 = vld [vmem:[#allocation50_spill] sm:$0xff]  ;;  %v5649_v16 = vld [vmem:[#allocation160_spill] sm:$0xff]  ;;  %v5651_v27 = vld [vmem:[#allocation27_spill] sm:$0xff] }
 0x2f1   : > { %5624 = vst [vmem:[#allocation80_spill] sm:$0xff] %v4193_v57  ;;  %v4213_v44 = vadd.f32 %v5638_v12, %v5637_v47  ;;  %v5641_v57 = vld [vmem:[#allocation51_spill] sm:$0xff]  ;;  %v4229_v6 = vadd.f32 %v3965_v28, %v5649_v16  ;;  %v4233_v12 = vadd.f32 %v3970_v48, %v5651_v27  ;;  %v5652_v47 = vld [vmem:[#allocation28_spill] sm:$0xff] }
 0x2f2   : > { %5627 = vst [vmem:[#allocation81_spill] sm:$0xff] %v4197_v62  ;;  %v4217_v2 = vadd.f32 %v5641_v57, %v5640_v50  ;;  %v5644_v62 = vld [vmem:[#allocation52_spill] sm:$0xff]  ;;  %v4237_v57 = vadd.f32 %v3975_v33, %v5652_v47  ;;  %v5653_v50 = vld [vmem:[#allocation142_spill] sm:$0xff]  ;;  %v5658_v16 = vld [vmem:[#allocation87_spill] sm:$0xff] }
 0x2f3   : > { %5630 = vst [vmem:[#allocation82_spill] sm:$0xff] %v4201_v51  ;;  %v4221_v32 = vadd.f32 %v5644_v62, %v5643_v63  ;;  %v5647_v51 = vld [vmem:[#allocation55_spill] sm:$0xff]  ;;  %v5654_v62 = vld [vmem:[#allocation86_spill] sm:$0xff]  ;;  %v5660_v27 = vunpack.c.h.bf16 %v5658_v16  ;;  %v5661_v47 = vld [vmem:[#allocation88_spill] sm:$0xff] }
 0x2f4   : > { %5633 = vst [vmem:[#allocation83_spill] sm:$0xff] %v4205_v15  ;;  %v4225_v40 = vadd.f32 %v5647_v51, %v5646_v19  ;;  %v5655_v63 = vunpack.c.l.bf16 %v5654_v62  ;;  %v5657_v19 = vunpack.c.h.bf16 %v5654_v62  ;;  %v5664_v62 = vld [vmem:[#allocation89_spill] sm:$0xff] }
 0x2f5   : > { %5636 = vst [vmem:[#allocation84_spill] sm:$0xff] %v4209_v0  ;;  %v5665_v0 = vunpack.c.l.bf16 %v5664_v62  ;;  %v5666_v15 = vunpack.c.h.bf16 %v5664_v62  ;;  %v5674_v62 = vunpack.c.l.bf16 %v5673_v17 }
 0x2f6   : > { %5639 = vst [vmem:[#allocation85_spill] sm:$0xff] %v4213_v44  ;;  %v5663_v44 = vunpack.c.h.bf16 %v5661_v47 }
 0x2f7   : > { %5642 = vst [vmem:[#allocation2_spill] sm:$0xff] %v4217_v2  ;;  %v4240_v2 = vperm.slane %v5653_v50, 4 }
 0x2f8   : > { %5645 = vst [vmem:[#allocation161_spill] sm:$0xff] %v4221_v32  ;;  %v5656_v32 = vld [vmem:[#allocation29_spill] sm:$0xff] }
 0x2f9   : > { %5648 = vst [vmem:[#allocation3_spill] sm:$0xff] %v4225_v40  ;;  %v1164_v51 = vmul.f32 %v5656_v32, %v5655_v63  ;;  %v1165_v28 = vmul.f32 %v5656_v32, %v5657_v19  ;;  %v1167_v33 = vmul.f32 %v5656_v32, %v5660_v27  ;;  %v5662_v40 = vunpack.c.l.bf16 %v5661_v47  ;;  %v5670_v47 = vld [vmem:[#allocation91_spill] sm:$0xff] }
 0x2fa   : > { %5650 = vst [vmem:[#allocation30_spill] sm:$0xff] %v4229_v6  ;;  %v5659_v6 = vunpack.c.l.bf16 %v5658_v16  ;;  %v1169_v63 = vmul.f32 %v5656_v32, %v5663_v44  ;;  %v1170_v19 = vmul.f32 %v5656_v32, %v5665_v0  ;;  %v5667_v16 = vld [vmem:[#allocation90_spill] sm:$0xff]  ;;  %v5671_v53 = vunpack.c.l.bf16 %v5670_v47 }
 0x2fb   : > { %v1168_v50 = vmul.f32 %v5656_v32, %v5662_v40  ;;  %v5668_v41 = vunpack.c.l.bf16 %v5667_v16  ;;  %v5669_v35 = vunpack.c.h.bf16 %v5667_v16  ;;  %v5672_v54 = vunpack.c.h.bf16 %v5670_v47  ;;  %v5679_v47 = vld [vmem:[#allocation94_spill] sm:$0xff] }
 0x2fc   : > { %v1166_v48 = vmul.f32 %v5656_v32, %v5659_v6  ;;  %v1171_v6 = vmul.f32 %v5656_v32, %v5666_v15  ;;  %v1174_v44 = vmul.f32 %v5656_v32, %v5671_v53  ;;  %v1176_v15 = vmul.f32 %v5656_v32, %v5674_v62 }
 0x2fd   : > { %v1172_v27 = vmul.f32 %v5656_v32, %v5668_v41  ;;  %v1173_v40 = vmul.f32 %v5656_v32, %v5669_v35  ;;  %v1175_v0 = vmul.f32 %v5656_v32, %v5672_v54  ;;  %v1177_v41 = vmul.f32 %v5656_v32, %v5675_v38  ;;  %v5682_v38 = vld [vmem:[#allocation95_spill] sm:$0xff] }
 0x2fe   : > { %v5677_v16 = vunpack.c.l.bf16 %v5676_v13  ;;  %v4292_v53 = vmul.f32 %v5656_v32, %v5678_v46  ;;  %v5680_v54 = vunpack.c.l.bf16 %v5679_v47  ;;  %v5681_v62 = vunpack.c.h.bf16 %v5679_v47 }
 0x2ff   : > { %v5683_v22 = vunpack.c.l.bf16 %v5682_v38  ;;  %v1228_v13 = vadd.f32 %v1164_v51, %v3985_v61  ;;  %v1229_v46 = vadd.f32 %v1165_v28, %v3989_v36  ;;  %v1230_v8 = vadd.f32 %v1166_v48, %v3993_v49  ;;  %v5687_v36 = vld [vmem:[#allocation119_spill] sm:$0xff] }
 0x300   : > { %v4287_v35 = vmul.f32 %v5656_v32, %v5677_v16  ;;  %v4297_v4 = vmul.f32 %v5656_v32, %v5680_v54  ;;  %v4302_v17 = vmul.f32 %v5656_v32, %v5681_v62  ;;  %v1231_v54 = vadd.f32 %v1167_v33, %v3997_v42 }
 0x301   : > { %v4307_v16 = vmul.f32 %v5656_v32, %v5683_v22  ;;  %v1232_v37 = vadd.f32 %v1168_v50, %v4001_v9  ;;  %v1233_v47 = vadd.f32 %v1169_v63, %v4005_v56  ;;  %v1234_v62 = vadd.f32 %v1170_v19, %v4009_v14  ;;  %v5690_v56 = vld [vmem:[#allocation148_spill] sm:$0xff]  ;;  %v5696_v19 = vld [vmem:[#allocation150_spill] sm:$0xff] }
 0x302   : > { %v1390_v22 = vmul.f32 %v4240_v2, %v5685_v5  ;;  %v1391_v61 = vmul.f32 %v4240_v2, %v5686_v60  ;;  %v5688_v51 = vunpack.c.l.bf16 %v5687_v36  ;;  %v5689_v42 = vunpack.c.h.bf16 %v5687_v36  ;;  %v5693_v60 = vld [vmem:[#allocation149_spill] sm:$0xff] }
 0x303   : > { %v5691_v28 = vunpack.c.l.bf16 %v5690_v56  ;;  %v5692_v5 = vunpack.c.h.bf16 %v5690_v56  ;;  %v5694_v48 = vunpack.c.l.bf16 %v5693_v60  ;;  %v5695_v50 = vunpack.c.h.bf16 %v5693_v60 }
 0x304   : > { %v1392_v49 = vmul.f32 %v4240_v2, %v5688_v51  ;;  %v1393_v9 = vmul.f32 %v4240_v2, %v5689_v42  ;;  %v5697_v36 = vunpack.c.l.bf16 %v5696_v19  ;;  %v5699_v42 = vunpack.c.h.bf16 %v5696_v19 }
 0x305   : > { %v4332_v14 = vmul.f32 %v4240_v2, %v5691_v28  ;;  %v4337_v39 = vmul.f32 %v4240_v2, %v5692_v5  ;;  %v4347_v33 = vmul.f32 %v4240_v2, %v5694_v48  ;;  %v4352_v63 = vmul.f32 %v4240_v2, %v5695_v50  ;;  %v5701_v28 = vld [vmem:[#allocation120_spill] sm:$0xff] }
 0x306   : > { %v4357_v51 = vmul.f32 %v4240_v2, %v5697_v36  ;;  %v4362_v56 = vmul.f32 %v4240_v2, %v5699_v42  ;;  %v5702_v5 = vunpack.c.l.bf16 %v5701_v28  ;;  %v1454_v29 = vadd.f32 %v1390_v22, %v1228_v13 }
 0x307   : > { %v1455_v60 = vadd.f32 %v1391_v61, %v1229_v46  ;;  %v1456_v10 = vadd.f32 %v1392_v49, %v1230_v8  ;;  %v5703_v50 = vunpack.c.h.bf16 %v5682_v38  ;;  %v1235_v36 = vadd.f32 %v1171_v6, %v4013_v58  ;;  %v5707_v46 = vld [vmem:[#allocation121_spill] sm:$0xff] }
 0x308   : > { %5698 = vst [vmem:[#allocation4_spill] sm:$0xff] %v4357_v51  ;;  %v1394_v48 = vmul.f32 %v4240_v2, %v5702_v5  ;;  %v5704_v59 = vunpack.c.h.bf16 %v5701_v28  ;;  %v1457_v42 = vadd.f32 %v1393_v9, %v1231_v54  ;;  %v1236_v13 = vadd.f32 %v1172_v27, %v4017_v55  ;;  %v5711_v55 = vld [vmem:[#allocation97_spill] sm:$0xff] }
 0x309   : > { %5700 = vst [vmem:[#allocation162_spill] sm:$0xff] %v4362_v56  ;;  %v1183_v20 = vmul.f32 %v5656_v32, %v5703_v50  ;;  %v5705_v56 = vld [vmem:[#allocation96_spill] sm:$0xff]  ;;  %v5708_v8 = vunpack.c.l.bf16 %v5707_v46  ;;  %v5710_v54 = vunpack.c.h.bf16 %v5707_v46  ;;  %v5712_v27 = vunpack.c.l.bf16 %v5711_v55 }
 0x30a   : > { %v1395_v19 = vmul.f32 %v4240_v2, %v5704_v59  ;;  %v5706_v51 = vunpack.c.l.bf16 %v5705_v56  ;;  %v1458_v22 = vadd.f32 %v1394_v48, %v1232_v37  ;;  %1518 = vst [vmem:[%s4342_s20] sm:$0xff] %v1454_v29  ;;  %v5709_v58 = vunpack.c.h.bf16 %v5705_v56  ;;  %v5713_v29 = vld [vmem:[#allocation122_spill] sm:$0xff] }
 0x30b   : > { %v1396_v38 = vmul.f32 %v4240_v2, %v5708_v8  ;;  %v1237_v59 = vadd.f32 %v1173_v40, %v4021_v45  ;;  %v1397_v61 = vmul.f32 %v4240_v2, %v5710_v54  ;;  %1519 = vst [vmem:[%s4342_s20 + $0x8] sm:$0xff] %v1455_v60  ;;  %v1186_v9 = vmul.f32 %v5656_v32, %v5712_v27 }
 0x30c   : > { %v1184_v5 = vmul.f32 %v5656_v32, %v5706_v51  ;;  %v1185_v6 = vmul.f32 %v5656_v32, %v5709_v58  ;;  %v1459_v49 = vadd.f32 %v1395_v19, %v1233_v47  ;;  %v1238_v37 = vadd.f32 %v1174_v44, %v4025_v1  ;;  %1520 = vst [vmem:[%s4342_s20 + $0x10] sm:$0xff] %v1456_v10  ;;  %v5717_v1 = vld [vmem:[#allocation115_spill] sm:$0xff] }
 0x30d   : > { %v5714_v51 = vunpack.c.l.bf16 %v5713_v29  ;;  %v1460_v28 = vadd.f32 %v1396_v38, %v1234_v62  ;;  %v5715_v45 = vunpack.c.h.bf16 %v5711_v55  ;;  %v1239_v47 = vadd.f32 %v1175_v0, %v4029_v18  ;;  %1521 = vst [vmem:[%s4342_s20 + $0x18] sm:$0xff] %v1457_v42  ;;  %v5719_v10 = vld [vmem:[#allocation123_spill] sm:$0xff] }
 0x30e   : > { %v5716_v48 = vunpack.c.h.bf16 %v5713_v29  ;;  %v1461_v50 = vadd.f32 %v1397_v61, %v1235_v36  ;;  %v5718_v44 = vunpack.c.l.bf16 %v5717_v1  ;;  %v1240_v62 = vadd.f32 %v1176_v15, %v4033_v3  ;;  %1522 = vst [vmem:[%s4342_s20 + $0x20] sm:$0xff] %v1458_v22 }
 0x30f   : > { %v1398_v56 = vmul.f32 %v4240_v2, %v5714_v51  ;;  %v1187_v40 = vmul.f32 %v5656_v32, %v5715_v45  ;;  %v5720_v46 = vunpack.c.l.bf16 %v5719_v10  ;;  %v5721_v18 = vunpack.c.h.bf16 %v5717_v1  ;;  %1523 = vst [vmem:[%s4342_s20 + $0x28] sm:$0xff] %v1459_v49  ;;  %v5726_v49 = vld [vmem:[#allocation125_spill] sm:$0xff] }
 0x310   : > { %v1399_v60 = vmul.f32 %v4240_v2, %v5716_v48  ;;  %v1222_v19 = vmul.f32 %v5656_v32, %v5718_v44  ;;  %v1241_v36 = vadd.f32 %v1177_v41, %v4037_v21  ;;  %v5722_v42 = vunpack.c.h.bf16 %v5719_v10  ;;  %1524 = vst [vmem:[%s4342_s20 + $0x30] sm:$0xff] %v1460_v28 }
 0x311   : > { %v1400_v8 = vmul.f32 %v4240_v2, %v5720_v46  ;;  %v1462_v38 = vadd.f32 %v1398_v56, %v1236_v13  ;;  %v1223_v0 = vmul.f32 %v5656_v32, %v5721_v18  ;;  %v1242_v3 = vadd.f32 %v4287_v35, %v4041_v7  ;;  %v5723_v13 = vld [vmem:[#allocation124_spill] sm:$0xff]  ;;  %1526 = vst.msk [vmem:[%s4342_s20 + $0x38] sm:$0xff] %vm1525_vm11, %v1461_v50  ;;  %v5736_v46 = vld [vmem:[#allocation66_spill] sm:$0xff] }
 0x312   : > { %v1401_v58 = vmul.f32 %v4240_v2, %v5722_v42  ;;  %v1463_v54 = vadd.f32 %v1399_v60, %v1237_v59  ;;  %v1243_v15 = vadd.f32 %v4292_v53, %v4045_v30  ;;  %v5724_v22 = vunpack.c.l.bf16 %v5723_v13 }
 0x313   : > { %v1464_v55 = vadd.f32 %v1400_v8, %v1238_v37  ;;  %v1244_v21 = vadd.f32 %v4297_v4, %v4049_v23  ;;  %v1245_v41 = vadd.f32 %v4302_v17, %v4053_v31  ;;  %v5725_v59 = vunpack.c.h.bf16 %v5723_v13  ;;  %1527 = vst [vmem:[%s4342_s20 + $0x40] sm:$0xff] %v1462_v38 }
 0x314   : > { %v1402_v61 = vmul.f32 %v4240_v2, %v5724_v22  ;;  %v1465_v35 = vadd.f32 %v1401_v58, %v1239_v47  ;;  %v1286_v30 = vadd.f32 %v1222_v19, %v4233_v12  ;;  %v1287_v53 = vadd.f32 %v1223_v0, %v4237_v57  ;;  %1528 = vst [vmem:[%s4342_s20 + $0x48] sm:$0xff] %v1463_v54  ;;  %v5729_v57 = vld [vmem:[#allocation126_spill] sm:$0xff]  ;;  %v5741_v0 = vld [vmem:[#allocation128_spill] sm:$0xff] }
 0x315   : > { %v1403_v7 = vmul.f32 %v4240_v2, %v5725_v59  ;;  %v5727_v27 = vunpack.c.l.bf16 %v5726_v49  ;;  %v1246_v31 = vadd.f32 %v4307_v16, %v4057_v24  ;;  %v1247_v4 = vadd.f32 %v1183_v20, %v4061_v34  ;;  %1529 = vst [vmem:[%s4342_s20 + $0x50] sm:$0xff] %v1464_v55  ;;  %v5732_v20 = vld [vmem:[#allocation127_spill] sm:$0xff]  ;;  %v5744_v58 = vld [vmem:[#allocation56_spill] sm:$0xff]  ;;  %v5748_v55 = vld [vmem:[#allocation57_spill] sm:$0xff] }
 0x316   : > { %v1466_v23 = vadd.f32 %v1402_v61, %v1240_v62  ;;  %v5728_v17 = vunpack.c.h.bf16 %v5726_v49  ;;  %v1248_v12 = vadd.f32 %v1184_v5, %v4065_v25  ;;  %v5730_v56 = vunpack.c.l.bf16 %v5729_v57  ;;  %1530 = vst [vmem:[%s4342_s20 + $0x58] sm:$0xff] %v1465_v35  ;;  %v5735_v62 = vld [vmem:[#allocation4_spill] sm:$0xff] }
 0x317   : > { %v1404_v37 = vmul.f32 %v4240_v2, %v5727_v27  ;;  %v1467_v51 = vadd.f32 %v1403_v7, %v1241_v36  ;;  %v5731_v45 = vunpack.c.h.bf16 %v5729_v57  ;;  %v1249_v34 = vadd.f32 %v1185_v6, %v4071_v52 }
 0x318   : > { %v1405_v29 = vmul.f32 %v4240_v2, %v5728_v17  ;;  %v1406_v28 = vmul.f32 %v4240_v2, %v5730_v56  ;;  %v5733_v16 = vunpack.c.l.bf16 %v5732_v20  ;;  %v5734_v60 = vunpack.c.h.bf16 %v5732_v20  ;;  %1531 = vst [vmem:[%s4342_s20 + $0x60] sm:$0xff] %v1466_v23 }
 0x319   : > { %v1407_v47 = vmul.f32 %v4240_v2, %v5731_v45  ;;  %v1468_v24 = vadd.f32 %v1404_v37, %v1242_v3  ;;  %v4469_v44 = vadd.f32 %v4332_v14, %v1286_v30  ;;  %v4472_v19 = vadd.f32 %v4337_v39, %v1287_v53  ;;  %v5737_v14 = vld [vmem:[#allocation162_spill] sm:$0xff]  ;;  %1532 = vst [vmem:[%s4342_s20 + $0x68] sm:$0xff] %v1467_v51 }
 0x31a   : > { %v1408_v48 = vmul.f32 %v4240_v2, %v5733_v16  ;;  %v1409_v25 = vmul.f32 %v4240_v2, %v5734_v60  ;;  %v1469_v5 = vadd.f32 %v1405_v29, %v1243_v15  ;;  %v1470_v50 = vadd.f32 %v1406_v28, %v1244_v21  ;;  %v5738_v39 = vld [vmem:[#allocation98_spill] sm:$0xff]  ;;  %v5756_v29 = vld [vmem:[#allocation59_spill] sm:$0xff]  ;;  %v5762_v60 = vld [vmem:[#allocation101_spill] sm:$0xff] }
 0x31b   : > { %v1471_v1 = vadd.f32 %v1407_v47, %v1245_v41  ;;  %v4477_v52 = vadd.f32 %v4347_v33, %v4118_v43  ;;  %v4481_v6 = vadd.f32 %v4352_v63, %v4121_v11  ;;  %v4485_v10 = vadd.f32 %v5735_v62, %v4125_v26  ;;  %v5740_v43 = vld [vmem:[#allocation151_spill] sm:$0xff]  ;;  %1533 = vst [vmem:[%s4342_s20 + $0x70] sm:$0xff] %v1468_v24  ;;  %v5749_v41 = vld [vmem:[#allocation129_spill] sm:$0xff]  ;;  %v5752_v53 = vld [vmem:[#allocation58_spill] sm:$0xff] }
 0x31c   : > { %v4489_v8 = vadd.f32 %v5737_v14, %v5736_v46  ;;  %v5739_v38 = vunpack.c.l.bf16 %v5738_v39  ;;  %v1250_v33 = vadd.f32 %v1186_v9, %v5740_v43  ;;  %v5742_v36 = vunpack.c.l.bf16 %v5741_v0  ;;  %1534 = vst.msk [vmem:[%s4342_s20 + $0x78] sm:$0xff] %vm1525_vm11, %v1469_v5  ;;  %v5746_v9 = vld [vmem:[#allocation99_spill] sm:$0xff]  ;;  %v5760_v24 = vld [vmem:[#allocation60_spill] sm:$0xff]  ;;  %v5768_v43 = vld [vmem:[#allocation62_spill] sm:$0xff] }
 0x31d   : > { %v1472_v63 = vadd.f32 %v1408_v48, %v1246_v31  ;;  %v5743_v26 = vunpack.c.h.bf16 %v5738_v39  ;;  %v1251_v54 = vadd.f32 %v1187_v40, %v5744_v58  ;;  %v5745_v3 = vunpack.c.h.bf16 %v5741_v0  ;;  %1535 = vst [vmem:[%s4342_s20 + $0x80] sm:$0xff] %v1470_v50  ;;  %v5754_v31 = vld [vmem:[#allocation100_spill] sm:$0xff]  ;;  %v5764_v50 = vld [vmem:[#allocation61_spill] sm:$0xff]  ;;  %v5765_v62 = vld [vmem:[#allocation131_spill] sm:$0xff] }
 0x31e   : > { %v1188_v18 = vmul.f32 %v5656_v32, %v5739_v38  ;;  %v1410_v11 = vmul.f32 %v4240_v2, %v5742_v36  ;;  %v1473_v13 = vadd.f32 %v1409_v25, %v1247_v4  ;;  %v5747_v22 = vunpack.c.l.bf16 %v5746_v9  ;;  %1536 = vst [vmem:[%s4342_s20 + $0x88] sm:$0xff] %v1471_v1  ;;  %v5772_v58 = vld [vmem:[#allocation63_spill] sm:$0xff] }
 0x31f   : > { %v1189_v42 = vmul.f32 %v5656_v32, %v5743_v26  ;;  %v1411_v15 = vmul.f32 %v4240_v2, %v5745_v3  ;;  %v5750_v59 = vunpack.c.l.bf16 %v5749_v41  ;;  %v5751_v40 = vunpack.c.h.bf16 %v5746_v9  ;;  %1537 = vst [vmem:[%s4342_s20 + $0x90] sm:$0xff] %v1472_v63  ;;  %v5770_v63 = vld [vmem:[#allocation102_spill] sm:$0xff]  ;;  %v5773_v3 = vld [vmem:[#allocation132_spill] sm:$0xff] }
 0x320   : > { %v1190_v61 = vmul.f32 %v5656_v32, %v5747_v22  ;;  %v1252_v21 = vadd.f32 %v1188_v18, %v5748_v55  ;;  %v1474_v35 = vadd.f32 %v1410_v11, %v1248_v12  ;;  %v5753_v27 = vunpack.c.h.bf16 %v5749_v41  ;;  %v5757_v12 = vld [vmem:[#allocation130_spill] sm:$0xff]  ;;  %1538 = vst [vmem:[%s4342_s20 + $0x98] sm:$0xff] %v1473_v13  ;;  %v5776_v55 = vld [vmem:[#allocation64_spill] sm:$0xff] }
 0x321   : > { %v1412_v7 = vmul.f32 %v4240_v2, %v5750_v59  ;;  %v1191_v30 = vmul.f32 %v5656_v32, %v5751_v40  ;;  %v1253_v49 = vadd.f32 %v1189_v42, %v5752_v53  ;;  %v1475_v23 = vadd.f32 %v1411_v15, %v1249_v34  ;;  %v5780_v53 = vld [vmem:[#allocation65_spill] sm:$0xff]  ;;  %1577 = vst [vmem:[%s4342_s20 + $0x1d0] sm:$0xff] %v4469_v44 }
 0x322   : > { %v1413_v37 = vmul.f32 %v4240_v2, %v5753_v27  ;;  %v5755_v4 = vunpack.c.l.bf16 %v5754_v31  ;;  %v1254_v51 = vadd.f32 %v1190_v61, %v5756_v29  ;;  %v5758_v57 = vunpack.c.l.bf16 %v5757_v12  ;;  %1539 = vst [vmem:[%s4342_s20 + $0xa0] sm:$0xff] %v1474_v35  ;;  %v5778_v35 = vld [vmem:[#allocation103_spill] sm:$0xff]  ;;  %v5781_v27 = vld [vmem:[#allocation133_spill] sm:$0xff] }
 0x323   : > { %v1476_v28 = vadd.f32 %v1412_v7, %v1250_v33  ;;  %v5759_v45 = vunpack.c.h.bf16 %v5754_v31  ;;  %v1255_v34 = vadd.f32 %v1191_v30, %v5760_v24  ;;  %v5761_v20 = vunpack.c.h.bf16 %v5757_v12  ;;  %1540 = vst [vmem:[%s4342_s20 + $0xa8] sm:$0xff] %v1475_v23  ;;  %v5784_v29 = vld [vmem:[#allocation67_spill] sm:$0xff]  ;;  %v5788_v24 = vld [vmem:[#allocation68_spill] sm:$0xff] }
 0x324   : > { %v1192_v17 = vmul.f32 %v5656_v32, %v5755_v4  ;;  %v1414_v56 = vmul.f32 %v4240_v2, %v5758_v57  ;;  %v1477_v48 = vadd.f32 %v1413_v37, %v1251_v54  ;;  %v5763_v25 = vunpack.c.l.bf16 %v5762_v60  ;;  %1578 = vst [vmem:[%s4342_s20 + $0x1d8] sm:$0xff] %v4472_v19 }
 0x325   : > { %v1193_v47 = vmul.f32 %v5656_v32, %v5759_v45  ;;  %v1415_v16 = vmul.f32 %v4240_v2, %v5761_v20  ;;  %v5766_v46 = vunpack.c.l.bf16 %v5765_v62  ;;  %v5767_v38 = vunpack.c.h.bf16 %v5762_v60  ;;  %1541 = vst [vmem:[%s4342_s20 + $0xb0] sm:$0xff] %v1476_v28  ;;  %v5786_v28 = vld [vmem:[#allocation104_spill] sm:$0xff]  ;;  %v5789_v20 = vld [vmem:[#allocation134_spill] sm:$0xff] }
 0x326   : > { %v1194_v5 = vmul.f32 %v5656_v32, %v5763_v25  ;;  %v1256_v1 = vadd.f32 %v1192_v17, %v5764_v50  ;;  %v1478_v39 = vadd.f32 %v1414_v56, %v1252_v21  ;;  %v5769_v0 = vunpack.c.h.bf16 %v5765_v62  ;;  %1542 = vst.msk [vmem:[%s4342_s20 + $0xb8] sm:$0xff] %vm1525_vm11, %v1477_v48  ;;  %v5792_v50 = vld [vmem:[#allocation69_spill] sm:$0xff] }
 0x327   : > { %v1416_v14 = vmul.f32 %v4240_v2, %v5766_v46  ;;  %v1195_v18 = vmul.f32 %v5656_v32, %v5767_v38  ;;  %v1257_v33 = vadd.f32 %v1193_v47, %v5768_v43  ;;  %v1479_v11 = vadd.f32 %v1415_v16, %v1253_v49  ;;  %v5796_v43 = vld [vmem:[#allocation70_spill] sm:$0xff]  ;;  %1579 = vst [vmem:[%s4342_s20 + $0x1e0] sm:$0xff] %v4477_v52 }
 0x328   : > { %v1417_v36 = vmul.f32 %v4240_v2, %v5769_v0  ;;  %v5771_v26 = vunpack.c.l.bf16 %v5770_v63  ;;  %v1258_v54 = vadd.f32 %v1194_v5, %v5772_v58  ;;  %v5774_v15 = vunpack.c.l.bf16 %v5773_v3  ;;  %1543 = vst [vmem:[%s4342_s20 + $0xc0] sm:$0xff] %v1478_v39  ;;  %v5794_v39 = vld [vmem:[#allocation105_spill] sm:$0xff]  ;;  %v5797_v0 = vld [vmem:[#allocation135_spill] sm:$0xff] }
 0x329   : > { %v1480_v9 = vadd.f32 %v1416_v14, %v1254_v51  ;;  %v5775_v22 = vunpack.c.h.bf16 %v5770_v63  ;;  %v1259_v21 = vadd.f32 %v1195_v18, %v5776_v55  ;;  %v5777_v41 = vunpack.c.h.bf16 %v5773_v3  ;;  %1544 = vst [vmem:[%s4342_s20 + $0xc8] sm:$0xff] %v1479_v11  ;;  %v5800_v58 = vld [vmem:[#allocation71_spill] sm:$0xff]  ;;  %v5804_v55 = vld [vmem:[#allocation72_spill] sm:$0xff] }
 0x32a   : > { %v1196_v42 = vmul.f32 %v5656_v32, %v5771_v26  ;;  %v1418_v13 = vmul.f32 %v4240_v2, %v5774_v15  ;;  %v1481_v7 = vadd.f32 %v1417_v36, %v1255_v34  ;;  %v5779_v40 = vunpack.c.l.bf16 %v5778_v35  ;;  %1580 = vst [vmem:[%s4342_s20 + $0x1e8] sm:$0xff] %v4481_v6 }
 0x32b   : > { %v1197_v61 = vmul.f32 %v5656_v32, %v5775_v22  ;;  %v1419_v59 = vmul.f32 %v4240_v2, %v5777_v41  ;;  %v5782_v37 = vunpack.c.l.bf16 %v5781_v27  ;;  %v5783_v4 = vunpack.c.h.bf16 %v5778_v35  ;;  %1545 = vst [vmem:[%s4342_s20 + $0xd0] sm:$0xff] %v1480_v9  ;;  %v5802_v9 = vld [vmem:[#allocation106_spill] sm:$0xff]  ;;  %v5805_v41 = vld [vmem:[#allocation136_spill] sm:$0xff] }
 0x32c   : > { %v1198_v30 = vmul.f32 %v5656_v32, %v5779_v40  ;;  %v1260_v49 = vadd.f32 %v1196_v42, %v5780_v53  ;;  %v1482_v31 = vadd.f32 %v1418_v13, %v1256_v1  ;;  %v5785_v12 = vunpack.c.h.bf16 %v5781_v27  ;;  %1546 = vst [vmem:[%s4342_s20 + $0xd8] sm:$0xff] %v1481_v7  ;;  %v5808_v53 = vld [vmem:[#allocation73_spill] sm:$0xff] }
 0x32d   : > { %v1420_v23 = vmul.f32 %v4240_v2, %v5782_v37  ;;  %v1199_v17 = vmul.f32 %v5656_v32, %v5783_v4  ;;  %v1261_v51 = vadd.f32 %v1197_v61, %v5784_v29  ;;  %v1483_v56 = vadd.f32 %v1419_v59, %v1257_v33  ;;  %v5812_v29 = vld [vmem:[#allocation116_spill] sm:$0xff]  ;;  %1581 = vst [vmem:[%s4342_s20 + $0x1f0] sm:$0xff] %v4485_v10 }
 0x32e   : > { %v1421_v57 = vmul.f32 %v4240_v2, %v5785_v12  ;;  %v5787_v45 = vunpack.c.l.bf16 %v5786_v28  ;;  %v1262_v34 = vadd.f32 %v1198_v30, %v5788_v24  ;;  %v5790_v16 = vunpack.c.l.bf16 %v5789_v20  ;;  %1547 = vst [vmem:[%s4342_s20 + $0xe0] sm:$0xff] %v1482_v31  ;;  %v5810_v31 = vld [vmem:[#allocation107_spill] sm:$0xff]  ;;  %v5813_v12 = vld [vmem:[#allocation137_spill] sm:$0xff] }
 0x32f   : > { %v1484_v60 = vadd.f32 %v1420_v23, %v1258_v54  ;;  %v5791_v25 = vunpack.c.h.bf16 %v5786_v28  ;;  %v1263_v1 = vadd.f32 %v1199_v17, %v5792_v50  ;;  %v5793_v62 = vunpack.c.h.bf16 %v5789_v20  ;;  %1548 = vst [vmem:[%s4342_s20 + $0xe8] sm:$0xff] %v1483_v56  ;;  %v5816_v24 = vld [vmem:[#allocation117_spill] sm:$0xff]  ;;  %v5820_v50 = vld [vmem:[#allocation74_spill] sm:$0xff] }
 0x330   : > { %v1200_v47 = vmul.f32 %v5656_v32, %v5787_v45  ;;  %v1422_v48 = vmul.f32 %v4240_v2, %v5790_v16  ;;  %v1485_v14 = vadd.f32 %v1421_v57, %v1259_v21  ;;  %v5795_v38 = vunpack.c.l.bf16 %v5794_v39  ;;  %1582 = vst.msk [vmem:[%s4342_s20 + $0x1f8] sm:$0xff] %vm1525_vm11, %v4489_v8 }
 0x331   : > { %v1201_v5 = vmul.f32 %v5656_v32, %v5791_v25  ;;  %v1423_v46 = vmul.f32 %v4240_v2, %v5793_v62  ;;  %v5798_v36 = vunpack.c.l.bf16 %v5797_v0  ;;  %v5799_v26 = vunpack.c.h.bf16 %v5794_v39  ;;  %1549 = vst [vmem:[%s4342_s20 + $0xf0] sm:$0xff] %v1484_v60  ;;  %v5818_v60 = vld [vmem:[#allocation108_spill] sm:$0xff]  ;;  %v5821_v62 = vld [vmem:[#allocation138_spill] sm:$0xff] }
 0x332   : > { %v1202_v18 = vmul.f32 %v5656_v32, %v5795_v38  ;;  %v1264_v33 = vadd.f32 %v1200_v47, %v5796_v43  ;;  %v1486_v63 = vadd.f32 %v1422_v48, %v1260_v49  ;;  %v5801_v3 = vunpack.c.h.bf16 %v5797_v0  ;;  %1550 = vst.msk [vmem:[%s4342_s20 + $0xf8] sm:$0xff] %vm1525_vm11, %v1485_v14  ;;  %v5824_v43 = vld [vmem:[#allocation75_spill] sm:$0xff] }
 0x333   : > { %v1424_v11 = vmul.f32 %v4240_v2, %v5798_v36  ;;  %v1203_v42 = vmul.f32 %v5656_v32, %v5799_v26  ;;  %v1265_v54 = vadd.f32 %v1201_v5, %v5800_v58  ;;  %v1487_v13 = vadd.f32 %v1423_v46, %v1261_v51  ;;  %v5828_v58 = vld [vmem:[#allocation76_spill] sm:$0xff] }
 0x334   : > { %v1425_v15 = vmul.f32 %v4240_v2, %v5801_v3  ;;  %v5803_v22 = vunpack.c.l.bf16 %v5802_v9  ;;  %v1266_v21 = vadd.f32 %v1202_v18, %v5804_v55  ;;  %v5806_v59 = vunpack.c.l.bf16 %v5805_v41  ;;  %1551 = vst [vmem:[%s4342_s20 + $0x100] sm:$0xff] %v1486_v63  ;;  %v5826_v63 = vld [vmem:[#allocation109_spill] sm:$0xff]  ;;  %v5829_v3 = vld [vmem:[#allocation139_spill] sm:$0xff] }
 0x335   : > { %v1488_v35 = vadd.f32 %v1424_v11, %v1262_v34  ;;  %v5807_v40 = vunpack.c.h.bf16 %v5802_v9  ;;  %v1267_v49 = vadd.f32 %v1203_v42, %v5808_v53  ;;  %v5809_v27 = vunpack.c.h.bf16 %v5805_v41  ;;  %1552 = vst [vmem:[%s4342_s20 + $0x108] sm:$0xff] %v1487_v13  ;;  %v5832_v55 = vld [vmem:[#allocation77_spill] sm:$0xff]  ;;  %v5836_v53 = vld [vmem:[#allocation78_spill] sm:$0xff] }
 0x336   : > { %v1204_v61 = vmul.f32 %v5656_v32, %v5803_v22  ;;  %v1426_v7 = vmul.f32 %v4240_v2, %v5806_v59  ;;  %v1489_v23 = vadd.f32 %v1425_v15, %v1263_v1  ;;  %v5811_v4 = vunpack.c.l.bf16 %v5810_v31 }
 0x337   : > { %v1205_v30 = vmul.f32 %v5656_v32, %v5807_v40  ;;  %v1427_v37 = vmul.f32 %v4240_v2, %v5809_v27  ;;  %v5814_v57 = vunpack.c.l.bf16 %v5813_v12  ;;  %v5815_v45 = vunpack.c.h.bf16 %v5810_v31  ;;  %1553 = vst [vmem:[%s4342_s20 + $0x110] sm:$0xff] %v1488_v35  ;;  %v5834_v35 = vld [vmem:[#allocation110_spill] sm:$0xff]  ;;  %v5837_v27 = vld [vmem:[#allocation140_spill] sm:$0xff] }
 0x338   : > { %v1206_v17 = vmul.f32 %v5656_v32, %v5811_v4  ;;  %v1268_v51 = vadd.f32 %v1204_v61, %v5812_v29  ;;  %v1490_v28 = vadd.f32 %v1426_v7, %v1264_v33  ;;  %v5817_v20 = vunpack.c.h.bf16 %v5813_v12  ;;  %1554 = vst [vmem:[%s4342_s20 + $0x118] sm:$0xff] %v1489_v23  ;;  %v5840_v29 = vld [vmem:[#allocation79_spill] sm:$0xff] }
 0x339   : > { %v1428_v56 = vmul.f32 %v4240_v2, %v5814_v57  ;;  %v1207_v47 = vmul.f32 %v5656_v32, %v5815_v45  ;;  %v1269_v34 = vadd.f32 %v1205_v30, %v5816_v24  ;;  %v1491_v48 = vadd.f32 %v1427_v37, %v1265_v54  ;;  %v5844_v24 = vld [vmem:[#allocation80_spill] sm:$0xff] }
 0x33a   : > { %v1429_v16 = vmul.f32 %v4240_v2, %v5817_v20  ;;  %v5819_v25 = vunpack.c.l.bf16 %v5818_v60  ;;  %v1270_v1 = vadd.f32 %v1206_v17, %v5820_v50  ;;  %v5822_v46 = vunpack.c.l.bf16 %v5821_v62  ;;  %1555 = vst [vmem:[%s4342_s20 + $0x120] sm:$0xff] %v1490_v28  ;;  %v5842_v28 = vld [vmem:[#allocation111_spill] sm:$0xff]  ;;  %v5845_v20 = vld [vmem:[#allocation141_spill] sm:$0xff] }
 0x33b   : > { %v1492_v39 = vadd.f32 %v1428_v56, %v1266_v21  ;;  %v5823_v38 = vunpack.c.h.bf16 %v5818_v60  ;;  %v1271_v33 = vadd.f32 %v1207_v47, %v5824_v43  ;;  %v5825_v0 = vunpack.c.h.bf16 %v5821_v62  ;;  %1556 = vst [vmem:[%s4342_s20 + $0x128] sm:$0xff] %v1491_v48  ;;  %v5848_v50 = vld [vmem:[#allocation81_spill] sm:$0xff]  ;;  %v5852_v43 = vld [vmem:[#allocation82_spill] sm:$0xff] }
 0x33c   : > { %v1208_v5 = vmul.f32 %v5656_v32, %v5819_v25  ;;  %v1430_v14 = vmul.f32 %v4240_v2, %v5822_v46  ;;  %v1493_v11 = vadd.f32 %v1429_v16, %v1267_v49  ;;  %v5827_v26 = vunpack.c.l.bf16 %v5826_v63 }
 0x33d   : > { %v1209_v18 = vmul.f32 %v5656_v32, %v5823_v38  ;;  %v1431_v36 = vmul.f32 %v4240_v2, %v5825_v0  ;;  %v5830_v15 = vunpack.c.l.bf16 %v5829_v3  ;;  %v5831_v22 = vunpack.c.h.bf16 %v5826_v63  ;;  %1557 = vst [vmem:[%s4342_s20 + $0x130] sm:$0xff] %v1492_v39  ;;  %v5850_v39 = vld [vmem:[#allocation112_spill] sm:$0xff]  ;;  %v5853_v0 = vld [vmem:[#allocation143_spill] sm:$0xff] }
 0x33e   : > { %v1210_v42 = vmul.f32 %v5656_v32, %v5827_v26  ;;  %v1272_v54 = vadd.f32 %v1208_v5, %v5828_v58  ;;  %v1494_v9 = vadd.f32 %v1430_v14, %v1268_v51  ;;  %v5833_v41 = vunpack.c.h.bf16 %v5829_v3  ;;  %1558 = vst.msk [vmem:[%s4342_s20 + $0x138] sm:$0xff] %vm1525_vm11, %v1493_v11  ;;  %v5856_v58 = vld [vmem:[#allocation83_spill] sm:$0xff] }
 0x33f   : > { %v1432_v13 = vmul.f32 %v4240_v2, %v5830_v15  ;;  %v1211_v61 = vmul.f32 %v5656_v32, %v5831_v22  ;;  %v1273_v21 = vadd.f32 %v1209_v18, %v5832_v55  ;;  %v1495_v7 = vadd.f32 %v1431_v36, %v1269_v34  ;;  %v5860_v55 = vld [vmem:[#allocation84_spill] sm:$0xff] }
 0x340   : > { %v1433_v59 = vmul.f32 %v4240_v2, %v5833_v41  ;;  %v5835_v40 = vunpack.c.l.bf16 %v5834_v35  ;;  %v1274_v49 = vadd.f32 %v1210_v42, %v5836_v53  ;;  %v5838_v37 = vunpack.c.l.bf16 %v5837_v27  ;;  %1559 = vst [vmem:[%s4342_s20 + $0x140] sm:$0xff] %v1494_v9  ;;  %v5858_v9 = vld [vmem:[#allocation113_spill] sm:$0xff]  ;;  %v5861_v41 = vld [vmem:[#allocation144_spill] sm:$0xff] }
 0x341   : > { %v1496_v31 = vadd.f32 %v1432_v13, %v1270_v1  ;;  %v5839_v4 = vunpack.c.h.bf16 %v5834_v35  ;;  %v1275_v51 = vadd.f32 %v1211_v61, %v5840_v29  ;;  %v5841_v12 = vunpack.c.h.bf16 %v5837_v27  ;;  %1560 = vst [vmem:[%s4342_s20 + $0x148] sm:$0xff] %v1495_v7  ;;  %v5864_v53 = vld [vmem:[#allocation85_spill] sm:$0xff]  ;;  %v5868_v29 = vld [vmem:[#allocation2_spill] sm:$0xff] }
 0x342   : > { %v1212_v30 = vmul.f32 %v5656_v32, %v5835_v40  ;;  %v1434_v23 = vmul.f32 %v4240_v2, %v5838_v37  ;;  %v1497_v56 = vadd.f32 %v1433_v59, %v1271_v33  ;;  %v5843_v45 = vunpack.c.l.bf16 %v5842_v28 }
 0x343   : > { %v1213_v17 = vmul.f32 %v5656_v32, %v5839_v4  ;;  %v1435_v57 = vmul.f32 %v4240_v2, %v5841_v12  ;;  %v5846_v16 = vunpack.c.l.bf16 %v5845_v20  ;;  %v5847_v25 = vunpack.c.h.bf16 %v5842_v28  ;;  %1561 = vst [vmem:[%s4342_s20 + $0x150] sm:$0xff] %v1496_v31  ;;  %v5866_v31 = vld [vmem:[#allocation114_spill] sm:$0xff]  ;;  %v5869_v12 = vld [vmem:[#allocation145_spill] sm:$0xff] }
 0x344   : > { %v1214_v47 = vmul.f32 %v5656_v32, %v5843_v45  ;;  %v1276_v34 = vadd.f32 %v1212_v30, %v5844_v24  ;;  %v1498_v60 = vadd.f32 %v1434_v23, %v1272_v54  ;;  %v5849_v62 = vunpack.c.h.bf16 %v5845_v20  ;;  %1562 = vst [vmem:[%s4342_s20 + $0x158] sm:$0xff] %v1497_v56  ;;  %v5872_v24 = vld [vmem:[#allocation161_spill] sm:$0xff] }
 0x345   : > { %v1436_v48 = vmul.f32 %v4240_v2, %v5846_v16  ;;  %v1215_v5 = vmul.f32 %v5656_v32, %v5847_v25  ;;  %v1277_v1 = vadd.f32 %v1213_v17, %v5848_v50  ;;  %v1499_v14 = vadd.f32 %v1435_v57, %v1273_v21 }
 0x346   : > { %v1437_v46 = vmul.f32 %v4240_v2, %v5849_v62  ;;  %v5851_v38 = vunpack.c.l.bf16 %v5850_v39  ;;  %v1278_v33 = vadd.f32 %v1214_v47, %v5852_v43  ;;  %v5854_v36 = vunpack.c.l.bf16 %v5853_v0  ;;  %1563 = vst [vmem:[%s4342_s20 + $0x160] sm:$0xff] %v1498_v60  ;;  %v5874_v60 = vld [vmem:[#allocation3_spill] sm:$0xff] }
 0x347   : > { %v1500_v63 = vadd.f32 %v1436_v48, %v1274_v49  ;;  %v5855_v26 = vunpack.c.h.bf16 %v5850_v39  ;;  %v1279_v54 = vadd.f32 %v1215_v5, %v5856_v58  ;;  %v5857_v3 = vunpack.c.h.bf16 %v5853_v0  ;;  %1564 = vst [vmem:[%s4342_s20 + $0x168] sm:$0xff] %v1499_v14  ;;  %v5875_v5 = vld [vmem:[#allocation146_spill] sm:$0xff] }
 0x348   : > { %v1216_v18 = vmul.f32 %v5656_v32, %v5851_v38  ;;  %v1438_v11 = vmul.f32 %v4240_v2, %v5854_v36  ;;  %v1501_v13 = vadd.f32 %v1437_v46, %v1275_v51  ;;  %v5859_v22 = vunpack.c.l.bf16 %v5858_v9 }
 0x349   : > { %v1217_v42 = vmul.f32 %v5656_v32, %v5855_v26  ;;  %v1439_v15 = vmul.f32 %v4240_v2, %v5857_v3  ;;  %v5862_v59 = vunpack.c.l.bf16 %v5861_v41  ;;  %v5863_v40 = vunpack.c.h.bf16 %v5858_v9  ;;  %1565 = vst [vmem:[%s4342_s20 + $0x170] sm:$0xff] %v1500_v63 }
 0x34a   : > { %v1218_v61 = vmul.f32 %v5656_v32, %v5859_v22  ;;  %v1280_v21 = vadd.f32 %v1216_v18, %v5860_v55  ;;  %v1502_v35 = vadd.f32 %v1438_v11, %v1276_v34  ;;  %v5865_v27 = vunpack.c.h.bf16 %v5861_v41  ;;  %1566 = vst.msk [vmem:[%s4342_s20 + $0x178] sm:$0xff] %vm1525_vm11, %v1501_v13  ;;  %v5879_v18 = vld [vmem:[#allocation147_spill] sm:$0xff] }
 0x34b   : > { %v1440_v7 = vmul.f32 %v4240_v2, %v5862_v59  ;;  %v1219_v30 = vmul.f32 %v5656_v32, %v5863_v40  ;;  %v1281_v49 = vadd.f32 %v1217_v42, %v5864_v53  ;;  %v1503_v23 = vadd.f32 %v1439_v15, %v1277_v1 }
 0x34c   : > { %v1441_v37 = vmul.f32 %v4240_v2, %v5865_v27  ;;  %v5867_v4 = vunpack.c.l.bf16 %v5866_v31  ;;  %v1282_v51 = vadd.f32 %v1218_v61, %v5868_v29  ;;  %v5870_v57 = vunpack.c.l.bf16 %v5869_v12  ;;  %1567 = vst [vmem:[%s4342_s20 + $0x180] sm:$0xff] %v1502_v35 }
 0x34d   : > { %v1504_v28 = vadd.f32 %v1440_v7, %v1278_v33  ;;  %v5871_v45 = vunpack.c.h.bf16 %v5866_v31  ;;  %v1283_v34 = vadd.f32 %v1219_v30, %v5872_v24  ;;  %v5873_v20 = vunpack.c.h.bf16 %v5869_v12  ;;  %1568 = vst [vmem:[%s4342_s20 + $0x188] sm:$0xff] %v1503_v23 }
 0x34e   : > { %v1220_v17 = vmul.f32 %v5656_v32, %v5867_v4  ;;  %v1442_v56 = vmul.f32 %v4240_v2, %v5870_v57  ;;  %v1505_v48 = vadd.f32 %v1441_v37, %v1279_v54  ;;  %v5876_v50 = vunpack.c.l.bf16 %v5875_v5 }
 0x34f   : > { %v1221_v47 = vmul.f32 %v5656_v32, %v5871_v45  ;;  %v1443_v16 = vmul.f32 %v4240_v2, %v5873_v20  ;;  %v5877_v32 = vld [vmem:[#allocation30_spill] sm:$0xff]  ;;  %v5878_v14 = vunpack.c.h.bf16 %v5875_v5  ;;  %v5880_v43 = vunpack.c.l.bf16 %v5879_v18  ;;  %1569 = vst [vmem:[%s4342_s20 + $0x190] sm:$0xff] %v1504_v28 }
 0x350   : > { %v1284_v25 = vadd.f32 %v1220_v17, %v5874_v60  ;;  %v1444_v1 = vmul.f32 %v4240_v2, %v5876_v50  ;;  %v1506_v62 = vadd.f32 %v1442_v56, %v1280_v21  ;;  %v5881_v36 = vunpack.c.h.bf16 %v5879_v18  ;;  %1570 = vst [vmem:[%s4342_s20 + $0x198] sm:$0xff] %v1505_v48 }
 0x351   : > { %v1285_v46 = vadd.f32 %v1221_v47, %v5877_v32  ;;  %v1445_v39 = vmul.f32 %v4240_v2, %v5878_v14  ;;  %v1507_v38 = vadd.f32 %v1443_v16, %v1281_v49  ;;  %v1446_v33 = vmul.f32 %v4240_v2, %v5880_v43 }
 0x352   : > { %v1508_v0 = vadd.f32 %v1444_v1, %v1282_v51  ;;  %v1447_v11 = vmul.f32 %v4240_v2, %v5881_v36  ;;  %1571 = vst [vmem:[%s4342_s20 + $0x1a0] sm:$0xff] %v1506_v62 }
 0x353   : > { %v1509_v63 = vadd.f32 %v1445_v39, %v1283_v34  ;;  %v1510_v26 = vadd.f32 %v1446_v33, %v1284_v25  ;;  %1572 = vst [vmem:[%s4342_s20 + $0x1a8] sm:$0xff] %v1507_v38 }
 0x354   : > { %v1511_v42 = vadd.f32 %v1447_v11, %v1285_v46  ;;  %1573 = vst [vmem:[%s4342_s20 + $0x1b0] sm:$0xff] %v1508_v0 }
 0x355   : > { %1574 = vst.msk [vmem:[%s4342_s20 + $0x1b8] sm:$0xff] %vm1525_vm11, %v1509_v63 }
 0x356   : > { %1575 = vst [vmem:[%s4342_s20 + $0x1c0] sm:$0xff] %v1510_v26 }
 0x357   : > { %1576 = vst [vmem:[%s4342_s20 + $0x1c8] sm:$0xff] %v1511_v42 }
 0x358 PF: > { %s17_s21 = sadd.s32 1, %s1828_s21  }
 0x359   : > { %p14_p4 = scmp.ge.s32.totalorder %s17_s21, 4  }
 0x35b   :  { %16 = sbr.rel (!%p14_p4) target bundleno = 1 (0x1), region = 91 }

</bundles_post_ra>
